<compile_context>
chip_gen: v6e
topology: v6e:2x2x1
jax: 0.10.0
libtpu: 0.0.40
codegen_flags: <defaults>
</compile_context>

<pallas_src>
import functools

import jax
import jax.numpy as jnp
from jax.experimental import pallas as pl
from jax.experimental.pallas import tpu as pltpu


def _conv3d_kernel(x_ref, w_ref, b_ref, o_ref, *,
                   kt, kh, kw, HWp, Wp, Lout, lane_chunk):
    """One batch of a stride-1 3-D convolution.

    x_ref : (1, Cin, Lp)            zero-padded volume, flat (Tp*Hp*Wp)+guard on lanes.
    w_ref : (kt*kh*kw, Cout, Cin)   one (Cout, Cin) matrix per tap.
    b_ref : (Cout, 1)               bias.
    o_ref : (1, Cout, Lout)         Lout = To*Hp*Wp "padded-plane" columns.
    """
    cout = o_ref.shape[1]
    k3 = kt * kh * kw

    bias_v = b_ref[...]                                   # (Cout, 1)
    w_taps = [w_ref[i] for i in range(k3)]                # tiny (Cout, Cin) tiles

    # Static lane offset of every tap (dt, dh, dw) -> dt*Hp*Wp + dh*Wp + dw.
    offs = [dt * HWp + dh * Wp + dw
            for dt in range(kt) for dh in range(kh) for dw in range(kw)]

    n_chunks = -(-Lout // lane_chunk)                     # static ceil-div
    for c in range(n_chunks):                             # static loop
        base = c * lane_chunk
        width = min(lane_chunk, Lout - base)              # static
        acc = jnp.zeros((cout, width), dtype=jnp.float32)
        for tap in range(k3):                             # static loop over taps
            sl = x_ref[0, :, pl.ds(base + offs[tap], width)]   # (Cin, width)
            acc += jnp.dot(w_taps[tap], sl,
                           preferred_element_type=jnp.float32)
        o_ref[0, :, pl.ds(base, width)] = (acc + bias_v).astype(o_ref.dtype)


def single_conv3d_block(x, weight, bias):
    """Pallas equivalent of SingleConv3DBlock(in, out, k).forward(x).

    x:      (B, Cin, T, H, W)  float32
    weight: (Cout, Cin, kt, kh, kw)
    bias:   (Cout,)
    returns (B, Cout, To, Ho, Wo)  (== (B, Cout, T, H, W) for odd kernels)
    """
    B, Cin, T, H, W = x.shape
    Cout, Cin2, kt, kh, kw = weight.shape
    assert Cin == Cin2
    pt, ph, pw = (kt - 1) // 2, (kh - 1) // 2, (kw - 1) // 2

    Tp, Hp, Wp = T + 2 * pt, H + 2 * ph, W + 2 * pw
    To, Ho, Wo = Tp - kt + 1, Hp - kh + 1, Wp - kw + 1   # == T, H, W for odd k
    HWp = Hp * Wp
    Lout = To * HWp                          # one lane per (padded-plane) output pos
    guard = (kh - 1) * Wp + (kw - 1)         # tail lanes read by the last taps
    Lp = Tp * HWp + guard

    # Halo-only zero padding + one small layout permute:
    # channels -> sublanes, flattened padded volume -> lanes.
    xp = jnp.pad(x, ((0, 0), (0, 0), (pt, pt), (ph, ph), (pw, pw)))
    xflat = xp.reshape(B, Cin, Tp * HWp)
    xflat = jnp.pad(xflat, ((0, 0), (0, 0), (0, guard)))          # (B, Cin, Lp)

    # (Cout, Cin, kt, kh, kw) -> (kt*kh*kw, Cout, Cin); tap order matches the
    # static loop order inside the kernel.
    w2 = jnp.transpose(weight, (2, 3, 4, 0, 1)).reshape(kt * kh * kw, Cout, Cin)
    w2 = w2.astype(jnp.float32)
    b2 = bias.reshape(Cout, 1).astype(jnp.float32)

    out = pl.pallas_call(
        functools.partial(_conv3d_kernel, kt=kt, kh=kh, kw=kw,
                          HWp=HWp, Wp=Wp, Lout=Lout,
                          lane_chunk=min(512, Lout)),
        out_shape=jax.ShapeDtypeStruct((B, Cout, Lout), jnp.float32),
        grid=(B,),
        in_specs=[
            # Full padded flat volume of one batch (resident across all taps).
            pl.BlockSpec((1, Cin, Lp), lambda b: (b, 0, 0)),
            pl.BlockSpec((kt * kh * kw, Cout, Cin), lambda b: (0, 0, 0)),
            pl.BlockSpec((Cout, 1), lambda b: (0, 0)),
        ],
        out_specs=pl.BlockSpec((1, Cout, Lout), lambda b: (b, 0, 0)),
        compiler_params=pltpu.CompilerParams(
            dimension_semantics=("parallel",),
            vmem_limit_bytes=32 * 1024 * 1024,
        ),
    )(xflat, w2, b2)

    # (B, Cout, To*Hp*Wp) -> (B, Cout, To, Hp, Wp) -> crop halo rows/cols.
    out = out.reshape(B, Cout, To, Hp, Wp)[:, :, :, :Ho, :Wo]
    return out


if __name__ == "__main__":
    # Small shapes consistent with SingleConv3DBlock: batch=2, in_planes=4,
    # out_planes=8, kernel=3, 8 frames at 16x16.
    B, Cin, Cout, T, H, W, ksz = 2, 4, 8, 8, 16, 16, 3

    key = jax.random.PRNGKey(0)
    kx, kw_, kb = jax.random.split(key, 3)
    x = jax.random.normal(kx, (B, Cin, T, H, W), jnp.float32)
    weight = 0.1 * jax.random.normal(kw_, (Cout, Cin, ksz, ksz, ksz), jnp.float32)
    bias = 0.1 * jax.random.normal(kb, (Cout,), jnp.float32)

    fwd = jax.jit(single_conv3d_block)
    out = fwd(x, weight, bias)
    jax.block_until_ready(out)

    # Pure-JAX reference with identical semantics (stride 1, pad (k-1)//2).
    p = (ksz - 1) // 2
    ref = jax.lax.conv_general_dilated(
        x, weight, window_strides=(1, 1, 1),
        padding=[(p, p), (p, p), (p, p)],
        dimension_numbers=("NCDHW", "OIDHW", "NCDHW"),
        precision=jax.lax.Precision.HIGHEST,
    ) + bias[None, :, None, None, None]

    assert out.shape == (B, Cout, T, H, W), out.shape
    assert bool(jnp.all(jnp.isfinite(out)))
    max_err = float(jnp.max(jnp.abs(out - ref)))
    assert max_err < 1e-3, f"max abs error vs reference conv3d: {max_err}"
    print("KERNEL_OK")
</pallas_src>

<mosaic_0001>
module attributes {stable_mosaic.version = 11 : i64} {
  func.func @_conv3d_kernel(%arg0: i32, %arg1: memref<1x4x3278xf32, #tpu.memory_space<vmem>>, %arg2: memref<27x8x4xf32, #tpu.memory_space<vmem>>, %arg3: memref<8x1xf32, #tpu.memory_space<vmem>>, %arg4: memref<1x8x2592xf32, #tpu.memory_space<vmem>>) attributes {dimension_semantics = [#tpu.dimension_semantics<parallel>], iteration_bounds = array<i64: 2>, scalar_prefetch = 0 : i64, scratch_operands = 0 : i64, tpu.core_type = #tpu.core_type<tc>, window_params = [{transform_indices = @transform_0, window_bounds = array<i64: 1, 4, 3278>}, {pipeline_mode = #tpu.pipeline_mode<synchronous>, transform_indices = @transform_1, window_bounds = array<i64: 27, 8, 4>}, {pipeline_mode = #tpu.pipeline_mode<synchronous>, transform_indices = @transform_2, window_bounds = array<i64: 8, 1>}, {transform_indices = @transform_3, window_bounds = array<i64: 1, 8, 2592>}]} {
    %c0 = arith.constant 0 : index
    %c0_0 = arith.constant 0 : index
    %0 = vector.load %arg3[%c0, %c0_0] : memref<8x1xf32, #tpu.memory_space<vmem>>, vector<8x1xf32>
    %c0_1 = arith.constant 0 : index
    %c0_2 = arith.constant 0 : index
    %c0_3 = arith.constant 0 : index
    %1 = vector.load %arg2[%c0_1, %c0_2, %c0_3] : memref<27x8x4xf32, #tpu.memory_space<vmem>>, vector<1x8x4xf32>
    %2 = vector.shape_cast %1 : vector<1x8x4xf32> to vector<8x4xf32>
    %c1 = arith.constant 1 : index
    %c0_4 = arith.constant 0 : index
    %c0_5 = arith.constant 0 : index
    %3 = vector.load %arg2[%c1, %c0_4, %c0_5] : memref<27x8x4xf32, #tpu.memory_space<vmem>>, vector<1x8x4xf32>
    %4 = vector.shape_cast %3 : vector<1x8x4xf32> to vector<8x4xf32>
    %c2 = arith.constant 2 : index
    %c0_6 = arith.constant 0 : index
    %c0_7 = arith.constant 0 : index
    %5 = vector.load %arg2[%c2, %c0_6, %c0_7] : memref<27x8x4xf32, #tpu.memory_space<vmem>>, vector<1x8x4xf32>
    %6 = vector.shape_cast %5 : vector<1x8x4xf32> to vector<8x4xf32>
    %c3 = arith.constant 3 : index
    %c0_8 = arith.constant 0 : index
    %c0_9 = arith.constant 0 : index
    %7 = vector.load %arg2[%c3, %c0_8, %c0_9] : memref<27x8x4xf32, #tpu.memory_space<vmem>>, vector<1x8x4xf32>
    %8 = vector.shape_cast %7 : vector<1x8x4xf32> to vector<8x4xf32>
    %c4 = arith.constant 4 : index
    %c0_10 = arith.constant 0 : index
    %c0_11 = arith.constant 0 : index
    %9 = vector.load %arg2[%c4, %c0_10, %c0_11] : memref<27x8x4xf32, #tpu.memory_space<vmem>>, vector<1x8x4xf32>
    %10 = vector.shape_cast %9 : vector<1x8x4xf32> to vector<8x4xf32>
    %c5 = arith.constant 5 : index
    %c0_12 = arith.constant 0 : index
    %c0_13 = arith.constant 0 : index
    %11 = vector.load %arg2[%c5, %c0_12, %c0_13] : memref<27x8x4xf32, #tpu.memory_space<vmem>>, vector<1x8x4xf32>
    %12 = vector.shape_cast %11 : vector<1x8x4xf32> to vector<8x4xf32>
    %c6 = arith.constant 6 : index
    %c0_14 = arith.constant 0 : index
    %c0_15 = arith.constant 0 : index
    %13 = vector.load %arg2[%c6, %c0_14, %c0_15] : memref<27x8x4xf32, #tpu.memory_space<vmem>>, vector<1x8x4xf32>
    %14 = vector.shape_cast %13 : vector<1x8x4xf32> to vector<8x4xf32>
    %c7 = arith.constant 7 : index
    %c0_16 = arith.constant 0 : index
    %c0_17 = arith.constant 0 : index
    %15 = vector.load %arg2[%c7, %c0_16, %c0_17] : memref<27x8x4xf32, #tpu.memory_space<vmem>>, vector<1x8x4xf32>
    %16 = vector.shape_cast %15 : vector<1x8x4xf32> to vector<8x4xf32>
    %c8 = arith.constant 8 : index
    %c0_18 = arith.constant 0 : index
    %c0_19 = arith.constant 0 : index
    %17 = vector.load %arg2[%c8, %c0_18, %c0_19] : memref<27x8x4xf32, #tpu.memory_space<vmem>>, vector<1x8x4xf32>
    %18 = vector.shape_cast %17 : vector<1x8x4xf32> to vector<8x4xf32>
    %c9 = arith.constant 9 : index
    %c0_20 = arith.constant 0 : index
    %c0_21 = arith.constant 0 : index
    %19 = vector.load %arg2[%c9, %c0_20, %c0_21] : memref<27x8x4xf32, #tpu.memory_space<vmem>>, vector<1x8x4xf32>
    %20 = vector.shape_cast %19 : vector<1x8x4xf32> to vector<8x4xf32>
    %c10 = arith.constant 10 : index
    %c0_22 = arith.constant 0 : index
    %c0_23 = arith.constant 0 : index
    %21 = vector.load %arg2[%c10, %c0_22, %c0_23] : memref<27x8x4xf32, #tpu.memory_space<vmem>>, vector<1x8x4xf32>
    %22 = vector.shape_cast %21 : vector<1x8x4xf32> to vector<8x4xf32>
    %c11 = arith.constant 11 : index
    %c0_24 = arith.constant 0 : index
    %c0_25 = arith.constant 0 : index
    %23 = vector.load %arg2[%c11, %c0_24, %c0_25] : memref<27x8x4xf32, #tpu.memory_space<vmem>>, vector<1x8x4xf32>
    %24 = vector.shape_cast %23 : vector<1x8x4xf32> to vector<8x4xf32>
    %c12 = arith.constant 12 : index
    %c0_26 = arith.constant 0 : index
    %c0_27 = arith.constant 0 : index
    %25 = vector.load %arg2[%c12, %c0_26, %c0_27] : memref<27x8x4xf32, #tpu.memory_space<vmem>>, vector<1x8x4xf32>
    %26 = vector.shape_cast %25 : vector<1x8x4xf32> to vector<8x4xf32>
    %c13 = arith.constant 13 : index
    %c0_28 = arith.constant 0 : index
    %c0_29 = arith.constant 0 : index
    %27 = vector.load %arg2[%c13, %c0_28, %c0_29] : memref<27x8x4xf32, #tpu.memory_space<vmem>>, vector<1x8x4xf32>
    %28 = vector.shape_cast %27 : vector<1x8x4xf32> to vector<8x4xf32>
    %c14 = arith.constant 14 : index
    %c0_30 = arith.constant 0 : index
    %c0_31 = arith.constant 0 : index
    %29 = vector.load %arg2[%c14, %c0_30, %c0_31] : memref<27x8x4xf32, #tpu.memory_space<vmem>>, vector<1x8x4xf32>
    %30 = vector.shape_cast %29 : vector<1x8x4xf32> to vector<8x4xf32>
    %c15 = arith.constant 15 : index
    %c0_32 = arith.constant 0 : index
    %c0_33 = arith.constant 0 : index
    %31 = vector.load %arg2[%c15, %c0_32, %c0_33] : memref<27x8x4xf32, #tpu.memory_space<vmem>>, vector<1x8x4xf32>
    %32 = vector.shape_cast %31 : vector<1x8x4xf32> to vector<8x4xf32>
    %c16 = arith.constant 16 : index
    %c0_34 = arith.constant 0 : index
    %c0_35 = arith.constant 0 : index
    %33 = vector.load %arg2[%c16, %c0_34, %c0_35] : memref<27x8x4xf32, #tpu.memory_space<vmem>>, vector<1x8x4xf32>
    %34 = vector.shape_cast %33 : vector<1x8x4xf32> to vector<8x4xf32>
    %c17 = arith.constant 17 : index
    %c0_36 = arith.constant 0 : index
    %c0_37 = arith.constant 0 : index
    %35 = vector.load %arg2[%c17, %c0_36, %c0_37] : memref<27x8x4xf32, #tpu.memory_space<vmem>>, vector<1x8x4xf32>
    %36 = vector.shape_cast %35 : vector<1x8x4xf32> to vector<8x4xf32>
    %c18 = arith.constant 18 : index
    %c0_38 = arith.constant 0 : index
    %c0_39 = arith.constant 0 : index
    %37 = vector.load %arg2[%c18, %c0_38, %c0_39] : memref<27x8x4xf32, #tpu.memory_space<vmem>>, vector<1x8x4xf32>
    %38 = vector.shape_cast %37 : vector<1x8x4xf32> to vector<8x4xf32>
    %c19 = arith.constant 19 : index
    %c0_40 = arith.constant 0 : index
    %c0_41 = arith.constant 0 : index
    %39 = vector.load %arg2[%c19, %c0_40, %c0_41] : memref<27x8x4xf32, #tpu.memory_space<vmem>>, vector<1x8x4xf32>
    %40 = vector.shape_cast %39 : vector<1x8x4xf32> to vector<8x4xf32>
    %c20 = arith.constant 20 : index
    %c0_42 = arith.constant 0 : index
    %c0_43 = arith.constant 0 : index
    %41 = vector.load %arg2[%c20, %c0_42, %c0_43] : memref<27x8x4xf32, #tpu.memory_space<vmem>>, vector<1x8x4xf32>
    %42 = vector.shape_cast %41 : vector<1x8x4xf32> to vector<8x4xf32>
    %c21 = arith.constant 21 : index
    %c0_44 = arith.constant 0 : index
    %c0_45 = arith.constant 0 : index
    %43 = vector.load %arg2[%c21, %c0_44, %c0_45] : memref<27x8x4xf32, #tpu.memory_space<vmem>>, vector<1x8x4xf32>
    %44 = vector.shape_cast %43 : vector<1x8x4xf32> to vector<8x4xf32>
    %c22 = arith.constant 22 : index
    %c0_46 = arith.constant 0 : index
    %c0_47 = arith.constant 0 : index
    %45 = vector.load %arg2[%c22, %c0_46, %c0_47] : memref<27x8x4xf32, #tpu.memory_space<vmem>>, vector<1x8x4xf32>
    %46 = vector.shape_cast %45 : vector<1x8x4xf32> to vector<8x4xf32>
    %c23 = arith.constant 23 : index
    %c0_48 = arith.constant 0 : index
    %c0_49 = arith.constant 0 : index
    %47 = vector.load %arg2[%c23, %c0_48, %c0_49] : memref<27x8x4xf32, #tpu.memory_space<vmem>>, vector<1x8x4xf32>
    %48 = vector.shape_cast %47 : vector<1x8x4xf32> to vector<8x4xf32>
    %c24 = arith.constant 24 : index
    %c0_50 = arith.constant 0 : index
    %c0_51 = arith.constant 0 : index
    %49 = vector.load %arg2[%c24, %c0_50, %c0_51] : memref<27x8x4xf32, #tpu.memory_space<vmem>>, vector<1x8x4xf32>
    %50 = vector.shape_cast %49 : vector<1x8x4xf32> to vector<8x4xf32>
    %c25 = arith.constant 25 : index
    %c0_52 = arith.constant 0 : index
    %c0_53 = arith.constant 0 : index
    %51 = vector.load %arg2[%c25, %c0_52, %c0_53] : memref<27x8x4xf32, #tpu.memory_space<vmem>>, vector<1x8x4xf32>
    %52 = vector.shape_cast %51 : vector<1x8x4xf32> to vector<8x4xf32>
    %c26 = arith.constant 26 : index
    %c0_54 = arith.constant 0 : index
    %c0_55 = arith.constant 0 : index
    %53 = vector.load %arg2[%c26, %c0_54, %c0_55] : memref<27x8x4xf32, #tpu.memory_space<vmem>>, vector<1x8x4xf32>
    %54 = vector.shape_cast %53 : vector<1x8x4xf32> to vector<8x4xf32>
    %cst = arith.constant 0.000000e+00 : f32
    %55 = vector.broadcast %cst : f32 to vector<8x512xf32>
    %c0_56 = arith.constant 0 : index
    %c0_57 = arith.constant 0 : index
    %c0_58 = arith.constant 0 : index
    %56 = vector.load %arg1[%c0_56, %c0_57, %c0_58] : memref<1x4x3278xf32, #tpu.memory_space<vmem>>, vector<1x4x512xf32>
    %57 = vector.shape_cast %56 : vector<1x4x512xf32> to vector<4x512xf32>
    %cst_59 = arith.constant dense<0.000000e+00> : vector<8x512xf32>
    %58 = tpu.matmul %2, %57, %cst_59 {dimension_numbers = #tpu.dot_dimension_numbers<[1], [0], [0], [1], [0, 0, 1, 1], [], []>} : vector<8x4xf32>, vector<4x512xf32>, vector<8x512xf32> -> vector<8x512xf32>
    %59 = arith.addf %55, %58 : vector<8x512xf32>
    %c0_60 = arith.constant 0 : index
    %c0_61 = arith.constant 0 : index
    %c1_62 = arith.constant 1 : index
    %60 = vector.load %arg1[%c0_60, %c0_61, %c1_62] : memref<1x4x3278xf32, #tpu.memory_space<vmem>>, vector<1x4x512xf32>
    %61 = vector.shape_cast %60 : vector<1x4x512xf32> to vector<4x512xf32>
    %cst_63 = arith.constant dense<0.000000e+00> : vector<8x512xf32>
    %62 = tpu.matmul %4, %61, %cst_63 {dimension_numbers = #tpu.dot_dimension_numbers<[1], [0], [0], [1], [0, 0, 1, 1], [], []>} : vector<8x4xf32>, vector<4x512xf32>, vector<8x512xf32> -> vector<8x512xf32>
    %63 = arith.addf %59, %62 : vector<8x512xf32>
    %c0_64 = arith.constant 0 : index
    %c0_65 = arith.constant 0 : index
    %c2_66 = arith.constant 2 : index
    %64 = vector.load %arg1[%c0_64, %c0_65, %c2_66] : memref<1x4x3278xf32, #tpu.memory_space<vmem>>, vector<1x4x512xf32>
    %65 = vector.shape_cast %64 : vector<1x4x512xf32> to vector<4x512xf32>
    %cst_67 = arith.constant dense<0.000000e+00> : vector<8x512xf32>
    %66 = tpu.matmul %6, %65, %cst_67 {dimension_numbers = #tpu.dot_dimension_numbers<[1], [0], [0], [1], [0, 0, 1, 1], [], []>} : vector<8x4xf32>, vector<4x512xf32>, vector<8x512xf32> -> vector<8x512xf32>
    %67 = arith.addf %63, %66 : vector<8x512xf32>
    %c0_68 = arith.constant 0 : index
    %c0_69 = arith.constant 0 : index
    %c18_70 = arith.constant 18 : index
    %68 = vector.load %arg1[%c0_68, %c0_69, %c18_70] : memref<1x4x3278xf32, #tpu.memory_space<vmem>>, vector<1x4x512xf32>
    %69 = vector.shape_cast %68 : vector<1x4x512xf32> to vector<4x512xf32>
    %cst_71 = arith.constant dense<0.000000e+00> : vector<8x512xf32>
    %70 = tpu.matmul %8, %69, %cst_71 {dimension_numbers = #tpu.dot_dimension_numbers<[1], [0], [0], [1], [0, 0, 1, 1], [], []>} : vector<8x4xf32>, vector<4x512xf32>, vector<8x512xf32> -> vector<8x512xf32>
    %71 = arith.addf %67, %70 : vector<8x512xf32>
    %c0_72 = arith.constant 0 : index
    %c0_73 = arith.constant 0 : index
    %c19_74 = arith.constant 19 : index
    %72 = vector.load %arg1[%c0_72, %c0_73, %c19_74] : memref<1x4x3278xf32, #tpu.memory_space<vmem>>, vector<1x4x512xf32>
    %73 = vector.shape_cast %72 : vector<1x4x512xf32> to vector<4x512xf32>
    %cst_75 = arith.constant dense<0.000000e+00> : vector<8x512xf32>
    %74 = tpu.matmul %10, %73, %cst_75 {dimension_numbers = #tpu.dot_dimension_numbers<[1], [0], [0], [1], [0, 0, 1, 1], [], []>} : vector<8x4xf32>, vector<4x512xf32>, vector<8x512xf32> -> vector<8x512xf32>
    %75 = arith.addf %71, %74 : vector<8x512xf32>
    %c0_76 = arith.constant 0 : index
    %c0_77 = arith.constant 0 : index
    %c20_78 = arith.constant 20 : index
    %76 = vector.load %arg1[%c0_76, %c0_77, %c20_78] : memref<1x4x3278xf32, #tpu.memory_space<vmem>>, vector<1x4x512xf32>
    %77 = vector.shape_cast %76 : vector<1x4x512xf32> to vector<4x512xf32>
    %cst_79 = arith.constant dense<0.000000e+00> : vector<8x512xf32>
    %78 = tpu.matmul %12, %77, %cst_79 {dimension_numbers = #tpu.dot_dimension_numbers<[1], [0], [0], [1], [0, 0, 1, 1], [], []>} : vector<8x4xf32>, vector<4x512xf32>, vector<8x512xf32> -> vector<8x512xf32>
    %79 = arith.addf %75, %78 : vector<8x512xf32>
    %c0_80 = arith.constant 0 : index
    %c0_81 = arith.constant 0 : index
    %c36 = arith.constant 36 : index
    %80 = vector.load %arg1[%c0_80, %c0_81, %c36] : memref<1x4x3278xf32, #tpu.memory_space<vmem>>, vector<1x4x512xf32>
    %81 = vector.shape_cast %80 : vector<1x4x512xf32> to vector<4x512xf32>
    %cst_82 = arith.constant dense<0.000000e+00> : vector<8x512xf32>
    %82 = tpu.matmul %14, %81, %cst_82 {dimension_numbers = #tpu.dot_dimension_numbers<[1], [0], [0], [1], [0, 0, 1, 1], [], []>} : vector<8x4xf32>, vector<4x512xf32>, vector<8x512xf32> -> vector<8x512xf32>
    %83 = arith.addf %79, %82 : vector<8x512xf32>
    %c0_83 = arith.constant 0 : index
    %c0_84 = arith.constant 0 : index
    %c37 = arith.constant 37 : index
    %84 = vector.load %arg1[%c0_83, %c0_84, %c37] : memref<1x4x3278xf32, #tpu.memory_space<vmem>>, vector<1x4x512xf32>
    %85 = vector.shape_cast %84 : vector<1x4x512xf32> to vector<4x512xf32>
    %cst_85 = arith.constant dense<0.000000e+00> : vector<8x512xf32>
    %86 = tpu.matmul %16, %85, %cst_85 {dimension_numbers = #tpu.dot_dimension_numbers<[1], [0], [0], [1], [0, 0, 1, 1], [], []>} : vector<8x4xf32>, vector<4x512xf32>, vector<8x512xf32> -> vector<8x512xf32>
    %87 = arith.addf %83, %86 : vector<8x512xf32>
    %c0_86 = arith.constant 0 : index
    %c0_87 = arith.constant 0 : index
    %c38 = arith.constant 38 : index
    %88 = vector.load %arg1[%c0_86, %c0_87, %c38] : memref<1x4x3278xf32, #tpu.memory_space<vmem>>, vector<1x4x512xf32>
    %89 = vector.shape_cast %88 : vector<1x4x512xf32> to vector<4x512xf32>
    %cst_88 = arith.constant dense<0.000000e+00> : vector<8x512xf32>
    %90 = tpu.matmul %18, %89, %cst_88 {dimension_numbers = #tpu.dot_dimension_numbers<[1], [0], [0], [1], [0, 0, 1, 1], [], []>} : vector<8x4xf32>, vector<4x512xf32>, vector<8x512xf32> -> vector<8x512xf32>
    %91 = arith.addf %87, %90 : vector<8x512xf32>
    %c0_89 = arith.constant 0 : index
    %c0_90 = arith.constant 0 : index
    %c324 = arith.constant 324 : index
    %92 = vector.load %arg1[%c0_89, %c0_90, %c324] : memref<1x4x3278xf32, #tpu.memory_space<vmem>>, vector<1x4x512xf32>
    %93 = vector.shape_cast %92 : vector<1x4x512xf32> to vector<4x512xf32>
    %cst_91 = arith.constant dense<0.000000e+00> : vector<8x512xf32>
    %94 = tpu.matmul %20, %93, %cst_91 {dimension_numbers = #tpu.dot_dimension_numbers<[1], [0], [0], [1], [0, 0, 1, 1], [], []>} : vector<8x4xf32>, vector<4x512xf32>, vector<8x512xf32> -> vector<8x512xf32>
    %95 = arith.addf %91, %94 : vector<8x512xf32>
    %c0_92 = arith.constant 0 : index
    %c0_93 = arith.constant 0 : index
    %c325 = arith.constant 325 : index
    %96 = vector.load %arg1[%c0_92, %c0_93, %c325] : memref<1x4x3278xf32, #tpu.memory_space<vmem>>, vector<1x4x512xf32>
    %97 = vector.shape_cast %96 : vector<1x4x512xf32> to vector<4x512xf32>
    %cst_94 = arith.constant dense<0.000000e+00> : vector<8x512xf32>
    %98 = tpu.matmul %22, %97, %cst_94 {dimension_numbers = #tpu.dot_dimension_numbers<[1], [0], [0], [1], [0, 0, 1, 1], [], []>} : vector<8x4xf32>, vector<4x512xf32>, vector<8x512xf32> -> vector<8x512xf32>
    %99 = arith.addf %95, %98 : vector<8x512xf32>
    %c0_95 = arith.constant 0 : index
    %c0_96 = arith.constant 0 : index
    %c326 = arith.constant 326 : index
    %100 = vector.load %arg1[%c0_95, %c0_96, %c326] : memref<1x4x3278xf32, #tpu.memory_space<vmem>>, vector<1x4x512xf32>
    %101 = vector.shape_cast %100 : vector<1x4x512xf32> to vector<4x512xf32>
    %cst_97 = arith.constant dense<0.000000e+00> : vector<8x512xf32>
    %102 = tpu.matmul %24, %101, %cst_97 {dimension_numbers = #tpu.dot_dimension_numbers<[1], [0], [0], [1], [0, 0, 1, 1], [], []>} : vector<8x4xf32>, vector<4x512xf32>, vector<8x512xf32> -> vector<8x512xf32>
    %103 = arith.addf %99, %102 : vector<8x512xf32>
    %c0_98 = arith.constant 0 : index
    %c0_99 = arith.constant 0 : index
    %c342 = arith.constant 342 : index
    %104 = vector.load %arg1[%c0_98, %c0_99, %c342] : memref<1x4x3278xf32, #tpu.memory_space<vmem>>, vector<1x4x512xf32>
    %105 = vector.shape_cast %104 : vector<1x4x512xf32> to vector<4x512xf32>
    %cst_100 = arith.constant dense<0.000000e+00> : vector<8x512xf32>
    %106 = tpu.matmul %26, %105, %cst_100 {dimension_numbers = #tpu.dot_dimension_numbers<[1], [0], [0], [1], [0, 0, 1, 1], [], []>} : vector<8x4xf32>, vector<4x512xf32>, vector<8x512xf32> -> vector<8x512xf32>
    %107 = arith.addf %103, %106 : vector<8x512xf32>
    %c0_101 = arith.constant 0 : index
    %c0_102 = arith.constant 0 : index
    %c343 = arith.constant 343 : index
    %108 = vector.load %arg1[%c0_101, %c0_102, %c343] : memref<1x4x3278xf32, #tpu.memory_space<vmem>>, vector<1x4x512xf32>
    %109 = vector.shape_cast %108 : vector<1x4x512xf32> to vector<4x512xf32>
    %cst_103 = arith.constant dense<0.000000e+00> : vector<8x512xf32>
    %110 = tpu.matmul %28, %109, %cst_103 {dimension_numbers = #tpu.dot_dimension_numbers<[1], [0], [0], [1], [0, 0, 1, 1], [], []>} : vector<8x4xf32>, vector<4x512xf32>, vector<8x512xf32> -> vector<8x512xf32>
    %111 = arith.addf %107, %110 : vector<8x512xf32>
    %c0_104 = arith.constant 0 : index
    %c0_105 = arith.constant 0 : index
    %c344 = arith.constant 344 : index
    %112 = vector.load %arg1[%c0_104, %c0_105, %c344] : memref<1x4x3278xf32, #tpu.memory_space<vmem>>, vector<1x4x512xf32>
    %113 = vector.shape_cast %112 : vector<1x4x512xf32> to vector<4x512xf32>
    %cst_106 = arith.constant dense<0.000000e+00> : vector<8x512xf32>
    %114 = tpu.matmul %30, %113, %cst_106 {dimension_numbers = #tpu.dot_dimension_numbers<[1], [0], [0], [1], [0, 0, 1, 1], [], []>} : vector<8x4xf32>, vector<4x512xf32>, vector<8x512xf32> -> vector<8x512xf32>
    %115 = arith.addf %111, %114 : vector<8x512xf32>
    %c0_107 = arith.constant 0 : index
    %c0_108 = arith.constant 0 : index
    %c360 = arith.constant 360 : index
    %116 = vector.load %arg1[%c0_107, %c0_108, %c360] : memref<1x4x3278xf32, #tpu.memory_space<vmem>>, vector<1x4x512xf32>
    %117 = vector.shape_cast %116 : vector<1x4x512xf32> to vector<4x512xf32>
    %cst_109 = arith.constant dense<0.000000e+00> : vector<8x512xf32>
    %118 = tpu.matmul %32, %117, %cst_109 {dimension_numbers = #tpu.dot_dimension_numbers<[1], [0], [0], [1], [0, 0, 1, 1], [], []>} : vector<8x4xf32>, vector<4x512xf32>, vector<8x512xf32> -> vector<8x512xf32>
    %119 = arith.addf %115, %118 : vector<8x512xf32>
    %c0_110 = arith.constant 0 : index
    %c0_111 = arith.constant 0 : index
    %c361 = arith.constant 361 : index
    %120 = vector.load %arg1[%c0_110, %c0_111, %c361] : memref<1x4x3278xf32, #tpu.memory_space<vmem>>, vector<1x4x512xf32>
    %121 = vector.shape_cast %120 : vector<1x4x512xf32> to vector<4x512xf32>
    %cst_112 = arith.constant dense<0.000000e+00> : vector<8x512xf32>
    %122 = tpu.matmul %34, %121, %cst_112 {dimension_numbers = #tpu.dot_dimension_numbers<[1], [0], [0], [1], [0, 0, 1, 1], [], []>} : vector<8x4xf32>, vector<4x512xf32>, vector<8x512xf32> -> vector<8x512xf32>
    %123 = arith.addf %119, %122 : vector<8x512xf32>
    %c0_113 = arith.constant 0 : index
    %c0_114 = arith.constant 0 : index
    %c362 = arith.constant 362 : index
    %124 = vector.load %arg1[%c0_113, %c0_114, %c362] : memref<1x4x3278xf32, #tpu.memory_space<vmem>>, vector<1x4x512xf32>
    %125 = vector.shape_cast %124 : vector<1x4x512xf32> to vector<4x512xf32>
    %cst_115 = arith.constant dense<0.000000e+00> : vector<8x512xf32>
    %126 = tpu.matmul %36, %125, %cst_115 {dimension_numbers = #tpu.dot_dimension_numbers<[1], [0], [0], [1], [0, 0, 1, 1], [], []>} : vector<8x4xf32>, vector<4x512xf32>, vector<8x512xf32> -> vector<8x512xf32>
    %127 = arith.addf %123, %126 : vector<8x512xf32>
    %c0_116 = arith.constant 0 : index
    %c0_117 = arith.constant 0 : index
    %c648 = arith.constant 648 : index
    %128 = vector.load %arg1[%c0_116, %c0_117, %c648] : memref<1x4x3278xf32, #tpu.memory_space<vmem>>, vector<1x4x512xf32>
    %129 = vector.shape_cast %128 : vector<1x4x512xf32> to vector<4x512xf32>
    %cst_118 = arith.constant dense<0.000000e+00> : vector<8x512xf32>
    %130 = tpu.matmul %38, %129, %cst_118 {dimension_numbers = #tpu.dot_dimension_numbers<[1], [0], [0], [1], [0, 0, 1, 1], [], []>} : vector<8x4xf32>, vector<4x512xf32>, vector<8x512xf32> -> vector<8x512xf32>
    %131 = arith.addf %127, %130 : vector<8x512xf32>
    %c0_119 = arith.constant 0 : index
    %c0_120 = arith.constant 0 : index
    %c649 = arith.constant 649 : index
    %132 = vector.load %arg1[%c0_119, %c0_120, %c649] : memref<1x4x3278xf32, #tpu.memory_space<vmem>>, vector<1x4x512xf32>
    %133 = vector.shape_cast %132 : vector<1x4x512xf32> to vector<4x512xf32>
    %cst_121 = arith.constant dense<0.000000e+00> : vector<8x512xf32>
    %134 = tpu.matmul %40, %133, %cst_121 {dimension_numbers = #tpu.dot_dimension_numbers<[1], [0], [0], [1], [0, 0, 1, 1], [], []>} : vector<8x4xf32>, vector<4x512xf32>, vector<8x512xf32> -> vector<8x512xf32>
    %135 = arith.addf %131, %134 : vector<8x512xf32>
    %c0_122 = arith.constant 0 : index
    %c0_123 = arith.constant 0 : index
    %c650 = arith.constant 650 : index
    %136 = vector.load %arg1[%c0_122, %c0_123, %c650] : memref<1x4x3278xf32, #tpu.memory_space<vmem>>, vector<1x4x512xf32>
    %137 = vector.shape_cast %136 : vector<1x4x512xf32> to vector<4x512xf32>
    %cst_124 = arith.constant dense<0.000000e+00> : vector<8x512xf32>
    %138 = tpu.matmul %42, %137, %cst_124 {dimension_numbers = #tpu.dot_dimension_numbers<[1], [0], [0], [1], [0, 0, 1, 1], [], []>} : vector<8x4xf32>, vector<4x512xf32>, vector<8x512xf32> -> vector<8x512xf32>
    %139 = arith.addf %135, %138 : vector<8x512xf32>
    %c0_125 = arith.constant 0 : index
    %c0_126 = arith.constant 0 : index
    %c666 = arith.constant 666 : index
    %140 = vector.load %arg1[%c0_125, %c0_126, %c666] : memref<1x4x3278xf32, #tpu.memory_space<vmem>>, vector<1x4x512xf32>
    %141 = vector.shape_cast %140 : vector<1x4x512xf32> to vector<4x512xf32>
    %cst_127 = arith.constant dense<0.000000e+00> : vector<8x512xf32>
    %142 = tpu.matmul %44, %141, %cst_127 {dimension_numbers = #tpu.dot_dimension_numbers<[1], [0], [0], [1], [0, 0, 1, 1], [], []>} : vector<8x4xf32>, vector<4x512xf32>, vector<8x512xf32> -> vector<8x512xf32>
    %143 = arith.addf %139, %142 : vector<8x512xf32>
    %c0_128 = arith.constant 0 : index
    %c0_129 = arith.constant 0 : index
    %c667 = arith.constant 667 : index
    %144 = vector.load %arg1[%c0_128, %c0_129, %c667] : memref<1x4x3278xf32, #tpu.memory_space<vmem>>, vector<1x4x512xf32>
    %145 = vector.shape_cast %144 : vector<1x4x512xf32> to vector<4x512xf32>
    %cst_130 = arith.constant dense<0.000000e+00> : vector<8x512xf32>
    %146 = tpu.matmul %46, %145, %cst_130 {dimension_numbers = #tpu.dot_dimension_numbers<[1], [0], [0], [1], [0, 0, 1, 1], [], []>} : vector<8x4xf32>, vector<4x512xf32>, vector<8x512xf32> -> vector<8x512xf32>
    %147 = arith.addf %143, %146 : vector<8x512xf32>
    %c0_131 = arith.constant 0 : index
    %c0_132 = arith.constant 0 : index
    %c668 = arith.constant 668 : index
    %148 = vector.load %arg1[%c0_131, %c0_132, %c668] : memref<1x4x3278xf32, #tpu.memory_space<vmem>>, vector<1x4x512xf32>
    %149 = vector.shape_cast %148 : vector<1x4x512xf32> to vector<4x512xf32>
    %cst_133 = arith.constant dense<0.000000e+00> : vector<8x512xf32>
    %150 = tpu.matmul %48, %149, %cst_133 {dimension_numbers = #tpu.dot_dimension_numbers<[1], [0], [0], [1], [0, 0, 1, 1], [], []>} : vector<8x4xf32>, vector<4x512xf32>, vector<8x512xf32> -> vector<8x512xf32>
    %151 = arith.addf %147, %150 : vector<8x512xf32>
    %c0_134 = arith.constant 0 : index
    %c0_135 = arith.constant 0 : index
    %c684 = arith.constant 684 : index
    %152 = vector.load %arg1[%c0_134, %c0_135, %c684] : memref<1x4x3278xf32, #tpu.memory_space<vmem>>, vector<1x4x512xf32>
    %153 = vector.shape_cast %152 : vector<1x4x512xf32> to vector<4x512xf32>
    %cst_136 = arith.constant dense<0.000000e+00> : vector<8x512xf32>
    %154 = tpu.matmul %50, %153, %cst_136 {dimension_numbers = #tpu.dot_dimension_numbers<[1], [0], [0], [1], [0, 0, 1, 1], [], []>} : vector<8x4xf32>, vector<4x512xf32>, vector<8x512xf32> -> vector<8x512xf32>
    %155 = arith.addf %151, %154 : vector<8x512xf32>
    %c0_137 = arith.constant 0 : index
    %c0_138 = arith.constant 0 : index
    %c685 = arith.constant 685 : index
    %156 = vector.load %arg1[%c0_137, %c0_138, %c685] : memref<1x4x3278xf32, #tpu.memory_space<vmem>>, vector<1x4x512xf32>
    %157 = vector.shape_cast %156 : vector<1x4x512xf32> to vector<4x512xf32>
    %cst_139 = arith.constant dense<0.000000e+00> : vector<8x512xf32>
    %158 = tpu.matmul %52, %157, %cst_139 {dimension_numbers = #tpu.dot_dimension_numbers<[1], [0], [0], [1], [0, 0, 1, 1], [], []>} : vector<8x4xf32>, vector<4x512xf32>, vector<8x512xf32> -> vector<8x512xf32>
    %159 = arith.addf %155, %158 : vector<8x512xf32>
    %c0_140 = arith.constant 0 : index
    %c0_141 = arith.constant 0 : index
    %c686 = arith.constant 686 : index
    %160 = vector.load %arg1[%c0_140, %c0_141, %c686] : memref<1x4x3278xf32, #tpu.memory_space<vmem>>, vector<1x4x512xf32>
    %161 = vector.shape_cast %160 : vector<1x4x512xf32> to vector<4x512xf32>
    %cst_142 = arith.constant dense<0.000000e+00> : vector<8x512xf32>
    %162 = tpu.matmul %54, %161, %cst_142 {dimension_numbers = #tpu.dot_dimension_numbers<[1], [0], [0], [1], [0, 0, 1, 1], [], []>} : vector<8x4xf32>, vector<4x512xf32>, vector<8x512xf32> -> vector<8x512xf32>
    %163 = arith.addf %159, %162 : vector<8x512xf32>
    %164 = vector.broadcast %0 : vector<8x1xf32> to vector<8x512xf32>
    %165 = arith.addf %163, %164 : vector<8x512xf32>
    %c0_143 = arith.constant 0 : index
    %c0_144 = arith.constant 0 : index
    %c0_145 = arith.constant 0 : index
    %166 = vector.load %arg4[%c0_143, %c0_144, %c0_145] : memref<1x8x2592xf32, #tpu.memory_space<vmem>>, vector<1x8x512xf32>
    %167 = vector.shape_cast %166 : vector<1x8x512xf32> to vector<8x512xf32>
    %168 = vector.shape_cast %165 : vector<8x512xf32> to vector<1x8x512xf32>
    tpu.vector_store %arg4[%c0_143, %c0_144, %c0_145], %168 {strides = array<i32>} : memref<1x8x2592xf32, #tpu.memory_space<vmem>>, vector<1x8x512xf32>,
    %cst_146 = arith.constant 0.000000e+00 : f32
    %169 = vector.broadcast %cst_146 : f32 to vector<8x512xf32>
    %c0_147 = arith.constant 0 : index
    %c0_148 = arith.constant 0 : index
    %c512 = arith.constant 512 : index
    %170 = vector.load %arg1[%c0_147, %c0_148, %c512] : memref<1x4x3278xf32, #tpu.memory_space<vmem>>, vector<1x4x512xf32>
    %171 = vector.shape_cast %170 : vector<1x4x512xf32> to vector<4x512xf32>
    %cst_149 = arith.constant dense<0.000000e+00> : vector<8x512xf32>
    %172 = tpu.matmul %2, %171, %cst_149 {dimension_numbers = #tpu.dot_dimension_numbers<[1], [0], [0], [1], [0, 0, 1, 1], [], []>} : vector<8x4xf32>, vector<4x512xf32>, vector<8x512xf32> -> vector<8x512xf32>
    %173 = arith.addf %169, %172 : vector<8x512xf32>
    %c0_150 = arith.constant 0 : index
    %c0_151 = arith.constant 0 : index
    %c513 = arith.constant 513 : index
    %174 = vector.load %arg1[%c0_150, %c0_151, %c513] : memref<1x4x3278xf32, #tpu.memory_space<vmem>>, vector<1x4x512xf32>
    %175 = vector.shape_cast %174 : vector<1x4x512xf32> to vector<4x512xf32>
    %cst_152 = arith.constant dense<0.000000e+00> : vector<8x512xf32>
    %176 = tpu.matmul %4, %175, %cst_152 {dimension_numbers = #tpu.dot_dimension_numbers<[1], [0], [0], [1], [0, 0, 1, 1], [], []>} : vector<8x4xf32>, vector<4x512xf32>, vector<8x512xf32> -> vector<8x512xf32>
    %177 = arith.addf %173, %176 : vector<8x512xf32>
    %c0_153 = arith.constant 0 : index
    %c0_154 = arith.constant 0 : index
    %c514 = arith.constant 514 : index
    %178 = vector.load %arg1[%c0_153, %c0_154, %c514] : memref<1x4x3278xf32, #tpu.memory_space<vmem>>, vector<1x4x512xf32>
    %179 = vector.shape_cast %178 : vector<1x4x512xf32> to vector<4x512xf32>
    %cst_155 = arith.constant dense<0.000000e+00> : vector<8x512xf32>
    %180 = tpu.matmul %6, %179, %cst_155 {dimension_numbers = #tpu.dot_dimension_numbers<[1], [0], [0], [1], [0, 0, 1, 1], [], []>} : vector<8x4xf32>, vector<4x512xf32>, vector<8x512xf32> -> vector<8x512xf32>
    %181 = arith.addf %177, %180 : vector<8x512xf32>
    %c0_156 = arith.constant 0 : index
    %c0_157 = arith.constant 0 : index
    %c530 = arith.constant 530 : index
    %182 = vector.load %arg1[%c0_156, %c0_157, %c530] : memref<1x4x3278xf32, #tpu.memory_space<vmem>>, vector<1x4x512xf32>
    %183 = vector.shape_cast %182 : vector<1x4x512xf32> to vector<4x512xf32>
    %cst_158 = arith.constant dense<0.000000e+00> : vector<8x512xf32>
    %184 = tpu.matmul %8, %183, %cst_158 {dimension_numbers = #tpu.dot_dimension_numbers<[1], [0], [0], [1], [0, 0, 1, 1], [], []>} : vector<8x4xf32>, vector<4x512xf32>, vector<8x512xf32> -> vector<8x512xf32>
    %185 = arith.addf %181, %184 : vector<8x512xf32>
    %c0_159 = arith.constant 0 : index
    %c0_160 = arith.constant 0 : index
    %c531 = arith.constant 531 : index
    %186 = vector.load %arg1[%c0_159, %c0_160, %c531] : memref<1x4x3278xf32, #tpu.memory_space<vmem>>, vector<1x4x512xf32>
    %187 = vector.shape_cast %186 : vector<1x4x512xf32> to vector<4x512xf32>
    %cst_161 = arith.constant dense<0.000000e+00> : vector<8x512xf32>
    %188 = tpu.matmul %10, %187, %cst_161 {dimension_numbers = #tpu.dot_dimension_numbers<[1], [0], [0], [1], [0, 0, 1, 1], [], []>} : vector<8x4xf32>, vector<4x512xf32>, vector<8x512xf32> -> vector<8x512xf32>
    %189 = arith.addf %185, %188 : vector<8x512xf32>
    %c0_162 = arith.constant 0 : index
    %c0_163 = arith.constant 0 : index
    %c532 = arith.constant 532 : index
    %190 = vector.load %arg1[%c0_162, %c0_163, %c532] : memref<1x4x3278xf32, #tpu.memory_space<vmem>>, vector<1x4x512xf32>
    %191 = vector.shape_cast %190 : vector<1x4x512xf32> to vector<4x512xf32>
    %cst_164 = arith.constant dense<0.000000e+00> : vector<8x512xf32>
    %192 = tpu.matmul %12, %191, %cst_164 {dimension_numbers = #tpu.dot_dimension_numbers<[1], [0], [0], [1], [0, 0, 1, 1], [], []>} : vector<8x4xf32>, vector<4x512xf32>, vector<8x512xf32> -> vector<8x512xf32>
    %193 = arith.addf %189, %192 : vector<8x512xf32>
    %c0_165 = arith.constant 0 : index
    %c0_166 = arith.constant 0 : index
    %c548 = arith.constant 548 : index
    %194 = vector.load %arg1[%c0_165, %c0_166, %c548] : memref<1x4x3278xf32, #tpu.memory_space<vmem>>, vector<1x4x512xf32>
    %195 = vector.shape_cast %194 : vector<1x4x512xf32> to vector<4x512xf32>
    %cst_167 = arith.constant dense<0.000000e+00> : vector<8x512xf32>
    %196 = tpu.matmul %14, %195, %cst_167 {dimension_numbers = #tpu.dot_dimension_numbers<[1], [0], [0], [1], [0, 0, 1, 1], [], []>} : vector<8x4xf32>, vector<4x512xf32>, vector<8x512xf32> -> vector<8x512xf32>
    %197 = arith.addf %193, %196 : vector<8x512xf32>
    %c0_168 = arith.constant 0 : index
    %c0_169 = arith.constant 0 : index
    %c549 = arith.constant 549 : index
    %198 = vector.load %arg1[%c0_168, %c0_169, %c549] : memref<1x4x3278xf32, #tpu.memory_space<vmem>>, vector<1x4x512xf32>
    %199 = vector.shape_cast %198 : vector<1x4x512xf32> to vector<4x512xf32>
    %cst_170 = arith.constant dense<0.000000e+00> : vector<8x512xf32>
    %200 = tpu.matmul %16, %199, %cst_170 {dimension_numbers = #tpu.dot_dimension_numbers<[1], [0], [0], [1], [0, 0, 1, 1], [], []>} : vector<8x4xf32>, vector<4x512xf32>, vector<8x512xf32> -> vector<8x512xf32>
    %201 = arith.addf %197, %200 : vector<8x512xf32>
    %c0_171 = arith.constant 0 : index
    %c0_172 = arith.constant 0 : index
    %c550 = arith.constant 550 : index
    %202 = vector.load %arg1[%c0_171, %c0_172, %c550] : memref<1x4x3278xf32, #tpu.memory_space<vmem>>, vector<1x4x512xf32>
    %203 = vector.shape_cast %202 : vector<1x4x512xf32> to vector<4x512xf32>
    %cst_173 = arith.constant dense<0.000000e+00> : vector<8x512xf32>
    %204 = tpu.matmul %18, %203, %cst_173 {dimension_numbers = #tpu.dot_dimension_numbers<[1], [0], [0], [1], [0, 0, 1, 1], [], []>} : vector<8x4xf32>, vector<4x512xf32>, vector<8x512xf32> -> vector<8x512xf32>
    %205 = arith.addf %201, %204 : vector<8x512xf32>
    %c0_174 = arith.constant 0 : index
    %c0_175 = arith.constant 0 : index
    %c836 = arith.constant 836 : index
    %206 = vector.load %arg1[%c0_174, %c0_175, %c836] : memref<1x4x3278xf32, #tpu.memory_space<vmem>>, vector<1x4x512xf32>
    %207 = vector.shape_cast %206 : vector<1x4x512xf32> to vector<4x512xf32>
    %cst_176 = arith.constant dense<0.000000e+00> : vector<8x512xf32>
    %208 = tpu.matmul %20, %207, %cst_176 {dimension_numbers = #tpu.dot_dimension_numbers<[1], [0], [0], [1], [0, 0, 1, 1], [], []>} : vector<8x4xf32>, vector<4x512xf32>, vector<8x512xf32> -> vector<8x512xf32>
    %209 = arith.addf %205, %208 : vector<8x512xf32>
    %c0_177 = arith.constant 0 : index
    %c0_178 = arith.constant 0 : index
    %c837 = arith.constant 837 : index
    %210 = vector.load %arg1[%c0_177, %c0_178, %c837] : memref<1x4x3278xf32, #tpu.memory_space<vmem>>, vector<1x4x512xf32>
    %211 = vector.shape_cast %210 : vector<1x4x512xf32> to vector<4x512xf32>
    %cst_179 = arith.constant dense<0.000000e+00> : vector<8x512xf32>
    %212 = tpu.matmul %22, %211, %cst_179 {dimension_numbers = #tpu.dot_dimension_numbers<[1], [0], [0], [1], [0, 0, 1, 1], [], []>} : vector<8x4xf32>, vector<4x512xf32>, vector<8x512xf32> -> vector<8x512xf32>
    %213 = arith.addf %209, %212 : vector<8x512xf32>
    %c0_180 = arith.constant 0 : index
    %c0_181 = arith.constant 0 : index
    %c838 = arith.constant 838 : index
    %214 = vector.load %arg1[%c0_180, %c0_181, %c838] : memref<1x4x3278xf32, #tpu.memory_space<vmem>>, vector<1x4x512xf32>
    %215 = vector.shape_cast %214 : vector<1x4x512xf32> to vector<4x512xf32>
    %cst_182 = arith.constant dense<0.000000e+00> : vector<8x512xf32>
    %216 = tpu.matmul %24, %215, %cst_182 {dimension_numbers = #tpu.dot_dimension_numbers<[1], [0], [0], [1], [0, 0, 1, 1], [], []>} : vector<8x4xf32>, vector<4x512xf32>, vector<8x512xf32> -> vector<8x512xf32>
    %217 = arith.addf %213, %216 : vector<8x512xf32>
    %c0_183 = arith.constant 0 : index
    %c0_184 = arith.constant 0 : index
    %c854 = arith.constant 854 : index
    %218 = vector.load %arg1[%c0_183, %c0_184, %c854] : memref<1x4x3278xf32, #tpu.memory_space<vmem>>, vector<1x4x512xf32>
    %219 = vector.shape_cast %218 : vector<1x4x512xf32> to vector<4x512xf32>
    %cst_185 = arith.constant dense<0.000000e+00> : vector<8x512xf32>
    %220 = tpu.matmul %26, %219, %cst_185 {dimension_numbers = #tpu.dot_dimension_numbers<[1], [0], [0], [1], [0, 0, 1, 1], [], []>} : vector<8x4xf32>, vector<4x512xf32>, vector<8x512xf32> -> vector<8x512xf32>
    %221 = arith.addf %217, %220 : vector<8x512xf32>
    %c0_186 = arith.constant 0 : index
    %c0_187 = arith.constant 0 : index
    %c855 = arith.constant 855 : index
    %222 = vector.load %arg1[%c0_186, %c0_187, %c855] : memref<1x4x3278xf32, #tpu.memory_space<vmem>>, vector<1x4x512xf32>
    %223 = vector.shape_cast %222 : vector<1x4x512xf32> to vector<4x512xf32>
    %cst_188 = arith.constant dense<0.000000e+00> : vector<8x512xf32>
    %224 = tpu.matmul %28, %223, %cst_188 {dimension_numbers = #tpu.dot_dimension_numbers<[1], [0], [0], [1], [0, 0, 1, 1], [], []>} : vector<8x4xf32>, vector<4x512xf32>, vector<8x512xf32> -> vector<8x512xf32>
    %225 = arith.addf %221, %224 : vector<8x512xf32>
    %c0_189 = arith.constant 0 : index
    %c0_190 = arith.constant 0 : index
    %c856 = arith.constant 856 : index
    %226 = vector.load %arg1[%c0_189, %c0_190, %c856] : memref<1x4x3278xf32, #tpu.memory_space<vmem>>, vector<1x4x512xf32>
    %227 = vector.shape_cast %226 : vector<1x4x512xf32> to vector<4x512xf32>
    %cst_191 = arith.constant dense<0.000000e+00> : vector<8x512xf32>
    %228 = tpu.matmul %30, %227, %cst_191 {dimension_numbers = #tpu.dot_dimension_numbers<[1], [0], [0], [1], [0, 0, 1, 1], [], []>} : vector<8x4xf32>, vector<4x512xf32>, vector<8x512xf32> -> vector<8x512xf32>
    %229 = arith.addf %225, %228 : vector<8x512xf32>
    %c0_192 = arith.constant 0 : index
    %c0_193 = arith.constant 0 : index
    %c872 = arith.constant 872 : index
    %230 = vector.load %arg1[%c0_192, %c0_193, %c872] : memref<1x4x3278xf32, #tpu.memory_space<vmem>>, vector<1x4x512xf32>
    %231 = vector.shape_cast %230 : vector<1x4x512xf32> to vector<4x512xf32>
    %cst_194 = arith.constant dense<0.000000e+00> : vector<8x512xf32>
    %232 = tpu.matmul %32, %231, %cst_194 {dimension_numbers = #tpu.dot_dimension_numbers<[1], [0], [0], [1], [0, 0, 1, 1], [], []>} : vector<8x4xf32>, vector<4x512xf32>, vector<8x512xf32> -> vector<8x512xf32>
    %233 = arith.addf %229, %232 : vector<8x512xf32>
    %c0_195 = arith.constant 0 : index
    %c0_196 = arith.constant 0 : index
    %c873 = arith.constant 873 : index
    %234 = vector.load %arg1[%c0_195, %c0_196, %c873] : memref<1x4x3278xf32, #tpu.memory_space<vmem>>, vector<1x4x512xf32>
    %235 = vector.shape_cast %234 : vector<1x4x512xf32> to vector<4x512xf32>
    %cst_197 = arith.constant dense<0.000000e+00> : vector<8x512xf32>
    %236 = tpu.matmul %34, %235, %cst_197 {dimension_numbers = #tpu.dot_dimension_numbers<[1], [0], [0], [1], [0, 0, 1, 1], [], []>} : vector<8x4xf32>, vector<4x512xf32>, vector<8x512xf32> -> vector<8x512xf32>
    %237 = arith.addf %233, %236 : vector<8x512xf32>
    %c0_198 = arith.constant 0 : index
    %c0_199 = arith.constant 0 : index
    %c874 = arith.constant 874 : index
    %238 = vector.load %arg1[%c0_198, %c0_199, %c874] : memref<1x4x3278xf32, #tpu.memory_space<vmem>>, vector<1x4x512xf32>
    %239 = vector.shape_cast %238 : vector<1x4x512xf32> to vector<4x512xf32>
    %cst_200 = arith.constant dense<0.000000e+00> : vector<8x512xf32>
    %240 = tpu.matmul %36, %239, %cst_200 {dimension_numbers = #tpu.dot_dimension_numbers<[1], [0], [0], [1], [0, 0, 1, 1], [], []>} : vector<8x4xf32>, vector<4x512xf32>, vector<8x512xf32> -> vector<8x512xf32>
    %241 = arith.addf %237, %240 : vector<8x512xf32>
    %c0_201 = arith.constant 0 : index
    %c0_202 = arith.constant 0 : index
    %c1160 = arith.constant 1160 : index
    %242 = vector.load %arg1[%c0_201, %c0_202, %c1160] : memref<1x4x3278xf32, #tpu.memory_space<vmem>>, vector<1x4x512xf32>
    %243 = vector.shape_cast %242 : vector<1x4x512xf32> to vector<4x512xf32>
    %cst_203 = arith.constant dense<0.000000e+00> : vector<8x512xf32>
    %244 = tpu.matmul %38, %243, %cst_203 {dimension_numbers = #tpu.dot_dimension_numbers<[1], [0], [0], [1], [0, 0, 1, 1], [], []>} : vector<8x4xf32>, vector<4x512xf32>, vector<8x512xf32> -> vector<8x512xf32>
    %245 = arith.addf %241, %244 : vector<8x512xf32>
    %c0_204 = arith.constant 0 : index
    %c0_205 = arith.constant 0 : index
    %c1161 = arith.constant 1161 : index
    %246 = vector.load %arg1[%c0_204, %c0_205, %c1161] : memref<1x4x3278xf32, #tpu.memory_space<vmem>>, vector<1x4x512xf32>
    %247 = vector.shape_cast %246 : vector<1x4x512xf32> to vector<4x512xf32>
    %cst_206 = arith.constant dense<0.000000e+00> : vector<8x512xf32>
    %248 = tpu.matmul %40, %247, %cst_206 {dimension_numbers = #tpu.dot_dimension_numbers<[1], [0], [0], [1], [0, 0, 1, 1], [], []>} : vector<8x4xf32>, vector<4x512xf32>, vector<8x512xf32> -> vector<8x512xf32>
    %249 = arith.addf %245, %248 : vector<8x512xf32>
    %c0_207 = arith.constant 0 : index
    %c0_208 = arith.constant 0 : index
    %c1162 = arith.constant 1162 : index
    %250 = vector.load %arg1[%c0_207, %c0_208, %c1162] : memref<1x4x3278xf32, #tpu.memory_space<vmem>>, vector<1x4x512xf32>
    %251 = vector.shape_cast %250 : vector<1x4x512xf32> to vector<4x512xf32>
    %cst_209 = arith.constant dense<0.000000e+00> : vector<8x512xf32>
    %252 = tpu.matmul %42, %251, %cst_209 {dimension_numbers = #tpu.dot_dimension_numbers<[1], [0], [0], [1], [0, 0, 1, 1], [], []>} : vector<8x4xf32>, vector<4x512xf32>, vector<8x512xf32> -> vector<8x512xf32>
    %253 = arith.addf %249, %252 : vector<8x512xf32>
    %c0_210 = arith.constant 0 : index
    %c0_211 = arith.constant 0 : index
    %c1178 = arith.constant 1178 : index
    %254 = vector.load %arg1[%c0_210, %c0_211, %c1178] : memref<1x4x3278xf32, #tpu.memory_space<vmem>>, vector<1x4x512xf32>
    %255 = vector.shape_cast %254 : vector<1x4x512xf32> to vector<4x512xf32>
    %cst_212 = arith.constant dense<0.000000e+00> : vector<8x512xf32>
    %256 = tpu.matmul %44, %255, %cst_212 {dimension_numbers = #tpu.dot_dimension_numbers<[1], [0], [0], [1], [0, 0, 1, 1], [], []>} : vector<8x4xf32>, vector<4x512xf32>, vector<8x512xf32> -> vector<8x512xf32>
    %257 = arith.addf %253, %256 : vector<8x512xf32>
    %c0_213 = arith.constant 0 : index
    %c0_214 = arith.constant 0 : index
    %c1179 = arith.constant 1179 : index
    %258 = vector.load %arg1[%c0_213, %c0_214, %c1179] : memref<1x4x3278xf32, #tpu.memory_space<vmem>>, vector<1x4x512xf32>
    %259 = vector.shape_cast %258 : vector<1x4x512xf32> to vector<4x512xf32>
    %cst_215 = arith.constant dense<0.000000e+00> : vector<8x512xf32>
    %260 = tpu.matmul %46, %259, %cst_215 {dimension_numbers = #tpu.dot_dimension_numbers<[1], [0], [0], [1], [0, 0, 1, 1], [], []>} : vector<8x4xf32>, vector<4x512xf32>, vector<8x512xf32> -> vector<8x512xf32>
    %261 = arith.addf %257, %260 : vector<8x512xf32>
    %c0_216 = arith.constant 0 : index
    %c0_217 = arith.constant 0 : index
    %c1180 = arith.constant 1180 : index
    %262 = vector.load %arg1[%c0_216, %c0_217, %c1180] : memref<1x4x3278xf32, #tpu.memory_space<vmem>>, vector<1x4x512xf32>
    %263 = vector.shape_cast %262 : vector<1x4x512xf32> to vector<4x512xf32>
    %cst_218 = arith.constant dense<0.000000e+00> : vector<8x512xf32>
    %264 = tpu.matmul %48, %263, %cst_218 {dimension_numbers = #tpu.dot_dimension_numbers<[1], [0], [0], [1], [0, 0, 1, 1], [], []>} : vector<8x4xf32>, vector<4x512xf32>, vector<8x512xf32> -> vector<8x512xf32>
    %265 = arith.addf %261, %264 : vector<8x512xf32>
    %c0_219 = arith.constant 0 : index
    %c0_220 = arith.constant 0 : index
    %c1196 = arith.constant 1196 : index
    %266 = vector.load %arg1[%c0_219, %c0_220, %c1196] : memref<1x4x3278xf32, #tpu.memory_space<vmem>>, vector<1x4x512xf32>
    %267 = vector.shape_cast %266 : vector<1x4x512xf32> to vector<4x512xf32>
    %cst_221 = arith.constant dense<0.000000e+00> : vector<8x512xf32>
    %268 = tpu.matmul %50, %267, %cst_221 {dimension_numbers = #tpu.dot_dimension_numbers<[1], [0], [0], [1], [0, 0, 1, 1], [], []>} : vector<8x4xf32>, vector<4x512xf32>, vector<8x512xf32> -> vector<8x512xf32>
    %269 = arith.addf %265, %268 : vector<8x512xf32>
    %c0_222 = arith.constant 0 : index
    %c0_223 = arith.constant 0 : index
    %c1197 = arith.constant 1197 : index
    %270 = vector.load %arg1[%c0_222, %c0_223, %c1197] : memref<1x4x3278xf32, #tpu.memory_space<vmem>>, vector<1x4x512xf32>
    %271 = vector.shape_cast %270 : vector<1x4x512xf32> to vector<4x512xf32>
    %cst_224 = arith.constant dense<0.000000e+00> : vector<8x512xf32>
    %272 = tpu.matmul %52, %271, %cst_224 {dimension_numbers = #tpu.dot_dimension_numbers<[1], [0], [0], [1], [0, 0, 1, 1], [], []>} : vector<8x4xf32>, vector<4x512xf32>, vector<8x512xf32> -> vector<8x512xf32>
    %273 = arith.addf %269, %272 : vector<8x512xf32>
    %c0_225 = arith.constant 0 : index
    %c0_226 = arith.constant 0 : index
    %c1198 = arith.constant 1198 : index
    %274 = vector.load %arg1[%c0_225, %c0_226, %c1198] : memref<1x4x3278xf32, #tpu.memory_space<vmem>>, vector<1x4x512xf32>
    %275 = vector.shape_cast %274 : vector<1x4x512xf32> to vector<4x512xf32>
    %cst_227 = arith.constant dense<0.000000e+00> : vector<8x512xf32>
    %276 = tpu.matmul %54, %275, %cst_227 {dimension_numbers = #tpu.dot_dimension_numbers<[1], [0], [0], [1], [0, 0, 1, 1], [], []>} : vector<8x4xf32>, vector<4x512xf32>, vector<8x512xf32> -> vector<8x512xf32>
    %277 = arith.addf %273, %276 : vector<8x512xf32>
    %278 = vector.broadcast %0 : vector<8x1xf32> to vector<8x512xf32>
    %279 = arith.addf %277, %278 : vector<8x512xf32>
    %c0_228 = arith.constant 0 : index
    %c0_229 = arith.constant 0 : index
    %c512_230 = arith.constant 512 : index
    %280 = vector.load %arg4[%c0_228, %c0_229, %c512_230] : memref<1x8x2592xf32, #tpu.memory_space<vmem>>, vector<1x8x512xf32>
    %281 = vector.shape_cast %280 : vector<1x8x512xf32> to vector<8x512xf32>
    %282 = vector.shape_cast %279 : vector<8x512xf32> to vector<1x8x512xf32>
    tpu.vector_store %arg4[%c0_228, %c0_229, %c512_230], %282 {strides = array<i32>} : memref<1x8x2592xf32, #tpu.memory_space<vmem>>, vector<1x8x512xf32>,
    %cst_231 = arith.constant 0.000000e+00 : f32
    %283 = vector.broadcast %cst_231 : f32 to vector<8x512xf32>
    %c0_232 = arith.constant 0 : index
    %c0_233 = arith.constant 0 : index
    %c1024 = arith.constant 1024 : index
    %284 = vector.load %arg1[%c0_232, %c0_233, %c1024] : memref<1x4x3278xf32, #tpu.memory_space<vmem>>, vector<1x4x512xf32>
    %285 = vector.shape_cast %284 : vector<1x4x512xf32> to vector<4x512xf32>
    %cst_234 = arith.constant dense<0.000000e+00> : vector<8x512xf32>
    %286 = tpu.matmul %2, %285, %cst_234 {dimension_numbers = #tpu.dot_dimension_numbers<[1], [0], [0], [1], [0, 0, 1, 1], [], []>} : vector<8x4xf32>, vector<4x512xf32>, vector<8x512xf32> -> vector<8x512xf32>
    %287 = arith.addf %283, %286 : vector<8x512xf32>
    %c0_235 = arith.constant 0 : index
    %c0_236 = arith.constant 0 : index
    %c1025 = arith.constant 1025 : index
    %288 = vector.load %arg1[%c0_235, %c0_236, %c1025] : memref<1x4x3278xf32, #tpu.memory_space<vmem>>, vector<1x4x512xf32>
    %289 = vector.shape_cast %288 : vector<1x4x512xf32> to vector<4x512xf32>
    %cst_237 = arith.constant dense<0.000000e+00> : vector<8x512xf32>
    %290 = tpu.matmul %4, %289, %cst_237 {dimension_numbers = #tpu.dot_dimension_numbers<[1], [0], [0], [1], [0, 0, 1, 1], [], []>} : vector<8x4xf32>, vector<4x512xf32>, vector<8x512xf32> -> vector<8x512xf32>
    %291 = arith.addf %287, %290 : vector<8x512xf32>
    %c0_238 = arith.constant 0 : index
    %c0_239 = arith.constant 0 : index
    %c1026 = arith.constant 1026 : index
    %292 = vector.load %arg1[%c0_238, %c0_239, %c1026] : memref<1x4x3278xf32, #tpu.memory_space<vmem>>, vector<1x4x512xf32>
    %293 = vector.shape_cast %292 : vector<1x4x512xf32> to vector<4x512xf32>
    %cst_240 = arith.constant dense<0.000000e+00> : vector<8x512xf32>
    %294 = tpu.matmul %6, %293, %cst_240 {dimension_numbers = #tpu.dot_dimension_numbers<[1], [0], [0], [1], [0, 0, 1, 1], [], []>} : vector<8x4xf32>, vector<4x512xf32>, vector<8x512xf32> -> vector<8x512xf32>
    %295 = arith.addf %291, %294 : vector<8x512xf32>
    %c0_241 = arith.constant 0 : index
    %c0_242 = arith.constant 0 : index
    %c1042 = arith.constant 1042 : index
    %296 = vector.load %arg1[%c0_241, %c0_242, %c1042] : memref<1x4x3278xf32, #tpu.memory_space<vmem>>, vector<1x4x512xf32>
    %297 = vector.shape_cast %296 : vector<1x4x512xf32> to vector<4x512xf32>
    %cst_243 = arith.constant dense<0.000000e+00> : vector<8x512xf32>
    %298 = tpu.matmul %8, %297, %cst_243 {dimension_numbers = #tpu.dot_dimension_numbers<[1], [0], [0], [1], [0, 0, 1, 1], [], []>} : vector<8x4xf32>, vector<4x512xf32>, vector<8x512xf32> -> vector<8x512xf32>
    %299 = arith.addf %295, %298 : vector<8x512xf32>
    %c0_244 = arith.constant 0 : index
    %c0_245 = arith.constant 0 : index
    %c1043 = arith.constant 1043 : index
    %300 = vector.load %arg1[%c0_244, %c0_245, %c1043] : memref<1x4x3278xf32, #tpu.memory_space<vmem>>, vector<1x4x512xf32>
    %301 = vector.shape_cast %300 : vector<1x4x512xf32> to vector<4x512xf32>
    %cst_246 = arith.constant dense<0.000000e+00> : vector<8x512xf32>
    %302 = tpu.matmul %10, %301, %cst_246 {dimension_numbers = #tpu.dot_dimension_numbers<[1], [0], [0], [1], [0, 0, 1, 1], [], []>} : vector<8x4xf32>, vector<4x512xf32>, vector<8x512xf32> -> vector<8x512xf32>
    %303 = arith.addf %299, %302 : vector<8x512xf32>
    %c0_247 = arith.constant 0 : index
    %c0_248 = arith.constant 0 : index
    %c1044 = arith.constant 1044 : index
    %304 = vector.load %arg1[%c0_247, %c0_248, %c1044] : memref<1x4x3278xf32, #tpu.memory_space<vmem>>, vector<1x4x512xf32>
    %305 = vector.shape_cast %304 : vector<1x4x512xf32> to vector<4x512xf32>
    %cst_249 = arith.constant dense<0.000000e+00> : vector<8x512xf32>
    %306 = tpu.matmul %12, %305, %cst_249 {dimension_numbers = #tpu.dot_dimension_numbers<[1], [0], [0], [1], [0, 0, 1, 1], [], []>} : vector<8x4xf32>, vector<4x512xf32>, vector<8x512xf32> -> vector<8x512xf32>
    %307 = arith.addf %303, %306 : vector<8x512xf32>
    %c0_250 = arith.constant 0 : index
    %c0_251 = arith.constant 0 : index
    %c1060 = arith.constant 1060 : index
    %308 = vector.load %arg1[%c0_250, %c0_251, %c1060] : memref<1x4x3278xf32, #tpu.memory_space<vmem>>, vector<1x4x512xf32>
    %309 = vector.shape_cast %308 : vector<1x4x512xf32> to vector<4x512xf32>
    %cst_252 = arith.constant dense<0.000000e+00> : vector<8x512xf32>
    %310 = tpu.matmul %14, %309, %cst_252 {dimension_numbers = #tpu.dot_dimension_numbers<[1], [0], [0], [1], [0, 0, 1, 1], [], []>} : vector<8x4xf32>, vector<4x512xf32>, vector<8x512xf32> -> vector<8x512xf32>
    %311 = arith.addf %307, %310 : vector<8x512xf32>
    %c0_253 = arith.constant 0 : index
    %c0_254 = arith.constant 0 : index
    %c1061 = arith.constant 1061 : index
    %312 = vector.load %arg1[%c0_253, %c0_254, %c1061] : memref<1x4x3278xf32, #tpu.memory_space<vmem>>, vector<1x4x512xf32>
    %313 = vector.shape_cast %312 : vector<1x4x512xf32> to vector<4x512xf32>
    %cst_255 = arith.constant dense<0.000000e+00> : vector<8x512xf32>
    %314 = tpu.matmul %16, %313, %cst_255 {dimension_numbers = #tpu.dot_dimension_numbers<[1], [0], [0], [1], [0, 0, 1, 1], [], []>} : vector<8x4xf32>, vector<4x512xf32>, vector<8x512xf32> -> vector<8x512xf32>
    %315 = arith.addf %311, %314 : vector<8x512xf32>
    %c0_256 = arith.constant 0 : index
    %c0_257 = arith.constant 0 : index
    %c1062 = arith.constant 1062 : index
    %316 = vector.load %arg1[%c0_256, %c0_257, %c1062] : memref<1x4x3278xf32, #tpu.memory_space<vmem>>, vector<1x4x512xf32>
    %317 = vector.shape_cast %316 : vector<1x4x512xf32> to vector<4x512xf32>
    %cst_258 = arith.constant dense<0.000000e+00> : vector<8x512xf32>
    %318 = tpu.matmul %18, %317, %cst_258 {dimension_numbers = #tpu.dot_dimension_numbers<[1], [0], [0], [1], [0, 0, 1, 1], [], []>} : vector<8x4xf32>, vector<4x512xf32>, vector<8x512xf32> -> vector<8x512xf32>
    %319 = arith.addf %315, %318 : vector<8x512xf32>
    %c0_259 = arith.constant 0 : index
    %c0_260 = arith.constant 0 : index
    %c1348 = arith.constant 1348 : index
    %320 = vector.load %arg1[%c0_259, %c0_260, %c1348] : memref<1x4x3278xf32, #tpu.memory_space<vmem>>, vector<1x4x512xf32>
    %321 = vector.shape_cast %320 : vector<1x4x512xf32> to vector<4x512xf32>
    %cst_261 = arith.constant dense<0.000000e+00> : vector<8x512xf32>
    %322 = tpu.matmul %20, %321, %cst_261 {dimension_numbers = #tpu.dot_dimension_numbers<[1], [0], [0], [1], [0, 0, 1, 1], [], []>} : vector<8x4xf32>, vector<4x512xf32>, vector<8x512xf32> -> vector<8x512xf32>
    %323 = arith.addf %319, %322 : vector<8x512xf32>
    %c0_262 = arith.constant 0 : index
    %c0_263 = arith.constant 0 : index
    %c1349 = arith.constant 1349 : index
    %324 = vector.load %arg1[%c0_262, %c0_263, %c1349] : memref<1x4x3278xf32, #tpu.memory_space<vmem>>, vector<1x4x512xf32>
    %325 = vector.shape_cast %324 : vector<1x4x512xf32> to vector<4x512xf32>
    %cst_264 = arith.constant dense<0.000000e+00> : vector<8x512xf32>
    %326 = tpu.matmul %22, %325, %cst_264 {dimension_numbers = #tpu.dot_dimension_numbers<[1], [0], [0], [1], [0, 0, 1, 1], [], []>} : vector<8x4xf32>, vector<4x512xf32>, vector<8x512xf32> -> vector<8x512xf32>
    %327 = arith.addf %323, %326 : vector<8x512xf32>
    %c0_265 = arith.constant 0 : index
    %c0_266 = arith.constant 0 : index
    %c1350 = arith.constant 1350 : index
    %328 = vector.load %arg1[%c0_265, %c0_266, %c1350] : memref<1x4x3278xf32, #tpu.memory_space<vmem>>, vector<1x4x512xf32>
    %329 = vector.shape_cast %328 : vector<1x4x512xf32> to vector<4x512xf32>
    %cst_267 = arith.constant dense<0.000000e+00> : vector<8x512xf32>
    %330 = tpu.matmul %24, %329, %cst_267 {dimension_numbers = #tpu.dot_dimension_numbers<[1], [0], [0], [1], [0, 0, 1, 1], [], []>} : vector<8x4xf32>, vector<4x512xf32>, vector<8x512xf32> -> vector<8x512xf32>
    %331 = arith.addf %327, %330 : vector<8x512xf32>
    %c0_268 = arith.constant 0 : index
    %c0_269 = arith.constant 0 : index
    %c1366 = arith.constant 1366 : index
    %332 = vector.load %arg1[%c0_268, %c0_269, %c1366] : memref<1x4x3278xf32, #tpu.memory_space<vmem>>, vector<1x4x512xf32>
    %333 = vector.shape_cast %332 : vector<1x4x512xf32> to vector<4x512xf32>
    %cst_270 = arith.constant dense<0.000000e+00> : vector<8x512xf32>
    %334 = tpu.matmul %26, %333, %cst_270 {dimension_numbers = #tpu.dot_dimension_numbers<[1], [0], [0], [1], [0, 0, 1, 1], [], []>} : vector<8x4xf32>, vector<4x512xf32>, vector<8x512xf32> -> vector<8x512xf32>
    %335 = arith.addf %331, %334 : vector<8x512xf32>
    %c0_271 = arith.constant 0 : index
    %c0_272 = arith.constant 0 : index
    %c1367 = arith.constant 1367 : index
    %336 = vector.load %arg1[%c0_271, %c0_272, %c1367] : memref<1x4x3278xf32, #tpu.memory_space<vmem>>, vector<1x4x512xf32>
    %337 = vector.shape_cast %336 : vector<1x4x512xf32> to vector<4x512xf32>
    %cst_273 = arith.constant dense<0.000000e+00> : vector<8x512xf32>
    %338 = tpu.matmul %28, %337, %cst_273 {dimension_numbers = #tpu.dot_dimension_numbers<[1], [0], [0], [1], [0, 0, 1, 1], [], []>} : vector<8x4xf32>, vector<4x512xf32>, vector<8x512xf32> -> vector<8x512xf32>
    %339 = arith.addf %335, %338 : vector<8x512xf32>
    %c0_274 = arith.constant 0 : index
    %c0_275 = arith.constant 0 : index
    %c1368 = arith.constant 1368 : index
    %340 = vector.load %arg1[%c0_274, %c0_275, %c1368] : memref<1x4x3278xf32, #tpu.memory_space<vmem>>, vector<1x4x512xf32>
    %341 = vector.shape_cast %340 : vector<1x4x512xf32> to vector<4x512xf32>
    %cst_276 = arith.constant dense<0.000000e+00> : vector<8x512xf32>
    %342 = tpu.matmul %30, %341, %cst_276 {dimension_numbers = #tpu.dot_dimension_numbers<[1], [0], [0], [1], [0, 0, 1, 1], [], []>} : vector<8x4xf32>, vector<4x512xf32>, vector<8x512xf32> -> vector<8x512xf32>
    %343 = arith.addf %339, %342 : vector<8x512xf32>
    %c0_277 = arith.constant 0 : index
    %c0_278 = arith.constant 0 : index
    %c1384 = arith.constant 1384 : index
    %344 = vector.load %arg1[%c0_277, %c0_278, %c1384] : memref<1x4x3278xf32, #tpu.memory_space<vmem>>, vector<1x4x512xf32>
    %345 = vector.shape_cast %344 : vector<1x4x512xf32> to vector<4x512xf32>
    %cst_279 = arith.constant dense<0.000000e+00> : vector<8x512xf32>
    %346 = tpu.matmul %32, %345, %cst_279 {dimension_numbers = #tpu.dot_dimension_numbers<[1], [0], [0], [1], [0, 0, 1, 1], [], []>} : vector<8x4xf32>, vector<4x512xf32>, vector<8x512xf32> -> vector<8x512xf32>
    %347 = arith.addf %343, %346 : vector<8x512xf32>
    %c0_280 = arith.constant 0 : index
    %c0_281 = arith.constant 0 : index
    %c1385 = arith.constant 1385 : index
    %348 = vector.load %arg1[%c0_280, %c0_281, %c1385] : memref<1x4x3278xf32, #tpu.memory_space<vmem>>, vector<1x4x512xf32>
    %349 = vector.shape_cast %348 : vector<1x4x512xf32> to vector<4x512xf32>
    %cst_282 = arith.constant dense<0.000000e+00> : vector<8x512xf32>
    %350 = tpu.matmul %34, %349, %cst_282 {dimension_numbers = #tpu.dot_dimension_numbers<[1], [0], [0], [1], [0, 0, 1, 1], [], []>} : vector<8x4xf32>, vector<4x512xf32>, vector<8x512xf32> -> vector<8x512xf32>
    %351 = arith.addf %347, %350 : vector<8x512xf32>
    %c0_283 = arith.constant 0 : index
    %c0_284 = arith.constant 0 : index
    %c1386 = arith.constant 1386 : index
    %352 = vector.load %arg1[%c0_283, %c0_284, %c1386] : memref<1x4x3278xf32, #tpu.memory_space<vmem>>, vector<1x4x512xf32>
    %353 = vector.shape_cast %352 : vector<1x4x512xf32> to vector<4x512xf32>
    %cst_285 = arith.constant dense<0.000000e+00> : vector<8x512xf32>
    %354 = tpu.matmul %36, %353, %cst_285 {dimension_numbers = #tpu.dot_dimension_numbers<[1], [0], [0], [1], [0, 0, 1, 1], [], []>} : vector<8x4xf32>, vector<4x512xf32>, vector<8x512xf32> -> vector<8x512xf32>
    %355 = arith.addf %351, %354 : vector<8x512xf32>
    %c0_286 = arith.constant 0 : index
    %c0_287 = arith.constant 0 : index
    %c1672 = arith.constant 1672 : index
    %356 = vector.load %arg1[%c0_286, %c0_287, %c1672] : memref<1x4x3278xf32, #tpu.memory_space<vmem>>, vector<1x4x512xf32>
    %357 = vector.shape_cast %356 : vector<1x4x512xf32> to vector<4x512xf32>
    %cst_288 = arith.constant dense<0.000000e+00> : vector<8x512xf32>
    %358 = tpu.matmul %38, %357, %cst_288 {dimension_numbers = #tpu.dot_dimension_numbers<[1], [0], [0], [1], [0, 0, 1, 1], [], []>} : vector<8x4xf32>, vector<4x512xf32>, vector<8x512xf32> -> vector<8x512xf32>
    %359 = arith.addf %355, %358 : vector<8x512xf32>
    %c0_289 = arith.constant 0 : index
    %c0_290 = arith.constant 0 : index
    %c1673 = arith.constant 1673 : index
    %360 = vector.load %arg1[%c0_289, %c0_290, %c1673] : memref<1x4x3278xf32, #tpu.memory_space<vmem>>, vector<1x4x512xf32>
    %361 = vector.shape_cast %360 : vector<1x4x512xf32> to vector<4x512xf32>
    %cst_291 = arith.constant dense<0.000000e+00> : vector<8x512xf32>
    %362 = tpu.matmul %40, %361, %cst_291 {dimension_numbers = #tpu.dot_dimension_numbers<[1], [0], [0], [1], [0, 0, 1, 1], [], []>} : vector<8x4xf32>, vector<4x512xf32>, vector<8x512xf32> -> vector<8x512xf32>
    %363 = arith.addf %359, %362 : vector<8x512xf32>
    %c0_292 = arith.constant 0 : index
    %c0_293 = arith.constant 0 : index
    %c1674 = arith.constant 1674 : index
    %364 = vector.load %arg1[%c0_292, %c0_293, %c1674] : memref<1x4x3278xf32, #tpu.memory_space<vmem>>, vector<1x4x512xf32>
    %365 = vector.shape_cast %364 : vector<1x4x512xf32> to vector<4x512xf32>
    %cst_294 = arith.constant dense<0.000000e+00> : vector<8x512xf32>
    %366 = tpu.matmul %42, %365, %cst_294 {dimension_numbers = #tpu.dot_dimension_numbers<[1], [0], [0], [1], [0, 0, 1, 1], [], []>} : vector<8x4xf32>, vector<4x512xf32>, vector<8x512xf32> -> vector<8x512xf32>
    %367 = arith.addf %363, %366 : vector<8x512xf32>
    %c0_295 = arith.constant 0 : index
    %c0_296 = arith.constant 0 : index
    %c1690 = arith.constant 1690 : index
    %368 = vector.load %arg1[%c0_295, %c0_296, %c1690] : memref<1x4x3278xf32, #tpu.memory_space<vmem>>, vector<1x4x512xf32>
    %369 = vector.shape_cast %368 : vector<1x4x512xf32> to vector<4x512xf32>
    %cst_297 = arith.constant dense<0.000000e+00> : vector<8x512xf32>
    %370 = tpu.matmul %44, %369, %cst_297 {dimension_numbers = #tpu.dot_dimension_numbers<[1], [0], [0], [1], [0, 0, 1, 1], [], []>} : vector<8x4xf32>, vector<4x512xf32>, vector<8x512xf32> -> vector<8x512xf32>
    %371 = arith.addf %367, %370 : vector<8x512xf32>
    %c0_298 = arith.constant 0 : index
    %c0_299 = arith.constant 0 : index
    %c1691 = arith.constant 1691 : index
    %372 = vector.load %arg1[%c0_298, %c0_299, %c1691] : memref<1x4x3278xf32, #tpu.memory_space<vmem>>, vector<1x4x512xf32>
    %373 = vector.shape_cast %372 : vector<1x4x512xf32> to vector<4x512xf32>
    %cst_300 = arith.constant dense<0.000000e+00> : vector<8x512xf32>
    %374 = tpu.matmul %46, %373, %cst_300 {dimension_numbers = #tpu.dot_dimension_numbers<[1], [0], [0], [1], [0, 0, 1, 1], [], []>} : vector<8x4xf32>, vector<4x512xf32>, vector<8x512xf32> -> vector<8x512xf32>
    %375 = arith.addf %371, %374 : vector<8x512xf32>
    %c0_301 = arith.constant 0 : index
    %c0_302 = arith.constant 0 : index
    %c1692 = arith.constant 1692 : index
    %376 = vector.load %arg1[%c0_301, %c0_302, %c1692] : memref<1x4x3278xf32, #tpu.memory_space<vmem>>, vector<1x4x512xf32>
    %377 = vector.shape_cast %376 : vector<1x4x512xf32> to vector<4x512xf32>
    %cst_303 = arith.constant dense<0.000000e+00> : vector<8x512xf32>
    %378 = tpu.matmul %48, %377, %cst_303 {dimension_numbers = #tpu.dot_dimension_numbers<[1], [0], [0], [1], [0, 0, 1, 1], [], []>} : vector<8x4xf32>, vector<4x512xf32>, vector<8x512xf32> -> vector<8x512xf32>
    %379 = arith.addf %375, %378 : vector<8x512xf32>
    %c0_304 = arith.constant 0 : index
    %c0_305 = arith.constant 0 : index
    %c1708 = arith.constant 1708 : index
    %380 = vector.load %arg1[%c0_304, %c0_305, %c1708] : memref<1x4x3278xf32, #tpu.memory_space<vmem>>, vector<1x4x512xf32>
    %381 = vector.shape_cast %380 : vector<1x4x512xf32> to vector<4x512xf32>
    %cst_306 = arith.constant dense<0.000000e+00> : vector<8x512xf32>
    %382 = tpu.matmul %50, %381, %cst_306 {dimension_numbers = #tpu.dot_dimension_numbers<[1], [0], [0], [1], [0, 0, 1, 1], [], []>} : vector<8x4xf32>, vector<4x512xf32>, vector<8x512xf32> -> vector<8x512xf32>
    %383 = arith.addf %379, %382 : vector<8x512xf32>
    %c0_307 = arith.constant 0 : index
    %c0_308 = arith.constant 0 : index
    %c1709 = arith.constant 1709 : index
    %384 = vector.load %arg1[%c0_307, %c0_308, %c1709] : memref<1x4x3278xf32, #tpu.memory_space<vmem>>, vector<1x4x512xf32>
    %385 = vector.shape_cast %384 : vector<1x4x512xf32> to vector<4x512xf32>
    %cst_309 = arith.constant dense<0.000000e+00> : vector<8x512xf32>
    %386 = tpu.matmul %52, %385, %cst_309 {dimension_numbers = #tpu.dot_dimension_numbers<[1], [0], [0], [1], [0, 0, 1, 1], [], []>} : vector<8x4xf32>, vector<4x512xf32>, vector<8x512xf32> -> vector<8x512xf32>
    %387 = arith.addf %383, %386 : vector<8x512xf32>
    %c0_310 = arith.constant 0 : index
    %c0_311 = arith.constant 0 : index
    %c1710 = arith.constant 1710 : index
    %388 = vector.load %arg1[%c0_310, %c0_311, %c1710] : memref<1x4x3278xf32, #tpu.memory_space<vmem>>, vector<1x4x512xf32>
    %389 = vector.shape_cast %388 : vector<1x4x512xf32> to vector<4x512xf32>
    %cst_312 = arith.constant dense<0.000000e+00> : vector<8x512xf32>
    %390 = tpu.matmul %54, %389, %cst_312 {dimension_numbers = #tpu.dot_dimension_numbers<[1], [0], [0], [1], [0, 0, 1, 1], [], []>} : vector<8x4xf32>, vector<4x512xf32>, vector<8x512xf32> -> vector<8x512xf32>
    %391 = arith.addf %387, %390 : vector<8x512xf32>
    %392 = vector.broadcast %0 : vector<8x1xf32> to vector<8x512xf32>
    %393 = arith.addf %391, %392 : vector<8x512xf32>
    %c0_313 = arith.constant 0 : index
    %c0_314 = arith.constant 0 : index
    %c1024_315 = arith.constant 1024 : index
    %394 = vector.load %arg4[%c0_313, %c0_314, %c1024_315] : memref<1x8x2592xf32, #tpu.memory_space<vmem>>, vector<1x8x512xf32>
    %395 = vector.shape_cast %394 : vector<1x8x512xf32> to vector<8x512xf32>
    %396 = vector.shape_cast %393 : vector<8x512xf32> to vector<1x8x512xf32>
    tpu.vector_store %arg4[%c0_313, %c0_314, %c1024_315], %396 {strides = array<i32>} : memref<1x8x2592xf32, #tpu.memory_space<vmem>>, vector<1x8x512xf32>,
    %cst_316 = arith.constant 0.000000e+00 : f32
    %397 = vector.broadcast %cst_316 : f32 to vector<8x512xf32>
    %c0_317 = arith.constant 0 : index
    %c0_318 = arith.constant 0 : index
    %c1536 = arith.constant 1536 : index
    %398 = vector.load %arg1[%c0_317, %c0_318, %c1536] : memref<1x4x3278xf32, #tpu.memory_space<vmem>>, vector<1x4x512xf32>
    %399 = vector.shape_cast %398 : vector<1x4x512xf32> to vector<4x512xf32>
    %cst_319 = arith.constant dense<0.000000e+00> : vector<8x512xf32>
    %400 = tpu.matmul %2, %399, %cst_319 {dimension_numbers = #tpu.dot_dimension_numbers<[1], [0], [0], [1], [0, 0, 1, 1], [], []>} : vector<8x4xf32>, vector<4x512xf32>, vector<8x512xf32> -> vector<8x512xf32>
    %401 = arith.addf %397, %400 : vector<8x512xf32>
    %c0_320 = arith.constant 0 : index
    %c0_321 = arith.constant 0 : index
    %c1537 = arith.constant 1537 : index
    %402 = vector.load %arg1[%c0_320, %c0_321, %c1537] : memref<1x4x3278xf32, #tpu.memory_space<vmem>>, vector<1x4x512xf32>
    %403 = vector.shape_cast %402 : vector<1x4x512xf32> to vector<4x512xf32>
    %cst_322 = arith.constant dense<0.000000e+00> : vector<8x512xf32>
    %404 = tpu.matmul %4, %403, %cst_322 {dimension_numbers = #tpu.dot_dimension_numbers<[1], [0], [0], [1], [0, 0, 1, 1], [], []>} : vector<8x4xf32>, vector<4x512xf32>, vector<8x512xf32> -> vector<8x512xf32>
    %405 = arith.addf %401, %404 : vector<8x512xf32>
    %c0_323 = arith.constant 0 : index
    %c0_324 = arith.constant 0 : index
    %c1538 = arith.constant 1538 : index
    %406 = vector.load %arg1[%c0_323, %c0_324, %c1538] : memref<1x4x3278xf32, #tpu.memory_space<vmem>>, vector<1x4x512xf32>
    %407 = vector.shape_cast %406 : vector<1x4x512xf32> to vector<4x512xf32>
    %cst_325 = arith.constant dense<0.000000e+00> : vector<8x512xf32>
    %408 = tpu.matmul %6, %407, %cst_325 {dimension_numbers = #tpu.dot_dimension_numbers<[1], [0], [0], [1], [0, 0, 1, 1], [], []>} : vector<8x4xf32>, vector<4x512xf32>, vector<8x512xf32> -> vector<8x512xf32>
    %409 = arith.addf %405, %408 : vector<8x512xf32>
    %c0_326 = arith.constant 0 : index
    %c0_327 = arith.constant 0 : index
    %c1554 = arith.constant 1554 : index
    %410 = vector.load %arg1[%c0_326, %c0_327, %c1554] : memref<1x4x3278xf32, #tpu.memory_space<vmem>>, vector<1x4x512xf32>
    %411 = vector.shape_cast %410 : vector<1x4x512xf32> to vector<4x512xf32>
    %cst_328 = arith.constant dense<0.000000e+00> : vector<8x512xf32>
    %412 = tpu.matmul %8, %411, %cst_328 {dimension_numbers = #tpu.dot_dimension_numbers<[1], [0], [0], [1], [0, 0, 1, 1], [], []>} : vector<8x4xf32>, vector<4x512xf32>, vector<8x512xf32> -> vector<8x512xf32>
    %413 = arith.addf %409, %412 : vector<8x512xf32>
    %c0_329 = arith.constant 0 : index
    %c0_330 = arith.constant 0 : index
    %c1555 = arith.constant 1555 : index
    %414 = vector.load %arg1[%c0_329, %c0_330, %c1555] : memref<1x4x3278xf32, #tpu.memory_space<vmem>>, vector<1x4x512xf32>
    %415 = vector.shape_cast %414 : vector<1x4x512xf32> to vector<4x512xf32>
    %cst_331 = arith.constant dense<0.000000e+00> : vector<8x512xf32>
    %416 = tpu.matmul %10, %415, %cst_331 {dimension_numbers = #tpu.dot_dimension_numbers<[1], [0], [0], [1], [0, 0, 1, 1], [], []>} : vector<8x4xf32>, vector<4x512xf32>, vector<8x512xf32> -> vector<8x512xf32>
    %417 = arith.addf %413, %416 : vector<8x512xf32>
    %c0_332 = arith.constant 0 : index
    %c0_333 = arith.constant 0 : index
    %c1556 = arith.constant 1556 : index
    %418 = vector.load %arg1[%c0_332, %c0_333, %c1556] : memref<1x4x3278xf32, #tpu.memory_space<vmem>>, vector<1x4x512xf32>
    %419 = vector.shape_cast %418 : vector<1x4x512xf32> to vector<4x512xf32>
    %cst_334 = arith.constant dense<0.000000e+00> : vector<8x512xf32>
    %420 = tpu.matmul %12, %419, %cst_334 {dimension_numbers = #tpu.dot_dimension_numbers<[1], [0], [0], [1], [0, 0, 1, 1], [], []>} : vector<8x4xf32>, vector<4x512xf32>, vector<8x512xf32> -> vector<8x512xf32>
    %421 = arith.addf %417, %420 : vector<8x512xf32>
    %c0_335 = arith.constant 0 : index
    %c0_336 = arith.constant 0 : index
    %c1572 = arith.constant 1572 : index
    %422 = vector.load %arg1[%c0_335, %c0_336, %c1572] : memref<1x4x3278xf32, #tpu.memory_space<vmem>>, vector<1x4x512xf32>
    %423 = vector.shape_cast %422 : vector<1x4x512xf32> to vector<4x512xf32>
    %cst_337 = arith.constant dense<0.000000e+00> : vector<8x512xf32>
    %424 = tpu.matmul %14, %423, %cst_337 {dimension_numbers = #tpu.dot_dimension_numbers<[1], [0], [0], [1], [0, 0, 1, 1], [], []>} : vector<8x4xf32>, vector<4x512xf32>, vector<8x512xf32> -> vector<8x512xf32>
    %425 = arith.addf %421, %424 : vector<8x512xf32>
    %c0_338 = arith.constant 0 : index
    %c0_339 = arith.constant 0 : index
    %c1573 = arith.constant 1573 : index
    %426 = vector.load %arg1[%c0_338, %c0_339, %c1573] : memref<1x4x3278xf32, #tpu.memory_space<vmem>>, vector<1x4x512xf32>
    %427 = vector.shape_cast %426 : vector<1x4x512xf32> to vector<4x512xf32>
    %cst_340 = arith.constant dense<0.000000e+00> : vector<8x512xf32>
    %428 = tpu.matmul %16, %427, %cst_340 {dimension_numbers = #tpu.dot_dimension_numbers<[1], [0], [0], [1], [0, 0, 1, 1], [], []>} : vector<8x4xf32>, vector<4x512xf32>, vector<8x512xf32> -> vector<8x512xf32>
    %429 = arith.addf %425, %428 : vector<8x512xf32>
    %c0_341 = arith.constant 0 : index
    %c0_342 = arith.constant 0 : index
    %c1574 = arith.constant 1574 : index
    %430 = vector.load %arg1[%c0_341, %c0_342, %c1574] : memref<1x4x3278xf32, #tpu.memory_space<vmem>>, vector<1x4x512xf32>
    %431 = vector.shape_cast %430 : vector<1x4x512xf32> to vector<4x512xf32>
    %cst_343 = arith.constant dense<0.000000e+00> : vector<8x512xf32>
    %432 = tpu.matmul %18, %431, %cst_343 {dimension_numbers = #tpu.dot_dimension_numbers<[1], [0], [0], [1], [0, 0, 1, 1], [], []>} : vector<8x4xf32>, vector<4x512xf32>, vector<8x512xf32> -> vector<8x512xf32>
    %433 = arith.addf %429, %432 : vector<8x512xf32>
    %c0_344 = arith.constant 0 : index
    %c0_345 = arith.constant 0 : index
    %c1860 = arith.constant 1860 : index
    %434 = vector.load %arg1[%c0_344, %c0_345, %c1860] : memref<1x4x3278xf32, #tpu.memory_space<vmem>>, vector<1x4x512xf32>
    %435 = vector.shape_cast %434 : vector<1x4x512xf32> to vector<4x512xf32>
    %cst_346 = arith.constant dense<0.000000e+00> : vector<8x512xf32>
    %436 = tpu.matmul %20, %435, %cst_346 {dimension_numbers = #tpu.dot_dimension_numbers<[1], [0], [0], [1], [0, 0, 1, 1], [], []>} : vector<8x4xf32>, vector<4x512xf32>, vector<8x512xf32> -> vector<8x512xf32>
    %437 = arith.addf %433, %436 : vector<8x512xf32>
    %c0_347 = arith.constant 0 : index
    %c0_348 = arith.constant 0 : index
    %c1861 = arith.constant 1861 : index
    %438 = vector.load %arg1[%c0_347, %c0_348, %c1861] : memref<1x4x3278xf32, #tpu.memory_space<vmem>>, vector<1x4x512xf32>
    %439 = vector.shape_cast %438 : vector<1x4x512xf32> to vector<4x512xf32>
    %cst_349 = arith.constant dense<0.000000e+00> : vector<8x512xf32>
    %440 = tpu.matmul %22, %439, %cst_349 {dimension_numbers = #tpu.dot_dimension_numbers<[1], [0], [0], [1], [0, 0, 1, 1], [], []>} : vector<8x4xf32>, vector<4x512xf32>, vector<8x512xf32> -> vector<8x512xf32>
    %441 = arith.addf %437, %440 : vector<8x512xf32>
    %c0_350 = arith.constant 0 : index
    %c0_351 = arith.constant 0 : index
    %c1862 = arith.constant 1862 : index
    %442 = vector.load %arg1[%c0_350, %c0_351, %c1862] : memref<1x4x3278xf32, #tpu.memory_space<vmem>>, vector<1x4x512xf32>
    %443 = vector.shape_cast %442 : vector<1x4x512xf32> to vector<4x512xf32>
    %cst_352 = arith.constant dense<0.000000e+00> : vector<8x512xf32>
    %444 = tpu.matmul %24, %443, %cst_352 {dimension_numbers = #tpu.dot_dimension_numbers<[1], [0], [0], [1], [0, 0, 1, 1], [], []>} : vector<8x4xf32>, vector<4x512xf32>, vector<8x512xf32> -> vector<8x512xf32>
    %445 = arith.addf %441, %444 : vector<8x512xf32>
    %c0_353 = arith.constant 0 : index
    %c0_354 = arith.constant 0 : index
    %c1878 = arith.constant 1878 : index
    %446 = vector.load %arg1[%c0_353, %c0_354, %c1878] : memref<1x4x3278xf32, #tpu.memory_space<vmem>>, vector<1x4x512xf32>
    %447 = vector.shape_cast %446 : vector<1x4x512xf32> to vector<4x512xf32>
    %cst_355 = arith.constant dense<0.000000e+00> : vector<8x512xf32>
    %448 = tpu.matmul %26, %447, %cst_355 {dimension_numbers = #tpu.dot_dimension_numbers<[1], [0], [0], [1], [0, 0, 1, 1], [], []>} : vector<8x4xf32>, vector<4x512xf32>, vector<8x512xf32> -> vector<8x512xf32>
    %449 = arith.addf %445, %448 : vector<8x512xf32>
    %c0_356 = arith.constant 0 : index
    %c0_357 = arith.constant 0 : index
    %c1879 = arith.constant 1879 : index
    %450 = vector.load %arg1[%c0_356, %c0_357, %c1879] : memref<1x4x3278xf32, #tpu.memory_space<vmem>>, vector<1x4x512xf32>
    %451 = vector.shape_cast %450 : vector<1x4x512xf32> to vector<4x512xf32>
    %cst_358 = arith.constant dense<0.000000e+00> : vector<8x512xf32>
    %452 = tpu.matmul %28, %451, %cst_358 {dimension_numbers = #tpu.dot_dimension_numbers<[1], [0], [0], [1], [0, 0, 1, 1], [], []>} : vector<8x4xf32>, vector<4x512xf32>, vector<8x512xf32> -> vector<8x512xf32>
    %453 = arith.addf %449, %452 : vector<8x512xf32>
    %c0_359 = arith.constant 0 : index
    %c0_360 = arith.constant 0 : index
    %c1880 = arith.constant 1880 : index
    %454 = vector.load %arg1[%c0_359, %c0_360, %c1880] : memref<1x4x3278xf32, #tpu.memory_space<vmem>>, vector<1x4x512xf32>
    %455 = vector.shape_cast %454 : vector<1x4x512xf32> to vector<4x512xf32>
    %cst_361 = arith.constant dense<0.000000e+00> : vector<8x512xf32>
    %456 = tpu.matmul %30, %455, %cst_361 {dimension_numbers = #tpu.dot_dimension_numbers<[1], [0], [0], [1], [0, 0, 1, 1], [], []>} : vector<8x4xf32>, vector<4x512xf32>, vector<8x512xf32> -> vector<8x512xf32>
    %457 = arith.addf %453, %456 : vector<8x512xf32>
    %c0_362 = arith.constant 0 : index
    %c0_363 = arith.constant 0 : index
    %c1896 = arith.constant 1896 : index
    %458 = vector.load %arg1[%c0_362, %c0_363, %c1896] : memref<1x4x3278xf32, #tpu.memory_space<vmem>>, vector<1x4x512xf32>
    %459 = vector.shape_cast %458 : vector<1x4x512xf32> to vector<4x512xf32>
    %cst_364 = arith.constant dense<0.000000e+00> : vector<8x512xf32>
    %460 = tpu.matmul %32, %459, %cst_364 {dimension_numbers = #tpu.dot_dimension_numbers<[1], [0], [0], [1], [0, 0, 1, 1], [], []>} : vector<8x4xf32>, vector<4x512xf32>, vector<8x512xf32> -> vector<8x512xf32>
    %461 = arith.addf %457, %460 : vector<8x512xf32>
    %c0_365 = arith.constant 0 : index
    %c0_366 = arith.constant 0 : index
    %c1897 = arith.constant 1897 : index
    %462 = vector.load %arg1[%c0_365, %c0_366, %c1897] : memref<1x4x3278xf32, #tpu.memory_space<vmem>>, vector<1x4x512xf32>
    %463 = vector.shape_cast %462 : vector<1x4x512xf32> to vector<4x512xf32>
    %cst_367 = arith.constant dense<0.000000e+00> : vector<8x512xf32>
    %464 = tpu.matmul %34, %463, %cst_367 {dimension_numbers = #tpu.dot_dimension_numbers<[1], [0], [0], [1], [0, 0, 1, 1], [], []>} : vector<8x4xf32>, vector<4x512xf32>, vector<8x512xf32> -> vector<8x512xf32>
    %465 = arith.addf %461, %464 : vector<8x512xf32>
    %c0_368 = arith.constant 0 : index
    %c0_369 = arith.constant 0 : index
    %c1898 = arith.constant 1898 : index
    %466 = vector.load %arg1[%c0_368, %c0_369, %c1898] : memref<1x4x3278xf32, #tpu.memory_space<vmem>>, vector<1x4x512xf32>
    %467 = vector.shape_cast %466 : vector<1x4x512xf32> to vector<4x512xf32>
    %cst_370 = arith.constant dense<0.000000e+00> : vector<8x512xf32>
    %468 = tpu.matmul %36, %467, %cst_370 {dimension_numbers = #tpu.dot_dimension_numbers<[1], [0], [0], [1], [0, 0, 1, 1], [], []>} : vector<8x4xf32>, vector<4x512xf32>, vector<8x512xf32> -> vector<8x512xf32>
    %469 = arith.addf %465, %468 : vector<8x512xf32>
    %c0_371 = arith.constant 0 : index
    %c0_372 = arith.constant 0 : index
    %c2184 = arith.constant 2184 : index
    %470 = vector.load %arg1[%c0_371, %c0_372, %c2184] : memref<1x4x3278xf32, #tpu.memory_space<vmem>>, vector<1x4x512xf32>
    %471 = vector.shape_cast %470 : vector<1x4x512xf32> to vector<4x512xf32>
    %cst_373 = arith.constant dense<0.000000e+00> : vector<8x512xf32>
    %472 = tpu.matmul %38, %471, %cst_373 {dimension_numbers = #tpu.dot_dimension_numbers<[1], [0], [0], [1], [0, 0, 1, 1], [], []>} : vector<8x4xf32>, vector<4x512xf32>, vector<8x512xf32> -> vector<8x512xf32>
    %473 = arith.addf %469, %472 : vector<8x512xf32>
    %c0_374 = arith.constant 0 : index
    %c0_375 = arith.constant 0 : index
    %c2185 = arith.constant 2185 : index
    %474 = vector.load %arg1[%c0_374, %c0_375, %c2185] : memref<1x4x3278xf32, #tpu.memory_space<vmem>>, vector<1x4x512xf32>
    %475 = vector.shape_cast %474 : vector<1x4x512xf32> to vector<4x512xf32>
    %cst_376 = arith.constant dense<0.000000e+00> : vector<8x512xf32>
    %476 = tpu.matmul %40, %475, %cst_376 {dimension_numbers = #tpu.dot_dimension_numbers<[1], [0], [0], [1], [0, 0, 1, 1], [], []>} : vector<8x4xf32>, vector<4x512xf32>, vector<8x512xf32> -> vector<8x512xf32>
    %477 = arith.addf %473, %476 : vector<8x512xf32>
    %c0_377 = arith.constant 0 : index
    %c0_378 = arith.constant 0 : index
    %c2186 = arith.constant 2186 : index
    %478 = vector.load %arg1[%c0_377, %c0_378, %c2186] : memref<1x4x3278xf32, #tpu.memory_space<vmem>>, vector<1x4x512xf32>
    %479 = vector.shape_cast %478 : vector<1x4x512xf32> to vector<4x512xf32>
    %cst_379 = arith.constant dense<0.000000e+00> : vector<8x512xf32>
    %480 = tpu.matmul %42, %479, %cst_379 {dimension_numbers = #tpu.dot_dimension_numbers<[1], [0], [0], [1], [0, 0, 1, 1], [], []>} : vector<8x4xf32>, vector<4x512xf32>, vector<8x512xf32> -> vector<8x512xf32>
    %481 = arith.addf %477, %480 : vector<8x512xf32>
    %c0_380 = arith.constant 0 : index
    %c0_381 = arith.constant 0 : index
    %c2202 = arith.constant 2202 : index
    %482 = vector.load %arg1[%c0_380, %c0_381, %c2202] : memref<1x4x3278xf32, #tpu.memory_space<vmem>>, vector<1x4x512xf32>
    %483 = vector.shape_cast %482 : vector<1x4x512xf32> to vector<4x512xf32>
    %cst_382 = arith.constant dense<0.000000e+00> : vector<8x512xf32>
    %484 = tpu.matmul %44, %483, %cst_382 {dimension_numbers = #tpu.dot_dimension_numbers<[1], [0], [0], [1], [0, 0, 1, 1], [], []>} : vector<8x4xf32>, vector<4x512xf32>, vector<8x512xf32> -> vector<8x512xf32>
    %485 = arith.addf %481, %484 : vector<8x512xf32>
    %c0_383 = arith.constant 0 : index
    %c0_384 = arith.constant 0 : index
    %c2203 = arith.constant 2203 : index
    %486 = vector.load %arg1[%c0_383, %c0_384, %c2203] : memref<1x4x3278xf32, #tpu.memory_space<vmem>>, vector<1x4x512xf32>
    %487 = vector.shape_cast %486 : vector<1x4x512xf32> to vector<4x512xf32>
    %cst_385 = arith.constant dense<0.000000e+00> : vector<8x512xf32>
    %488 = tpu.matmul %46, %487, %cst_385 {dimension_numbers = #tpu.dot_dimension_numbers<[1], [0], [0], [1], [0, 0, 1, 1], [], []>} : vector<8x4xf32>, vector<4x512xf32>, vector<8x512xf32> -> vector<8x512xf32>
    %489 = arith.addf %485, %488 : vector<8x512xf32>
    %c0_386 = arith.constant 0 : index
    %c0_387 = arith.constant 0 : index
    %c2204 = arith.constant 2204 : index
    %490 = vector.load %arg1[%c0_386, %c0_387, %c2204] : memref<1x4x3278xf32, #tpu.memory_space<vmem>>, vector<1x4x512xf32>
    %491 = vector.shape_cast %490 : vector<1x4x512xf32> to vector<4x512xf32>
    %cst_388 = arith.constant dense<0.000000e+00> : vector<8x512xf32>
    %492 = tpu.matmul %48, %491, %cst_388 {dimension_numbers = #tpu.dot_dimension_numbers<[1], [0], [0], [1], [0, 0, 1, 1], [], []>} : vector<8x4xf32>, vector<4x512xf32>, vector<8x512xf32> -> vector<8x512xf32>
    %493 = arith.addf %489, %492 : vector<8x512xf32>
    %c0_389 = arith.constant 0 : index
    %c0_390 = arith.constant 0 : index
    %c2220 = arith.constant 2220 : index
    %494 = vector.load %arg1[%c0_389, %c0_390, %c2220] : memref<1x4x3278xf32, #tpu.memory_space<vmem>>, vector<1x4x512xf32>
    %495 = vector.shape_cast %494 : vector<1x4x512xf32> to vector<4x512xf32>
    %cst_391 = arith.constant dense<0.000000e+00> : vector<8x512xf32>
    %496 = tpu.matmul %50, %495, %cst_391 {dimension_numbers = #tpu.dot_dimension_numbers<[1], [0], [0], [1], [0, 0, 1, 1], [], []>} : vector<8x4xf32>, vector<4x512xf32>, vector<8x512xf32> -> vector<8x512xf32>
    %497 = arith.addf %493, %496 : vector<8x512xf32>
    %c0_392 = arith.constant 0 : index
    %c0_393 = arith.constant 0 : index
    %c2221 = arith.constant 2221 : index
    %498 = vector.load %arg1[%c0_392, %c0_393, %c2221] : memref<1x4x3278xf32, #tpu.memory_space<vmem>>, vector<1x4x512xf32>
    %499 = vector.shape_cast %498 : vector<1x4x512xf32> to vector<4x512xf32>
    %cst_394 = arith.constant dense<0.000000e+00> : vector<8x512xf32>
    %500 = tpu.matmul %52, %499, %cst_394 {dimension_numbers = #tpu.dot_dimension_numbers<[1], [0], [0], [1], [0, 0, 1, 1], [], []>} : vector<8x4xf32>, vector<4x512xf32>, vector<8x512xf32> -> vector<8x512xf32>
    %501 = arith.addf %497, %500 : vector<8x512xf32>
    %c0_395 = arith.constant 0 : index
    %c0_396 = arith.constant 0 : index
    %c2222 = arith.constant 2222 : index
    %502 = vector.load %arg1[%c0_395, %c0_396, %c2222] : memref<1x4x3278xf32, #tpu.memory_space<vmem>>, vector<1x4x512xf32>
    %503 = vector.shape_cast %502 : vector<1x4x512xf32> to vector<4x512xf32>
    %cst_397 = arith.constant dense<0.000000e+00> : vector<8x512xf32>
    %504 = tpu.matmul %54, %503, %cst_397 {dimension_numbers = #tpu.dot_dimension_numbers<[1], [0], [0], [1], [0, 0, 1, 1], [], []>} : vector<8x4xf32>, vector<4x512xf32>, vector<8x512xf32> -> vector<8x512xf32>
    %505 = arith.addf %501, %504 : vector<8x512xf32>
    %506 = vector.broadcast %0 : vector<8x1xf32> to vector<8x512xf32>
    %507 = arith.addf %505, %506 : vector<8x512xf32>
    %c0_398 = arith.constant 0 : index
    %c0_399 = arith.constant 0 : index
    %c1536_400 = arith.constant 1536 : index
    %508 = vector.load %arg4[%c0_398, %c0_399, %c1536_400] : memref<1x8x2592xf32, #tpu.memory_space<vmem>>, vector<1x8x512xf32>
    %509 = vector.shape_cast %508 : vector<1x8x512xf32> to vector<8x512xf32>
    %510 = vector.shape_cast %507 : vector<8x512xf32> to vector<1x8x512xf32>
    tpu.vector_store %arg4[%c0_398, %c0_399, %c1536_400], %510 {strides = array<i32>} : memref<1x8x2592xf32, #tpu.memory_space<vmem>>, vector<1x8x512xf32>,
    %cst_401 = arith.constant 0.000000e+00 : f32
    %511 = vector.broadcast %cst_401 : f32 to vector<8x512xf32>
    %c0_402 = arith.constant 0 : index
    %c0_403 = arith.constant 0 : index
    %c2048 = arith.constant 2048 : index
    %512 = vector.load %arg1[%c0_402, %c0_403, %c2048] : memref<1x4x3278xf32, #tpu.memory_space<vmem>>, vector<1x4x512xf32>
    %513 = vector.shape_cast %512 : vector<1x4x512xf32> to vector<4x512xf32>
    %cst_404 = arith.constant dense<0.000000e+00> : vector<8x512xf32>
    %514 = tpu.matmul %2, %513, %cst_404 {dimension_numbers = #tpu.dot_dimension_numbers<[1], [0], [0], [1], [0, 0, 1, 1], [], []>} : vector<8x4xf32>, vector<4x512xf32>, vector<8x512xf32> -> vector<8x512xf32>
    %515 = arith.addf %511, %514 : vector<8x512xf32>
    %c0_405 = arith.constant 0 : index
    %c0_406 = arith.constant 0 : index
    %c2049 = arith.constant 2049 : index
    %516 = vector.load %arg1[%c0_405, %c0_406, %c2049] : memref<1x4x3278xf32, #tpu.memory_space<vmem>>, vector<1x4x512xf32>
    %517 = vector.shape_cast %516 : vector<1x4x512xf32> to vector<4x512xf32>
    %cst_407 = arith.constant dense<0.000000e+00> : vector<8x512xf32>
    %518 = tpu.matmul %4, %517, %cst_407 {dimension_numbers = #tpu.dot_dimension_numbers<[1], [0], [0], [1], [0, 0, 1, 1], [], []>} : vector<8x4xf32>, vector<4x512xf32>, vector<8x512xf32> -> vector<8x512xf32>
    %519 = arith.addf %515, %518 : vector<8x512xf32>
    %c0_408 = arith.constant 0 : index
    %c0_409 = arith.constant 0 : index
    %c2050 = arith.constant 2050 : index
    %520 = vector.load %arg1[%c0_408, %c0_409, %c2050] : memref<1x4x3278xf32, #tpu.memory_space<vmem>>, vector<1x4x512xf32>
    %521 = vector.shape_cast %520 : vector<1x4x512xf32> to vector<4x512xf32>
    %cst_410 = arith.constant dense<0.000000e+00> : vector<8x512xf32>
    %522 = tpu.matmul %6, %521, %cst_410 {dimension_numbers = #tpu.dot_dimension_numbers<[1], [0], [0], [1], [0, 0, 1, 1], [], []>} : vector<8x4xf32>, vector<4x512xf32>, vector<8x512xf32> -> vector<8x512xf32>
    %523 = arith.addf %519, %522 : vector<8x512xf32>
    %c0_411 = arith.constant 0 : index
    %c0_412 = arith.constant 0 : index
    %c2066 = arith.constant 2066 : index
    %524 = vector.load %arg1[%c0_411, %c0_412, %c2066] : memref<1x4x3278xf32, #tpu.memory_space<vmem>>, vector<1x4x512xf32>
    %525 = vector.shape_cast %524 : vector<1x4x512xf32> to vector<4x512xf32>
    %cst_413 = arith.constant dense<0.000000e+00> : vector<8x512xf32>
    %526 = tpu.matmul %8, %525, %cst_413 {dimension_numbers = #tpu.dot_dimension_numbers<[1], [0], [0], [1], [0, 0, 1, 1], [], []>} : vector<8x4xf32>, vector<4x512xf32>, vector<8x512xf32> -> vector<8x512xf32>
    %527 = arith.addf %523, %526 : vector<8x512xf32>
    %c0_414 = arith.constant 0 : index
    %c0_415 = arith.constant 0 : index
    %c2067 = arith.constant 2067 : index
    %528 = vector.load %arg1[%c0_414, %c0_415, %c2067] : memref<1x4x3278xf32, #tpu.memory_space<vmem>>, vector<1x4x512xf32>
    %529 = vector.shape_cast %528 : vector<1x4x512xf32> to vector<4x512xf32>
    %cst_416 = arith.constant dense<0.000000e+00> : vector<8x512xf32>
    %530 = tpu.matmul %10, %529, %cst_416 {dimension_numbers = #tpu.dot_dimension_numbers<[1], [0], [0], [1], [0, 0, 1, 1], [], []>} : vector<8x4xf32>, vector<4x512xf32>, vector<8x512xf32> -> vector<8x512xf32>
    %531 = arith.addf %527, %530 : vector<8x512xf32>
    %c0_417 = arith.constant 0 : index
    %c0_418 = arith.constant 0 : index
    %c2068 = arith.constant 2068 : index
    %532 = vector.load %arg1[%c0_417, %c0_418, %c2068] : memref<1x4x3278xf32, #tpu.memory_space<vmem>>, vector<1x4x512xf32>
    %533 = vector.shape_cast %532 : vector<1x4x512xf32> to vector<4x512xf32>
    %cst_419 = arith.constant dense<0.000000e+00> : vector<8x512xf32>
    %534 = tpu.matmul %12, %533, %cst_419 {dimension_numbers = #tpu.dot_dimension_numbers<[1], [0], [0], [1], [0, 0, 1, 1], [], []>} : vector<8x4xf32>, vector<4x512xf32>, vector<8x512xf32> -> vector<8x512xf32>
    %535 = arith.addf %531, %534 : vector<8x512xf32>
    %c0_420 = arith.constant 0 : index
    %c0_421 = arith.constant 0 : index
    %c2084 = arith.constant 2084 : index
    %536 = vector.load %arg1[%c0_420, %c0_421, %c2084] : memref<1x4x3278xf32, #tpu.memory_space<vmem>>, vector<1x4x512xf32>
    %537 = vector.shape_cast %536 : vector<1x4x512xf32> to vector<4x512xf32>
    %cst_422 = arith.constant dense<0.000000e+00> : vector<8x512xf32>
    %538 = tpu.matmul %14, %537, %cst_422 {dimension_numbers = #tpu.dot_dimension_numbers<[1], [0], [0], [1], [0, 0, 1, 1], [], []>} : vector<8x4xf32>, vector<4x512xf32>, vector<8x512xf32> -> vector<8x512xf32>
    %539 = arith.addf %535, %538 : vector<8x512xf32>
    %c0_423 = arith.constant 0 : index
    %c0_424 = arith.constant 0 : index
    %c2085 = arith.constant 2085 : index
    %540 = vector.load %arg1[%c0_423, %c0_424, %c2085] : memref<1x4x3278xf32, #tpu.memory_space<vmem>>, vector<1x4x512xf32>
    %541 = vector.shape_cast %540 : vector<1x4x512xf32> to vector<4x512xf32>
    %cst_425 = arith.constant dense<0.000000e+00> : vector<8x512xf32>
    %542 = tpu.matmul %16, %541, %cst_425 {dimension_numbers = #tpu.dot_dimension_numbers<[1], [0], [0], [1], [0, 0, 1, 1], [], []>} : vector<8x4xf32>, vector<4x512xf32>, vector<8x512xf32> -> vector<8x512xf32>
    %543 = arith.addf %539, %542 : vector<8x512xf32>
    %c0_426 = arith.constant 0 : index
    %c0_427 = arith.constant 0 : index
    %c2086 = arith.constant 2086 : index
    %544 = vector.load %arg1[%c0_426, %c0_427, %c2086] : memref<1x4x3278xf32, #tpu.memory_space<vmem>>, vector<1x4x512xf32>
    %545 = vector.shape_cast %544 : vector<1x4x512xf32> to vector<4x512xf32>
    %cst_428 = arith.constant dense<0.000000e+00> : vector<8x512xf32>
    %546 = tpu.matmul %18, %545, %cst_428 {dimension_numbers = #tpu.dot_dimension_numbers<[1], [0], [0], [1], [0, 0, 1, 1], [], []>} : vector<8x4xf32>, vector<4x512xf32>, vector<8x512xf32> -> vector<8x512xf32>
    %547 = arith.addf %543, %546 : vector<8x512xf32>
    %c0_429 = arith.constant 0 : index
    %c0_430 = arith.constant 0 : index
    %c2372 = arith.constant 2372 : index
    %548 = vector.load %arg1[%c0_429, %c0_430, %c2372] : memref<1x4x3278xf32, #tpu.memory_space<vmem>>, vector<1x4x512xf32>
    %549 = vector.shape_cast %548 : vector<1x4x512xf32> to vector<4x512xf32>
    %cst_431 = arith.constant dense<0.000000e+00> : vector<8x512xf32>
    %550 = tpu.matmul %20, %549, %cst_431 {dimension_numbers = #tpu.dot_dimension_numbers<[1], [0], [0], [1], [0, 0, 1, 1], [], []>} : vector<8x4xf32>, vector<4x512xf32>, vector<8x512xf32> -> vector<8x512xf32>
    %551 = arith.addf %547, %550 : vector<8x512xf32>
    %c0_432 = arith.constant 0 : index
    %c0_433 = arith.constant 0 : index
    %c2373 = arith.constant 2373 : index
    %552 = vector.load %arg1[%c0_432, %c0_433, %c2373] : memref<1x4x3278xf32, #tpu.memory_space<vmem>>, vector<1x4x512xf32>
    %553 = vector.shape_cast %552 : vector<1x4x512xf32> to vector<4x512xf32>
    %cst_434 = arith.constant dense<0.000000e+00> : vector<8x512xf32>
    %554 = tpu.matmul %22, %553, %cst_434 {dimension_numbers = #tpu.dot_dimension_numbers<[1], [0], [0], [1], [0, 0, 1, 1], [], []>} : vector<8x4xf32>, vector<4x512xf32>, vector<8x512xf32> -> vector<8x512xf32>
    %555 = arith.addf %551, %554 : vector<8x512xf32>
    %c0_435 = arith.constant 0 : index
    %c0_436 = arith.constant 0 : index
    %c2374 = arith.constant 2374 : index
    %556 = vector.load %arg1[%c0_435, %c0_436, %c2374] : memref<1x4x3278xf32, #tpu.memory_space<vmem>>, vector<1x4x512xf32>
    %557 = vector.shape_cast %556 : vector<1x4x512xf32> to vector<4x512xf32>
    %cst_437 = arith.constant dense<0.000000e+00> : vector<8x512xf32>
    %558 = tpu.matmul %24, %557, %cst_437 {dimension_numbers = #tpu.dot_dimension_numbers<[1], [0], [0], [1], [0, 0, 1, 1], [], []>} : vector<8x4xf32>, vector<4x512xf32>, vector<8x512xf32> -> vector<8x512xf32>
    %559 = arith.addf %555, %558 : vector<8x512xf32>
    %c0_438 = arith.constant 0 : index
    %c0_439 = arith.constant 0 : index
    %c2390 = arith.constant 2390 : index
    %560 = vector.load %arg1[%c0_438, %c0_439, %c2390] : memref<1x4x3278xf32, #tpu.memory_space<vmem>>, vector<1x4x512xf32>
    %561 = vector.shape_cast %560 : vector<1x4x512xf32> to vector<4x512xf32>
    %cst_440 = arith.constant dense<0.000000e+00> : vector<8x512xf32>
    %562 = tpu.matmul %26, %561, %cst_440 {dimension_numbers = #tpu.dot_dimension_numbers<[1], [0], [0], [1], [0, 0, 1, 1], [], []>} : vector<8x4xf32>, vector<4x512xf32>, vector<8x512xf32> -> vector<8x512xf32>
    %563 = arith.addf %559, %562 : vector<8x512xf32>
    %c0_441 = arith.constant 0 : index
    %c0_442 = arith.constant 0 : index
    %c2391 = arith.constant 2391 : index
    %564 = vector.load %arg1[%c0_441, %c0_442, %c2391] : memref<1x4x3278xf32, #tpu.memory_space<vmem>>, vector<1x4x512xf32>
    %565 = vector.shape_cast %564 : vector<1x4x512xf32> to vector<4x512xf32>
    %cst_443 = arith.constant dense<0.000000e+00> : vector<8x512xf32>
    %566 = tpu.matmul %28, %565, %cst_443 {dimension_numbers = #tpu.dot_dimension_numbers<[1], [0], [0], [1], [0, 0, 1, 1], [], []>} : vector<8x4xf32>, vector<4x512xf32>, vector<8x512xf32> -> vector<8x512xf32>
    %567 = arith.addf %563, %566 : vector<8x512xf32>
    %c0_444 = arith.constant 0 : index
    %c0_445 = arith.constant 0 : index
    %c2392 = arith.constant 2392 : index
    %568 = vector.load %arg1[%c0_444, %c0_445, %c2392] : memref<1x4x3278xf32, #tpu.memory_space<vmem>>, vector<1x4x512xf32>
    %569 = vector.shape_cast %568 : vector<1x4x512xf32> to vector<4x512xf32>
    %cst_446 = arith.constant dense<0.000000e+00> : vector<8x512xf32>
    %570 = tpu.matmul %30, %569, %cst_446 {dimension_numbers = #tpu.dot_dimension_numbers<[1], [0], [0], [1], [0, 0, 1, 1], [], []>} : vector<8x4xf32>, vector<4x512xf32>, vector<8x512xf32> -> vector<8x512xf32>
    %571 = arith.addf %567, %570 : vector<8x512xf32>
    %c0_447 = arith.constant 0 : index
    %c0_448 = arith.constant 0 : index
    %c2408 = arith.constant 2408 : index
    %572 = vector.load %arg1[%c0_447, %c0_448, %c2408] : memref<1x4x3278xf32, #tpu.memory_space<vmem>>, vector<1x4x512xf32>
    %573 = vector.shape_cast %572 : vector<1x4x512xf32> to vector<4x512xf32>
    %cst_449 = arith.constant dense<0.000000e+00> : vector<8x512xf32>
    %574 = tpu.matmul %32, %573, %cst_449 {dimension_numbers = #tpu.dot_dimension_numbers<[1], [0], [0], [1], [0, 0, 1, 1], [], []>} : vector<8x4xf32>, vector<4x512xf32>, vector<8x512xf32> -> vector<8x512xf32>
    %575 = arith.addf %571, %574 : vector<8x512xf32>
    %c0_450 = arith.constant 0 : index
    %c0_451 = arith.constant 0 : index
    %c2409 = arith.constant 2409 : index
    %576 = vector.load %arg1[%c0_450, %c0_451, %c2409] : memref<1x4x3278xf32, #tpu.memory_space<vmem>>, vector<1x4x512xf32>
    %577 = vector.shape_cast %576 : vector<1x4x512xf32> to vector<4x512xf32>
    %cst_452 = arith.constant dense<0.000000e+00> : vector<8x512xf32>
    %578 = tpu.matmul %34, %577, %cst_452 {dimension_numbers = #tpu.dot_dimension_numbers<[1], [0], [0], [1], [0, 0, 1, 1], [], []>} : vector<8x4xf32>, vector<4x512xf32>, vector<8x512xf32> -> vector<8x512xf32>
    %579 = arith.addf %575, %578 : vector<8x512xf32>
    %c0_453 = arith.constant 0 : index
    %c0_454 = arith.constant 0 : index
    %c2410 = arith.constant 2410 : index
    %580 = vector.load %arg1[%c0_453, %c0_454, %c2410] : memref<1x4x3278xf32, #tpu.memory_space<vmem>>, vector<1x4x512xf32>
    %581 = vector.shape_cast %580 : vector<1x4x512xf32> to vector<4x512xf32>
    %cst_455 = arith.constant dense<0.000000e+00> : vector<8x512xf32>
    %582 = tpu.matmul %36, %581, %cst_455 {dimension_numbers = #tpu.dot_dimension_numbers<[1], [0], [0], [1], [0, 0, 1, 1], [], []>} : vector<8x4xf32>, vector<4x512xf32>, vector<8x512xf32> -> vector<8x512xf32>
    %583 = arith.addf %579, %582 : vector<8x512xf32>
    %c0_456 = arith.constant 0 : index
    %c0_457 = arith.constant 0 : index
    %c2696 = arith.constant 2696 : index
    %584 = vector.load %arg1[%c0_456, %c0_457, %c2696] : memref<1x4x3278xf32, #tpu.memory_space<vmem>>, vector<1x4x512xf32>
    %585 = vector.shape_cast %584 : vector<1x4x512xf32> to vector<4x512xf32>
    %cst_458 = arith.constant dense<0.000000e+00> : vector<8x512xf32>
    %586 = tpu.matmul %38, %585, %cst_458 {dimension_numbers = #tpu.dot_dimension_numbers<[1], [0], [0], [1], [0, 0, 1, 1], [], []>} : vector<8x4xf32>, vector<4x512xf32>, vector<8x512xf32> -> vector<8x512xf32>
    %587 = arith.addf %583, %586 : vector<8x512xf32>
    %c0_459 = arith.constant 0 : index
    %c0_460 = arith.constant 0 : index
    %c2697 = arith.constant 2697 : index
    %588 = vector.load %arg1[%c0_459, %c0_460, %c2697] : memref<1x4x3278xf32, #tpu.memory_space<vmem>>, vector<1x4x512xf32>
    %589 = vector.shape_cast %588 : vector<1x4x512xf32> to vector<4x512xf32>
    %cst_461 = arith.constant dense<0.000000e+00> : vector<8x512xf32>
    %590 = tpu.matmul %40, %589, %cst_461 {dimension_numbers = #tpu.dot_dimension_numbers<[1], [0], [0], [1], [0, 0, 1, 1], [], []>} : vector<8x4xf32>, vector<4x512xf32>, vector<8x512xf32> -> vector<8x512xf32>
    %591 = arith.addf %587, %590 : vector<8x512xf32>
    %c0_462 = arith.constant 0 : index
    %c0_463 = arith.constant 0 : index
    %c2698 = arith.constant 2698 : index
    %592 = vector.load %arg1[%c0_462, %c0_463, %c2698] : memref<1x4x3278xf32, #tpu.memory_space<vmem>>, vector<1x4x512xf32>
    %593 = vector.shape_cast %592 : vector<1x4x512xf32> to vector<4x512xf32>
    %cst_464 = arith.constant dense<0.000000e+00> : vector<8x512xf32>
    %594 = tpu.matmul %42, %593, %cst_464 {dimension_numbers = #tpu.dot_dimension_numbers<[1], [0], [0], [1], [0, 0, 1, 1], [], []>} : vector<8x4xf32>, vector<4x512xf32>, vector<8x512xf32> -> vector<8x512xf32>
    %595 = arith.addf %591, %594 : vector<8x512xf32>
    %c0_465 = arith.constant 0 : index
    %c0_466 = arith.constant 0 : index
    %c2714 = arith.constant 2714 : index
    %596 = vector.load %arg1[%c0_465, %c0_466, %c2714] : memref<1x4x3278xf32, #tpu.memory_space<vmem>>, vector<1x4x512xf32>
    %597 = vector.shape_cast %596 : vector<1x4x512xf32> to vector<4x512xf32>
    %cst_467 = arith.constant dense<0.000000e+00> : vector<8x512xf32>
    %598 = tpu.matmul %44, %597, %cst_467 {dimension_numbers = #tpu.dot_dimension_numbers<[1], [0], [0], [1], [0, 0, 1, 1], [], []>} : vector<8x4xf32>, vector<4x512xf32>, vector<8x512xf32> -> vector<8x512xf32>
    %599 = arith.addf %595, %598 : vector<8x512xf32>
    %c0_468 = arith.constant 0 : index
    %c0_469 = arith.constant 0 : index
    %c2715 = arith.constant 2715 : index
    %600 = vector.load %arg1[%c0_468, %c0_469, %c2715] : memref<1x4x3278xf32, #tpu.memory_space<vmem>>, vector<1x4x512xf32>
    %601 = vector.shape_cast %600 : vector<1x4x512xf32> to vector<4x512xf32>
    %cst_470 = arith.constant dense<0.000000e+00> : vector<8x512xf32>
    %602 = tpu.matmul %46, %601, %cst_470 {dimension_numbers = #tpu.dot_dimension_numbers<[1], [0], [0], [1], [0, 0, 1, 1], [], []>} : vector<8x4xf32>, vector<4x512xf32>, vector<8x512xf32> -> vector<8x512xf32>
    %603 = arith.addf %599, %602 : vector<8x512xf32>
    %c0_471 = arith.constant 0 : index
    %c0_472 = arith.constant 0 : index
    %c2716 = arith.constant 2716 : index
    %604 = vector.load %arg1[%c0_471, %c0_472, %c2716] : memref<1x4x3278xf32, #tpu.memory_space<vmem>>, vector<1x4x512xf32>
    %605 = vector.shape_cast %604 : vector<1x4x512xf32> to vector<4x512xf32>
    %cst_473 = arith.constant dense<0.000000e+00> : vector<8x512xf32>
    %606 = tpu.matmul %48, %605, %cst_473 {dimension_numbers = #tpu.dot_dimension_numbers<[1], [0], [0], [1], [0, 0, 1, 1], [], []>} : vector<8x4xf32>, vector<4x512xf32>, vector<8x512xf32> -> vector<8x512xf32>
    %607 = arith.addf %603, %606 : vector<8x512xf32>
    %c0_474 = arith.constant 0 : index
    %c0_475 = arith.constant 0 : index
    %c2732 = arith.constant 2732 : index
    %608 = vector.load %arg1[%c0_474, %c0_475, %c2732] : memref<1x4x3278xf32, #tpu.memory_space<vmem>>, vector<1x4x512xf32>
    %609 = vector.shape_cast %608 : vector<1x4x512xf32> to vector<4x512xf32>
    %cst_476 = arith.constant dense<0.000000e+00> : vector<8x512xf32>
    %610 = tpu.matmul %50, %609, %cst_476 {dimension_numbers = #tpu.dot_dimension_numbers<[1], [0], [0], [1], [0, 0, 1, 1], [], []>} : vector<8x4xf32>, vector<4x512xf32>, vector<8x512xf32> -> vector<8x512xf32>
    %611 = arith.addf %607, %610 : vector<8x512xf32>
    %c0_477 = arith.constant 0 : index
    %c0_478 = arith.constant 0 : index
    %c2733 = arith.constant 2733 : index
    %612 = vector.load %arg1[%c0_477, %c0_478, %c2733] : memref<1x4x3278xf32, #tpu.memory_space<vmem>>, vector<1x4x512xf32>
    %613 = vector.shape_cast %612 : vector<1x4x512xf32> to vector<4x512xf32>
    %cst_479 = arith.constant dense<0.000000e+00> : vector<8x512xf32>
    %614 = tpu.matmul %52, %613, %cst_479 {dimension_numbers = #tpu.dot_dimension_numbers<[1], [0], [0], [1], [0, 0, 1, 1], [], []>} : vector<8x4xf32>, vector<4x512xf32>, vector<8x512xf32> -> vector<8x512xf32>
    %615 = arith.addf %611, %614 : vector<8x512xf32>
    %c0_480 = arith.constant 0 : index
    %c0_481 = arith.constant 0 : index
    %c2734 = arith.constant 2734 : index
    %616 = vector.load %arg1[%c0_480, %c0_481, %c2734] : memref<1x4x3278xf32, #tpu.memory_space<vmem>>, vector<1x4x512xf32>
    %617 = vector.shape_cast %616 : vector<1x4x512xf32> to vector<4x512xf32>
    %cst_482 = arith.constant dense<0.000000e+00> : vector<8x512xf32>
    %618 = tpu.matmul %54, %617, %cst_482 {dimension_numbers = #tpu.dot_dimension_numbers<[1], [0], [0], [1], [0, 0, 1, 1], [], []>} : vector<8x4xf32>, vector<4x512xf32>, vector<8x512xf32> -> vector<8x512xf32>
    %619 = arith.addf %615, %618 : vector<8x512xf32>
    %620 = vector.broadcast %0 : vector<8x1xf32> to vector<8x512xf32>
    %621 = arith.addf %619, %620 : vector<8x512xf32>
    %c0_483 = arith.constant 0 : index
    %c0_484 = arith.constant 0 : index
    %c2048_485 = arith.constant 2048 : index
    %622 = vector.load %arg4[%c0_483, %c0_484, %c2048_485] : memref<1x8x2592xf32, #tpu.memory_space<vmem>>, vector<1x8x512xf32>
    %623 = vector.shape_cast %622 : vector<1x8x512xf32> to vector<8x512xf32>
    %624 = vector.shape_cast %621 : vector<8x512xf32> to vector<1x8x512xf32>
    tpu.vector_store %arg4[%c0_483, %c0_484, %c2048_485], %624 {strides = array<i32>} : memref<1x8x2592xf32, #tpu.memory_space<vmem>>, vector<1x8x512xf32>,
    %cst_486 = arith.constant 0.000000e+00 : f32
    %625 = vector.broadcast %cst_486 : f32 to vector<8x32xf32>
    %c0_487 = arith.constant 0 : index
    %c0_488 = arith.constant 0 : index
    %c2560 = arith.constant 2560 : index
    %626 = vector.load %arg1[%c0_487, %c0_488, %c2560] : memref<1x4x3278xf32, #tpu.memory_space<vmem>>, vector<1x4x32xf32>
    %627 = vector.shape_cast %626 : vector<1x4x32xf32> to vector<4x32xf32>
    %cst_489 = arith.constant dense<0.000000e+00> : vector<8x32xf32>
    %628 = tpu.matmul %2, %627, %cst_489 {dimension_numbers = #tpu.dot_dimension_numbers<[1], [0], [0], [1], [0, 0, 1, 1], [], []>} : vector<8x4xf32>, vector<4x32xf32>, vector<8x32xf32> -> vector<8x32xf32>
    %629 = arith.addf %625, %628 : vector<8x32xf32>
    %c0_490 = arith.constant 0 : index
    %c0_491 = arith.constant 0 : index
    %c2561 = arith.constant 2561 : index
    %630 = vector.load %arg1[%c0_490, %c0_491, %c2561] : memref<1x4x3278xf32, #tpu.memory_space<vmem>>, vector<1x4x32xf32>
    %631 = vector.shape_cast %630 : vector<1x4x32xf32> to vector<4x32xf32>
    %cst_492 = arith.constant dense<0.000000e+00> : vector<8x32xf32>
    %632 = tpu.matmul %4, %631, %cst_492 {dimension_numbers = #tpu.dot_dimension_numbers<[1], [0], [0], [1], [0, 0, 1, 1], [], []>} : vector<8x4xf32>, vector<4x32xf32>, vector<8x32xf32> -> vector<8x32xf32>
    %633 = arith.addf %629, %632 : vector<8x32xf32>
    %c0_493 = arith.constant 0 : index
    %c0_494 = arith.constant 0 : index
    %c2562 = arith.constant 2562 : index
    %634 = vector.load %arg1[%c0_493, %c0_494, %c2562] : memref<1x4x3278xf32, #tpu.memory_space<vmem>>, vector<1x4x32xf32>
    %635 = vector.shape_cast %634 : vector<1x4x32xf32> to vector<4x32xf32>
    %cst_495 = arith.constant dense<0.000000e+00> : vector<8x32xf32>
    %636 = tpu.matmul %6, %635, %cst_495 {dimension_numbers = #tpu.dot_dimension_numbers<[1], [0], [0], [1], [0, 0, 1, 1], [], []>} : vector<8x4xf32>, vector<4x32xf32>, vector<8x32xf32> -> vector<8x32xf32>
    %637 = arith.addf %633, %636 : vector<8x32xf32>
    %c0_496 = arith.constant 0 : index
    %c0_497 = arith.constant 0 : index
    %c2578 = arith.constant 2578 : index
    %638 = vector.load %arg1[%c0_496, %c0_497, %c2578] : memref<1x4x3278xf32, #tpu.memory_space<vmem>>, vector<1x4x32xf32>
    %639 = vector.shape_cast %638 : vector<1x4x32xf32> to vector<4x32xf32>
    %cst_498 = arith.constant dense<0.000000e+00> : vector<8x32xf32>
    %640 = tpu.matmul %8, %639, %cst_498 {dimension_numbers = #tpu.dot_dimension_numbers<[1], [0], [0], [1], [0, 0, 1, 1], [], []>} : vector<8x4xf32>, vector<4x32xf32>, vector<8x32xf32> -> vector<8x32xf32>
    %641 = arith.addf %637, %640 : vector<8x32xf32>
    %c0_499 = arith.constant 0 : index
    %c0_500 = arith.constant 0 : index
    %c2579 = arith.constant 2579 : index
    %642 = vector.load %arg1[%c0_499, %c0_500, %c2579] : memref<1x4x3278xf32, #tpu.memory_space<vmem>>, vector<1x4x32xf32>
    %643 = vector.shape_cast %642 : vector<1x4x32xf32> to vector<4x32xf32>
    %cst_501 = arith.constant dense<0.000000e+00> : vector<8x32xf32>
    %644 = tpu.matmul %10, %643, %cst_501 {dimension_numbers = #tpu.dot_dimension_numbers<[1], [0], [0], [1], [0, 0, 1, 1], [], []>} : vector<8x4xf32>, vector<4x32xf32>, vector<8x32xf32> -> vector<8x32xf32>
    %645 = arith.addf %641, %644 : vector<8x32xf32>
    %c0_502 = arith.constant 0 : index
    %c0_503 = arith.constant 0 : index
    %c2580 = arith.constant 2580 : index
    %646 = vector.load %arg1[%c0_502, %c0_503, %c2580] : memref<1x4x3278xf32, #tpu.memory_space<vmem>>, vector<1x4x32xf32>
    %647 = vector.shape_cast %646 : vector<1x4x32xf32> to vector<4x32xf32>
    %cst_504 = arith.constant dense<0.000000e+00> : vector<8x32xf32>
    %648 = tpu.matmul %12, %647, %cst_504 {dimension_numbers = #tpu.dot_dimension_numbers<[1], [0], [0], [1], [0, 0, 1, 1], [], []>} : vector<8x4xf32>, vector<4x32xf32>, vector<8x32xf32> -> vector<8x32xf32>
    %649 = arith.addf %645, %648 : vector<8x32xf32>
    %c0_505 = arith.constant 0 : index
    %c0_506 = arith.constant 0 : index
    %c2596 = arith.constant 2596 : index
    %650 = vector.load %arg1[%c0_505, %c0_506, %c2596] : memref<1x4x3278xf32, #tpu.memory_space<vmem>>, vector<1x4x32xf32>
    %651 = vector.shape_cast %650 : vector<1x4x32xf32> to vector<4x32xf32>
    %cst_507 = arith.constant dense<0.000000e+00> : vector<8x32xf32>
    %652 = tpu.matmul %14, %651, %cst_507 {dimension_numbers = #tpu.dot_dimension_numbers<[1], [0], [0], [1], [0, 0, 1, 1], [], []>} : vector<8x4xf32>, vector<4x32xf32>, vector<8x32xf32> -> vector<8x32xf32>
    %653 = arith.addf %649, %652 : vector<8x32xf32>
    %c0_508 = arith.constant 0 : index
    %c0_509 = arith.constant 0 : index
    %c2597 = arith.constant 2597 : index
    %654 = vector.load %arg1[%c0_508, %c0_509, %c2597] : memref<1x4x3278xf32, #tpu.memory_space<vmem>>, vector<1x4x32xf32>
    %655 = vector.shape_cast %654 : vector<1x4x32xf32> to vector<4x32xf32>
    %cst_510 = arith.constant dense<0.000000e+00> : vector<8x32xf32>
    %656 = tpu.matmul %16, %655, %cst_510 {dimension_numbers = #tpu.dot_dimension_numbers<[1], [0], [0], [1], [0, 0, 1, 1], [], []>} : vector<8x4xf32>, vector<4x32xf32>, vector<8x32xf32> -> vector<8x32xf32>
    %657 = arith.addf %653, %656 : vector<8x32xf32>
    %c0_511 = arith.constant 0 : index
    %c0_512 = arith.constant 0 : index
    %c2598 = arith.constant 2598 : index
    %658 = vector.load %arg1[%c0_511, %c0_512, %c2598] : memref<1x4x3278xf32, #tpu.memory_space<vmem>>, vector<1x4x32xf32>
    %659 = vector.shape_cast %658 : vector<1x4x32xf32> to vector<4x32xf32>
    %cst_513 = arith.constant dense<0.000000e+00> : vector<8x32xf32>
    %660 = tpu.matmul %18, %659, %cst_513 {dimension_numbers = #tpu.dot_dimension_numbers<[1], [0], [0], [1], [0, 0, 1, 1], [], []>} : vector<8x4xf32>, vector<4x32xf32>, vector<8x32xf32> -> vector<8x32xf32>
    %661 = arith.addf %657, %660 : vector<8x32xf32>
    %c0_514 = arith.constant 0 : index
    %c0_515 = arith.constant 0 : index
    %c2884 = arith.constant 2884 : index
    %662 = vector.load %arg1[%c0_514, %c0_515, %c2884] : memref<1x4x3278xf32, #tpu.memory_space<vmem>>, vector<1x4x32xf32>
    %663 = vector.shape_cast %662 : vector<1x4x32xf32> to vector<4x32xf32>
    %cst_516 = arith.constant dense<0.000000e+00> : vector<8x32xf32>
    %664 = tpu.matmul %20, %663, %cst_516 {dimension_numbers = #tpu.dot_dimension_numbers<[1], [0], [0], [1], [0, 0, 1, 1], [], []>} : vector<8x4xf32>, vector<4x32xf32>, vector<8x32xf32> -> vector<8x32xf32>
    %665 = arith.addf %661, %664 : vector<8x32xf32>
    %c0_517 = arith.constant 0 : index
    %c0_518 = arith.constant 0 : index
    %c2885 = arith.constant 2885 : index
    %666 = vector.load %arg1[%c0_517, %c0_518, %c2885] : memref<1x4x3278xf32, #tpu.memory_space<vmem>>, vector<1x4x32xf32>
    %667 = vector.shape_cast %666 : vector<1x4x32xf32> to vector<4x32xf32>
    %cst_519 = arith.constant dense<0.000000e+00> : vector<8x32xf32>
    %668 = tpu.matmul %22, %667, %cst_519 {dimension_numbers = #tpu.dot_dimension_numbers<[1], [0], [0], [1], [0, 0, 1, 1], [], []>} : vector<8x4xf32>, vector<4x32xf32>, vector<8x32xf32> -> vector<8x32xf32>
    %669 = arith.addf %665, %668 : vector<8x32xf32>
    %c0_520 = arith.constant 0 : index
    %c0_521 = arith.constant 0 : index
    %c2886 = arith.constant 2886 : index
    %670 = vector.load %arg1[%c0_520, %c0_521, %c2886] : memref<1x4x3278xf32, #tpu.memory_space<vmem>>, vector<1x4x32xf32>
    %671 = vector.shape_cast %670 : vector<1x4x32xf32> to vector<4x32xf32>
    %cst_522 = arith.constant dense<0.000000e+00> : vector<8x32xf32>
    %672 = tpu.matmul %24, %671, %cst_522 {dimension_numbers = #tpu.dot_dimension_numbers<[1], [0], [0], [1], [0, 0, 1, 1], [], []>} : vector<8x4xf32>, vector<4x32xf32>, vector<8x32xf32> -> vector<8x32xf32>
    %673 = arith.addf %669, %672 : vector<8x32xf32>
    %c0_523 = arith.constant 0 : index
    %c0_524 = arith.constant 0 : index
    %c2902 = arith.constant 2902 : index
    %674 = vector.load %arg1[%c0_523, %c0_524, %c2902] : memref<1x4x3278xf32, #tpu.memory_space<vmem>>, vector<1x4x32xf32>
    %675 = vector.shape_cast %674 : vector<1x4x32xf32> to vector<4x32xf32>
    %cst_525 = arith.constant dense<0.000000e+00> : vector<8x32xf32>
    %676 = tpu.matmul %26, %675, %cst_525 {dimension_numbers = #tpu.dot_dimension_numbers<[1], [0], [0], [1], [0, 0, 1, 1], [], []>} : vector<8x4xf32>, vector<4x32xf32>, vector<8x32xf32> -> vector<8x32xf32>
    %677 = arith.addf %673, %676 : vector<8x32xf32>
    %c0_526 = arith.constant 0 : index
    %c0_527 = arith.constant 0 : index
    %c2903 = arith.constant 2903 : index
    %678 = vector.load %arg1[%c0_526, %c0_527, %c2903] : memref<1x4x3278xf32, #tpu.memory_space<vmem>>, vector<1x4x32xf32>
    %679 = vector.shape_cast %678 : vector<1x4x32xf32> to vector<4x32xf32>
    %cst_528 = arith.constant dense<0.000000e+00> : vector<8x32xf32>
    %680 = tpu.matmul %28, %679, %cst_528 {dimension_numbers = #tpu.dot_dimension_numbers<[1], [0], [0], [1], [0, 0, 1, 1], [], []>} : vector<8x4xf32>, vector<4x32xf32>, vector<8x32xf32> -> vector<8x32xf32>
    %681 = arith.addf %677, %680 : vector<8x32xf32>
    %c0_529 = arith.constant 0 : index
    %c0_530 = arith.constant 0 : index
    %c2904 = arith.constant 2904 : index
    %682 = vector.load %arg1[%c0_529, %c0_530, %c2904] : memref<1x4x3278xf32, #tpu.memory_space<vmem>>, vector<1x4x32xf32>
    %683 = vector.shape_cast %682 : vector<1x4x32xf32> to vector<4x32xf32>
    %cst_531 = arith.constant dense<0.000000e+00> : vector<8x32xf32>
    %684 = tpu.matmul %30, %683, %cst_531 {dimension_numbers = #tpu.dot_dimension_numbers<[1], [0], [0], [1], [0, 0, 1, 1], [], []>} : vector<8x4xf32>, vector<4x32xf32>, vector<8x32xf32> -> vector<8x32xf32>
    %685 = arith.addf %681, %684 : vector<8x32xf32>
    %c0_532 = arith.constant 0 : index
    %c0_533 = arith.constant 0 : index
    %c2920 = arith.constant 2920 : index
    %686 = vector.load %arg1[%c0_532, %c0_533, %c2920] : memref<1x4x3278xf32, #tpu.memory_space<vmem>>, vector<1x4x32xf32>
    %687 = vector.shape_cast %686 : vector<1x4x32xf32> to vector<4x32xf32>
    %cst_534 = arith.constant dense<0.000000e+00> : vector<8x32xf32>
    %688 = tpu.matmul %32, %687, %cst_534 {dimension_numbers = #tpu.dot_dimension_numbers<[1], [0], [0], [1], [0, 0, 1, 1], [], []>} : vector<8x4xf32>, vector<4x32xf32>, vector<8x32xf32> -> vector<8x32xf32>
    %689 = arith.addf %685, %688 : vector<8x32xf32>
    %c0_535 = arith.constant 0 : index
    %c0_536 = arith.constant 0 : index
    %c2921 = arith.constant 2921 : index
    %690 = vector.load %arg1[%c0_535, %c0_536, %c2921] : memref<1x4x3278xf32, #tpu.memory_space<vmem>>, vector<1x4x32xf32>
    %691 = vector.shape_cast %690 : vector<1x4x32xf32> to vector<4x32xf32>
    %cst_537 = arith.constant dense<0.000000e+00> : vector<8x32xf32>
    %692 = tpu.matmul %34, %691, %cst_537 {dimension_numbers = #tpu.dot_dimension_numbers<[1], [0], [0], [1], [0, 0, 1, 1], [], []>} : vector<8x4xf32>, vector<4x32xf32>, vector<8x32xf32> -> vector<8x32xf32>
    %693 = arith.addf %689, %692 : vector<8x32xf32>
    %c0_538 = arith.constant 0 : index
    %c0_539 = arith.constant 0 : index
    %c2922 = arith.constant 2922 : index
    %694 = vector.load %arg1[%c0_538, %c0_539, %c2922] : memref<1x4x3278xf32, #tpu.memory_space<vmem>>, vector<1x4x32xf32>
    %695 = vector.shape_cast %694 : vector<1x4x32xf32> to vector<4x32xf32>
    %cst_540 = arith.constant dense<0.000000e+00> : vector<8x32xf32>
    %696 = tpu.matmul %36, %695, %cst_540 {dimension_numbers = #tpu.dot_dimension_numbers<[1], [0], [0], [1], [0, 0, 1, 1], [], []>} : vector<8x4xf32>, vector<4x32xf32>, vector<8x32xf32> -> vector<8x32xf32>
    %697 = arith.addf %693, %696 : vector<8x32xf32>
    %c0_541 = arith.constant 0 : index
    %c0_542 = arith.constant 0 : index
    %c3208 = arith.constant 3208 : index
    %698 = vector.load %arg1[%c0_541, %c0_542, %c3208] : memref<1x4x3278xf32, #tpu.memory_space<vmem>>, vector<1x4x32xf32>
    %699 = vector.shape_cast %698 : vector<1x4x32xf32> to vector<4x32xf32>
    %cst_543 = arith.constant dense<0.000000e+00> : vector<8x32xf32>
    %700 = tpu.matmul %38, %699, %cst_543 {dimension_numbers = #tpu.dot_dimension_numbers<[1], [0], [0], [1], [0, 0, 1, 1], [], []>} : vector<8x4xf32>, vector<4x32xf32>, vector<8x32xf32> -> vector<8x32xf32>
    %701 = arith.addf %697, %700 : vector<8x32xf32>
    %c0_544 = arith.constant 0 : index
    %c0_545 = arith.constant 0 : index
    %c3209 = arith.constant 3209 : index
    %702 = vector.load %arg1[%c0_544, %c0_545, %c3209] : memref<1x4x3278xf32, #tpu.memory_space<vmem>>, vector<1x4x32xf32>
    %703 = vector.shape_cast %702 : vector<1x4x32xf32> to vector<4x32xf32>
    %cst_546 = arith.constant dense<0.000000e+00> : vector<8x32xf32>
    %704 = tpu.matmul %40, %703, %cst_546 {dimension_numbers = #tpu.dot_dimension_numbers<[1], [0], [0], [1], [0, 0, 1, 1], [], []>} : vector<8x4xf32>, vector<4x32xf32>, vector<8x32xf32> -> vector<8x32xf32>
    %705 = arith.addf %701, %704 : vector<8x32xf32>
    %c0_547 = arith.constant 0 : index
    %c0_548 = arith.constant 0 : index
    %c3210 = arith.constant 3210 : index
    %706 = vector.load %arg1[%c0_547, %c0_548, %c3210] : memref<1x4x3278xf32, #tpu.memory_space<vmem>>, vector<1x4x32xf32>
    %707 = vector.shape_cast %706 : vector<1x4x32xf32> to vector<4x32xf32>
    %cst_549 = arith.constant dense<0.000000e+00> : vector<8x32xf32>
    %708 = tpu.matmul %42, %707, %cst_549 {dimension_numbers = #tpu.dot_dimension_numbers<[1], [0], [0], [1], [0, 0, 1, 1], [], []>} : vector<8x4xf32>, vector<4x32xf32>, vector<8x32xf32> -> vector<8x32xf32>
    %709 = arith.addf %705, %708 : vector<8x32xf32>
    %c0_550 = arith.constant 0 : index
    %c0_551 = arith.constant 0 : index
    %c3226 = arith.constant 3226 : index
    %710 = vector.load %arg1[%c0_550, %c0_551, %c3226] : memref<1x4x3278xf32, #tpu.memory_space<vmem>>, vector<1x4x32xf32>
    %711 = vector.shape_cast %710 : vector<1x4x32xf32> to vector<4x32xf32>
    %cst_552 = arith.constant dense<0.000000e+00> : vector<8x32xf32>
    %712 = tpu.matmul %44, %711, %cst_552 {dimension_numbers = #tpu.dot_dimension_numbers<[1], [0], [0], [1], [0, 0, 1, 1], [], []>} : vector<8x4xf32>, vector<4x32xf32>, vector<8x32xf32> -> vector<8x32xf32>
    %713 = arith.addf %709, %712 : vector<8x32xf32>
    %c0_553 = arith.constant 0 : index
    %c0_554 = arith.constant 0 : index
    %c3227 = arith.constant 3227 : index
    %714 = vector.load %arg1[%c0_553, %c0_554, %c3227] : memref<1x4x3278xf32, #tpu.memory_space<vmem>>, vector<1x4x32xf32>
    %715 = vector.shape_cast %714 : vector<1x4x32xf32> to vector<4x32xf32>
    %cst_555 = arith.constant dense<0.000000e+00> : vector<8x32xf32>
    %716 = tpu.matmul %46, %715, %cst_555 {dimension_numbers = #tpu.dot_dimension_numbers<[1], [0], [0], [1], [0, 0, 1, 1], [], []>} : vector<8x4xf32>, vector<4x32xf32>, vector<8x32xf32> -> vector<8x32xf32>
    %717 = arith.addf %713, %716 : vector<8x32xf32>
    %c0_556 = arith.constant 0 : index
    %c0_557 = arith.constant 0 : index
    %c3228 = arith.constant 3228 : index
    %718 = vector.load %arg1[%c0_556, %c0_557, %c3228] : memref<1x4x3278xf32, #tpu.memory_space<vmem>>, vector<1x4x32xf32>
    %719 = vector.shape_cast %718 : vector<1x4x32xf32> to vector<4x32xf32>
    %cst_558 = arith.constant dense<0.000000e+00> : vector<8x32xf32>
    %720 = tpu.matmul %48, %719, %cst_558 {dimension_numbers = #tpu.dot_dimension_numbers<[1], [0], [0], [1], [0, 0, 1, 1], [], []>} : vector<8x4xf32>, vector<4x32xf32>, vector<8x32xf32> -> vector<8x32xf32>
    %721 = arith.addf %717, %720 : vector<8x32xf32>
    %c0_559 = arith.constant 0 : index
    %c0_560 = arith.constant 0 : index
    %c3244 = arith.constant 3244 : index
    %722 = vector.load %arg1[%c0_559, %c0_560, %c3244] : memref<1x4x3278xf32, #tpu.memory_space<vmem>>, vector<1x4x32xf32>
    %723 = vector.shape_cast %722 : vector<1x4x32xf32> to vector<4x32xf32>
    %cst_561 = arith.constant dense<0.000000e+00> : vector<8x32xf32>
    %724 = tpu.matmul %50, %723, %cst_561 {dimension_numbers = #tpu.dot_dimension_numbers<[1], [0], [0], [1], [0, 0, 1, 1], [], []>} : vector<8x4xf32>, vector<4x32xf32>, vector<8x32xf32> -> vector<8x32xf32>
    %725 = arith.addf %721, %724 : vector<8x32xf32>
    %c0_562 = arith.constant 0 : index
    %c0_563 = arith.constant 0 : index
    %c3245 = arith.constant 3245 : index
    %726 = vector.load %arg1[%c0_562, %c0_563, %c3245] : memref<1x4x3278xf32, #tpu.memory_space<vmem>>, vector<1x4x32xf32>
    %727 = vector.shape_cast %726 : vector<1x4x32xf32> to vector<4x32xf32>
    %cst_564 = arith.constant dense<0.000000e+00> : vector<8x32xf32>
    %728 = tpu.matmul %52, %727, %cst_564 {dimension_numbers = #tpu.dot_dimension_numbers<[1], [0], [0], [1], [0, 0, 1, 1], [], []>} : vector<8x4xf32>, vector<4x32xf32>, vector<8x32xf32> -> vector<8x32xf32>
    %729 = arith.addf %725, %728 : vector<8x32xf32>
    %c0_565 = arith.constant 0 : index
    %c0_566 = arith.constant 0 : index
    %c3246 = arith.constant 3246 : index
    %730 = vector.load %arg1[%c0_565, %c0_566, %c3246] : memref<1x4x3278xf32, #tpu.memory_space<vmem>>, vector<1x4x32xf32>
    %731 = vector.shape_cast %730 : vector<1x4x32xf32> to vector<4x32xf32>
    %cst_567 = arith.constant dense<0.000000e+00> : vector<8x32xf32>
    %732 = tpu.matmul %54, %731, %cst_567 {dimension_numbers = #tpu.dot_dimension_numbers<[1], [0], [0], [1], [0, 0, 1, 1], [], []>} : vector<8x4xf32>, vector<4x32xf32>, vector<8x32xf32> -> vector<8x32xf32>
    %733 = arith.addf %729, %732 : vector<8x32xf32>
    %734 = vector.broadcast %0 : vector<8x1xf32> to vector<8x32xf32>
    %735 = arith.addf %733, %734 : vector<8x32xf32>
    %c0_568 = arith.constant 0 : index
    %c0_569 = arith.constant 0 : index
    %c2560_570 = arith.constant 2560 : index
    %736 = vector.load %arg4[%c0_568, %c0_569, %c2560_570] : memref<1x8x2592xf32, #tpu.memory_space<vmem>>, vector<1x8x32xf32>
    %737 = vector.shape_cast %736 : vector<1x8x32xf32> to vector<8x32xf32>
    %738 = vector.shape_cast %735 : vector<8x32xf32> to vector<1x8x32xf32>
    tpu.vector_store %arg4[%c0_568, %c0_569, %c2560_570], %738 {strides = array<i32>} : memref<1x8x2592xf32, #tpu.memory_space<vmem>>, vector<1x8x32xf32>,
    return
  }
  func.func @transform_0(%arg0: i32) -> (i32, i32, i32) {
    %c0_i32 = arith.constant 0 : i32
    %c0_i32_0 = arith.constant 0 : i32
    %c0_i32_1 = arith.constant 0 : i32
    return %arg0, %c0_i32, %c0_i32_0 : i32, i32, i32
  }
  func.func @transform_1(%arg0: i32) -> (i32, i32, i32) {
    %c0_i32 = arith.constant 0 : i32
    %c0_i32_0 = arith.constant 0 : i32
    %c0_i32_1 = arith.constant 0 : i32
    %c0_i32_2 = arith.constant 0 : i32
    return %c0_i32, %c0_i32_0, %c0_i32_1 : i32, i32, i32
  }
  func.func @transform_2(%arg0: i32) -> (i32, i32) {
    %c0_i32 = arith.constant 0 : i32
    %c0_i32_0 = arith.constant 0 : i32
    %c0_i32_1 = arith.constant 0 : i32
    return %c0_i32, %c0_i32_0 : i32, i32
  }
  func.func @transform_3(%arg0: i32) -> (i32, i32, i32) {
    %c0_i32 = arith.constant 0 : i32
    %c0_i32_0 = arith.constant 0 : i32
    %c0_i32_1 = arith.constant 0 : i32
    return %arg0, %c0_i32, %c0_i32_0 : i32, i32, i32
  }
}

</mosaic_0001>

<bundles_post_ra>
// kernel: single_conv3d_block.1
= control target key start
LH: loop header
LB: loop body
LE: loop exit
PB: predicated region body
PF: predicated region fallthrough
CT: control target
= control target key end

     0   :  { %s27468_s12 = smov 0   ;;  %s32640_s0 = inlined_call_operand.vmem [shape: f32[2,4,3278], index: 0, kind: input, shape index: {}]   ;;  %s32641_s1 = inlined_call_operand.vmem [shape: f32[27,8,4], index: 1, kind: input, shape index: {}]   ;;  %s32642_s2 = inlined_call_operand.vmem [shape: f32[8,1], index: 2, kind: input, shape index: {}]   ;;  %s32643_s3 = inlined_call_operand.vmem [shape: f32[2,8,2592], index: 3, kind: output, shape index: {}]  }
   0x1 LB: > { %s26132_s13 = sadd.s32 4294967295, %s27417_s12   ;;  %p26136_p0 = scmp.ge.s32.totalorder %s27417_s12, 1  ;;  %s27417_s12 = sphi %s27468_s12, %s13_s12  }
   0x2   : > { %p137_p1 = scmp.lt.s32.totalorder %s27417_s12, 3 }
   0x4   : > { %p138_p2 = pnand %p26136_p0, %p137_p1 }
   0x6   : > { %141 = sbr.rel (%p138_p2) target bundleno = 1699 (0x6a3), region = 32 }
   0xb   : > { %p161_p3 = scmp.lt.s32.totalorder %s26132_s13, 1  ;;  %v32668_v0 = vmov 0.0   ;;  %s27420_s18 = smov 127   ;;  %vm243_vm0 = vcmask 1039360   ;;  %vm252_vm1 = vcmask 1043456   ;;  %v26139_v29 = vld [vmem:[%s32641_s1 + $0x8] sm:$0xff] }
   0xc   : > { %325 = vmatprep.mubr.f32.mxu0 %v32668_v0  ;;  %396 = vmatprep.mubr.f32.mxu1 %v32668_v0  ;;  %s32691_s19 = smov 126   ;;  %s32681_s20 = smov 110   ;;  %vm248_vm2 = vcmask 31744   ;;  %vm574_vm3 = vcmask 1031168   ;;  %v172_v34 = vld [vmem:[%s32641_s1] sm:$0xff]  ;;  %v26140_v40 = vld [vmem:[%s32641_s1 + $0x10] sm:$0xff] }
   0xd   : > { %s33025_s13 = smov (!%p161_p3, %s26132_s13), 1  ;;  %s27423_s21 = smov 109   ;;  %vm754_vm4 = vcmask 900096   ;;  %v26141_v47 = vld [vmem:[%s32641_s1 + $0x18] sm:$0xff]  ;;  %v27434_v48 = vmov 0   ;;  %vm934_vm5 = vcmask 891904  }
   0xe   : > { %s27220_s14 = smul.u32 104, %s33025_s13  ;;  %s32706_s22 = smov 108   ;;  %27259 = vset.pattern.permute.xlu0 %v27434_v48  ;;  %v26142_v59 = vld [vmem:[%s32641_s1 + $0x20] sm:$0xff]  ;;  %vm1114_vm6 = vcmask 883712   ;;  %vm1294_vm7 = vcmask 752640   ;;  %vm1474_vm8 = vcmask 744448  }
   0xf   : > { %s27425_s23 = smov 92   ;;  %s32702_s24 = smov 91   ;;  %vm1654_vm9 = vcmask 736256   ;;  %vm1834_vm10 = vcmask 490496   ;;  %vm32683_vm11 = vcmask 482304   ;;  %vm32678_vm12 = vcmask 474112  }
  0x10   : > { %s27482_s17 = scalar_lea.vmem %s32640_s0, %s27220_s14  ;;  %s32704_s25 = smov 90   ;;  %vm32677_vm13 = vcmask 343040   ;;  %vm32657_vm14 = vcmask 334848   ;;  %vm32652_vm15 = vcmask 326656  }
  0x11   : > { %v27487_v1 = vld [vmem:[%s27482_s17 + $0x8] sm:$0xff]  ;;  %v27490_v2 = vld [vmem:[%s27482_s17] sm:$0xff]  ;;  %v227_v3 = vld [vmem:[%s27482_s17 + $0x10] sm:$0xf]  ;;  %s32703_s26 = smov 60   ;;  %s32697_s27 = smov 59  }
  0x12   : > { %237 = vrot.lane.b32.xlu1 %v27487_v1, %s27420_s18  ;;  %233 = vrot.lane.b32.xlu0 %v27490_v2, %s27420_s18  ;;  %v27499_v4 = vcombine.high %v27490_v2, %v27490_v2  ;;  %v27506_v5 = vcombine.high %v27487_v1, %v27487_v1  ;;  %v558_v6 = vld [vmem:[%s27482_s17 + $0x10] sm:$0xf]  ;;  %v1818_v15 = vld [vmem:[%s27482_s17 + $0x18] sm:$0xf]  ;;  %s32695_s28 = smov 58   ;;  %s32693_s29 = smov 42  }
  0x13   : > { %v738_v7 = vld [vmem:[%s27482_s17 + $0x10] sm:$0xf]  ;;  %v1998_v16 = vld [vmem:[%s27482_s17 + $0x18] sm:$0xf]  ;;  %s32688_s30 = smov 41   ;;  %s32686_s6 = smov 40  }
  0x14   : > { %v918_v8 = vld [vmem:[%s27482_s17 + $0x10] sm:$0xf]  ;;  %v2178_v17 = vld [vmem:[%s27482_s17 + $0x18] sm:$0xf]  ;;  %s32684_s15 = smov 24   ;;  %s32679_s5 = smov 23  }
  0x15   : > { %v1098_v9 = vld [vmem:[%s27482_s17 + $0x10] sm:$0xf]  ;;  %v2358_v18 = vld [vmem:[%s27482_s17 + $0x18] sm:$0xf]  ;;  %s32675_s9 = smov 22   ;;  %s32673_s14 = smov 120  }
  0x16   : > { %564 = vrot.lane.b32.xlu1 %v27490_v2, %s32691_s19  ;;  %241 = vrot.lane.b32.xlu0 %v227_v3, %s27420_s18  ;;  %v1278_v10 = vld [vmem:[%s27482_s17 + $0x10] sm:$0xf]  ;;  %v2538_v32 = vld [vmem:[%s27482_s17 + $0x18] sm:$0xf]  ;;  %s32671_s7 = smov 119   ;;  %s32655_s11 = smov 118  }
  0x17   : > { %v1458_v11 = vld [vmem:[%s27482_s17 + $0x10] sm:$0xf]  ;;  %v2718_v43 = vld [vmem:[%s27482_s17 + $0x18] sm:$0xf]  ;;  %s32644_s8 = smov 102   ;;  %s32646_s4 = smov 101  }
  0x18   : > { %v1638_v12 = vld [vmem:[%s27482_s17 + $0x10] sm:$0xf]  ;;  %v2898_v57 = vld [vmem:[%s27482_s17 + $0x18] sm:$0xf]  ;;  %s32700_s10 = smov 82   ;;  %s32721_s16 = smov 101  }
  0x19   : > { %v27581_v13 = vld [vmem:[%s27482_s17 + $0x10] sm:$0xff] }
  0x1a   : > { %239 = vrot.lane.b32.xlu1 %v27506_v5, %s27420_s18  ;;  %235 = vrot.lane.b32.xlu0 %v27499_v4, %s27420_s18  ;;  %v27589_v14 = vcombine.high %v27581_v13, %v27581_v13 }
  0x1e   : > { %568 = vrot.lane.b32.xlu1 %v27487_v1, %s32691_s19  ;;  %566 = vrot.lane.b32.xlu0 %v27499_v4, %s32691_s19 }
  0x22   : > { %572 = vrot.lane.b32.xlu1 %v558_v6, %s32691_s19  ;;  %570 = vrot.lane.b32.xlu0 %v27506_v5, %s32691_s19 }
  0x26   : > { %746 = vrot.lane.b32.xlu1 %v27499_v4, %s32681_s20  ;;  %744 = vrot.lane.b32.xlu0 %v27490_v2, %s32681_s20 }
  0x2a   : > { %750 = vrot.lane.b32.xlu1 %v27506_v5, %s32681_s20  ;;  %748 = vrot.lane.b32.xlu0 %v27487_v1, %s32681_s20 }
  0x2e   : > { %924 = vrot.lane.b32.xlu1 %v27490_v2, %s27423_s21  ;;  %752 = vrot.lane.b32.xlu0 %v738_v7, %s32681_s20 }
  0x32   : > { %928 = vrot.lane.b32.xlu1 %v27487_v1, %s27423_s21  ;;  %926 = vrot.lane.b32.xlu0 %v27499_v4, %s27423_s21 }
  0x36   : > { %932 = vrot.lane.b32.xlu1 %v918_v8, %s27423_s21  ;;  %930 = vrot.lane.b32.xlu0 %v27506_v5, %s27423_s21 }
  0x3a   : > { %1106 = vrot.lane.b32.xlu1 %v27499_v4, %s32706_s22  ;;  %1104 = vrot.lane.b32.xlu0 %v27490_v2, %s32706_s22 }
  0x3e   : > { %1110 = vrot.lane.b32.xlu1 %v27506_v5, %s32706_s22  ;;  %1108 = vrot.lane.b32.xlu0 %v27487_v1, %s32706_s22 }
  0x42   : > { %1284 = vrot.lane.b32.xlu1 %v27490_v2, %s27425_s23  ;;  %1112 = vrot.lane.b32.xlu0 %v1098_v9, %s32706_s22  ;;  %v26143_v9 = vld [vmem:[%s32641_s1 + $0x28] sm:$0xff] }
  0x46   : > { %1288 = vrot.lane.b32.xlu1 %v27487_v1, %s27425_s23  ;;  %1286 = vrot.lane.b32.xlu0 %v27499_v4, %s27425_s23 }
  0x4a   : > { %1292 = vrot.lane.b32.xlu1 %v1278_v10, %s27425_s23  ;;  %1290 = vrot.lane.b32.xlu0 %v27506_v5, %s27425_s23 }
  0x4e   : > { %1466 = vrot.lane.b32.xlu1 %v27499_v4, %s32702_s24  ;;  %1464 = vrot.lane.b32.xlu0 %v27490_v2, %s32702_s24 }
  0x52   : > { %1470 = vrot.lane.b32.xlu1 %v27506_v5, %s32702_s24  ;;  %1468 = vrot.lane.b32.xlu0 %v27487_v1, %s32702_s24 }
  0x56   : > { %1644 = vrot.lane.b32.xlu1 %v27490_v2, %s32704_s25  ;;  %1472 = vrot.lane.b32.xlu0 %v1458_v11, %s32702_s24 }
  0x5a   : > { %1648 = vrot.lane.b32.xlu1 %v27487_v1, %s32704_s25  ;;  %1646 = vrot.lane.b32.xlu0 %v27499_v4, %s32704_s25 }
  0x5e   : > { %1652 = vrot.lane.b32.xlu1 %v1638_v12, %s32704_s25  ;;  %1650 = vrot.lane.b32.xlu0 %v27506_v5, %s32704_s25 }
  0x62   : > { %1826 = vrot.lane.b32.xlu1 %v27506_v5, %s32703_s26  ;;  %1824 = vrot.lane.b32.xlu0 %v27487_v1, %s32703_s26 }
  0x66   : > { %1830 = vrot.lane.b32.xlu1 %v27589_v14, %s32703_s26  ;;  %1828 = vrot.lane.b32.xlu0 %v27581_v13, %s32703_s26 }
  0x6a   : > { %2004 = vrot.lane.b32.xlu1 %v27487_v1, %s32697_s27  ;;  %1832 = vrot.lane.b32.xlu0 %v1818_v15, %s32703_s26 }
  0x6e   : > { %2008 = vrot.lane.b32.xlu1 %v27581_v13, %s32697_s27  ;;  %2006 = vrot.lane.b32.xlu0 %v27506_v5, %s32697_s27 }
  0x72   : > { %2012 = vrot.lane.b32.xlu1 %v1998_v16, %s32697_s27  ;;  %2010 = vrot.lane.b32.xlu0 %v27589_v14, %s32697_s27 }
  0x76   : > { %2186 = vrot.lane.b32.xlu1 %v27506_v5, %s32695_s28  ;;  %2184 = vrot.lane.b32.xlu0 %v27487_v1, %s32695_s28 }
  0x7a   : > { %2190 = vrot.lane.b32.xlu1 %v27589_v14, %s32695_s28  ;;  %2188 = vrot.lane.b32.xlu0 %v27581_v13, %s32695_s28 }
  0x7e   : > { %2364 = vrot.lane.b32.xlu1 %v27487_v1, %s32693_s29  ;;  %2192 = vrot.lane.b32.xlu0 %v2178_v17, %s32695_s28  ;;  %v27764_v17 = vld [vmem:[%s27482_s17 + $0x14] sm:$0xff] }
  0x82   : > { %2368 = vrot.lane.b32.xlu1 %v27581_v13, %s32693_s29  ;;  %2366 = vrot.lane.b32.xlu0 %v27506_v5, %s32693_s29 }
  0x84   : > { %v238_v19 = vpop.permute.xlu1 %237  ;;  %v234_v20 = vpop.permute.xlu0 %233 }
  0x86   : > { %2372 = vrot.lane.b32.xlu1 %v2358_v18, %s32693_s29  ;;  %2370 = vrot.lane.b32.xlu0 %v27589_v14, %s32693_s29 }
  0x88   : > { %v565_v21 = vpop.permute.xlu1 %564  ;;  %v242_v22 = vpop.permute.xlu0 %241 }
  0x8a   : > { %2546 = vrot.lane.b32.xlu1 %v27506_v5, %s32688_s30  ;;  %2544 = vrot.lane.b32.xlu0 %v27487_v1, %s32688_s30 }
  0x8c   : > { %v240_v23 = vpop.permute.xlu1 %239  ;;  %v236_v24 = vpop.permute.xlu0 %235 }
  0x8d   : > { %v247_v25 = vsel %vm243_vm0, %v240_v23, %v242_v22  ;;  %v245_v26 = vsel %vm243_vm0, %v236_v24, %v238_v19  ;;  %v244_v27 = vsel %vm243_vm0, %v234_v20, %v236_v24  ;;  %v246_v28 = vsel %vm243_vm0, %v238_v19, %v240_v23  ;;  %v3258_v19 = vld [vmem:[%s27482_s17 + $0x18] sm:$0xf] }
  0x8e   : > { %2550 = vrot.lane.b32.xlu1 %v27589_v14, %s32688_s30  ;;  %26168 = vmatprep.subr.msk.mxu1 %vm252_vm1, %v247_v25  ;;  %v27780_v22 = vcombine.high %v27764_v17, %v27764_v17  ;;  %v27784_v25 = vld [vmem:[%s27482_s17 + $0x1c] sm:$0xff] }
  0x8f   : > { %2548 = vrot.lane.b32.xlu0 %v27581_v13, %s32688_s30  ;;  %26165 = vmatprep.subr.msk.mxu0 %vm252_vm1, %v245_v26 }
  0x90   : > { %26166 = vmatpush1.msk.msra.mxu0 %vm252_vm1, %v244_v27  ;;  %26169 = vmatpush1.msk.msra.mxu1 %vm252_vm1, %v246_v28  ;;  %v569_v30 = vpop.permute.xlu1 %568  ;;  %v567_v31 = vpop.permute.xlu0 %566  ;;  %v27796_v28 = vcombine.high %v27784_v25, %v27784_v25 }
  0x91   : > { %26167 = vmatmul.mubr.msk.f32.vlgmr.msra.gmra.mxu0 %vm248_vm2, %v26139_v29  ;;  %26171 = vmatprep.subr.msk.mxu0 %vm252_vm1, %v27499_v4  ;;  %v576_v33 = vsel %vm574_vm3, %v567_v31, %v569_v30  ;;  %v575_v37 = vsel %vm574_vm3, %v565_v21, %v567_v31  ;;  %v3078_v4 = vld [vmem:[%s27482_s17 + $0x18] sm:$0xf]  ;;  %v26144_v21 = vld [vmem:[%s32641_s1 + $0x30] sm:$0xff]  ;;  %v3438_v31 = vld [vmem:[%s27482_s17 + $0x24] sm:$0xf] }
  0x92   : > { %26172 = vmatpush1.msk.msra.mxu0 %vm252_vm1, %v27490_v2  ;;  %2724 = vrot.lane.b32.xlu1 %v27487_v1, %s32686_s6 }
  0x93   : > { %2552 = vrot.lane.b32.xlu0 %v2538_v32, %s32688_s30  ;;  %26177 = vmatprep.subr.msk.mxu0 %vm252_vm1, %v576_v33 }
  0x94   : > { %26170 = vmatmul.mubr.msk.f32.vlgmr.msra.gmra.mxu1 %vm248_vm2, %v26139_v29  ;;  %478 = vmatprep.mubr.f32.mxu0 %v32668_v0  ;;  %v573_v35 = vpop.permute.xlu1 %572  ;;  %v571_v36 = vpop.permute.xlu0 %570 }
  0x95   : > { %26173 = vmatmul.mubr.msk.f32.vlgmr.msra.gmra.mxu0 %vm248_vm2, %v172_v34  ;;  %26174 = vmatprep.subr.msk.mxu1 %vm252_vm1, %v27506_v5  ;;  %v578_v38 = vsel %vm574_vm3, %v571_v36, %v573_v35  ;;  %v577_v39 = vsel %vm574_vm3, %v569_v30, %v571_v36  ;;  %v26145_v35 = vld [vmem:[%s32641_s1 + $0x38] sm:$0xff] }
  0x96   : > { %26178 = vmatpush1.msk.msra.mxu0 %vm252_vm1, %v575_v37  ;;  %26175 = vmatpush1.msk.msra.mxu1 %vm252_vm1, %v27487_v1 }
  0x97   : > { %2728 = vrot.lane.b32.xlu1 %v27581_v13, %s32686_s6  ;;  %549 = vmatprep.mubr.f32.mxu1 %v32668_v0 }
  0x98   : > { %2726 = vrot.lane.b32.xlu0 %v27506_v5, %s32686_s6  ;;  %26180 = vmatprep.subr.msk.mxu1 %vm252_vm1, %v578_v38  ;;  %v747_v41 = vpop.permute.xlu1 %746  ;;  %v745_v42 = vpop.permute.xlu0 %744 }
  0x99   : > { %26176 = vmatmul.mubr.msk.f32.vlgmr.msra.gmra.mxu1 %vm248_vm2, %v172_v34  ;;  %654 = vmatprep.mubr.f32.mxu0 %v32668_v0  ;;  %v755_v49 = vsel %vm754_vm4, %v745_v42, %v747_v41 }
  0x9a   : > { %26181 = vmatpush1.msk.msra.mxu1 %vm252_vm1, %v577_v39  ;;  %26179 = vmatmul.mubr.msk.f32.vlgmr.msra.gmra.mxu0 %vm248_vm2, %v26140_v40 }
  0x9b   : > { %2732 = vrot.lane.b32.xlu1 %v2718_v43, %s32686_s6  ;;  %725 = vmatprep.mubr.f32.mxu1 %v32668_v0 }
  0x9c   : > { %2730 = vrot.lane.b32.xlu0 %v27589_v14, %s32686_s6  ;;  %v751_v44 = vpop.permute.xlu1 %750  ;;  %v749_v45 = vpop.permute.xlu0 %748  ;;  %834 = vmatprep.mubr.f32.mxu0 %v32668_v0 }
  0x9d   : > { %v756_v46 = vsel %vm754_vm4, %v747_v41, %v749_v45  ;;  %26182 = vmatmul.mubr.msk.f32.vlgmr.msra.gmra.mxu1 %vm248_vm2, %v26140_v40  ;;  %v757_v53 = vsel %vm754_vm4, %v749_v45, %v751_v44 }
  0x9e   : > { %26183 = vmatprep.subr.msk.mxu0 %vm252_vm1, %v756_v46  ;;  %905 = vmatprep.mubr.f32.mxu1 %v32668_v0  ;;  %v26146_v46 = vld [vmem:[%s32641_s1 + $0x40] sm:$0xff] }
  0x9f   : > { %2906 = vrot.lane.b32.xlu1 %v27506_v5, %s32684_s15  ;;  %26184 = vmatpush1.msk.msra.mxu0 %vm252_vm1, %v755_v49 }
  0xa0   : > { %2904 = vrot.lane.b32.xlu0 %v27487_v1, %s32684_s15  ;;  %v925_v50 = vpop.permute.xlu1 %924  ;;  %v753_v51 = vpop.permute.xlu0 %752  ;;  %26185 = vmatmul.mubr.msk.f32.vlgmr.msra.gmra.mxu0 %vm248_vm2, %v26141_v47 }
  0xa1   : > { %v758_v52 = vsel %vm754_vm4, %v751_v44, %v753_v51  ;;  %1014 = vmatprep.mubr.f32.mxu0 %v32668_v0  ;;  %v3618_v44 = vld [vmem:[%s27482_s17 + $0x24] sm:$0xf] }
  0xa2   : > { %26186 = vmatprep.subr.msk.mxu1 %vm252_vm1, %v758_v52 }
  0xa3   : > { %2910 = vrot.lane.b32.xlu1 %v27589_v14, %s32684_s15  ;;  %26187 = vmatpush1.msk.msra.mxu1 %vm252_vm1, %v757_v53  ;;  %v3798_v53 = vld [vmem:[%s27482_s17 + $0x24] sm:$0xf] }
  0xa4   : > { %2908 = vrot.lane.b32.xlu0 %v27581_v13, %s32684_s15  ;;  %v929_v54 = vpop.permute.xlu1 %928  ;;  %v927_v55 = vpop.permute.xlu0 %926  ;;  %26188 = vmatmul.mubr.msk.f32.vlgmr.msra.gmra.mxu1 %vm248_vm2, %v26141_v47 }
  0xa5   : > { %v935_v56 = vsel %vm934_vm5, %v925_v50, %v927_v55  ;;  %v936_v58 = vsel %vm934_vm5, %v927_v55, %v929_v54  ;;  %1085 = vmatprep.mubr.f32.mxu1 %v32668_v0 }
  0xa6   : > { %26189 = vmatprep.subr.msk.mxu0 %vm252_vm1, %v936_v58 }
  0xa7   : > { %3084 = vrot.lane.b32.xlu1 %v27487_v1, %s32679_s5  ;;  %26190 = vmatpush1.msk.msra.mxu0 %vm252_vm1, %v935_v56 }
  0xa8   : > { %2912 = vrot.lane.b32.xlu0 %v2898_v57, %s32684_s15  ;;  %v933_v60 = vpop.permute.xlu1 %932  ;;  %v931_v61 = vpop.permute.xlu0 %930  ;;  %26191 = vmatmul.mubr.msk.f32.vlgmr.msra.gmra.mxu0 %vm248_vm2, %v26142_v59  ;;  %v26147_v57 = vld [vmem:[%s32641_s1 + $0x48] sm:$0xff] }
  0xa9   : > { %v937_v62 = vsel %vm934_vm5, %v929_v54, %v931_v61  ;;  %v938_v63 = vsel %vm934_vm5, %v931_v61, %v933_v60  ;;  %1194 = vmatprep.mubr.f32.mxu0 %v32668_v0 }
  0xaa   : > { %26192 = vmatprep.subr.msk.mxu1 %vm252_vm1, %v938_v63 }
  0xab   : > { %3088 = vrot.lane.b32.xlu1 %v27581_v13, %s32679_s5  ;;  %26193 = vmatpush1.msk.msra.mxu1 %vm252_vm1, %v937_v62 }
  0xac   : > { %3086 = vrot.lane.b32.xlu0 %v27506_v5, %s32679_s5  ;;  %v1107_v2 = vpop.permute.xlu1 %1106  ;;  %v1105_v3 = vpop.permute.xlu0 %1104  ;;  %26194 = vmatmul.mubr.msk.f32.vlgmr.msra.gmra.mxu1 %vm248_vm2, %v26142_v59 }
  0xad   : > { %1265 = vmatprep.mubr.f32.mxu1 %v32668_v0  ;;  %v1115_v10 = vsel %vm1114_vm6, %v1105_v3, %v1107_v2 }
  0xaf   : > { %3092 = vrot.lane.b32.xlu1 %v3078_v4, %s32679_s5  ;;  %v3978_v4 = vld [vmem:[%s27482_s17 + $0x24] sm:$0xf] }
  0xb0   : > { %3090 = vrot.lane.b32.xlu0 %v27589_v14, %s32679_s5  ;;  %v1111_v6 = vpop.permute.xlu1 %1110  ;;  %v1109_v7 = vpop.permute.xlu0 %1108 }
  0xb1   : > { %v1116_v8 = vsel %vm1114_vm6, %v1107_v2, %v1109_v7  ;;  %v1117_v16 = vsel %vm1114_vm6, %v1109_v7, %v1111_v6  ;;  %v26148_v7 = vld [vmem:[%s32641_s1 + $0x50] sm:$0xff] }
  0xb2   : > { %26195 = vmatprep.subr.msk.mxu0 %vm252_vm1, %v1116_v8 }
  0xb3   : > { %3266 = vrot.lane.b32.xlu1 %v27506_v5, %s32675_s9  ;;  %26196 = vmatpush1.msk.msra.mxu0 %vm252_vm1, %v1115_v10 }
  0xb4   : > { %3264 = vrot.lane.b32.xlu0 %v27487_v1, %s32675_s9  ;;  %v1285_v11 = vpop.permute.xlu1 %1284  ;;  %v1113_v12 = vpop.permute.xlu0 %1112  ;;  %26197 = vmatmul.mubr.msk.f32.vlgmr.msra.gmra.mxu0 %vm248_vm2, %v26143_v9 }
  0xb5   : > { %v1118_v15 = vsel %vm1114_vm6, %v1111_v6, %v1113_v12  ;;  %1374 = vmatprep.mubr.f32.mxu0 %v32668_v0 }
  0xb6   : > { %26198 = vmatprep.subr.msk.mxu1 %vm252_vm1, %v1118_v15 }
  0xb7   : > { %3270 = vrot.lane.b32.xlu1 %v27589_v14, %s32675_s9  ;;  %26199 = vmatpush1.msk.msra.mxu1 %vm252_vm1, %v1117_v16  ;;  %v4158_v16 = vld [vmem:[%s27482_s17 + $0x24] sm:$0xf] }
  0xb8   : > { %3268 = vrot.lane.b32.xlu0 %v27581_v13, %s32675_s9  ;;  %v1289_v1 = vpop.permute.xlu1 %1288  ;;  %v1287_v5 = vpop.permute.xlu0 %1286  ;;  %26200 = vmatmul.mubr.msk.f32.vlgmr.msra.gmra.mxu1 %vm248_vm2, %v26143_v9 }
  0xb9   : > { %v1295_v18 = vsel %vm1294_vm7, %v1285_v11, %v1287_v5  ;;  %v1296_v20 = vsel %vm1294_vm7, %v1287_v5, %v1289_v1  ;;  %1445 = vmatprep.mubr.f32.mxu1 %v32668_v0 }
  0xba   : > { %26201 = vmatprep.subr.msk.mxu0 %vm252_vm1, %v1296_v20 }
  0xbb   : > { %3444 = vrot.lane.b32.xlu1 %v27764_v17, %s32673_s14  ;;  %26202 = vmatpush1.msk.msra.mxu0 %vm252_vm1, %v1295_v18 }
  0xbc   : > { %3272 = vrot.lane.b32.xlu0 %v3258_v19, %s32675_s9  ;;  %v1293_v23 = vpop.permute.xlu1 %1292  ;;  %v1291_v24 = vpop.permute.xlu0 %1290  ;;  %26203 = vmatmul.mubr.msk.f32.vlgmr.msra.gmra.mxu0 %vm248_vm2, %v26144_v21  ;;  %v26149_v19 = vld [vmem:[%s32641_s1 + $0x58] sm:$0xff] }
  0xbd   : > { %v1297_v26 = vsel %vm1294_vm7, %v1289_v1, %v1291_v24  ;;  %v1298_v27 = vsel %vm1294_vm7, %v1291_v24, %v1293_v23  ;;  %1554 = vmatprep.mubr.f32.mxu0 %v32668_v0 }
  0xbe   : > { %26204 = vmatprep.subr.msk.mxu1 %vm252_vm1, %v1298_v27 }
  0xbf   : > { %3448 = vrot.lane.b32.xlu1 %v27784_v25, %s32673_s14  ;;  %26205 = vmatpush1.msk.msra.mxu1 %vm252_vm1, %v1297_v26 }
  0xc0   : > { %3446 = vrot.lane.b32.xlu0 %v27780_v22, %s32673_s14  ;;  %v1467_v29 = vpop.permute.xlu1 %1466  ;;  %v1465_v30 = vpop.permute.xlu0 %1464  ;;  %26206 = vmatmul.mubr.msk.f32.vlgmr.msra.gmra.mxu1 %vm248_vm2, %v26144_v21 }
  0xc1   : > { %1625 = vmatprep.mubr.f32.mxu1 %v32668_v0  ;;  %v1475_v36 = vsel %vm1474_vm8, %v1465_v30, %v1467_v29 }
  0xc3   : > { %3452 = vrot.lane.b32.xlu1 %v3438_v31, %s32673_s14  ;;  %v4338_v31 = vld [vmem:[%s27482_s17 + $0x24] sm:$0xf] }
  0xc4   : > { %3450 = vrot.lane.b32.xlu0 %v27796_v28, %s32673_s14  ;;  %v1471_v32 = vpop.permute.xlu1 %1470  ;;  %v1469_v33 = vpop.permute.xlu0 %1468 }
  0xc5   : > { %v1476_v34 = vsel %vm1474_vm8, %v1467_v29, %v1469_v33  ;;  %v1477_v40 = vsel %vm1474_vm8, %v1469_v33, %v1471_v32  ;;  %v26150_v33 = vld [vmem:[%s32641_s1 + $0x60] sm:$0xff] }
  0xc6   : > { %26207 = vmatprep.subr.msk.mxu0 %vm252_vm1, %v1476_v34 }
  0xc7   : > { %3626 = vrot.lane.b32.xlu1 %v27780_v22, %s32671_s7  ;;  %26208 = vmatpush1.msk.msra.mxu0 %vm252_vm1, %v1475_v36 }
  0xc8   : > { %3624 = vrot.lane.b32.xlu0 %v27764_v17, %s32671_s7  ;;  %v1645_v37 = vpop.permute.xlu1 %1644  ;;  %v1473_v38 = vpop.permute.xlu0 %1472  ;;  %26209 = vmatmul.mubr.msk.f32.vlgmr.msra.gmra.mxu0 %vm248_vm2, %v26145_v35 }
  0xc9   : > { %v1478_v39 = vsel %vm1474_vm8, %v1471_v32, %v1473_v38  ;;  %1734 = vmatprep.mubr.f32.mxu0 %v32668_v0 }
  0xca   : > { %26210 = vmatprep.subr.msk.mxu1 %vm252_vm1, %v1478_v39 }
  0xcb   : > { %3630 = vrot.lane.b32.xlu1 %v27796_v28, %s32671_s7  ;;  %26211 = vmatpush1.msk.msra.mxu1 %vm252_vm1, %v1477_v40  ;;  %v4518_v40 = vld [vmem:[%s27482_s17 + $0x24] sm:$0xf] }
  0xcc   : > { %3628 = vrot.lane.b32.xlu0 %v27784_v25, %s32671_s7  ;;  %v1649_v41 = vpop.permute.xlu1 %1648  ;;  %v1647_v42 = vpop.permute.xlu0 %1646  ;;  %26212 = vmatmul.mubr.msk.f32.vlgmr.msra.gmra.mxu1 %vm248_vm2, %v26145_v35 }
  0xcd   : > { %v1655_v43 = vsel %vm1654_vm9, %v1645_v37, %v1647_v42  ;;  %v1656_v45 = vsel %vm1654_vm9, %v1647_v42, %v1649_v41  ;;  %1805 = vmatprep.mubr.f32.mxu1 %v32668_v0 }
  0xce   : > { %26213 = vmatprep.subr.msk.mxu0 %vm252_vm1, %v1656_v45 }
  0xcf   : > { %3804 = vrot.lane.b32.xlu1 %v27764_v17, %s32655_s11  ;;  %26214 = vmatpush1.msk.msra.mxu0 %vm252_vm1, %v1655_v43 }
  0xd0   : > { %3632 = vrot.lane.b32.xlu0 %v3618_v44, %s32671_s7  ;;  %v1653_v47 = vpop.permute.xlu1 %1652  ;;  %v1651_v48 = vpop.permute.xlu0 %1650  ;;  %26215 = vmatmul.mubr.msk.f32.vlgmr.msra.gmra.mxu0 %vm248_vm2, %v26146_v46  ;;  %v26151_v44 = vld [vmem:[%s32641_s1 + $0x68] sm:$0xff] }
  0xd1   : > { %v1657_v49 = vsel %vm1654_vm9, %v1649_v41, %v1651_v48  ;;  %v1658_v50 = vsel %vm1654_vm9, %v1651_v48, %v1653_v47  ;;  %1914 = vmatprep.mubr.f32.mxu0 %v32668_v0 }
  0xd2   : > { %26216 = vmatprep.subr.msk.mxu1 %vm252_vm1, %v1658_v50 }
  0xd3   : > { %3808 = vrot.lane.b32.xlu1 %v27784_v25, %s32655_s11  ;;  %26217 = vmatpush1.msk.msra.mxu1 %vm252_vm1, %v1657_v49 }
  0xd4   : > { %3806 = vrot.lane.b32.xlu0 %v27780_v22, %s32655_s11  ;;  %v1827_v51 = vpop.permute.xlu1 %1826  ;;  %v1825_v52 = vpop.permute.xlu0 %1824  ;;  %26218 = vmatmul.mubr.msk.f32.vlgmr.msra.gmra.mxu1 %vm248_vm2, %v26146_v46 }
  0xd5   : > { %1985 = vmatprep.mubr.f32.mxu1 %v32668_v0  ;;  %v1835_v58 = vsel %vm1834_vm10, %v1825_v52, %v1827_v51 }
  0xd7   : > { %3812 = vrot.lane.b32.xlu1 %v3798_v53, %s32655_s11 }
  0xd8   : > { %3810 = vrot.lane.b32.xlu0 %v27796_v28, %s32655_s11  ;;  %v1831_v54 = vpop.permute.xlu1 %1830  ;;  %v1829_v55 = vpop.permute.xlu0 %1828  ;;  %s32712_s11 = smov 118  }
  0xd9   : > { %v1836_v56 = vsel %vm1834_vm10, %v1827_v51, %v1829_v55  ;;  %v1837_v62 = vsel %vm1834_vm10, %v1829_v55, %v1831_v54  ;;  %v4698_v51 = vld [vmem:[%s27482_s17 + $0x24] sm:$0xf]  ;;  %v26152_v55 = vld [vmem:[%s32641_s1 + $0x70] sm:$0xff] }
  0xda   : > { %26219 = vmatprep.subr.msk.mxu0 %vm252_vm1, %v1836_v56 }
  0xdb   : > { %3986 = vrot.lane.b32.xlu1 %v27780_v22, %s32644_s8  ;;  %26220 = vmatpush1.msk.msra.mxu0 %vm252_vm1, %v1835_v58 }
  0xdc   : > { %3984 = vrot.lane.b32.xlu0 %v27764_v17, %s32644_s8  ;;  %v2005_v59 = vpop.permute.xlu1 %2004  ;;  %v1833_v60 = vpop.permute.xlu0 %1832  ;;  %26221 = vmatmul.mubr.msk.f32.vlgmr.msra.gmra.mxu0 %vm248_vm2, %v26147_v57 }
  0xdd   : > { %v1838_v61 = vsel %vm1834_vm10, %v1831_v54, %v1833_v60  ;;  %2094 = vmatprep.mubr.f32.mxu0 %v32668_v0 }
  0xde   : > { %26222 = vmatprep.subr.msk.mxu1 %vm252_vm1, %v1838_v61 }
  0xdf   : > { %3990 = vrot.lane.b32.xlu1 %v27796_v28, %s32644_s8  ;;  %26223 = vmatpush1.msk.msra.mxu1 %vm252_vm1, %v1837_v62 }
  0xe0   : > { %3988 = vrot.lane.b32.xlu0 %v27784_v25, %s32644_s8  ;;  %v2009_v63 = vpop.permute.xlu1 %2008  ;;  %v2007_v2 = vpop.permute.xlu0 %2006  ;;  %26224 = vmatmul.mubr.msk.f32.vlgmr.msra.gmra.mxu1 %vm248_vm2, %v26147_v57 }
  0xe1   : > { %v2015_v3 = vsel %vm32683_vm11, %v2005_v59, %v2007_v2  ;;  %v2016_v6 = vsel %vm32683_vm11, %v2007_v2, %v2009_v63  ;;  %2165 = vmatprep.mubr.f32.mxu1 %v32668_v0  ;;  %v4878_v59 = vld [vmem:[%s27482_s17 + $0x24] sm:$0xf]  ;;  %v26153_v2 = vld [vmem:[%s32641_s1 + $0x78] sm:$0xff] }
  0xe2   : > { %26225 = vmatprep.subr.msk.mxu0 %vm252_vm1, %v2016_v6 }
  0xe3   : > { %4164 = vrot.lane.b32.xlu1 %v27764_v17, %s32646_s4  ;;  %26226 = vmatpush1.msk.msra.mxu0 %vm252_vm1, %v2015_v3 }
  0xe4   : > { %3992 = vrot.lane.b32.xlu0 %v3978_v4, %s32644_s8  ;;  %v2013_v8 = vpop.permute.xlu1 %2012  ;;  %v2011_v9 = vpop.permute.xlu0 %2010  ;;  %26227 = vmatmul.mubr.msk.f32.vlgmr.msra.gmra.mxu0 %vm248_vm2, %v26148_v7  ;;  %s32648_s8 = smov 100  }
  0xe5   : > { %v2017_v10 = vsel %vm32683_vm11, %v2009_v63, %v2011_v9  ;;  %v2018_v11 = vsel %vm32683_vm11, %v2011_v9, %v2013_v8  ;;  %2274 = vmatprep.mubr.f32.mxu0 %v32668_v0 }
  0xe6   : > { %26228 = vmatprep.subr.msk.mxu1 %vm252_vm1, %v2018_v11 }
  0xe7   : > { %4168 = vrot.lane.b32.xlu1 %v27784_v25, %s32646_s4  ;;  %26229 = vmatpush1.msk.msra.mxu1 %vm252_vm1, %v2017_v10  ;;  %v5071_v10 = vld [vmem:[%s27482_s17 + $0x20] sm:$0xf] }
  0xe8   : > { %4166 = vrot.lane.b32.xlu0 %v27780_v22, %s32646_s4  ;;  %v2187_v12 = vpop.permute.xlu1 %2186  ;;  %v2185_v15 = vpop.permute.xlu0 %2184  ;;  %26230 = vmatmul.mubr.msk.f32.vlgmr.msra.gmra.mxu1 %vm248_vm2, %v26148_v7 }
  0xe9   : > { %2345 = vmatprep.mubr.f32.mxu1 %v32668_v0  ;;  %v2195_v20 = vsel %vm32678_vm12, %v2185_v15, %v2187_v12 }
  0xeb   : > { %4172 = vrot.lane.b32.xlu1 %v4158_v16, %s32646_s4  ;;  %v28042_v16 = vld [vmem:[%s27482_s17 + $0x10] sm:$0xff] }
  0xec   : > { %4170 = vrot.lane.b32.xlu0 %v27796_v28, %s32646_s4  ;;  %v2191_v1 = vpop.permute.xlu1 %2190  ;;  %v2189_v5 = vpop.permute.xlu0 %2188  ;;  %s32650_s4 = smov 84  }
  0xed   : > { %v2196_v18 = vsel %vm32678_vm12, %v2187_v12, %v2189_v5  ;;  %v2197_v26 = vsel %vm32678_vm12, %v2189_v5, %v2191_v1  ;;  %v28051_v5 = vcombine.high %v28042_v16, %v28042_v16 }
  0xee   : > { %26231 = vmatprep.subr.msk.mxu0 %vm252_vm1, %v2196_v18 }
  0xef   : > { %4346 = vrot.lane.b32.xlu1 %v27780_v22, %s32648_s8  ;;  %26232 = vmatpush1.msk.msra.mxu0 %vm252_vm1, %v2195_v20 }
  0xf0   : > { %4344 = vrot.lane.b32.xlu0 %v27764_v17, %s32648_s8  ;;  %v2365_v21 = vpop.permute.xlu1 %2364  ;;  %v2193_v23 = vpop.permute.xlu0 %2192  ;;  %26233 = vmatmul.mubr.msk.f32.vlgmr.msra.gmra.mxu0 %vm248_vm2, %v26149_v19 }
  0xf1   : > { %v2198_v24 = vsel %vm32678_vm12, %v2191_v1, %v2193_v23  ;;  %2454 = vmatprep.mubr.f32.mxu0 %v32668_v0  ;;  %v26154_v1 = vld [vmem:[%s32641_s1 + $0x80] sm:$0xff] }
  0xf2   : > { %26234 = vmatprep.subr.msk.mxu1 %vm252_vm1, %v2198_v24 }
  0xf3   : > { %4350 = vrot.lane.b32.xlu1 %v27796_v28, %s32648_s8  ;;  %26235 = vmatpush1.msk.msra.mxu1 %vm252_vm1, %v2197_v26  ;;  %v5393_v26 = vld [vmem:[%s27482_s17 + $0x20] sm:$0xf] }
  0xf4   : > { %4348 = vrot.lane.b32.xlu0 %v27784_v25, %s32648_s8  ;;  %v2369_v27 = vpop.permute.xlu1 %2368  ;;  %v2367_v29 = vpop.permute.xlu0 %2366  ;;  %26236 = vmatmul.mubr.msk.f32.vlgmr.msra.gmra.mxu1 %vm248_vm2, %v26149_v19 }
  0xf5   : > { %v2375_v30 = vsel %vm32677_vm13, %v2365_v21, %v2367_v29  ;;  %v2376_v32 = vsel %vm32677_vm13, %v2367_v29, %v2369_v27  ;;  %2525 = vmatprep.mubr.f32.mxu1 %v32668_v0 }
  0xf6   : > { %26237 = vmatprep.subr.msk.mxu0 %vm252_vm1, %v2376_v32 }
  0xf7   : > { %4524 = vrot.lane.b32.xlu1 %v27764_v17, %s32650_s4  ;;  %26238 = vmatpush1.msk.msra.mxu0 %vm252_vm1, %v2375_v30 }
  0xf8   : > { %4352 = vrot.lane.b32.xlu0 %v4338_v31, %s32648_s8  ;;  %v2373_v34 = vpop.permute.xlu1 %2372  ;;  %v2371_v35 = vpop.permute.xlu0 %2370  ;;  %26239 = vmatmul.mubr.msk.f32.vlgmr.msra.gmra.mxu0 %vm248_vm2, %v26150_v33  ;;  %s32653_s8 = smov 83   ;;  %v26155_v31 = vld [vmem:[%s32641_s1 + $0x88] sm:$0xff] }
  0xf9   : > { %v2377_v36 = vsel %vm32677_vm13, %v2369_v27, %v2371_v35  ;;  %v2378_v37 = vsel %vm32677_vm13, %v2371_v35, %v2373_v34  ;;  %2634 = vmatprep.mubr.f32.mxu0 %v32668_v0 }
  0xfa   : > { %26240 = vmatprep.subr.msk.mxu1 %vm252_vm1, %v2378_v37 }
  0xfb   : > { %4528 = vrot.lane.b32.xlu1 %v27784_v25, %s32650_s4  ;;  %26241 = vmatpush1.msk.msra.mxu1 %vm252_vm1, %v2377_v36 }
  0xfc   : > { %4526 = vrot.lane.b32.xlu0 %v27780_v22, %s32650_s4  ;;  %v2547_v38 = vpop.permute.xlu1 %2546  ;;  %v2545_v39 = vpop.permute.xlu0 %2544  ;;  %26242 = vmatmul.mubr.msk.f32.vlgmr.msra.gmra.mxu1 %vm248_vm2, %v26150_v33 }
  0xfd   : > { %2705 = vmatprep.mubr.f32.mxu1 %v32668_v0  ;;  %v2555_v45 = vsel %vm32657_vm14, %v2545_v39, %v2547_v38 }
  0xff   : > { %4532 = vrot.lane.b32.xlu1 %v4518_v40, %s32650_s4 }
 0x100   : > { %4530 = vrot.lane.b32.xlu0 %v27796_v28, %s32650_s4  ;;  %v2551_v41 = vpop.permute.xlu1 %2550  ;;  %s32718_s4 = smov 102  }
 0x101   : > { %v2549_v42 = vpop.permute.xlu0 %2548 }
 0x102   : > { %v2556_v43 = vsel %vm32657_vm14, %v2547_v38, %v2549_v42  ;;  %v2557_v49 = vsel %vm32657_vm14, %v2549_v42, %v2551_v41  ;;  %v5569_v38 = vld [vmem:[%s27482_s17 + $0x20] sm:$0xf]  ;;  %v26156_v42 = vld [vmem:[%s32641_s1 + $0x90] sm:$0xff] }
 0x103   : > { %4706 = vrot.lane.b32.xlu1 %v27780_v22, %s32653_s8  ;;  %26243 = vmatprep.subr.msk.mxu0 %vm252_vm1, %v2556_v43 }
 0x104   : > { %4704 = vrot.lane.b32.xlu0 %v27764_v17, %s32653_s8  ;;  %26244 = vmatpush1.msk.msra.mxu0 %vm252_vm1, %v2555_v45  ;;  %v2725_v46 = vpop.permute.xlu1 %2724 }
 0x105   : > { %v2553_v47 = vpop.permute.xlu0 %2552  ;;  %26245 = vmatmul.mubr.msk.f32.vlgmr.msra.gmra.mxu0 %vm248_vm2, %v26151_v44 }
 0x106   : > { %v2558_v48 = vsel %vm32657_vm14, %v2551_v41, %v2553_v47  ;;  %2814 = vmatprep.mubr.f32.mxu0 %v32668_v0  ;;  %vm32658_vm14 = vcmask 187392  }
 0x107   : > { %4710 = vrot.lane.b32.xlu1 %v27796_v28, %s32653_s8  ;;  %26246 = vmatprep.subr.msk.mxu1 %vm252_vm1, %v2558_v48 }
 0x108   : > { %4708 = vrot.lane.b32.xlu0 %v27784_v25, %s32653_s8  ;;  %26247 = vmatpush1.msk.msra.mxu1 %vm252_vm1, %v2557_v49  ;;  %v5745_v49 = vld [vmem:[%s27482_s17 + $0x20] sm:$0xf] }
 0x109   : > { %v2729_v50 = vpop.permute.xlu1 %2728  ;;  %26248 = vmatmul.mubr.msk.f32.vlgmr.msra.gmra.mxu1 %vm248_vm2, %v26151_v44 }
 0x10a   : > { %v2727_v52 = vpop.permute.xlu0 %2726  ;;  %2885 = vmatprep.mubr.f32.mxu1 %v32668_v0 }
 0x10b   : > { %v2735_v53 = vsel %vm32652_vm15, %v2725_v46, %v2727_v52  ;;  %4884 = vrot.lane.b32.xlu1 %v27764_v17, %s32700_s10  ;;  %v2736_v54 = vsel %vm32652_vm15, %v2727_v52, %v2729_v50 }
 0x10c   : > { %4712 = vrot.lane.b32.xlu0 %v4698_v51, %s32653_s8  ;;  %26249 = vmatprep.subr.msk.mxu0 %vm252_vm1, %v2736_v54  ;;  %s32723_s8 = smov 84  }
 0x10d   : > { %26250 = vmatpush1.msk.msra.mxu0 %vm252_vm1, %v2735_v53  ;;  %v2733_v56 = vpop.permute.xlu1 %2732  ;;  %v26157_v53 = vld [vmem:[%s32641_s1 + $0x98] sm:$0xff] }
 0x10e   : > { %v2731_v57 = vpop.permute.xlu0 %2730  ;;  %26251 = vmatmul.mubr.msk.f32.vlgmr.msra.gmra.mxu0 %vm248_vm2, %v26152_v55 }
 0x10f   : > { %v2737_v58 = vsel %vm32652_vm15, %v2729_v50, %v2731_v57  ;;  %4888 = vrot.lane.b32.xlu1 %v27784_v25, %s32700_s10  ;;  %v2738_v17 = vsel %vm32652_vm15, %v2731_v57, %v2733_v56  ;;  %2994 = vmatprep.mubr.f32.mxu0 %v32668_v0  ;;  %vm32659_vm15 = vcmask 195584  }
 0x110   : > { %4886 = vrot.lane.b32.xlu0 %v27780_v22, %s32700_s10  ;;  %26252 = vmatprep.subr.msk.mxu1 %vm252_vm1, %v2738_v17  ;;  %v171_v22 = vld [vmem:[%s32642_s2] sm:$0xff] }
 0x111   : > { %26253 = vmatpush1.msk.msra.mxu1 %vm252_vm1, %v2737_v58  ;;  %v2907_v60 = vpop.permute.xlu1 %2906 }
 0x112   : > { %v2905_v61 = vpop.permute.xlu0 %2904  ;;  %26254 = vmatmul.mubr.msk.f32.vlgmr.msra.gmra.mxu1 %vm248_vm2, %v26152_v55 }
 0x113   : > { %4892 = vrot.lane.b32.xlu1 %v4878_v59, %s32700_s10  ;;  %3065 = vmatprep.mubr.f32.mxu1 %v32668_v0  ;;  %v2915_v3 = vsel %vm32659_vm15, %v2905_v61, %v2907_v60  ;;  %v5921_v59 = vld [vmem:[%s27482_s17 + $0x20] sm:$0xf] }
 0x114   : > { %4890 = vrot.lane.b32.xlu0 %v27796_v28, %s32700_s10  ;;  %v28018_v28 = vld [vmem:[%s27482_s17 + $0x18] sm:$0xff] }
 0x115   : > { %v2911_v25 = vpop.permute.xlu1 %2910  ;;  %v28027_v7 = vcombine.high %v28018_v28, %v28018_v28 }
 0x116   : > { %v2909_v62 = vpop.permute.xlu0 %2908 }
 0x117   : > { %v2916_v63 = vsel %vm32659_vm15, %v2907_v60, %v2909_v62  ;;  %5077 = vrot.lane.b32.xlu1 %v27581_v13, %s27420_s18  ;;  %v2917_v8 = vsel %vm32659_vm15, %v2909_v62, %v2911_v25 }
 0x118   : > { %5058 = vperm.xlu0 %27259, %v171_v22   ;;  %26255 = vmatprep.subr.msk.mxu0 %vm252_vm1, %v2916_v63  ;;  %v26158_v22 = vld [vmem:[%s32641_s1 + $0xa0] sm:$0xff] }
 0x119   : > { %26256 = vmatpush1.msk.msra.mxu0 %vm252_vm1, %v2915_v3  ;;  %v3085_v4 = vpop.permute.xlu1 %3084 }
 0x11a   : > { %v2913_v6 = vpop.permute.xlu0 %2912  ;;  %26257 = vmatmul.mubr.msk.f32.vlgmr.msra.gmra.mxu0 %vm248_vm2, %v26153_v2 }
 0x11b   : > { %v2918_v13 = vsel %vm32659_vm15, %v2911_v25, %v2913_v6  ;;  %5079 = vrot.lane.b32.xlu1 %v27589_v14, %s27420_s18  ;;  %3174 = vmatprep.mubr.f32.mxu0 %v32668_v0  ;;  %vm32660_vm15 = vcmask 982016  }
 0x11c   : > { %26258 = vmatprep.subr.msk.mxu1 %vm252_vm1, %v2918_v13  ;;  %5081 = vrot.lane.b32.xlu0 %v28018_v28, %s27420_s18  ;;  %v6097_v13 = vld [vmem:[%s27482_s17 + $0x20] sm:$0xf] }
 0x11d   : > { %26259 = vmatpush1.msk.msra.mxu1 %vm252_vm1, %v2917_v8  ;;  %v3089_v9 = vpop.permute.xlu1 %3088 }
 0x11e   : > { %v3087_v11 = vpop.permute.xlu0 %3086  ;;  %26260 = vmatmul.mubr.msk.f32.vlgmr.msra.gmra.mxu1 %vm248_vm2, %v26153_v2 }
 0x11f   : > { %v3095_v12 = vsel %vm32658_vm14, %v3085_v4, %v3087_v11  ;;  %v3096_v15 = vsel %vm32658_vm14, %v3087_v11, %v3089_v9  ;;  %5083 = vrot.lane.b32.xlu1 %v28027_v7, %s27420_s18  ;;  %3245 = vmatprep.mubr.f32.mxu1 %v32668_v0  ;;  %v26159_v11 = vld [vmem:[%s32641_s1 + $0xa8] sm:$0xff] }
 0x120   : > { %26261 = vmatprep.subr.msk.mxu0 %vm252_vm1, %v3096_v15  ;;  %5085 = vrot.lane.b32.xlu0 %v5071_v10, %s27420_s18 }
 0x121   : > { %26262 = vmatpush1.msk.msra.mxu0 %vm252_vm1, %v3095_v12  ;;  %v3093_v18 = vpop.permute.xlu1 %3092 }
 0x122   : > { %v3091_v19 = vpop.permute.xlu0 %3090  ;;  %26263 = vmatmul.mubr.msk.f32.vlgmr.msra.gmra.mxu0 %vm248_vm2, %v26154_v1 }
 0x123   : > { %v3097_v20 = vsel %vm32658_vm14, %v3089_v9, %v3091_v19  ;;  %v3098_v21 = vsel %vm32658_vm14, %v3091_v19, %v3093_v18  ;;  %5399 = vrot.lane.b32.xlu1 %v28042_v16, %s32691_s19  ;;  %3354 = vmatprep.mubr.f32.mxu0 %v32668_v0  ;;  %vm32661_vm14 = vcmask 179200  }
 0x124   : > { %26264 = vmatprep.subr.msk.mxu1 %vm252_vm1, %v3098_v21  ;;  %5401 = vrot.lane.b32.xlu0 %v28051_v5, %s32691_s19  ;;  %v6273_v21 = vld [vmem:[%s27482_s17 + $0x20] sm:$0xf] }
 0x125   : > { %26265 = vmatpush1.msk.msra.mxu1 %vm252_vm1, %v3097_v20  ;;  %v3267_v23 = vpop.permute.xlu1 %3266 }
 0x126   : > { %v3265_v24 = vpop.permute.xlu0 %3264  ;;  %26266 = vmatmul.mubr.msk.f32.vlgmr.msra.gmra.mxu1 %vm248_vm2, %v26154_v1 }
 0x127   : > { %5403 = vrot.lane.b32.xlu1 %v28018_v28, %s32691_s19  ;;  %3425 = vmatprep.mubr.f32.mxu1 %v32668_v0  ;;  %v3275_v32 = vsel %vm32661_vm14, %v3265_v24, %v3267_v23 }
 0x128   : > { %5405 = vrot.lane.b32.xlu0 %v28027_v7, %s32691_s19 }
 0x129   : > { %v3271_v27 = vpop.permute.xlu1 %3270 }
 0x12a   : > { %v3269_v29 = vpop.permute.xlu0 %3268 }
 0x12b   : > { %v3276_v30 = vsel %vm32661_vm14, %v3267_v23, %v3269_v29  ;;  %5407 = vrot.lane.b32.xlu1 %v5393_v26, %s32691_s19  ;;  %v3277_v36 = vsel %vm32661_vm14, %v3269_v29, %v3271_v27 }
 0x12c   : > { %26267 = vmatprep.subr.msk.mxu0 %vm252_vm1, %v3276_v30  ;;  %5575 = vrot.lane.b32.xlu0 %v28042_v16, %s32681_s20 }
 0x12d   : > { %26268 = vmatpush1.msk.msra.mxu0 %vm252_vm1, %v3275_v32  ;;  %v3445_v33 = vpop.permute.xlu1 %3444 }
 0x12e   : > { %v3273_v34 = vpop.permute.xlu0 %3272  ;;  %26269 = vmatmul.mubr.msk.f32.vlgmr.msra.gmra.mxu0 %vm248_vm2, %v26155_v31 }
 0x12f   : > { %v3278_v35 = vsel %vm32661_vm14, %v3271_v27, %v3273_v34  ;;  %5577 = vrot.lane.b32.xlu1 %v28051_v5, %s32681_s20  ;;  %3534 = vmatprep.mubr.f32.mxu0 %v32668_v0  ;;  %vm32662_vm14 = vcmask 965632   ;;  %v26160_v27 = vld [vmem:[%s32641_s1 + $0xb0] sm:$0xff] }
 0x130   : > { %26270 = vmatprep.subr.msk.mxu1 %vm252_vm1, %v3278_v35  ;;  %5579 = vrot.lane.b32.xlu0 %v28018_v28, %s32681_s20 }
 0x131   : > { %26271 = vmatpush1.msk.msra.mxu1 %vm252_vm1, %v3277_v36  ;;  %v3449_v37 = vpop.permute.xlu1 %3448 }
 0x132   : > { %v3447_v39 = vpop.permute.xlu0 %3446  ;;  %26272 = vmatmul.mubr.msk.f32.vlgmr.msra.gmra.mxu1 %vm248_vm2, %v26155_v31 }
 0x133   : > { %v3455_v40 = vsel %vm32660_vm15, %v3445_v33, %v3447_v39  ;;  %v3456_v41 = vsel %vm32660_vm15, %v3447_v39, %v3449_v37  ;;  %5581 = vrot.lane.b32.xlu1 %v28027_v7, %s32681_s20  ;;  %3605 = vmatprep.mubr.f32.mxu1 %v32668_v0  ;;  %v28232_v39 = vld [vmem:[%s27482_s17 + $0x20] sm:$0xff] }
 0x134   : > { %26273 = vmatprep.subr.msk.mxu0 %vm252_vm1, %v3456_v41  ;;  %5583 = vrot.lane.b32.xlu0 %v5569_v38, %s32681_s20 }
 0x135   : > { %26274 = vmatpush1.msk.msra.mxu0 %vm252_vm1, %v3455_v40  ;;  %v3453_v43 = vpop.permute.xlu1 %3452 }
 0x136   : > { %v3451_v44 = vpop.permute.xlu0 %3450  ;;  %26275 = vmatmul.mubr.msk.f32.vlgmr.msra.gmra.mxu0 %vm248_vm2, %v26156_v42 }
 0x137   : > { %v3457_v45 = vsel %vm32660_vm15, %v3449_v37, %v3451_v44  ;;  %v3458_v46 = vsel %vm32660_vm15, %v3451_v44, %v3453_v43  ;;  %5751 = vrot.lane.b32.xlu1 %v28042_v16, %s27423_s21  ;;  %3714 = vmatprep.mubr.f32.mxu0 %v32668_v0  ;;  %vm32663_vm15 = vcmask 973824   ;;  %v26161_v37 = vld [vmem:[%s32641_s1 + $0xb8] sm:$0xff]  ;;  %v28241_v43 = vcombine.high %v28232_v39, %v28232_v39 }
 0x138   : > { %26276 = vmatprep.subr.msk.mxu1 %vm252_vm1, %v3458_v46  ;;  %5753 = vrot.lane.b32.xlu0 %v28051_v5, %s27423_s21  ;;  %v6625_v46 = vld [vmem:[%s27482_s17 + $0x28] sm:$0xf] }
 0x139   : > { %26277 = vmatpush1.msk.msra.mxu1 %vm252_vm1, %v3457_v45  ;;  %v3627_v47 = vpop.permute.xlu1 %3626 }
 0x13a   : > { %v3625_v48 = vpop.permute.xlu0 %3624  ;;  %26278 = vmatmul.mubr.msk.f32.vlgmr.msra.gmra.mxu1 %vm248_vm2, %v26156_v42 }
 0x13b   : > { %5755 = vrot.lane.b32.xlu1 %v28018_v28, %s27423_s21  ;;  %3785 = vmatprep.mubr.f32.mxu1 %v32668_v0  ;;  %v3635_v54 = vsel %vm32663_vm15, %v3625_v48, %v3627_v47 }
 0x13c   : > { %5757 = vrot.lane.b32.xlu0 %v28027_v7, %s27423_s21 }
 0x13d   : > { %v3631_v50 = vpop.permute.xlu1 %3630 }
 0x13e   : > { %v3629_v51 = vpop.permute.xlu0 %3628 }
 0x13f   : > { %v3636_v52 = vsel %vm32663_vm15, %v3627_v47, %v3629_v51  ;;  %5759 = vrot.lane.b32.xlu1 %v5745_v49, %s27423_s21  ;;  %v3637_v58 = vsel %vm32663_vm15, %v3629_v51, %v3631_v50 }
 0x140   : > { %26279 = vmatprep.subr.msk.mxu0 %vm252_vm1, %v3636_v52  ;;  %5927 = vrot.lane.b32.xlu0 %v28042_v16, %s32706_s22 }
 0x141   : > { %26280 = vmatpush1.msk.msra.mxu0 %vm252_vm1, %v3635_v54  ;;  %v3805_v55 = vpop.permute.xlu1 %3804 }
 0x142   : > { %v3633_v56 = vpop.permute.xlu0 %3632  ;;  %26281 = vmatmul.mubr.msk.f32.vlgmr.msra.gmra.mxu0 %vm248_vm2, %v26157_v53 }
 0x143   : > { %v3638_v57 = vsel %vm32663_vm15, %v3631_v50, %v3633_v56  ;;  %5929 = vrot.lane.b32.xlu1 %v28051_v5, %s32706_s22  ;;  %3894 = vmatprep.mubr.f32.mxu0 %v32668_v0  ;;  %vm32664_vm15 = vcmask 826368   ;;  %v26162_v50 = vld [vmem:[%s32641_s1 + $0xc0] sm:$0xff] }
 0x144   : > { %26282 = vmatprep.subr.msk.mxu1 %vm252_vm1, %v3638_v57  ;;  %5931 = vrot.lane.b32.xlu0 %v28018_v28, %s32706_s22 }
 0x145   : > { %26283 = vmatpush1.msk.msra.mxu1 %vm252_vm1, %v3637_v58  ;;  %v3809_v17 = vpop.permute.xlu1 %3808  ;;  %v6801_v58 = vld [vmem:[%s27482_s17 + $0x28] sm:$0xf] }
 0x146   : > { %v3807_v60 = vpop.permute.xlu0 %3806  ;;  %26284 = vmatmul.mubr.msk.f32.vlgmr.msra.gmra.mxu1 %vm248_vm2, %v26157_v53 }
 0x147   : > { %v3815_v61 = vsel %vm32662_vm14, %v3805_v55, %v3807_v60  ;;  %v3816_v25 = vsel %vm32662_vm14, %v3807_v60, %v3809_v17  ;;  %5933 = vrot.lane.b32.xlu1 %v28027_v7, %s32706_s22  ;;  %3965 = vmatprep.mubr.f32.mxu1 %v32668_v0 }
 0x148   : > { %26285 = vmatprep.subr.msk.mxu0 %vm252_vm1, %v3816_v25  ;;  %5935 = vrot.lane.b32.xlu0 %v5921_v59, %s32706_s22 }
 0x149   : > { %26286 = vmatpush1.msk.msra.mxu0 %vm252_vm1, %v3815_v61  ;;  %v3813_v62 = vpop.permute.xlu1 %3812 }
 0x14a   : > { %v3811_v63 = vpop.permute.xlu0 %3810  ;;  %26287 = vmatmul.mubr.msk.f32.vlgmr.msra.gmra.mxu0 %vm248_vm2, %v26158_v22 }
 0x14b   : > { %v3817_v2 = vsel %vm32662_vm14, %v3809_v17, %v3811_v63  ;;  %v3818_v3 = vsel %vm32662_vm14, %v3811_v63, %v3813_v62  ;;  %6103 = vrot.lane.b32.xlu1 %v28042_v16, %s27425_s23  ;;  %4074 = vmatprep.mubr.f32.mxu0 %v32668_v0  ;;  %vm32665_vm14 = vcmask 834560  }
 0x14c   : > { %26288 = vmatprep.subr.msk.mxu1 %vm252_vm1, %v3818_v3  ;;  %6105 = vrot.lane.b32.xlu0 %v28051_v5, %s27425_s23 }
 0x14d   : > { %26289 = vmatpush1.msk.msra.mxu1 %vm252_vm1, %v3817_v2  ;;  %v3987_v4 = vpop.permute.xlu1 %3986 }
 0x14e   : > { %v3985_v6 = vpop.permute.xlu0 %3984  ;;  %26290 = vmatmul.mubr.msk.f32.vlgmr.msra.gmra.mxu1 %vm248_vm2, %v26158_v22  ;;  %v26163_v22 = vld [vmem:[%s32641_s1 + $0xc8] sm:$0xff] }
 0x14f   : > { %6107 = vrot.lane.b32.xlu1 %v28018_v28, %s27425_s23  ;;  %4145 = vmatprep.mubr.f32.mxu1 %v32668_v0  ;;  %v3995_v12 = vsel %vm32665_vm14, %v3985_v6, %v3987_v4 }
 0x150   : > { %6109 = vrot.lane.b32.xlu0 %v28027_v7, %s27425_s23 }
 0x151   : > { %v3991_v8 = vpop.permute.xlu1 %3990  ;;  %v28272_v56 = vpop.f32.mrf.mxu0 }
 0x152   : > { %v3989_v9 = vpop.permute.xlu0 %3988 }
 0x153   : > { %v3996_v10 = vsel %vm32665_vm14, %v3987_v4, %v3989_v9  ;;  %6111 = vrot.lane.b32.xlu1 %v6097_v13, %s27425_s23  ;;  %v3997_v19 = vsel %vm32665_vm14, %v3989_v9, %v3991_v8  ;;  %v28281_v59 = vpop.f32.mrf.mxu0  ;;  %v6977_v9 = vld [vmem:[%s27482_s17 + $0x28] sm:$0xf] }
 0x154   : > { %26291 = vmatprep.subr.msk.mxu0 %vm252_vm1, %v3996_v10  ;;  %6279 = vrot.lane.b32.xlu0 %v28042_v16, %s32702_s24  ;;  %v28283_v61 = vpop.f32.mrf.mxu1 }
 0x155   : > { %26292 = vmatpush1.msk.msra.mxu0 %vm252_vm1, %v3995_v12  ;;  %v4165_v15 = vpop.permute.xlu1 %4164  ;;  %v28295_v2 = vpop.f32.mrf.mxu0 }
 0x156   : > { %v3993_v1 = vpop.permute.xlu0 %3992  ;;  %26293 = vmatmul.mubr.msk.f32.vlgmr.msra.gmra.mxu0 %vm248_vm2, %v26159_v11  ;;  %v28298_v4 = vpop.f32.mrf.mxu1 }
 0x157   : > { %v3998_v18 = vsel %vm32665_vm14, %v3991_v8, %v3993_v1  ;;  %6281 = vrot.lane.b32.xlu1 %v28051_v5, %s32702_s24  ;;  %4254 = vmatprep.mubr.f32.mxu0 %v32668_v0  ;;  %vm32666_vm14 = vcmask 687104   ;;  %v28310_v10 = vpop.f32.mrf.mxu0 }
 0x158   : > { %26294 = vmatprep.subr.msk.mxu1 %vm252_vm1, %v3998_v18  ;;  %6283 = vrot.lane.b32.xlu0 %v28018_v28, %s32702_s24  ;;  %v26164_v18 = vld [vmem:[%s32641_s1 + $0xd0] sm:$0xff] }
 0x159   : > { %26295 = vmatpush1.msk.msra.mxu1 %vm252_vm1, %v3997_v19  ;;  %v4169_v20 = vpop.permute.xlu1 %4168  ;;  %v28313_v12 = vpop.f32.mrf.mxu1 }
 0x15a   : > { %v4167_v23 = vpop.permute.xlu0 %4166  ;;  %26296 = vmatmul.mubr.msk.f32.vlgmr.msra.gmra.mxu1 %vm248_vm2, %v26159_v11 }
 0x15b   : > { %v4175_v24 = vsel %vm32664_vm15, %v4165_v15, %v4167_v23  ;;  %v4176_v26 = vsel %vm32664_vm15, %v4167_v23, %v4169_v20  ;;  %6285 = vrot.lane.b32.xlu1 %v28027_v7, %s32702_s24  ;;  %4325 = vmatprep.mubr.f32.mxu1 %v32668_v0  ;;  %v28329_v23 = vpop.f32.mrf.mxu1 }
 0x15c   : > { %26297 = vmatprep.subr.msk.mxu0 %vm252_vm1, %v4176_v26  ;;  %6287 = vrot.lane.b32.xlu0 %v6273_v21, %s32702_s24 }
 0x15d   : > { %26298 = vmatpush1.msk.msra.mxu0 %vm252_vm1, %v4175_v24  ;;  %v4173_v29 = vpop.permute.xlu1 %4172 }
 0x15e   : > { %v4171_v30 = vpop.permute.xlu0 %4170  ;;  %26299 = vmatmul.mubr.msk.f32.vlgmr.msra.gmra.mxu0 %vm248_vm2, %v26160_v27 }
 0x15f   : > { %v4177_v31 = vsel %vm32664_vm15, %v4169_v20, %v4171_v30  ;;  %v4178_v32 = vsel %vm32664_vm15, %v4171_v30, %v4173_v29  ;;  %6455 = vrot.lane.b32.xlu1 %v28042_v16, %s32704_s25  ;;  %4434 = vmatprep.mubr.f32.mxu0 %v32668_v0  ;;  %v6449_v16 = vld [vmem:[%s27482_s17 + $0x20] sm:$0xf]  ;;  %vm32667_vm15 = vcmask 818176   ;;  %v28326_v20 = vpop.f32.mrf.mxu0  ;;  %v28343_v30 = vpop.f32.mrf.mxu1 }
 0x160   : > { %26300 = vmatprep.subr.msk.mxu1 %vm252_vm1, %v4178_v32  ;;  %6457 = vrot.lane.b32.xlu0 %v28051_v5, %s32704_s25 }
 0x161   : > { %26301 = vmatpush1.msk.msra.mxu1 %vm252_vm1, %v4177_v31  ;;  %v4347_v33 = vpop.permute.xlu1 %4346  ;;  %v28341_v29 = vpop.f32.mrf.mxu0  ;;  %v7153_v31 = vld [vmem:[%s27482_s17 + $0x28] sm:$0xf] }
 0x162   : > { %v4345_v34 = vpop.permute.xlu0 %4344  ;;  %26302 = vmatmul.mubr.msk.f32.vlgmr.msra.gmra.mxu1 %vm248_vm2, %v26160_v27 }
 0x163   : > { %6459 = vrot.lane.b32.xlu1 %v28018_v28, %s32704_s25  ;;  %4505 = vmatprep.mubr.f32.mxu1 %v32668_v0  ;;  %v4355_v38 = vsel %vm32667_vm15, %v4345_v34, %v4347_v33  ;;  %v28353_v34 = vpop.f32.mrf.mxu1 }
 0x164   : > { %6461 = vrot.lane.b32.xlu0 %v28027_v7, %s32704_s25 }
 0x165   : > { %v4351_v35 = vpop.permute.xlu1 %4350 }
 0x166   : > { %v4349_v36 = vpop.permute.xlu0 %4348 }
 0x167   : > { %v4356_v5 = vsel %vm32667_vm15, %v4347_v33, %v4349_v36  ;;  %6463 = vrot.lane.b32.xlu1 %v6449_v16, %s32704_s25  ;;  %v4357_v44 = vsel %vm32667_vm15, %v4349_v36, %v4351_v35  ;;  %v28351_v33 = vpop.f32.mrf.mxu0  ;;  %v28360_v36 = vpop.f32.mrf.mxu1 }
 0x168   : > { %26303 = vmatprep.subr.msk.mxu0 %vm252_vm1, %v4356_v5  ;;  %6631 = vrot.lane.b32.xlu0 %v28018_v28, %s32703_s26 }
 0x169   : > { %26304 = vmatpush1.msk.msra.mxu0 %vm252_vm1, %v4355_v38  ;;  %v4525_v40 = vpop.permute.xlu1 %4524  ;;  %v7329_v38 = vld [vmem:[%s27482_s17 + $0x28] sm:$0xf] }
 0x16a   : > { %v4353_v41 = vpop.permute.xlu0 %4352  ;;  %26305 = vmatmul.mubr.msk.f32.vlgmr.msra.gmra.mxu0 %vm248_vm2, %v26161_v37 }
 0x16b   : > { %v4358_v42 = vsel %vm32667_vm15, %v4351_v35, %v4353_v41  ;;  %6633 = vrot.lane.b32.xlu1 %v28027_v7, %s32703_s26  ;;  %4614 = vmatprep.mubr.f32.mxu0 %v32668_v0  ;;  %vm4894_vm15 = vcmask 670720   ;;  %v28358_v35 = vpop.f32.mrf.mxu0  ;;  %v28371_v41 = vpop.f32.mrf.mxu1 }
 0x16c   : > { %26306 = vmatprep.subr.msk.mxu1 %vm252_vm1, %v4358_v42  ;;  %6635 = vrot.lane.b32.xlu0 %v28232_v39, %s32703_s26 }
 0x16d   : > { %26307 = vmatpush1.msk.msra.mxu1 %vm252_vm1, %v4357_v44  ;;  %v4529_v45 = vpop.permute.xlu1 %4528 }
 0x16e   : > { %v4527_v47 = vpop.permute.xlu0 %4526  ;;  %26308 = vmatmul.mubr.msk.f32.vlgmr.msra.gmra.mxu1 %vm248_vm2, %v26161_v37 }
 0x16f   : > { %v4535_v48 = vsel %vm32666_vm14, %v4525_v40, %v4527_v47  ;;  %v4536_v49 = vsel %vm32666_vm14, %v4527_v47, %v4529_v45  ;;  %6637 = vrot.lane.b32.xlu1 %v28241_v43, %s32703_s26  ;;  %4685 = vmatprep.mubr.f32.mxu1 %v32668_v0  ;;  %v28369_v40 = vpop.f32.mrf.mxu0 }
 0x170   : > { %26309 = vmatprep.subr.msk.mxu0 %vm252_vm1, %v4536_v49  ;;  %6639 = vrot.lane.b32.xlu0 %v6625_v46, %s32703_s26 }
 0x171   : > { %26310 = vmatpush1.msk.msra.mxu0 %vm252_vm1, %v4535_v48  ;;  %v4533_v51 = vpop.permute.xlu1 %4532  ;;  %v28380_v47 = vpop.f32.mrf.mxu0 }
 0x172   : > { %v4531_v52 = vpop.permute.xlu0 %4530  ;;  %26311 = vmatmul.mubr.msk.f32.vlgmr.msra.gmra.mxu0 %vm248_vm2, %v26162_v50  ;;  %v28382_v48 = vpop.f32.mrf.mxu1 }
 0x173   : > { %v4537_v53 = vsel %vm32666_vm14, %v4529_v45, %v4531_v52  ;;  %v4538_v54 = vsel %vm32666_vm14, %v4531_v52, %v4533_v51  ;;  %6807 = vrot.lane.b32.xlu1 %v28018_v28, %s32697_s27  ;;  %4794 = vmatprep.mubr.f32.mxu0 %v32668_v0  ;;  %vm4714_vm14 = vcmask 678912  }
 0x174   : > { %26312 = vmatprep.subr.msk.mxu1 %vm252_vm1, %v4538_v54  ;;  %6809 = vrot.lane.b32.xlu0 %v28027_v7, %s32697_s27  ;;  %v27290_v54 = vld [vmem:[%s27482_s17 + $0x10] sm:$0xff] }
 0x175   : > { %26313 = vmatpush1.msk.msra.mxu1 %vm252_vm1, %v4537_v53  ;;  %v4707_v55 = vpop.permute.xlu1 %4706 }
 0x176   : > { %v4705_v57 = vpop.permute.xlu0 %4704  ;;  %26314 = vmatmul.mubr.msk.f32.vlgmr.msra.gmra.mxu1 %vm248_vm2, %v26162_v50  ;;  %v27289_v50 = vld [vmem:[%s32641_s1 + $0x8] sm:$0xff] }
 0x177   : > { %6811 = vrot.lane.b32.xlu1 %v28232_v39, %s32697_s27  ;;  %4865 = vmatprep.mubr.f32.mxu1 %v32668_v0  ;;  %v4715_v62 = vsel %vm4714_vm14, %v4705_v57, %v4707_v55  ;;  %v28403_v57 = vpop.f32.mrf.mxu1 }
 0x178   : > { %6813 = vrot.lane.b32.xlu0 %v28241_v43, %s32697_s27 }
 0x179   : > { %v4711_v17 = vpop.permute.xlu1 %4710 }
 0x17a   : > { %v4709_v60 = vpop.permute.xlu0 %4708 }
 0x17b   : > { %v4716_v25 = vsel %vm4714_vm14, %v4707_v55, %v4709_v60  ;;  %6815 = vrot.lane.b32.xlu1 %v6801_v58, %s32697_s27  ;;  %v4717_v13 = vsel %vm4714_vm14, %v4709_v60, %v4711_v17  ;;  %v28401_v55 = vpop.f32.mrf.mxu0  ;;  %v27291_v60 = vld [vmem:[%s32641_s1] sm:$0xff] }
 0x17c   : > { %26315 = vmatprep.subr.msk.mxu0 %vm252_vm1, %v4716_v25  ;;  %6983 = vrot.lane.b32.xlu0 %v28018_v28, %s32695_s28  ;;  %v7505_v25 = vld [vmem:[%s27482_s17 + $0x28] sm:$0xf] }
 0x17d   : > { %26316 = vmatpush1.msk.msra.mxu0 %vm252_vm1, %v4715_v62  ;;  %v4885_v63 = vpop.permute.xlu1 %4884  ;;  %v28422_v62 = vpop.f32.mrf.mxu0 }
 0x17e   : > { %v4713_v3 = vpop.permute.xlu0 %4712  ;;  %26317 = vmatmul.mubr.msk.f32.vlgmr.msra.gmra.mxu0 %vm248_vm2, %v26163_v22 }
 0x17f   : > { %v4718_v6 = vsel %vm4714_vm14, %v4711_v17, %v4713_v3  ;;  %6985 = vrot.lane.b32.xlu1 %v28027_v7, %s32695_s28  ;;  %4974 = vmatprep.mubr.f32.mxu0 %v32668_v0 }
 0x180   : > { %26318 = vmatprep.subr.msk.mxu1 %vm252_vm1, %v4718_v6  ;;  %6987 = vrot.lane.b32.xlu0 %v28232_v39, %s32695_s28 }
 0x181   : > { %26319 = vmatpush1.msk.msra.mxu1 %vm252_vm1, %v4717_v13  ;;  %v4889_v8 = vpop.permute.xlu1 %4888 }
 0x182   : > { %v4887_v11 = vpop.permute.xlu0 %4886  ;;  %26320 = vmatmul.mubr.msk.f32.vlgmr.msra.gmra.mxu1 %vm248_vm2, %v26163_v22 }
 0x183   : > { %v4895_v15 = vsel %vm4894_vm15, %v4885_v63, %v4887_v11  ;;  %v4896_v1 = vsel %vm4894_vm15, %v4887_v11, %v4889_v8  ;;  %6989 = vrot.lane.b32.xlu1 %v28241_v43, %s32695_s28  ;;  %5045 = vmatprep.mubr.f32.mxu1 %v32668_v0  ;;  %v28424_v63 = vpop.f32.mrf.mxu1  ;;  %v28440_v11 = vpop.f32.mrf.mxu0 }
 0x184   : > { %26321 = vmatprep.subr.msk.mxu0 %vm252_vm1, %v4896_v1  ;;  %6991 = vrot.lane.b32.xlu0 %v6977_v9, %s32695_s28  ;;  %v27292_v9 = vld [vmem:[%s32641_s1 + $0x10] sm:$0xff] }
 0x185   : > { %26322 = vmatpush1.msk.msra.mxu0 %vm252_vm1, %v4895_v15  ;;  %v4893_v19 = vpop.permute.xlu1 %4892  ;;  %v28442_v15 = vpop.f32.mrf.mxu1 }
 0x186   : > { %26323 = vmatmul.mubr.msk.f32.vlgmr.msra.gmra.mxu0 %vm248_vm2, %v26164_v18  ;;  %v4891_v21 = vpop.permute.xlu0 %4890 }
 0x187   : > { %v4897_v24 = vsel %vm4894_vm15, %v4889_v8, %v4891_v21  ;;  %v4898_v26 = vsel %vm4894_vm15, %v4891_v21, %v4893_v19  ;;  %7159 = vrot.lane.b32.xlu1 %v28018_v28, %s32693_s29  ;;  %5163 = vmatprep.mubr.f32.mxu0 %v32668_v0  ;;  %v28451_v19 = vpop.f32.mrf.mxu0  ;;  %v28453_v21 = vpop.f32.mrf.mxu1 }
 0x188   : > { %26324 = vmatprep.subr.msk.mxu1 %vm252_vm1, %v4898_v26  ;;  %7161 = vrot.lane.b32.xlu0 %v28027_v7, %s32693_s29 }
 0x189   : > { %26325 = vmatpush1.msk.msra.mxu1 %vm252_vm1, %v4897_v24  ;;  %v5078_v27 = vpop.permute.xlu1 %5077 }
 0x18a   : > { %26326 = vmatmul.mubr.msk.f32.vlgmr.msra.gmra.mxu1 %vm248_vm2, %v26164_v18 }
 0x18b   : > { %7163 = vrot.lane.b32.xlu1 %v28232_v39, %s32693_s29  ;;  %5234 = vmatprep.mubr.f32.mxu1 %v32668_v0 }
 0x18c   : > { %7165 = vrot.lane.b32.xlu0 %v28241_v43, %s32693_s29 }
 0x18d   : > { %v5080_v32 = vpop.permute.xlu1 %5079 }
 0x18e   : > { %v5087_v45 = vsel %vm243_vm0, %v5078_v27, %v5080_v32 }
 0x18f   : > { %7167 = vrot.lane.b32.xlu1 %v7153_v31, %s32693_s29 }
 0x190   : > { %7335 = vrot.lane.b32.xlu0 %v28018_v28, %s32688_s30 }
 0x191   : > { %v5084_v16 = vpop.permute.xlu1 %5083 }
 0x193   : > { %v28362_v5 = vpop.permute.xlu0 %5058  ;;  %7337 = vrot.lane.b32.xlu1 %v28027_v7, %s32688_s30 }
 0x194   : > { %32708 = vst [vmem:[#allocation2_spill] sm:$0xff] %v28362_v5  ;;  %7339 = vrot.lane.b32.xlu0 %v28232_v39, %s32688_s30  ;;  %v27297_v5 = vld [vmem:[%s32641_s1 + $0x38] sm:$0xff] }
 0x195   : > { %v5400_v37 = vpop.permute.xlu1 %5399 }
 0x197   : > { %v5082_v42 = vpop.permute.xlu0 %5081  ;;  %7341 = vrot.lane.b32.xlu1 %v28241_v43, %s32688_s30 }
 0x198   : > { %v5088_v44 = vsel %vm243_vm0, %v5080_v32, %v5082_v42  ;;  %7343 = vrot.lane.b32.xlu0 %v7329_v38, %s32688_s30  ;;  %v5089_v52 = vsel %vm243_vm0, %v5082_v42, %v5084_v16  ;;  %v7681_v32 = vld [vmem:[%s27482_s17 + $0x28] sm:$0xf]  ;;  %v27293_v42 = vld [vmem:[%s32641_s1 + $0x18] sm:$0xff] }
 0x199   : > { %26327 = vmatprep.subr.msk.mxu0 %vm252_vm1, %v5088_v44  ;;  %v5404_v46 = vpop.permute.xlu1 %5403 }
 0x19a   : > { %26328 = vmatpush1.msk.msra.mxu0 %vm252_vm1, %v5087_v45 }
 0x19b   : > { %v5086_v49 = vpop.permute.xlu0 %5085  ;;  %7511 = vrot.lane.b32.xlu1 %v28018_v28, %s32686_s6  ;;  %26329 = vmatmul.mubr.msk.f32.vlgmr.msra.gmra.mxu0 %vm248_vm2, %v27289_v50 }
 0x19c   : > { %v5090_v51 = vsel %vm243_vm0, %v5084_v16, %v5086_v49  ;;  %26333 = vmatprep.subr.msk.mxu0 %vm252_vm1, %v27589_v14  ;;  %5313 = vmatprep.mubr.f32.mxu0 %v32668_v0  ;;  %v28464_v16 = vpop.f32.mrf.mxu0 }
 0x19d   : > { %26330 = vmatprep.subr.msk.mxu1 %vm252_vm1, %v5090_v51  ;;  %v5408_v53 = vpop.permute.xlu1 %5407  ;;  %26334 = vmatpush1.msk.msra.mxu0 %vm252_vm1, %v27290_v54  ;;  %v7857_v54 = vld [vmem:[%s27482_s17 + $0x28] sm:$0xf] }
 0x19e   : > { %26331 = vmatpush1.msk.msra.mxu1 %vm252_vm1, %v5089_v52  ;;  %7513 = vrot.lane.b32.xlu0 %v28027_v7, %s32686_s6  ;;  %v28480_v49 = vpop.f32.mrf.mxu0 }
 0x19f   : > { %v5402_v14 = vpop.permute.xlu0 %5401  ;;  %7515 = vrot.lane.b32.xlu1 %v28232_v39, %s32686_s6  ;;  %26332 = vmatmul.mubr.msk.f32.vlgmr.msra.gmra.mxu1 %vm248_vm2, %v27289_v50 }
 0x1a0   : > { %v5409_v58 = vsel %vm574_vm3, %v5400_v37, %v5402_v14  ;;  %v5410_v17 = vsel %vm574_vm3, %v5402_v14, %v5404_v46  ;;  %26335 = vmatmul.mubr.msk.f32.vlgmr.msra.gmra.mxu0 %vm248_vm2, %v27291_v60  ;;  %26336 = vmatprep.subr.msk.mxu1 %vm252_vm1, %v28027_v7  ;;  %v28466_v37 = vpop.f32.mrf.mxu1 }
 0x1a1   : > { %26339 = vmatprep.subr.msk.mxu0 %vm252_vm1, %v5410_v17  ;;  %v5578_v22 = vpop.permute.xlu1 %5577  ;;  %26337 = vmatpush1.msk.msra.mxu1 %vm252_vm1, %v28018_v28 }
 0x1a2   : > { %26340 = vmatpush1.msk.msra.mxu0 %vm252_vm1, %v5409_v58  ;;  %5384 = vmatprep.mubr.f32.mxu1 %v32668_v0  ;;  %v28482_v50 = vpop.f32.mrf.mxu1  ;;  %v28495_v58 = vpop.f32.mrf.mxu0 }
 0x1a3   : > { %v5406_v3 = vpop.permute.xlu0 %5405  ;;  %7519 = vrot.lane.b32.xlu1 %v7505_v25, %s32686_s6  ;;  %26338 = vmatmul.mubr.msk.f32.vlgmr.msra.gmra.mxu1 %vm248_vm2, %v27291_v60  ;;  %v27294_v25 = vld [vmem:[%s32641_s1 + $0x20] sm:$0xff] }
 0x1a4   : > { %v5411_v6 = vsel %vm574_vm3, %v5404_v46, %v5406_v3  ;;  %v5412_v13 = vsel %vm574_vm3, %v5406_v3, %v5408_v53  ;;  %7517 = vrot.lane.b32.xlu0 %v28241_v43, %s32686_s6  ;;  %5485 = vmatprep.mubr.f32.mxu0 %v32668_v0  ;;  %v28497_v17 = vpop.f32.mrf.mxu1 }
 0x1a5   : > { %26342 = vmatprep.subr.msk.mxu1 %vm252_vm1, %v5412_v13  ;;  %v5582_v8 = vpop.permute.xlu1 %5581  ;;  %26341 = vmatmul.mubr.msk.f32.vlgmr.msra.gmra.mxu0 %vm248_vm2, %v27292_v9  ;;  %v28511_v13 = vpop.f32.mrf.mxu0 }
 0x1a6   : > { %26343 = vmatpush1.msk.msra.mxu1 %vm252_vm1, %v5411_v6  ;;  %5556 = vmatprep.mubr.f32.mxu1 %v32668_v0 }
 0x1a7   : > { %v5576_v1 = vpop.permute.xlu0 %5575  ;;  %7689 = vrot.lane.b32.xlu1 %v28027_v7, %s32684_s15  ;;  %26344 = vmatmul.mubr.msk.f32.vlgmr.msra.gmra.mxu1 %vm248_vm2, %v27292_v9 }
 0x1a8   : > { %7687 = vrot.lane.b32.xlu0 %v28018_v28, %s32684_s15  ;;  %5661 = vmatprep.mubr.f32.mxu0 %v32668_v0  ;;  %v5585_v27 = vsel %vm754_vm4, %v5576_v1, %v5578_v22 }
 0x1a9   : > { %v5752_v18 = vpop.permute.xlu1 %5751  ;;  %5732 = vmatprep.mubr.f32.mxu1 %v32668_v0 }
 0x1ab   : > { %v5580_v24 = vpop.permute.xlu0 %5579  ;;  %7693 = vrot.lane.b32.xlu1 %v28241_v43, %s32684_s15 }
 0x1ac   : > { %v5586_v26 = vsel %vm754_vm4, %v5578_v22, %v5580_v24  ;;  %7691 = vrot.lane.b32.xlu0 %v28232_v39, %s32684_s15  ;;  %v5587_v45 = vsel %vm754_vm4, %v5580_v24, %v5582_v8 }
 0x1ad   : > { %26345 = vmatprep.subr.msk.mxu0 %vm252_vm1, %v5586_v26  ;;  %v5756_v31 = vpop.permute.xlu1 %5755 }
 0x1ae   : > { %26346 = vmatpush1.msk.msra.mxu0 %vm252_vm1, %v5585_v27 }
 0x1af   : > { %v5584_v38 = vpop.permute.xlu0 %5583  ;;  %7863 = vrot.lane.b32.xlu1 %v28018_v28, %s32679_s5  ;;  %26347 = vmatmul.mubr.msk.f32.vlgmr.msra.gmra.mxu0 %vm248_vm2, %v27293_v42 }
 0x1b0   : > { %v5588_v44 = vsel %vm754_vm4, %v5582_v8, %v5584_v38  ;;  %7695 = vrot.lane.b32.xlu0 %v7681_v32, %s32684_s15  ;;  %5837 = vmatprep.mubr.f32.mxu0 %v32668_v0  ;;  %v28513_v8 = vpop.f32.mrf.mxu1  ;;  %v8033_v32 = vld [vmem:[%s27482_s17 + $0x28] sm:$0xf] }
 0x1b1   : > { %26348 = vmatprep.subr.msk.mxu1 %vm252_vm1, %v5588_v44  ;;  %v5760_v46 = vpop.permute.xlu1 %5759 }
 0x1b2   : > { %26349 = vmatpush1.msk.msra.mxu1 %vm252_vm1, %v5587_v45  ;;  %v28523_v24 = vpop.f32.mrf.mxu1 }
 0x1b3   : > { %v5754_v51 = vpop.permute.xlu0 %5753  ;;  %7867 = vrot.lane.b32.xlu1 %v28232_v39, %s32679_s5  ;;  %26350 = vmatmul.mubr.msk.f32.vlgmr.msra.gmra.mxu1 %vm248_vm2, %v27293_v42 }
 0x1b4   : > { %v5761_v52 = vsel %vm934_vm5, %v5752_v18, %v5754_v51  ;;  %v5762_v53 = vsel %vm934_vm5, %v5754_v51, %v5756_v31  ;;  %7865 = vrot.lane.b32.xlu0 %v28027_v7, %s32679_s5  ;;  %5908 = vmatprep.mubr.f32.mxu1 %v32668_v0  ;;  %v28521_v18 = vpop.f32.mrf.mxu0  ;;  %v28539_v42 = vpop.f32.mrf.mxu1 }
 0x1b5   : > { %26351 = vmatprep.subr.msk.mxu0 %vm252_vm1, %v5762_v53  ;;  %v5930_v14 = vpop.permute.xlu1 %5929 }
 0x1b6   : > { %26352 = vmatpush1.msk.msra.mxu0 %vm252_vm1, %v5761_v52  ;;  %v28537_v38 = vpop.f32.mrf.mxu0 }
 0x1b7   : > { %v5758_v60 = vpop.permute.xlu0 %5757  ;;  %7871 = vrot.lane.b32.xlu1 %v7857_v54, %s32679_s5  ;;  %26353 = vmatmul.mubr.msk.f32.vlgmr.msra.gmra.mxu0 %vm248_vm2, %v27294_v25  ;;  %v28562_v54 = vpop.f32.mrf.mxu1 }
 0x1b8   : > { %v5763_v22 = vsel %vm934_vm5, %v5756_v31, %v5758_v60  ;;  %v5764_v3 = vsel %vm934_vm5, %v5758_v60, %v5760_v46  ;;  %7869 = vrot.lane.b32.xlu0 %v28241_v43, %s32679_s5  ;;  %6013 = vmatprep.mubr.f32.mxu0 %v32668_v0  ;;  %v28554_v46 = vld [vmem:[%s27482_s17 + $0x2c] sm:$0xff]  ;;  %v28560_v53 = vpop.f32.mrf.mxu0  ;;  %s32775_s5 = smov 22  }
 0x1b9   : > { %26354 = vmatprep.subr.msk.mxu1 %vm252_vm1, %v5764_v3  ;;  %v5934_v6 = vpop.permute.xlu1 %5933  ;;  %v8209_v3 = vld [vmem:[%s27482_s17 + $0x34] sm:$0xf] }
 0x1ba   : > { %26355 = vmatpush1.msk.msra.mxu1 %vm252_vm1, %v5763_v22  ;;  %v28571_v22 = vcombine.high %v28554_v46, %v28554_v46 }
 0x1bb   : > { %v5928_v9 = vpop.permute.xlu0 %5927  ;;  %8041 = vrot.lane.b32.xlu1 %v28027_v7, %s32675_s9  ;;  %26356 = vmatmul.mubr.msk.f32.vlgmr.msra.gmra.mxu1 %vm248_vm2, %v27294_v25  ;;  %v28531_v7 = vld [vmem:[%s27482_s17 + $0x24] sm:$0xff] }
 0x1bc   : > { %8039 = vrot.lane.b32.xlu0 %v28018_v28, %s32675_s9  ;;  %6084 = vmatprep.mubr.f32.mxu1 %v32668_v0  ;;  %v5937_v28 = vsel %vm1114_vm6, %v5928_v9, %v5930_v14  ;;  %v28550_v45 = vcombine.high %v28531_v7, %v28531_v7  ;;  %v28579_v9 = vpop.f32.mrf.mxu0 }
 0x1bd   : > { %v6104_v1 = vpop.permute.xlu1 %6103 }
 0x1bf   : > { %v5932_v26 = vpop.permute.xlu0 %5931  ;;  %8045 = vrot.lane.b32.xlu1 %v28241_v43, %s32675_s9 }
 0x1c0   : > { %v5938_v27 = vsel %vm1114_vm6, %v5930_v14, %v5932_v26  ;;  %8043 = vrot.lane.b32.xlu0 %v28232_v39, %s32675_s9  ;;  %v27295_v39 = vld [vmem:[%s32641_s1 + $0x28] sm:$0xff]  ;;  %v5939_v51 = vsel %vm1114_vm6, %v5932_v26, %v5934_v6 }
 0x1c1   : > { %26357 = vmatprep.subr.msk.mxu0 %vm252_vm1, %v5938_v27  ;;  %v6108_v31 = vpop.permute.xlu1 %6107  ;;  %v27296_v27 = vld [vmem:[%s32641_s1 + $0x30] sm:$0xff] }
 0x1c2   : > { %26358 = vmatpush1.msk.msra.mxu0 %vm252_vm1, %v5937_v28 }
 0x1c3   : > { %v5936_v43 = vpop.permute.xlu0 %5935  ;;  %8215 = vrot.lane.b32.xlu1 %v28531_v7, %s32673_s14  ;;  %26359 = vmatmul.mubr.msk.f32.vlgmr.msra.gmra.mxu0 %vm248_vm2, %v27295_v39 }
 0x1c4   : > { %v5940_v44 = vsel %vm1114_vm6, %v5934_v6, %v5936_v43  ;;  %8047 = vrot.lane.b32.xlu0 %v8033_v32, %s32675_s9  ;;  %6189 = vmatprep.mubr.f32.mxu0 %v32668_v0  ;;  %s32724_s9 = smov 83  }
 0x1c5   : > { %26360 = vmatprep.subr.msk.mxu1 %vm252_vm1, %v5940_v44  ;;  %v6112_v52 = vpop.permute.xlu1 %6111 }
 0x1c6   : > { %26361 = vmatpush1.msk.msra.mxu1 %vm252_vm1, %v5939_v51 }
 0x1c7   : > { %v6106_v14 = vpop.permute.xlu0 %6105  ;;  %8219 = vrot.lane.b32.xlu1 %v28554_v46, %s32673_s14  ;;  %26362 = vmatmul.mubr.msk.f32.vlgmr.msra.gmra.mxu1 %vm248_vm2, %v27295_v39  ;;  %v28595_v39 = vpop.f32.mrf.mxu0 }
 0x1c8   : > { %v6113_v60 = vsel %vm1294_vm7, %v6104_v1, %v6106_v14  ;;  %v6114_v25 = vsel %vm1294_vm7, %v6106_v14, %v6108_v31  ;;  %8217 = vrot.lane.b32.xlu0 %v28550_v45, %s32673_s14  ;;  %6260 = vmatprep.mubr.f32.mxu1 %v32668_v0  ;;  %v28581_v1 = vpop.f32.mrf.mxu1 }
 0x1c9   : > { %26363 = vmatprep.subr.msk.mxu0 %vm252_vm1, %v6114_v25  ;;  %v6282_v6 = vpop.permute.xlu1 %6281 }
 0x1ca   : > { %26364 = vmatpush1.msk.msra.mxu0 %vm252_vm1, %v6113_v60  ;;  %v28597_v44 = vpop.f32.mrf.mxu1 }
 0x1cb   : > { %v6110_v26 = vpop.permute.xlu0 %6109  ;;  %8223 = vrot.lane.b32.xlu1 %v8209_v3, %s32673_s14  ;;  %26365 = vmatmul.mubr.msk.f32.vlgmr.msra.gmra.mxu0 %vm248_vm2, %v27296_v27 }
 0x1cc   : > { %v6115_v28 = vsel %vm1294_vm7, %v6108_v31, %v6110_v26  ;;  %v6116_v32 = vsel %vm1294_vm7, %v6110_v26, %v6112_v52  ;;  %8221 = vrot.lane.b32.xlu0 %v28571_v22, %s32673_s14  ;;  %6365 = vmatprep.mubr.f32.mxu0 %v32668_v0  ;;  %v28605_v52 = vpop.f32.mrf.mxu0  ;;  %v28607_v14 = vpop.f32.mrf.mxu1 }
 0x1cd   : > { %26366 = vmatprep.subr.msk.mxu1 %vm252_vm1, %v6116_v32  ;;  %v6286_v43 = vpop.permute.xlu1 %6285  ;;  %32709 = vst [vmem:[#allocation3_spill] sm:$0xff] %v28607_v14 }
 0x1ce   : > { %26367 = vmatpush1.msk.msra.mxu1 %vm252_vm1, %v6115_v28  ;;  %v28618_v28 = vpop.f32.mrf.mxu0  ;;  %v28620_v32 = vpop.f32.mrf.mxu1 }
 0x1cf   : > { %v6280_v51 = vpop.permute.xlu0 %6279  ;;  %8393 = vrot.lane.b32.xlu1 %v28550_v45, %s32671_s7  ;;  %26368 = vmatmul.mubr.msk.f32.vlgmr.msra.gmra.mxu1 %vm248_vm2, %v27296_v27  ;;  %v8385_v27 = vld [vmem:[%s27482_s17 + $0x34] sm:$0xf]  ;;  %32710 = vst [vmem:[#allocation4_spill] sm:$0xff] %v28618_v28  ;;  %32711 = vst [vmem:[#allocation5_spill] sm:$0xff] %v28620_v32 }
 0x1d0   : > { %8391 = vrot.lane.b32.xlu0 %v28531_v7, %s32671_s7  ;;  %6436 = vmatprep.mubr.f32.mxu1 %v32668_v0  ;;  %v6289_v3 = vsel %vm1474_vm8, %v6280_v51, %v6282_v6  ;;  %v32713_v51 = vmov 0.0   ;;  %v28634_v32 = vpop.f32.mrf.mxu0  ;;  %v28636_v28 = vpop.f32.mrf.mxu1 }
 0x1d1   : > { %v6456_v31 = vpop.permute.xlu1 %6455 }
 0x1d3   : > { %v6284_v60 = vpop.permute.xlu0 %6283  ;;  %8397 = vrot.lane.b32.xlu1 %v28571_v22, %s32671_s7 }
 0x1d4   : > { %v6290_v25 = vsel %vm1474_vm8, %v6282_v6, %v6284_v60  ;;  %8395 = vrot.lane.b32.xlu0 %v28554_v46, %s32671_s7 }
 0x1d5   : > { %26369 = vmatprep.subr.msk.mxu0 %vm252_vm1, %v6290_v25  ;;  %v6460_v26 = vpop.permute.xlu1 %6459  ;;  %v6291_v25 = vsel %vm1474_vm8, %v6284_v60, %v6286_v43 }
 0x1d6   : > { %26370 = vmatpush1.msk.msra.mxu0 %vm252_vm1, %v6289_v3 }
 0x1d7   : > { %v6288_v0 = vpop.permute.xlu0 %6287  ;;  %8567 = vrot.lane.b32.xlu1 %v28531_v7, %s32712_s11  ;;  %26371 = vmatmul.mubr.msk.f32.vlgmr.msra.gmra.mxu0 %vm248_vm2, %v27297_v5 }
 0x1d8   : > { %v6292_v6 = vsel %vm1474_vm8, %v6286_v43, %v6288_v0  ;;  %8399 = vrot.lane.b32.xlu0 %v8385_v27, %s32671_s7  ;;  %6541 = vmatprep.mubr.f32.mxu0 %v32713_v51  ;;  %v8561_v43 = vld [vmem:[%s27482_s17 + $0x34] sm:$0xf]  ;;  %s32722_s7 = smov 100  }
 0x1d9   : > { %26372 = vmatprep.subr.msk.mxu1 %vm252_vm1, %v6292_v6  ;;  %v6464_v3 = vpop.permute.xlu1 %6463  ;;  %v28649_v6 = vpop.f32.mrf.mxu0 }
 0x1da   : > { %26373 = vmatpush1.msk.msra.mxu1 %vm252_vm1, %v6291_v25  ;;  %32714 = vst [vmem:[#allocation6_spill] sm:$0xff] %v28649_v6  ;;  %v28651_v25 = vpop.f32.mrf.mxu1  ;;  %v481_v6 = vadd.f32 %v28295_v2, %v28272_v56  ;;  %v552_v56 = vadd.f32 %v28313_v12, %v28283_v61  ;;  %v8737_v12 = vld [vmem:[%s27482_s17 + $0x34] sm:$0xf] }
 0x1db   : > { %v6458_v14 = vpop.permute.xlu0 %6457  ;;  %8571 = vrot.lane.b32.xlu1 %v28554_v46, %s32712_s11  ;;  %26374 = vmatmul.mubr.msk.f32.vlgmr.msra.gmra.mxu1 %vm248_vm2, %v27297_v5  ;;  %32715 = vst [vmem:[#allocation7_spill] sm:$0xff] %v28651_v25 }
 0x1dc   : > { %v6465_v0 = vsel %vm1654_vm9, %v6456_v31, %v6458_v14  ;;  %v6466_v27 = vsel %vm1654_vm9, %v6458_v14, %v6460_v26  ;;  %8569 = vrot.lane.b32.xlu0 %v28550_v45, %s32712_s11  ;;  %6612 = vmatprep.mubr.f32.mxu1 %v32713_v51  ;;  %v27298_v31 = vld [vmem:[%s32641_s1 + $0x40] sm:$0xff]  ;;  %v28667_v25 = vpop.f32.mrf.mxu1  ;;  %v732_v2 = vadd.f32 %v28326_v20, %v481_v6 }
 0x1dd   : > { %26375 = vmatprep.subr.msk.mxu0 %vm252_vm1, %v6466_v27  ;;  %v6634_v60 = vpop.permute.xlu1 %6633  ;;  %32717 = vst [vmem:[#allocation9_spill] sm:$0xff] %v28667_v25 }
 0x1de   : > { %26376 = vmatpush1.msk.msra.mxu0 %vm252_vm1, %v6465_v0 }
 0x1df   : > { %v6462_v5 = vpop.permute.xlu0 %6461  ;;  %8575 = vrot.lane.b32.xlu1 %v8561_v43, %s32712_s11  ;;  %26377 = vmatmul.mubr.msk.f32.vlgmr.msra.gmra.mxu0 %vm248_vm2, %v27298_v31  ;;  %v28665_v43 = vpop.f32.mrf.mxu0 }
 0x1e0   : > { %v6467_v14 = vsel %vm1654_vm9, %v6460_v26, %v6462_v5  ;;  %v6468_v27 = vsel %vm1654_vm9, %v6462_v5, %v6464_v3  ;;  %8573 = vrot.lane.b32.xlu0 %v28571_v22, %s32712_s11  ;;  %6717 = vmatprep.mubr.f32.mxu0 %v32713_v51  ;;  %32716 = vst [vmem:[#allocation8_spill] sm:$0xff] %v28665_v43 }
 0x1e1   : > { %26378 = vmatprep.subr.msk.mxu1 %vm252_vm1, %v6468_v27  ;;  %v6638_v0 = vpop.permute.xlu1 %6637  ;;  %v483_v3 = vadd.f32 %v28310_v10, %v28281_v59  ;;  %v28681_v27 = vpop.f32.mrf.mxu1  ;;  %v554_v10 = vadd.f32 %v28329_v23, %v28298_v4  ;;  %v912_v43 = vadd.f32 %v28351_v33, %v732_v2  ;;  %v27299_v4 = vld [vmem:[%s32641_s1 + $0x48] sm:$0xff] }
 0x1e2   : > { %26379 = vmatpush1.msk.msra.mxu1 %vm252_vm1, %v6467_v14  ;;  %v28679_v14 = vpop.f32.mrf.mxu0  ;;  %32720 = vst [vmem:[#allocation11_spill] sm:$0xff] %v28681_v27 }
 0x1e3   : > { %v6632_v26 = vpop.permute.xlu0 %6631  ;;  %8745 = vrot.lane.b32.xlu1 %v28550_v45, %s32718_s4  ;;  %26380 = vmatmul.mubr.msk.f32.vlgmr.msra.gmra.mxu1 %vm248_vm2, %v27298_v31  ;;  %32719 = vst [vmem:[#allocation10_spill] sm:$0xff] %v28679_v14  ;;  %v733_v27 = vadd.f32 %v28341_v29, %v483_v3  ;;  %v28700_v6 = vpop.f32.mrf.mxu1  ;;  %v734_v14 = vadd.f32 %v28343_v30, %v552_v56 }
 0x1e4   : > { %8743 = vrot.lane.b32.xlu0 %v28531_v7, %s32718_s4  ;;  %6788 = vmatprep.mubr.f32.mxu1 %v32713_v51  ;;  %v6641_v59 = vsel %vm1834_vm10, %v6632_v26, %v6634_v60  ;;  %v28698_v20 = vpop.f32.mrf.mxu0  ;;  %v735_v30 = vadd.f32 %v28353_v34, %v554_v10  ;;  %v1092_v2 = vadd.f32 %v28369_v40, %v912_v43 }
 0x1e5   : > { %v6808_v5 = vpop.permute.xlu1 %6807  ;;  %v913_v33 = vadd.f32 %v28358_v35, %v733_v27  ;;  %v28720_v3 = vpop.f32.mrf.mxu1  ;;  %v914_v56 = vadd.f32 %v28360_v36, %v734_v14 }
 0x1e6   : > { %v28718_v26 = vpop.f32.mrf.mxu0  ;;  %v915_v36 = vadd.f32 %v28371_v41, %v735_v30  ;;  %v27300_v41 = vld [vmem:[%s32641_s1 + $0x50] sm:$0xff] }
 0x1e7   : > { %v6636_v31 = vpop.permute.xlu0 %6635  ;;  %8749 = vrot.lane.b32.xlu1 %v28571_v22, %s32718_s4  ;;  %v1093_v40 = vadd.f32 %v28380_v47, %v913_v33  ;;  %v1094_v27 = vadd.f32 %v28382_v48, %v914_v56 }
 0x1e8   : > { %v6642_v25 = vsel %vm1834_vm10, %v6634_v60, %v6636_v31  ;;  %8747 = vrot.lane.b32.xlu0 %v28554_v46, %s32718_s4  ;;  %v6643_v29 = vsel %vm1834_vm10, %v6636_v31, %v6638_v0  ;;  %v28737_v14 = vpop.f32.mrf.mxu0  ;;  %v1272_v31 = vadd.f32 %v28401_v55, %v1092_v2  ;;  %v1095_v48 = vadd.f32 %v28403_v57, %v915_v36 }
 0x1e9   : > { %26381 = vmatprep.subr.msk.mxu0 %vm252_vm1, %v6642_v25  ;;  %v6812_v61 = vpop.permute.xlu1 %6811  ;;  %v1273_v55 = vadd.f32 %v28422_v62, %v1093_v40 }
 0x1ea   : > { %26382 = vmatpush1.msk.msra.mxu0 %vm252_vm1, %v6641_v59  ;;  %v1275_v57 = vadd.f32 %v28442_v15, %v1095_v48 }
 0x1eb   : > { %v6640_v60 = vpop.permute.xlu0 %6639  ;;  %8919 = vrot.lane.b32.xlu1 %v28531_v7, %s32721_s16  ;;  %26383 = vmatmul.mubr.msk.f32.vlgmr.msra.gmra.mxu0 %vm248_vm2, %v27299_v4  ;;  %v1453_v62 = vadd.f32 %v28451_v19, %v1273_v55  ;;  %v9265_v55 = vld [vmem:[%s27482_s17 + $0x34] sm:$0xf] }
 0x1ec   : > { %v6644_v23 = vsel %vm1834_vm10, %v6638_v0, %v6640_v60  ;;  %8751 = vrot.lane.b32.xlu0 %v8737_v12, %s32718_s4  ;;  %6893 = vmatprep.mubr.f32.mxu0 %v32713_v51  ;;  %v8913_v0 = vld [vmem:[%s27482_s17 + $0x34] sm:$0xf]  ;;  %v1455_v19 = vadd.f32 %v28466_v37, %v1275_v57  ;;  %v27301_v37 = vld [vmem:[%s32641_s1 + $0x58] sm:$0xff] }
 0x1ed   : > { %26384 = vmatprep.subr.msk.mxu1 %vm252_vm1, %v6644_v23  ;;  %v6816_v25 = vpop.permute.xlu1 %6815 }
 0x1ee   : > { %26385 = vmatpush1.msk.msra.mxu1 %vm252_vm1, %v6643_v29  ;;  %v1452_v29 = vadd.f32 %v28440_v11, %v1272_v31 }
 0x1ef   : > { %v6810_v59 = vpop.permute.xlu0 %6809  ;;  %8923 = vrot.lane.b32.xlu1 %v28554_v46, %s32721_s16  ;;  %26386 = vmatmul.mubr.msk.f32.vlgmr.msra.gmra.mxu1 %vm248_vm2, %v27299_v4  ;;  %v28757_v4 = vpop.f32.mrf.mxu0 }
 0x1f0   : > { %v6817_v34 = vsel %vm32683_vm11, %v6808_v5, %v6810_v59  ;;  %v6818_v35 = vsel %vm32683_vm11, %v6810_v59, %v6812_v61  ;;  %8921 = vrot.lane.b32.xlu0 %v28550_v45, %s32721_s16  ;;  %6964 = vmatprep.mubr.f32.mxu1 %v32713_v51  ;;  %v28739_v5 = vpop.f32.mrf.mxu1  ;;  %v1632_v56 = vadd.f32 %v28464_v16, %v1452_v29 }
 0x1f1   : > { %26387 = vmatprep.subr.msk.mxu0 %vm252_vm1, %v6818_v35  ;;  %v6986_v43 = vpop.permute.xlu1 %6985  ;;  %v9089_v35 = vld [vmem:[%s27482_s17 + $0x34] sm:$0xf] }
 0x1f2   : > { %26388 = vmatpush1.msk.msra.mxu0 %vm252_vm1, %v6817_v34  ;;  %v28759_v23 = vpop.f32.mrf.mxu1  ;;  %v1633_v34 = vadd.f32 %v28480_v49, %v1453_v62  ;;  %v1812_v40 = vadd.f32 %v28495_v58, %v1632_v56  ;;  %v1635_v58 = vadd.f32 %v28497_v17, %v1455_v19 }
 0x1f3   : > { %v6814_v10 = vpop.permute.xlu0 %6813  ;;  %8927 = vrot.lane.b32.xlu1 %v8913_v0, %s32721_s16  ;;  %26389 = vmatmul.mubr.msk.f32.vlgmr.msra.gmra.mxu0 %vm248_vm2, %v27300_v41 }
 0x1f4   : > { %v6819_v47 = vsel %vm32683_vm11, %v6812_v61, %v6814_v10  ;;  %v6820_v12 = vsel %vm32683_vm11, %v6814_v10, %v6816_v25  ;;  %8925 = vrot.lane.b32.xlu0 %v28571_v22, %s32721_s16  ;;  %7069 = vmatprep.mubr.f32.mxu0 %v32713_v51  ;;  %v1274_v61 = vadd.f32 %v28424_v63, %v1094_v27  ;;  %v28771_v63 = vpop.f32.mrf.mxu0  ;;  %v28773_v11 = vpop.f32.mrf.mxu1  ;;  %vm32756_vm11 = vcmask 965632  }
 0x1f5   : > { %26390 = vmatprep.subr.msk.mxu1 %vm252_vm1, %v6820_v12  ;;  %v6990_v60 = vpop.permute.xlu1 %6989  ;;  %v1992_v12 = vadd.f32 %v28521_v18, %v1812_v40 }
 0x1f6   : > { %26391 = vmatpush1.msk.msra.mxu1 %vm252_vm1, %v6819_v47  ;;  %v1454_v25 = vadd.f32 %v28453_v21, %v1274_v61  ;;  %v28788_v16 = vpop.f32.mrf.mxu0  ;;  %v28790_v0 = vpop.f32.mrf.mxu1 }
 0x1f7   : > { %v6984_v30 = vpop.permute.xlu0 %6983  ;;  %9097 = vrot.lane.b32.xlu1 %v28550_v45, %s32722_s7  ;;  %26392 = vmatmul.mubr.msk.f32.vlgmr.msra.gmra.mxu1 %vm248_vm2, %v27300_v41  ;;  %v2172_v57 = vadd.f32 %v28560_v53, %v1992_v12 }
 0x1f8   : > { %9095 = vrot.lane.b32.xlu0 %v28531_v7, %s32722_s7  ;;  %7140 = vmatprep.mubr.f32.mxu1 %v32713_v51  ;;  %v6993_v15 = vsel %vm32678_vm12, %v6984_v30, %v6986_v43  ;;  %v1634_v36 = vadd.f32 %v28482_v50, %v1454_v25  ;;  %v28808_v10 = vpop.f32.mrf.mxu0  ;;  %v28810_v41 = vpop.f32.mrf.mxu1 }
 0x1f9   : > { %v7160_v33 = vpop.permute.xlu1 %7159 }
 0x1fa   : > { %v1814_v47 = vadd.f32 %v28513_v8, %v1634_v36  ;;  %v1815_v8 = vadd.f32 %v28523_v24, %v1635_v58  ;;  %v28827_v61 = vpop.f32.mrf.mxu0  ;;  %v28829_v29 = vpop.f32.mrf.mxu1  ;;  %v27302_v24 = vld [vmem:[%s32641_s1 + $0x60] sm:$0xff]  ;;  %v32726_v36 = vld [vmem:[#allocation4_spill] sm:$0xff] }
 0x1fb   : > { %v6988_v2 = vpop.permute.xlu0 %6987  ;;  %9101 = vrot.lane.b32.xlu1 %v28571_v22, %s32722_s7 }
 0x1fc   : > { %v6994_v59 = vsel %vm32678_vm12, %v6986_v43, %v6988_v2  ;;  %9099 = vrot.lane.b32.xlu0 %v28554_v46, %s32722_s7  ;;  %v6995_v50 = vsel %vm32678_vm12, %v6988_v2, %v6990_v60  ;;  %v1813_v43 = vadd.f32 %v28511_v13, %v1633_v34  ;;  %v1994_v30 = vadd.f32 %v28539_v42, %v1814_v47  ;;  %v28847_v56 = vpop.f32.mrf.mxu0  ;;  %v28849_v2 = vpop.f32.mrf.mxu1 }
 0x1fd   : > { %26393 = vmatprep.subr.msk.mxu0 %vm252_vm1, %v6994_v59  ;;  %v7164_v21 = vpop.permute.xlu1 %7163  ;;  %v1995_v42 = vadd.f32 %v28562_v54, %v1815_v8  ;;  %v32732_v8 = vld [vmem:[#allocation7_spill] sm:$0xff] }
 0x1fe   : > { %26394 = vmatpush1.msk.msra.mxu0 %vm252_vm1, %v6993_v15  ;;  %v1993_v18 = vadd.f32 %v28537_v38, %v1813_v43  ;;  %v2174_v59 = vadd.f32 %v28581_v1, %v1994_v30  ;;  %v2352_v15 = vadd.f32 %v28595_v39, %v2172_v57  ;;  %v28863_v39 = vpop.f32.mrf.mxu1  ;;  %v9441_v43 = vld [vmem:[%s27482_s17 + $0x34] sm:$0xf] }
 0x1ff   : > { %v6992_v27 = vpop.permute.xlu0 %6991  ;;  %9271 = vrot.lane.b32.xlu1 %v28531_v7, %s32723_s8  ;;  %26395 = vmatmul.mubr.msk.f32.vlgmr.msra.gmra.mxu0 %vm248_vm2, %v27301_v37  ;;  %v2175_v54 = vadd.f32 %v28597_v44, %v1995_v42 }
 0x200   : > { %v6996_v49 = vsel %vm32678_vm12, %v6990_v60, %v6992_v27  ;;  %9103 = vrot.lane.b32.xlu0 %v9089_v35, %s32722_s7  ;;  %7245 = vmatprep.mubr.f32.mxu0 %v32713_v51  ;;  %v2173_v53 = vadd.f32 %v28579_v9, %v1993_v18  ;;  %v2532_v40 = vadd.f32 %v32726_v36, %v2352_v15  ;;  %v9617_v15 = vld [vmem:[%s27482_s17 + $0x34] sm:$0xf] }
 0x201   : > { %26396 = vmatprep.subr.msk.mxu1 %vm252_vm1, %v6996_v49  ;;  %v7168_v31 = vpop.permute.xlu1 %7167 }
 0x202   : > { %26397 = vmatpush1.msk.msra.mxu1 %vm252_vm1, %v6995_v50  ;;  %v2353_v9 = vadd.f32 %v28605_v52, %v2173_v53  ;;  %v28861_v1 = vpop.f32.mrf.mxu0  ;;  %v32729_v52 = vld [vmem:[#allocation5_spill] sm:$0xff] }
 0x203   : > { %v7162_v48 = vpop.permute.xlu0 %7161  ;;  %9275 = vrot.lane.b32.xlu1 %v28554_v46, %s32723_s8  ;;  %26398 = vmatmul.mubr.msk.f32.vlgmr.msra.gmra.mxu1 %vm248_vm2, %v27301_v37  ;;  %v2355_v49 = vadd.f32 %v32729_v52, %v2175_v54  ;;  %v32738_v54 = vld [vmem:[#allocation11_spill] sm:$0xff] }
 0x204   : > { %v7169_v17 = vsel %vm32677_vm13, %v7160_v33, %v7162_v48  ;;  %v7170_v13 = vsel %vm32677_vm13, %v7162_v48, %v7164_v21  ;;  %9273 = vrot.lane.b32.xlu0 %v28550_v45, %s32723_s8  ;;  %7316 = vmatprep.mubr.f32.mxu1 %v32713_v51  ;;  %v2533_v50 = vadd.f32 %v28634_v32, %v2353_v9  ;;  %v32730_v48 = vld [vmem:[#allocation6_spill] sm:$0xff]  ;;  %v27303_v32 = vld [vmem:[%s32641_s1 + $0x68] sm:$0xff] }
 0x205   : > { %26399 = vmatprep.subr.msk.mxu0 %vm252_vm1, %v7170_v13  ;;  %v7338_v60 = vpop.permute.xlu1 %7337  ;;  %v2535_v18 = vadd.f32 %v32732_v8, %v2355_v49 }
 0x206   : > { %26400 = vmatpush1.msk.msra.mxu0 %vm252_vm1, %v7169_v17  ;;  %v28880_v47 = vpop.f32.mrf.mxu1  ;;  %v2712_v17 = vadd.f32 %v32730_v48, %v2532_v40 }
 0x207   : > { %v7166_v62 = vpop.permute.xlu0 %7165  ;;  %9279 = vrot.lane.b32.xlu1 %v9265_v55, %s32723_s8  ;;  %26401 = vmatmul.mubr.msk.f32.vlgmr.msra.gmra.mxu0 %vm248_vm2, %v27302_v24  ;;  %v2715_v9 = vadd.f32 %v32738_v54, %v2535_v18  ;;  %v9801_v18 = vld [vmem:[%s27482_s17 + $0x30] sm:$0xf] }
 0x208   : > { %v7171_v38 = vsel %vm32677_vm13, %v7164_v21, %v7166_v62  ;;  %v7172_v33 = vsel %vm32677_vm13, %v7166_v62, %v7168_v31  ;;  %9277 = vrot.lane.b32.xlu0 %v28571_v22, %s32723_s8  ;;  %7421 = vmatprep.mubr.f32.mxu0 %v32713_v51  ;;  %v32725_v21 = vld [vmem:[#allocation3_spill] sm:$0xff]  ;;  %vm32727_vm13 = vcmask 334848   ;;  %v28878_v31 = vpop.f32.mrf.mxu0  ;;  %v28900_v62 = vpop.f32.mrf.mxu1  ;;  %v10123_v54 = vld [vmem:[%s27482_s17 + $0x30] sm:$0xf] }
 0x209   : > { %26402 = vmatprep.subr.msk.mxu1 %vm252_vm1, %v7172_v33  ;;  %v7342_v25 = vpop.permute.xlu1 %7341  ;;  %v2354_v35 = vadd.f32 %v32725_v21, %v2174_v59  ;;  %vm32728_vm12 = vmmov %vm32727_vm13  ;;  %v32735_v33 = vld [vmem:[#allocation10_spill] sm:$0xff] }
 0x20a   : > { %26403 = vmatpush1.msk.msra.mxu1 %vm252_vm1, %v7171_v38  ;;  %v28898_v57 = vpop.f32.mrf.mxu0  ;;  %v2892_v42 = vadd.f32 %v32735_v33, %v2712_v17 }
 0x20b   : > { %v7336_v19 = vpop.permute.xlu0 %7335  ;;  %9449 = vrot.lane.b32.xlu1 %v28550_v45, %s32724_s9  ;;  %26404 = vmatmul.mubr.msk.f32.vlgmr.msra.gmra.mxu1 %vm248_vm2, %v27302_v24  ;;  %v2534_v12 = vadd.f32 %v28636_v28, %v2354_v35  ;;  %v32734_v24 = vld [vmem:[#allocation9_spill] sm:$0xff] }
 0x20c   : > { %9447 = vrot.lane.b32.xlu0 %v28531_v7, %s32724_s9  ;;  %7492 = vmatprep.mubr.f32.mxu1 %v32713_v51  ;;  %v7345_v44 = vsel %vm32728_vm12, %v7336_v19, %v7338_v60  ;;  %v28913_v19 = vld [vmem:[%s27482_s17 + $0x20] sm:$0xff]  ;;  %v3072_v36 = vadd.f32 %v28718_v26, %v2892_v42  ;;  %v2895_v26 = vadd.f32 %v28720_v3, %v2715_v9 }
 0x20d   : > { %v7512_v34 = vpop.permute.xlu1 %7511  ;;  %v2714_v38 = vadd.f32 %v32734_v24, %v2534_v12 }
 0x20e   : > { %v28922_v35 = vpop.f32.mrf.mxu1 }
 0x20f   : > { %v7340_v27 = vpop.permute.xlu0 %7339  ;;  %9453 = vrot.lane.b32.xlu1 %v28571_v22, %s32724_s9 }
 0x210   : > { %v7346_v37 = vsel %vm32727_vm13, %v7338_v60, %v7340_v27  ;;  %9451 = vrot.lane.b32.xlu0 %v28554_v46, %s32724_s9  ;;  %vm32731_vm13 = vmmov %vm32728_vm12  ;;  %v32733_v60 = vld [vmem:[#allocation8_spill] sm:$0xff] }
 0x211   : > { %26405 = vmatprep.subr.msk.mxu0 %vm252_vm1, %v7346_v37  ;;  %v7516_v58 = vpop.permute.xlu1 %7515  ;;  %v7347_v28 = vsel %vm32731_vm13, %v7340_v27, %v7342_v25  ;;  %v27304_v27 = vld [vmem:[%s32641_s1 + $0x70] sm:$0xff] }
 0x212   : > { %26406 = vmatpush1.msk.msra.mxu0 %vm252_vm1, %v7345_v44 }
 0x213   : > { %v7344_v13 = vpop.permute.xlu0 %7343  ;;  %9623 = vrot.lane.b32.xlu1 %v28531_v7, %s32700_s10  ;;  %26407 = vmatmul.mubr.msk.f32.vlgmr.msra.gmra.mxu0 %vm248_vm2, %v27303_v32  ;;  %v2713_v7 = vadd.f32 %v32733_v60, %v2533_v50 }
 0x214   : > { %v7348_v55 = vsel %vm32728_vm12, %v7342_v25, %v7344_v13  ;;  %9455 = vrot.lane.b32.xlu0 %v9441_v43, %s32724_s9  ;;  %7597 = vmatprep.mubr.f32.mxu0 %v32713_v51  ;;  %vm32736_vm12 = vcmask 326656  }
 0x215   : > { %26408 = vmatprep.subr.msk.mxu1 %vm252_vm1, %v7348_v55  ;;  %v7520_v30 = vpop.permute.xlu1 %7519  ;;  %vm32737_vm13 = vmmov %vm32736_vm12  ;;  %v2893_v21 = vadd.f32 %v28698_v20, %v2713_v7  ;;  %v28929_v20 = vcombine.high %v28913_v19, %v28913_v19 }
 0x216   : > { %26409 = vmatpush1.msk.msra.mxu1 %vm252_vm1, %v7347_v28 }
 0x217   : > { %v7514_v53 = vpop.permute.xlu0 %7513  ;;  %9627 = vrot.lane.b32.xlu1 %v28554_v46, %s32700_s10  ;;  %26410 = vmatmul.mubr.msk.f32.vlgmr.msra.gmra.mxu1 %vm248_vm2, %v27303_v32  ;;  %v3073_v52 = vadd.f32 %v28737_v14, %v2893_v21  ;;  %v3075_v14 = vadd.f32 %v28759_v23, %v2895_v26 }
 0x218   : > { %v7521_v25 = vsel %vm32736_vm12, %v7512_v34, %v7514_v53  ;;  %v7522_v59 = vsel %vm32737_vm13, %v7514_v53, %v7516_v58  ;;  %9625 = vrot.lane.b32.xlu0 %v28550_v45, %s32700_s10  ;;  %7668 = vmatprep.mubr.f32.mxu1 %v32713_v51  ;;  %v28920_v34 = vpop.f32.mrf.mxu0  ;;  %v2894_v45 = vadd.f32 %v28700_v6, %v2714_v38  ;;  %vm32739_vm13 = vmmov %vm32736_vm12  ;;  %v28940_v6 = vld [vmem:[%s27482_s17 + $0x28] sm:$0xff] }
 0x219   : > { %26411 = vmatprep.subr.msk.mxu0 %vm252_vm1, %v7522_v59  ;;  %v7690_v46 = vpop.permute.xlu1 %7689  ;;  %v28957_v3 = vcombine.high %v28940_v6, %v28940_v6 }
 0x21a   : > { %26412 = vmatpush1.msk.msra.mxu0 %vm252_vm1, %v7521_v25  ;;  %v28947_v50 = vpop.f32.mrf.mxu0  ;;  %v3074_v43 = vadd.f32 %v28739_v5, %v2894_v45  ;;  %v3253_v5 = vadd.f32 %v28771_v63, %v3073_v52  ;;  %v3255_v63 = vadd.f32 %v28790_v0, %v3075_v14  ;;  %v27305_v0 = vld [vmem:[%s32641_s1 + $0x78] sm:$0xff] }
 0x21b   : > { %v7518_v40 = vpop.permute.xlu0 %7517  ;;  %9631 = vrot.lane.b32.xlu1 %v9617_v15, %s32700_s10  ;;  %26413 = vmatmul.mubr.msk.f32.vlgmr.msra.gmra.mxu0 %vm248_vm2, %v27304_v27 }
 0x21c   : > { %v7523_v37 = vsel %vm32736_vm12, %v7516_v58, %v7518_v40  ;;  %v7524_v44 = vsel %vm32739_vm13, %v7518_v40, %v7520_v30  ;;  %9629 = vrot.lane.b32.xlu0 %v28571_v22, %s32700_s10  ;;  %7773 = vmatprep.mubr.f32.mxu0 %v32713_v51  ;;  %v28949_v58 = vpop.f32.mrf.mxu1  ;;  %v3252_v22 = vadd.f32 %v28757_v4, %v3072_v36  ;;  %v28965_v48 = vpop.f32.mrf.mxu0  ;;  %vm32740_vm12 = vcmask 195584  }
 0x21d   : > { %26414 = vmatprep.subr.msk.mxu1 %vm252_vm1, %v7524_v44  ;;  %v7694_v49 = vpop.permute.xlu1 %7693  ;;  %v3254_v13 = vadd.f32 %v28773_v11, %v3074_v43  ;;  %vm32741_vm13 = vmmov %vm32740_vm12  ;;  %v3433_v8 = vadd.f32 %v28808_v10, %v3253_v5 }
 0x21e   : > { %26415 = vmatpush1.msk.msra.mxu1 %vm252_vm1, %v7523_v37  ;;  %v28967_v17 = vpop.f32.mrf.mxu1  ;;  %v3432_v32 = vadd.f32 %v28788_v16, %v3252_v22  ;;  %v28982_v16 = vpop.f32.mrf.mxu0 }
 0x21f   : > { %v7688_v12 = vpop.permute.xlu0 %7687  ;;  %9809 = vrot.lane.b32.xlu1 %v28929_v20, %s27420_s18  ;;  %26416 = vmatmul.mubr.msk.f32.vlgmr.msra.gmra.mxu1 %vm248_vm2, %v27304_v27  ;;  %v3434_v7 = vadd.f32 %v28810_v41, %v3254_v13  ;;  %v3613_v38 = vadd.f32 %v28847_v56, %v3433_v8 }
 0x220   : > { %9807 = vrot.lane.b32.xlu0 %v28913_v19, %s27420_s18  ;;  %7844 = vmatprep.mubr.f32.mxu1 %v32713_v51  ;;  %v7697_v23 = vsel %vm32741_vm13, %v7688_v12, %v7690_v46  ;;  %v28984_v60 = vpop.f32.mrf.mxu1  ;;  %v3612_v30 = vadd.f32 %v28827_v61, %v3432_v32  ;;  %vm32742_vm13 = vmmov %vm32740_vm12  ;;  %v3435_v61 = vadd.f32 %v28829_v29, %v3255_v63  ;;  %v4258_v42 = vpop.f32.mrf.mxu0 }
 0x221   : > { %v7864_v4 = vpop.permute.xlu1 %7863  ;;  %v3614_v25 = vadd.f32 %v28849_v2, %v3434_v7 }
 0x222   : > { %v4327_v53 = vpop.f32.mrf.mxu1  ;;  %v3792_v59 = vadd.f32 %v28861_v1, %v3612_v30  ;;  %v3615_v2 = vadd.f32 %v28863_v39, %v3435_v61  ;;  %v3793_v1 = vadd.f32 %v28878_v31, %v3613_v38  ;;  %v27306_v39 = vld [vmem:[%s32641_s1 + $0x80] sm:$0xff] }
 0x223   : > { %v7692_v55 = vpop.permute.xlu0 %7691  ;;  %9813 = vrot.lane.b32.xlu1 %v28957_v3, %s27420_s18  ;;  %v3794_v45 = vadd.f32 %v28880_v47, %v3614_v25 }
 0x224   : > { %v7698_v28 = vsel %vm32740_vm12, %v7690_v46, %v7692_v55  ;;  %9811 = vrot.lane.b32.xlu0 %v28940_v6, %s27420_s18  ;;  %v7699_v41 = vsel %vm32742_vm13, %v7692_v55, %v7694_v49  ;;  %v4329_v46 = vpop.f32.mrf.mxu1  ;;  %v3972_v36 = vadd.f32 %v28898_v57, %v3792_v59  ;;  %v3795_v47 = vadd.f32 %v28900_v62, %v3615_v2 }
 0x225   : > { %26417 = vmatprep.subr.msk.mxu0 %vm252_vm1, %v7698_v28  ;;  %v7868_v11 = vpop.permute.xlu1 %7867  ;;  %v3973_v57 = vadd.f32 %v28920_v34, %v3793_v1  ;;  %v3974_v52 = vadd.f32 %v28922_v35, %v3794_v45  ;;  %v27308_v1 = vld [vmem:[%s32641_s1 + $0x90] sm:$0xff] }
 0x226   : > { %26418 = vmatpush1.msk.msra.mxu0 %vm252_vm1, %v7697_v23  ;;  %v3975_v62 = vadd.f32 %v28949_v58, %v3795_v47 }
 0x227   : > { %v7696_v24 = vpop.permute.xlu0 %7695  ;;  %10129 = vrot.lane.b32.xlu1 %v28913_v19, %s32691_s19  ;;  %26419 = vmatmul.mubr.msk.f32.vlgmr.msra.gmra.mxu0 %vm248_vm2, %v27305_v0  ;;  %v4153_v34 = vadd.f32 %v28965_v48, %v3973_v57 }
 0x228   : > { %v7700_v10 = vsel %vm32740_vm12, %v7694_v49, %v7696_v24  ;;  %9815 = vrot.lane.b32.xlu0 %v9801_v18, %s27420_s18  ;;  %7949 = vmatprep.mubr.f32.mxu0 %v32713_v51  ;;  %vm32743_vm12 = vcmask 187392   ;;  %v4152_v49 = vadd.f32 %v28947_v50, %v3972_v36  ;;  %v4154_v50 = vadd.f32 %v28967_v17, %v3974_v52  ;;  %v10299_v17 = vld [vmem:[%s27482_s17 + $0x30] sm:$0xf] }
 0x229   : > { %26420 = vmatprep.subr.msk.mxu1 %vm252_vm1, %v7700_v10  ;;  %v7872_v33 = vpop.permute.xlu1 %7871  ;;  %vm32744_vm13 = vmmov %vm32743_vm12  ;;  %v4155_v48 = vadd.f32 %v28984_v60, %v3975_v62  ;;  %v4333_v13 = vadd.f32 %v4258_v42, %v4153_v34  ;;  %v10475_v42 = vld [vmem:[%s27482_s17 + $0x30] sm:$0xf] }
 0x22a   : > { %26421 = vmatpush1.msk.msra.mxu1 %vm252_vm1, %v7699_v41  ;;  %v4436_v21 = vpop.f32.mrf.mxu0  ;;  %v4332_v14 = vadd.f32 %v28982_v16, %v4152_v49  ;;  %v4334_v23 = vadd.f32 %v4327_v53, %v4154_v50 }
 0x22b   : > { %v7866_v15 = vpop.permute.xlu0 %7865  ;;  %10133 = vrot.lane.b32.xlu1 %v28940_v6, %s32691_s19  ;;  %26422 = vmatmul.mubr.msk.f32.vlgmr.msra.gmra.mxu1 %vm248_vm2, %v27305_v0  ;;  %v4335_v60 = vadd.f32 %v4329_v46, %v4155_v48 }
 0x22c   : > { %v7873_v29 = vsel %vm32743_vm12, %v7864_v4, %v7866_v15  ;;  %v7874_v56 = vsel %vm32744_vm13, %v7866_v15, %v7868_v11  ;;  %10131 = vrot.lane.b32.xlu0 %v28929_v20, %s32691_s19  ;;  %8020 = vmatprep.mubr.f32.mxu1 %v32713_v51  ;;  %vm32745_vm13 = vmmov %vm32743_vm12  ;;  %v4438_v44 = vpop.f32.mrf.mxu0  ;;  %v4512_v63 = vadd.f32 %v4436_v21, %v4332_v14 }
 0x22d   : > { %26423 = vmatprep.subr.msk.mxu0 %vm252_vm1, %v7874_v56  ;;  %v8042_v9 = vpop.permute.xlu1 %8041  ;;  %v4513_v7 = vadd.f32 %v4438_v44, %v4333_v13 }
 0x22e   : > { %26424 = vmatpush1.msk.msra.mxu0 %vm252_vm1, %v7873_v29  ;;  %v4507_v26 = vpop.f32.mrf.mxu1 }
 0x22f   : > { %v7870_v40 = vpop.permute.xlu0 %7869  ;;  %10137 = vrot.lane.b32.xlu1 %v10123_v54, %s32691_s19  ;;  %26425 = vmatmul.mubr.msk.f32.vlgmr.msra.gmra.mxu0 %vm248_vm2, %v27306_v39  ;;  %v4514_v10 = vadd.f32 %v4507_v26, %v4334_v23 }
 0x230   : > { %v7875_v31 = vsel %vm32743_vm12, %v7868_v11, %v7870_v40  ;;  %v7876_v27 = vsel %vm32745_vm13, %v7870_v40, %v7872_v33  ;;  %10135 = vrot.lane.b32.xlu0 %v28957_v3, %s32691_s19  ;;  %8125 = vmatprep.mubr.f32.mxu0 %v32713_v51  ;;  %v4509_v12 = vpop.f32.mrf.mxu1  ;;  %vm32746_vm12 = vcmask 179200   ;;  %v27307_v11 = vld [vmem:[%s32641_s1 + $0x88] sm:$0xff] }
 0x231   : > { %26426 = vmatprep.subr.msk.mxu1 %vm252_vm1, %v7876_v27  ;;  %v8046_v37 = vpop.permute.xlu1 %8045  ;;  %vm32747_vm13 = vmmov %vm32746_vm12  ;;  %v4515_v53 = vadd.f32 %v4509_v12, %v4335_v60  ;;  %v27310_v60 = vld [vmem:[%s32641_s1 + $0xa0] sm:$0xff] }
 0x232   : > { %26427 = vmatpush1.msk.msra.mxu1 %vm252_vm1, %v7875_v31  ;;  %v4616_v35 = vpop.f32.mrf.mxu0 }
 0x233   : > { %v8040_v43 = vpop.permute.xlu0 %8039  ;;  %10307 = vrot.lane.b32.xlu1 %v28929_v20, %s32681_s20  ;;  %26428 = vmatmul.mubr.msk.f32.vlgmr.msra.gmra.mxu1 %vm248_vm2, %v27306_v39  ;;  %v4692_v41 = vadd.f32 %v4616_v35, %v4512_v63 }
 0x234   : > { %10305 = vrot.lane.b32.xlu0 %v28913_v19, %s32681_s20  ;;  %8196 = vmatprep.mubr.f32.mxu1 %v32713_v51  ;;  %v8049_v58 = vsel %vm32747_vm13, %v8040_v43, %v8042_v9  ;;  %v4618_v55 = vpop.f32.mrf.mxu0  ;;  %vm32748_vm13 = vmmov %vm32746_vm12 }
 0x235   : > { %v8216_v22 = vpop.permute.xlu1 %8215  ;;  %v4693_v25 = vadd.f32 %v4618_v55, %v4513_v7 }
 0x236   : > { %v4687_v28 = vpop.f32.mrf.mxu1 }
 0x237   : > { %v8044_v5 = vpop.permute.xlu0 %8043  ;;  %10311 = vrot.lane.b32.xlu1 %v28957_v3, %s32681_s20  ;;  %v4694_v56 = vadd.f32 %v4687_v28, %v4514_v10 }
 0x238   : > { %v8050_v4 = vsel %vm32746_vm12, %v8042_v9, %v8044_v5  ;;  %10309 = vrot.lane.b32.xlu0 %v28940_v6, %s32681_s20  ;;  %v8051_v16 = vsel %vm32748_vm13, %v8044_v5, %v8046_v37  ;;  %v4689_v0 = vpop.f32.mrf.mxu1 }
 0x239   : > { %26429 = vmatprep.subr.msk.mxu0 %vm252_vm1, %v8050_v4  ;;  %v8220_v32 = vpop.permute.xlu1 %8219  ;;  %v4695_v46 = vadd.f32 %v4689_v0, %v4515_v53 }
 0x23a   : > { %26430 = vmatpush1.msk.msra.mxu0 %vm252_vm1, %v8049_v58  ;;  %v10651_v58 = vld [vmem:[%s27482_s17 + $0x30] sm:$0xf] }
 0x23b   : > { %v8048_v8 = vpop.permute.xlu0 %8047  ;;  %10481 = vrot.lane.b32.xlu1 %v28913_v19, %s27423_s21  ;;  %26431 = vmatmul.mubr.msk.f32.vlgmr.msra.gmra.mxu0 %vm248_vm2, %v27307_v11 }
 0x23c   : > { %v8052_v18 = vsel %vm32746_vm12, %v8046_v37, %v8048_v8  ;;  %10313 = vrot.lane.b32.xlu0 %v10299_v17, %s32681_s20  ;;  %8301 = vmatprep.mubr.f32.mxu0 %v32713_v51  ;;  %vm32749_vm12 = vcmask 982016   ;;  %s27221_s20 = smul.u32 168, %s33025_s13  ;;  %v32752_v37 = vld [vmem:[#allocation2_spill] sm:$0xff]  ;;  %s32774_s13 = smov 23  }
 0x23d   : > { %26432 = vmatprep.subr.msk.mxu1 %vm252_vm1, %v8052_v18  ;;  %v8224_v30 = vpop.permute.xlu1 %8223  ;;  %vm32750_vm13 = vmmov %vm32749_vm12 }
 0x23e   : > { %26433 = vmatpush1.msk.msra.mxu1 %vm252_vm1, %v8051_v16  ;;  %v4796_v24 = vpop.f32.mrf.mxu0  ;;  %s29097_s14 = scalar_lea.vmem %s32643_s3, %s27221_s20  ;;  %s32776_s20 = smov 120  }
 0x23f   : > { %v8218_v61 = vpop.permute.xlu0 %8217  ;;  %10485 = vrot.lane.b32.xlu1 %v28940_v6, %s27423_s21  ;;  %26434 = vmatmul.mubr.msk.f32.vlgmr.msra.gmra.mxu1 %vm248_vm2, %v27307_v11  ;;  %v4872_v54 = vadd.f32 %v4796_v24, %v4692_v41  ;;  %v10827_v11 = vld [vmem:[%s27482_s17 + $0x30] sm:$0xf] }
 0x240   : > { %v8225_v38 = vsel %vm32749_vm12, %v8216_v22, %v8218_v61  ;;  %v8226_v33 = vsel %vm32750_vm13, %v8218_v61, %v8220_v32  ;;  %10483 = vrot.lane.b32.xlu0 %v28929_v20, %s27423_s21  ;;  %8372 = vmatprep.mubr.f32.mxu1 %v32713_v51  ;;  %v4798_v15 = vpop.f32.mrf.mxu0  ;;  %vm32751_vm13 = vmmov %vm32749_vm12 }
 0x241   : > { %26435 = vmatprep.subr.msk.mxu0 %vm252_vm1, %v8226_v33  ;;  %v8394_v59 = vpop.permute.xlu1 %8393  ;;  %v4873_v45 = vadd.f32 %v4798_v15, %v4693_v25  ;;  %v27311_v25 = vld [vmem:[%s32641_s1 + $0xa8] sm:$0xff] }
 0x242   : > { %26436 = vmatpush1.msk.msra.mxu0 %vm252_vm1, %v8225_v38  ;;  %v4867_v29 = vpop.f32.mrf.mxu1 }
 0x243   : > { %v8222_v2 = vpop.permute.xlu0 %8221  ;;  %10489 = vrot.lane.b32.xlu1 %v10475_v42, %s27423_s21  ;;  %26437 = vmatmul.mubr.msk.f32.vlgmr.msra.gmra.mxu0 %vm248_vm2, %v27308_v1  ;;  %v4874_v31 = vadd.f32 %v4867_v29, %v4694_v56  ;;  %v11003_v42 = vld [vmem:[%s27482_s17 + $0x30] sm:$0xf] }
 0x244   : > { %v8227_v9 = vsel %vm32749_vm12, %v8220_v32, %v8222_v2  ;;  %v8228_v21 = vsel %vm32751_vm13, %v8222_v2, %v8224_v30  ;;  %10487 = vrot.lane.b32.xlu0 %v28957_v3, %s27423_s21  ;;  %8477 = vmatprep.mubr.f32.mxu0 %v32713_v51  ;;  %v4869_v39 = vpop.f32.mrf.mxu1  ;;  %vm32753_vm12 = vcmask 973824   ;;  %v27309_v32 = vld [vmem:[%s32641_s1 + $0x98] sm:$0xff] }
 0x245   : > { %26438 = vmatprep.subr.msk.mxu1 %vm252_vm1, %v8228_v21  ;;  %v8398_v36 = vpop.permute.xlu1 %8397  ;;  %v4875_v26 = vadd.f32 %v4869_v39, %v4695_v46  ;;  %vm32754_vm13 = vmmov %vm32753_vm12  ;;  %v27312_v46 = vld [vmem:[%s32641_s1 + $0xb0] sm:$0xff] }
 0x246   : > { %v4976_v40 = vpop.f32.mrf.mxu0  ;;  %26439 = vmatpush1.msk.msra.mxu1 %vm252_vm1, %v8227_v9 }
 0x247   : > { %v5052_v27 = vadd.f32 %v4976_v40, %v4872_v54  ;;  %v8392_v47 = vpop.permute.xlu0 %8391  ;;  %10659 = vrot.lane.b32.xlu1 %v28929_v20, %s32706_s22  ;;  %26440 = vmatmul.mubr.msk.f32.vlgmr.msra.gmra.mxu1 %vm248_vm2, %v27308_v1  ;;  %v11179_v1 = vld [vmem:[%s27482_s17 + $0x30] sm:$0xf] }
 0x248   : > { %v4978_v57 = vpop.f32.mrf.mxu0  ;;  %10657 = vrot.lane.b32.xlu0 %v28913_v19, %s32706_s22  ;;  %8548 = vmatprep.mubr.f32.mxu1 %v32713_v51  ;;  %v8401_v50 = vsel %vm32754_vm13, %v8392_v47, %v8394_v59  ;;  %vm32755_vm13 = vmmov %vm32753_vm12  ;;  %v29202_v40 = vld [vmem:[%s27482_s17 + $0x30] sm:$0xff] }
 0x249   : > { %v5061_v44 = vadd.f32 %v32752_v37, %v5052_v27  ;;  %v5053_v52 = vadd.f32 %v4978_v57, %v4873_v45  ;;  %v8568_v49 = vpop.permute.xlu1 %8567  ;;  %v29211_v27 = vcombine.high %v29202_v40, %v29202_v40 }
 0x24a   : > { %v5047_v43 = vpop.f32.mrf.mxu1 }
 0x24b   : > { %5065 = vst [vmem:[%s29097_s14] sm:$0xff] %v5061_v44  ;;  %v5062_v62 = vadd.f32 %v32752_v37, %v5053_v52  ;;  %v5054_v34 = vadd.f32 %v5047_v43, %v4874_v31  ;;  %v8396_v22 = vpop.permute.xlu0 %8395  ;;  %10663 = vrot.lane.b32.xlu1 %v28957_v3, %s32706_s22 }
 0x24c   : > { %v5049_v35 = vpop.f32.mrf.mxu1  ;;  %v8402_v12 = vsel %vm32753_vm12, %v8394_v59, %v8396_v22  ;;  %10661 = vrot.lane.b32.xlu0 %v28940_v6, %s32706_s22  ;;  %v8403_v55 = vsel %vm32755_vm13, %v8396_v22, %v8398_v36  ;;  %vm32758_vm13 = vmmov %vm32756_vm11 }
 0x24d   : > { %5066 = vst [vmem:[%s29097_s14 + $0x8] sm:$0xff] %v5062_v62  ;;  %v5063_v14 = vadd.f32 %v32752_v37, %v5054_v34  ;;  %v5055_v5 = vadd.f32 %v5049_v35, %v4875_v26  ;;  %26441 = vmatprep.subr.msk.mxu0 %vm252_vm1, %v8402_v12  ;;  %v8572_v4 = vpop.permute.xlu1 %8571  ;;  %v27313_v62 = vld [vmem:[%s32641_s1 + $0xb8] sm:$0xff] }
 0x24e   : > { %26442 = vmatpush1.msk.msra.mxu0 %vm252_vm1, %v8401_v50 }
 0x24f   : > { %5067 = vst [vmem:[%s29097_s14 + $0x10] sm:$0xff] %v5063_v14  ;;  %v5064_v48 = vadd.f32 %v32752_v37, %v5055_v5  ;;  %v8400_v13 = vpop.permute.xlu0 %8399  ;;  %10833 = vrot.lane.b32.xlu1 %v28913_v19, %s27425_s23  ;;  %26443 = vmatmul.mubr.msk.f32.vlgmr.msra.gmra.mxu0 %vm248_vm2, %v27309_v32  ;;  %v11531_v5 = vld [vmem:[%s27482_s17 + $0x38] sm:$0xf] }
 0x250   : > { %v8404_v17 = vsel %vm32753_vm12, %v8398_v36, %v8400_v13  ;;  %10665 = vrot.lane.b32.xlu0 %v10651_v58, %s32706_s22  ;;  %8653 = vmatprep.mubr.f32.mxu0 %v32713_v51  ;;  %vm32757_vm12 = vmmov %vm32756_vm11 }
 0x251   : > { %5068 = vst [vmem:[%s29097_s14 + $0x18] sm:$0xff] %v5064_v48  ;;  %26444 = vmatprep.subr.msk.mxu1 %vm252_vm1, %v8404_v17  ;;  %v8576_v28 = vpop.permute.xlu1 %8575  ;;  %v27314_v48 = vld [vmem:[%s32641_s1 + $0xc0] sm:$0xff] }
 0x252   : > { %26445 = vmatpush1.msk.msra.mxu1 %vm252_vm1, %v8403_v55 }
 0x253   : > { %v8570_v23 = vpop.permute.xlu0 %8569  ;;  %10837 = vrot.lane.b32.xlu1 %v28940_v6, %s27425_s23  ;;  %26446 = vmatmul.mubr.msk.f32.vlgmr.msra.gmra.mxu1 %vm248_vm2, %v27309_v32 }
 0x254   : > { %v8577_v63 = vsel %vm32756_vm11, %v8568_v49, %v8570_v23  ;;  %v8578_v8 = vsel %vm32757_vm12, %v8570_v23, %v8572_v4  ;;  %10835 = vrot.lane.b32.xlu0 %v28929_v20, %s27425_s23  ;;  %8724 = vmatprep.mubr.f32.mxu1 %v32713_v51  ;;  %vm32759_vm12 = vcmask 834560   ;;  %v11355_v49 = vld [vmem:[%s27482_s17 + $0x38] sm:$0xf] }
 0x255   : > { %26447 = vmatprep.subr.msk.mxu0 %vm252_vm1, %v8578_v8  ;;  %v8746_v18 = vpop.permute.xlu1 %8745 }
 0x256   : > { %26448 = vmatpush1.msk.msra.mxu0 %vm252_vm1, %v8577_v63 }
 0x257   : > { %v8574_v16 = vpop.permute.xlu0 %8573  ;;  %10841 = vrot.lane.b32.xlu1 %v10827_v11, %s27425_s23  ;;  %26449 = vmatmul.mubr.msk.f32.vlgmr.msra.gmra.mxu0 %vm248_vm2, %v27310_v60 }
 0x258   : > { %v8579_v7 = vsel %vm32756_vm11, %v8572_v4, %v8574_v16  ;;  %v8580_v30 = vsel %vm32758_vm13, %v8574_v16, %v8576_v28  ;;  %10839 = vrot.lane.b32.xlu0 %v28957_v3, %s27425_s23  ;;  %8829 = vmatprep.mubr.f32.mxu0 %v32713_v51  ;;  %vm32760_vm11 = vmmov %vm32759_vm12 }
 0x259   : > { %26450 = vmatprep.subr.msk.mxu1 %vm252_vm1, %v8580_v30  ;;  %v8750_v24 = vpop.permute.xlu1 %8749  ;;  %vm32761_vm13 = vmmov %vm32760_vm11 }
 0x25a   : > { %26451 = vmatpush1.msk.msra.mxu1 %vm252_vm1, %v8579_v7  ;;  %v11707_v7 = vld [vmem:[%s27482_s17 + $0x38] sm:$0xf] }
 0x25b   : > { %v8744_v0 = vpop.permute.xlu0 %8743  ;;  %11011 = vrot.lane.b32.xlu1 %v28929_v20, %s32702_s24  ;;  %26452 = vmatmul.mubr.msk.f32.vlgmr.msra.gmra.mxu1 %vm248_vm2, %v27310_v60  ;;  %v29264_v28 = vpop.f32.mrf.mxu0 }
 0x25c   : > { %11009 = vrot.lane.b32.xlu0 %v28913_v19, %s32702_s24  ;;  %8900 = vmatprep.mubr.f32.mxu1 %v32713_v51  ;;  %v8753_v38 = vsel %vm32760_vm11, %v8744_v0, %v8746_v18  ;;  %v27315_v0 = vld [vmem:[%s32641_s1 + $0xc8] sm:$0xff] }
 0x25d   : > { %v8920_v10 = vpop.permute.xlu1 %8919  ;;  %v29273_v11 = vpop.f32.mrf.mxu0 }
 0x25f   : > { %v8748_v41 = vpop.permute.xlu0 %8747  ;;  %11015 = vrot.lane.b32.xlu1 %v28957_v3, %s32702_s24  ;;  %v29269_v63 = vpop.f32.mrf.mxu1 }
 0x260   : > { %v8754_v61 = vsel %vm32759_vm12, %v8746_v18, %v8748_v41  ;;  %11013 = vrot.lane.b32.xlu0 %v28940_v6, %s32702_s24  ;;  %vm32762_vm12 = vmmov %vm32760_vm11  ;;  %vm32763_vm11 = vcmask 826368  }
 0x261   : > { %26453 = vmatprep.subr.msk.mxu0 %vm252_vm1, %v8754_v61  ;;  %v8924_v33 = vpop.permute.xlu1 %8923  ;;  %v8755_v15 = vsel %vm32762_vm12, %v8748_v41, %v8750_v24  ;;  %vm32765_vm12 = vmmov %vm32763_vm11  ;;  %v29282_v30 = vpop.f32.mrf.mxu1 }
 0x262   : > { %26454 = vmatpush1.msk.msra.mxu0 %vm252_vm1, %v8753_v38 }
 0x263   : > { %v8752_v53 = vpop.permute.xlu0 %8751  ;;  %11185 = vrot.lane.b32.xlu1 %v28913_v19, %s32704_s25  ;;  %26455 = vmatmul.mubr.msk.f32.vlgmr.msra.gmra.mxu0 %vm248_vm2, %v27311_v25 }
 0x264   : > { %v8756_v59 = vsel %vm32761_vm13, %v8750_v24, %v8752_v53  ;;  %11017 = vrot.lane.b32.xlu0 %v11003_v42, %s32702_s24  ;;  %9005 = vmatprep.mubr.f32.mxu0 %v32713_v51  ;;  %vm32764_vm13 = vmmov %vm32763_vm11 }
 0x265   : > { %26456 = vmatprep.subr.msk.mxu1 %vm252_vm1, %v8756_v59  ;;  %v8928_v29 = vpop.permute.xlu1 %8927 }
 0x266   : > { %26457 = vmatpush1.msk.msra.mxu1 %vm252_vm1, %v8755_v15  ;;  %v11883_v15 = vld [vmem:[%s27482_s17 + $0x38] sm:$0xf] }
 0x267   : > { %v8922_v56 = vpop.permute.xlu0 %8921  ;;  %11189 = vrot.lane.b32.xlu1 %v28940_v6, %s32704_s25  ;;  %26458 = vmatmul.mubr.msk.f32.vlgmr.msra.gmra.mxu1 %vm248_vm2, %v27311_v25 }
 0x268   : > { %v8929_v54 = vsel %vm32763_vm11, %v8920_v10, %v8922_v56  ;;  %v8930_v2 = vsel %vm32764_vm13, %v8922_v56, %v8924_v33  ;;  %11187 = vrot.lane.b32.xlu0 %v28929_v20, %s32704_s25  ;;  %9076 = vmatprep.mubr.f32.mxu1 %v32713_v51  ;;  %vm32766_vm13 = vcmask 818176   ;;  %v29290_v10 = vpop.f32.mrf.mxu0 }
 0x269   : > { %26459 = vmatprep.subr.msk.mxu0 %vm252_vm1, %v8930_v2  ;;  %v9098_v9 = vpop.permute.xlu1 %9097 }
 0x26a   : > { %26460 = vmatpush1.msk.msra.mxu0 %vm252_vm1, %v8929_v54  ;;  %v29303_v53 = vpop.f32.mrf.mxu0  ;;  %v27316_v54 = vld [vmem:[%s32641_s1 + $0xd0] sm:$0xff] }
 0x26b   : > { %v8926_v21 = vpop.permute.xlu0 %8925  ;;  %11193 = vrot.lane.b32.xlu1 %v11179_v1, %s32704_s25  ;;  %26461 = vmatmul.mubr.msk.f32.vlgmr.msra.gmra.mxu0 %vm248_vm2, %v27312_v46 }
 0x26c   : > { %v8931_v45 = vsel %vm32765_vm12, %v8924_v33, %v8926_v21  ;;  %v8932_v36 = vsel %vm32763_vm11, %v8926_v21, %v8928_v29  ;;  %11191 = vrot.lane.b32.xlu0 %v28957_v3, %s32704_s25  ;;  %9181 = vmatprep.mubr.f32.mxu0 %v32713_v51  ;;  %vm32767_vm12 = vmmov %vm32766_vm13  ;;  %v29298_v33 = vpop.f32.mrf.mxu1  ;;  %v29320_v1 = vpop.f32.mrf.mxu0 }
 0x26d   : > { %26462 = vmatprep.subr.msk.mxu1 %vm252_vm1, %v8932_v36  ;;  %v9102_v39 = vpop.permute.xlu1 %9101  ;;  %vm32768_vm11 = vmmov %vm32767_vm12 }
 0x26e   : > { %26463 = vmatpush1.msk.msra.mxu1 %vm252_vm1, %v8931_v45  ;;  %v29313_v56 = vpop.f32.mrf.mxu1 }
 0x26f   : > { %v9096_v31 = vpop.permute.xlu0 %9095  ;;  %11363 = vrot.lane.b32.xlu1 %v28957_v3, %s32703_s26  ;;  %26464 = vmatmul.mubr.msk.f32.vlgmr.msra.gmra.mxu1 %vm248_vm2, %v27312_v46 }
 0x270   : > { %11361 = vrot.lane.b32.xlu0 %v28940_v6, %s32703_s26  ;;  %9252 = vmatprep.mubr.f32.mxu1 %v32713_v51  ;;  %v9105_v26 = vsel %vm32767_vm12, %v9096_v31, %v9098_v9  ;;  %vm32770_vm12 = vcmask 687104   ;;  %v29329_v45 = vpop.f32.mrf.mxu1 }
 0x271   : > { %v9272_v47 = vpop.permute.xlu1 %9271 }
 0x273   : > { %v9100_v57 = vpop.permute.xlu0 %9099  ;;  %11367 = vrot.lane.b32.xlu1 %v29211_v27, %s32703_s26 }
 0x274   : > { %v9106_v44 = vsel %vm32766_vm13, %v9098_v9, %v9100_v57  ;;  %11365 = vrot.lane.b32.xlu0 %v29202_v40, %s32703_s26  ;;  %vm32769_vm13 = vmmov %vm32768_vm11 }
 0x275   : > { %26465 = vmatprep.subr.msk.mxu0 %vm252_vm1, %v9106_v44  ;;  %v9276_v52 = vpop.permute.xlu1 %9275  ;;  %v9107_v22 = vsel %vm32769_vm13, %v9100_v57, %v9102_v39 }
 0x276   : > { %26466 = vmatpush1.msk.msra.mxu0 %vm252_vm1, %v9105_v26 }
 0x277   : > { %v9104_v43 = vpop.permute.xlu0 %9103  ;;  %11537 = vrot.lane.b32.xlu1 %v28940_v6, %s32697_s27  ;;  %26467 = vmatmul.mubr.msk.f32.vlgmr.msra.gmra.mxu0 %vm248_vm2, %v27313_v62 }
 0x278   : > { %v9108_v34 = vsel %vm32768_vm11, %v9102_v39, %v9104_v43  ;;  %11369 = vrot.lane.b32.xlu0 %v11355_v49, %s32703_s26  ;;  %9357 = vmatprep.mubr.f32.mxu0 %v32713_v51  ;;  %vm32771_vm11 = vmmov %vm32770_vm12  ;;  %v29334_v39 = vpop.f32.mrf.mxu0  ;;  %v12059_v43 = vld [vmem:[%s27482_s17 + $0x38] sm:$0xf] }
 0x279   : > { %26468 = vmatprep.subr.msk.mxu1 %vm252_vm1, %v9108_v34  ;;  %v9280_v35 = vpop.permute.xlu1 %9279  ;;  %vm32772_vm13 = vmmov %vm32771_vm11 }
 0x27a   : > { %26469 = vmatpush1.msk.msra.mxu1 %vm252_vm1, %v9107_v22  ;;  %v29343_v44 = vpop.f32.mrf.mxu0  ;;  %v27317_v22 = vld [vmem:[%s32641_s1 + $0x8] sm:$0xff] }
 0x27b   : > { %v9274_v12 = vpop.permute.xlu0 %9273  ;;  %11541 = vrot.lane.b32.xlu1 %v29202_v40, %s32697_s27  ;;  %26470 = vmatmul.mubr.msk.f32.vlgmr.msra.gmra.mxu1 %vm248_vm2, %v27313_v62 }
 0x27c   : > { %v9281_v50 = vsel %vm32770_vm12, %v9272_v47, %v9274_v12  ;;  %v9282_v14 = vsel %vm32771_vm11, %v9274_v12, %v9276_v52  ;;  %11539 = vrot.lane.b32.xlu0 %v28957_v3, %s32697_s27  ;;  %9428 = vmatprep.mubr.f32.mxu1 %v32713_v51  ;;  %vm32773_vm12 = vmmov %vm32771_vm11  ;;  %v29339_v47 = vpop.f32.mrf.mxu1  ;;  %vm32787_vm11 = vcmask 482304  }
 0x27d   : > { %26471 = vmatprep.subr.msk.mxu0 %vm252_vm1, %v9282_v14  ;;  %v9450_v4 = vpop.permute.xlu1 %9449 }
 0x27e   : > { %26472 = vmatpush1.msk.msra.mxu0 %vm252_vm1, %v9281_v50  ;;  %v29352_v62 = vpop.f32.mrf.mxu1 }
 0x27f   : > { %v9278_v58 = vpop.permute.xlu0 %9277  ;;  %11545 = vrot.lane.b32.xlu1 %v11531_v5, %s32697_s27  ;;  %26473 = vmatmul.mubr.msk.f32.vlgmr.msra.gmra.mxu0 %vm248_vm2, %v27314_v48 }
 0x280   : > { %v9283_v13 = vsel %vm32772_vm13, %v9276_v52, %v9278_v58  ;;  %v9284_v32 = vsel %vm32773_vm12, %v9278_v58, %v9280_v35  ;;  %11543 = vrot.lane.b32.xlu0 %v29211_v27, %s32697_s27  ;;  %9533 = vmatprep.mubr.f32.mxu0 %v32713_v51  ;;  %v29360_v35 = vpop.f32.mrf.mxu0  ;;  %v29372_v5 = vpop.f32.mrf.mxu1  ;;  %vm32788_vm13 = vmmov %vm32787_vm11 }
 0x281   : > { %26474 = vmatprep.subr.msk.mxu1 %vm252_vm1, %v9284_v32  ;;  %v9454_v17 = vpop.permute.xlu1 %9453  ;;  %vm32789_vm12 = vmmov %vm32787_vm11 }
 0x282   : > { %26475 = vmatpush1.msk.msra.mxu1 %vm252_vm1, %v9283_v13  ;;  %v12235_v13 = vld [vmem:[%s27482_s17 + $0x38] sm:$0xf] }
 0x283   : > { %v9448_v55 = vpop.permute.xlu0 %9447  ;;  %11715 = vrot.lane.b32.xlu1 %v28957_v3, %s32695_s28  ;;  %26476 = vmatmul.mubr.msk.f32.vlgmr.msra.gmra.mxu1 %vm248_vm2, %v27314_v48 }
 0x284   : > { %11713 = vrot.lane.b32.xlu0 %v28940_v6, %s32695_s28  ;;  %9604 = vmatprep.mubr.f32.mxu1 %v32713_v51  ;;  %v9457_v16 = vsel %vm4714_vm14, %v9448_v55, %v9450_v4 }
 0x285   : > { %v9624_v23 = vpop.permute.xlu1 %9623 }
 0x287   : > { %v9452_v8 = vpop.permute.xlu0 %9451  ;;  %11719 = vrot.lane.b32.xlu1 %v29211_v27, %s32695_s28 }
 0x288   : > { %v9458_v18 = vsel %vm4714_vm14, %v9450_v4, %v9452_v8  ;;  %11717 = vrot.lane.b32.xlu0 %v29202_v40, %s32695_s28  ;;  %v9459_v61 = vsel %vm4714_vm14, %v9452_v8, %v9454_v17 }
 0x289   : > { %26477 = vmatprep.subr.msk.mxu0 %vm252_vm1, %v9458_v18  ;;  %v9628_v60 = vpop.permute.xlu1 %9627 }
 0x28a   : > { %26478 = vmatpush1.msk.msra.mxu0 %vm252_vm1, %v9457_v16 }
 0x28b   : > { %v9456_v24 = vpop.permute.xlu0 %9455  ;;  %11889 = vrot.lane.b32.xlu1 %v28940_v6, %s32693_s29  ;;  %26479 = vmatmul.mubr.msk.f32.vlgmr.msra.gmra.mxu0 %vm248_vm2, %v27315_v0 }
 0x28c   : > { %v9460_v41 = vsel %vm4714_vm14, %v9454_v17, %v9456_v24  ;;  %11721 = vrot.lane.b32.xlu0 %v11707_v7, %s32695_s28  ;;  %9709 = vmatprep.mubr.f32.mxu0 %v32713_v51  ;;  %v29394_v17 = vpop.f32.mrf.mxu1 }
 0x28d   : > { %26480 = vmatprep.subr.msk.mxu1 %vm252_vm1, %v9460_v41  ;;  %v9632_v38 = vpop.permute.xlu1 %9631 }
 0x28e   : > { %26481 = vmatpush1.msk.msra.mxu1 %vm252_vm1, %v9459_v61  ;;  %v29412_v7 = vpop.f32.mrf.mxu1 }
 0x28f   : > { %v9626_v42 = vpop.permute.xlu0 %9625  ;;  %11893 = vrot.lane.b32.xlu1 %v29202_v40, %s32693_s29  ;;  %26482 = vmatmul.mubr.msk.f32.vlgmr.msra.gmra.mxu1 %vm248_vm2, %v27315_v0 }
 0x290   : > { %v9633_v25 = vsel %vm4894_vm15, %v9624_v23, %v9626_v42  ;;  %v9634_v59 = vsel %vm4894_vm15, %v9626_v42, %v9628_v60  ;;  %11891 = vrot.lane.b32.xlu0 %v28957_v3, %s32693_s29  ;;  %9780 = vmatprep.mubr.f32.mxu1 %v32713_v51  ;;  %v29424_v61 = vpop.f32.mrf.mxu1 }
 0x291   : > { %26483 = vmatprep.subr.msk.mxu0 %vm252_vm1, %v9634_v59  ;;  %v9810_v29 = vpop.permute.xlu1 %9809 }
 0x292   : > { %26484 = vmatpush1.msk.msra.mxu0 %vm252_vm1, %v9633_v25 }
 0x293   : > { %26485 = vmatmul.mubr.msk.f32.vlgmr.msra.gmra.mxu0 %vm248_vm2, %v27316_v54  ;;  %v9630_v2 = vpop.permute.xlu0 %9629  ;;  %11897 = vrot.lane.b32.xlu1 %v11883_v15, %s32693_s29 }
 0x294   : > { %v9635_v9 = vsel %vm4894_vm15, %v9628_v60, %v9630_v2  ;;  %v9636_v21 = vsel %vm4894_vm15, %v9630_v2, %v9632_v38  ;;  %11895 = vrot.lane.b32.xlu0 %v29211_v27, %s32693_s29  ;;  %9893 = vmatprep.mubr.f32.mxu0 %v32713_v51  ;;  %v27319_v60 = vld [vmem:[%s32641_s1 + $0x10] sm:$0xff]  ;;  %v12411_v2 = vld [vmem:[%s27482_s17 + $0x38] sm:$0xf] }
 0x295   : > { %26486 = vmatprep.subr.msk.mxu1 %vm252_vm1, %v9636_v21  ;;  %v9814_v46 = vpop.permute.xlu1 %9813 }
 0x296   : > { %26487 = vmatpush1.msk.msra.mxu1 %vm252_vm1, %v9635_v9  ;;  %v27320_v9 = vld [vmem:[%s32641_s1 + $0x18] sm:$0xff] }
 0x297   : > { %26488 = vmatmul.mubr.msk.f32.vlgmr.msra.gmra.mxu1 %vm248_vm2, %v27316_v54  ;;  %v9808_v36 = vpop.permute.xlu0 %9807  ;;  %12067 = vrot.lane.b32.xlu1 %v28957_v3, %s32688_s30 }
 0x298   : > { %12065 = vrot.lane.b32.xlu0 %v28940_v6, %s32688_s30  ;;  %9964 = vmatprep.mubr.f32.mxu1 %v32713_v51  ;;  %v9817_v52 = vsel %vm243_vm0, %v9808_v36, %v9810_v29 }
 0x299   : > { %v10130_v31 = vpop.permute.xlu1 %10129 }
 0x29b   : > { %v9812_v57 = vpop.permute.xlu0 %9811  ;;  %12071 = vrot.lane.b32.xlu1 %v29211_v27, %s32688_s30 }
 0x29c   : > { %v9818_v26 = vsel %vm243_vm0, %v9810_v29, %v9812_v57  ;;  %12069 = vrot.lane.b32.xlu0 %v29202_v40, %s32688_s30  ;;  %v9819_v50 = vsel %vm243_vm0, %v9812_v57, %v9814_v46  ;;  %v29436_v29 = vpop.f32.mrf.mxu1 }
 0x29d   : > { %26489 = vmatprep.subr.msk.mxu0 %vm252_vm1, %v9818_v26  ;;  %v10134_v49 = vpop.permute.xlu1 %10133 }
 0x29e   : > { %26490 = vmatpush1.msk.msra.mxu0 %vm252_vm1, %v9817_v52 }
 0x29f   : > { %v9816_v34 = vpop.permute.xlu0 %9815  ;;  %12241 = vrot.lane.b32.xlu1 %v28940_v6, %s32686_s6  ;;  %26491 = vmatmul.mubr.msk.f32.vlgmr.msra.gmra.mxu0 %vm248_vm2, %v27317_v22 }
 0x2a0   : > { %v9820_v12 = vsel %vm243_vm0, %v9814_v46, %v9816_v34  ;;  %26495 = vmatprep.subr.msk.mxu0 %vm252_vm1, %v28929_v20  ;;  %12073 = vrot.lane.b32.xlu0 %v12059_v43, %s32688_s30  ;;  %v29377_v20 = vpop.f32.mrf.mxu0  ;;  %v12587_v43 = vld [vmem:[%s27482_s17 + $0x38] sm:$0xf]  ;;  %v12761_v34 = vld [vmem:[%s27482_s17 + $0x28] sm:$0xff]  ;;  %s32821_s30 = smov 110  }
 0x2a1   : > { %26492 = vmatprep.subr.msk.mxu1 %vm252_vm1, %v9820_v12  ;;  %v10138_v14 = vpop.permute.xlu1 %10137  ;;  %26496 = vmatpush1.msk.msra.mxu0 %vm252_vm1, %v28913_v19  ;;  %v27318_v19 = vld [vmem:[%s32641_s1] sm:$0xff] }
 0x2a2   : > { %26493 = vmatpush1.msk.msra.mxu1 %vm252_vm1, %v9819_v50  ;;  %10043 = vmatprep.mubr.f32.mxu0 %v32713_v51  ;;  %v29398_v23 = vpop.f32.mrf.mxu0 }
 0x2a3   : > { %v10132_v4 = vpop.permute.xlu0 %10131  ;;  %12245 = vrot.lane.b32.xlu1 %v29202_v40, %s32686_s6  ;;  %26494 = vmatmul.mubr.msk.f32.vlgmr.msra.gmra.mxu1 %vm248_vm2, %v27317_v22 }
 0x2a4   : > { %v10139_v58 = vsel %vm574_vm3, %v10130_v31, %v10132_v4  ;;  %v10140_v48 = vsel %vm574_vm3, %v10132_v4, %v10134_v49  ;;  %26497 = vmatmul.mubr.msk.f32.vlgmr.msra.gmra.mxu0 %vm248_vm2, %v27318_v19  ;;  %26498 = vmatprep.subr.msk.mxu1 %vm252_vm1, %v28957_v3  ;;  %v29417_v0 = vpop.f32.mrf.mxu0  ;;  %v29453_v31 = vpop.f32.mrf.mxu1  ;;  %v27321_v4 = vld [vmem:[%s32641_s1 + $0x20] sm:$0xff] }
 0x2a5   : > { %26501 = vmatprep.subr.msk.mxu0 %vm252_vm1, %v10140_v48  ;;  %v10308_v32 = vpop.permute.xlu1 %10307  ;;  %26499 = vmatpush1.msk.msra.mxu1 %vm252_vm1, %v28940_v6 }
 0x2a6   : > { %26502 = vmatpush1.msk.msra.mxu0 %vm252_vm1, %v10139_v58  ;;  %12243 = vrot.lane.b32.xlu0 %v28957_v3, %s32686_s6  ;;  %v29428_v42 = vpop.f32.mrf.mxu0  ;;  %v29469_v12 = vpop.f32.mrf.mxu1 }
 0x2a7   : > { %v10136_v55 = vpop.permute.xlu0 %10135  ;;  %10114 = vmatprep.mubr.f32.mxu1 %v32713_v51  ;;  %12249 = vrot.lane.b32.xlu1 %v12235_v13, %s32686_s6 }
 0x2a8   : > { %v10141_v8 = vsel %vm574_vm3, %v10134_v49, %v10136_v55  ;;  %v10142_v18 = vsel %vm574_vm3, %v10136_v55, %v10138_v14  ;;  %26500 = vmatmul.mubr.msk.f32.vlgmr.msra.gmra.mxu1 %vm248_vm2, %v27318_v19  ;;  %10215 = vmatprep.mubr.f32.mxu0 %v32713_v51  ;;  %v29445_v21 = vpop.f32.mrf.mxu0  ;;  %v12767_v14 = vcombine.high %v12761_v34, %v12761_v34  ;;  %v29485_v13 = vpop.f32.mrf.mxu1 }
 0x2a9   : > { %26504 = vmatprep.subr.msk.mxu1 %vm252_vm1, %v10142_v18  ;;  %v10312_v16 = vpop.permute.xlu1 %10311  ;;  %26503 = vmatmul.mubr.msk.f32.vlgmr.msra.gmra.mxu0 %vm248_vm2, %v27319_v60 }
 0x2aa   : > { %26505 = vmatpush1.msk.msra.mxu1 %vm252_vm1, %v10141_v8  ;;  %12247 = vrot.lane.b32.xlu0 %v29211_v27, %s32686_s6  ;;  %v29458_v26 = vpop.f32.mrf.mxu0  ;;  %v29493_v18 = vpop.f32.mrf.mxu1  ;;  %s32777_s6 = smov 119  }
 0x2ab   : > { %v10306_v24 = vpop.permute.xlu0 %10305  ;;  %12419 = vrot.lane.b32.xlu1 %v28957_v3, %s32684_s15  ;;  %10286 = vmatprep.mubr.f32.mxu1 %v32713_v51 }
 0x2ac   : > { %26506 = vmatmul.mubr.msk.f32.vlgmr.msra.gmra.mxu1 %vm248_vm2, %v27319_v60  ;;  %10391 = vmatprep.mubr.f32.mxu0 %v32713_v51  ;;  %v10315_v59 = vsel %vm754_vm4, %v10306_v24, %v10308_v32  ;;  %v29476_v58 = vpop.f32.mrf.mxu0 }
 0x2ad   : > { %v10482_v41 = vpop.permute.xlu1 %10481  ;;  %10462 = vmatprep.mubr.f32.mxu1 %v32713_v51 }
 0x2ae   : > { %12417 = vrot.lane.b32.xlu0 %v28940_v6, %s32684_s15  ;;  %v29489_v55 = vpop.f32.mrf.mxu0 }
 0x2af   : > { %v10310_v38 = vpop.permute.xlu0 %10309  ;;  %12423 = vrot.lane.b32.xlu1 %v29211_v27, %s32684_s15 }
 0x2b0   : > { %v10316_v25 = vsel %vm754_vm4, %v10308_v32, %v10310_v38  ;;  %v10317_v36 = vsel %vm754_vm4, %v10310_v38, %v10312_v16  ;;  %v29497_v60 = vpop.f32.mrf.mxu0 }
 0x2b1   : > { %26507 = vmatprep.subr.msk.mxu0 %vm252_vm1, %v10316_v25  ;;  %v10486_v15 = vpop.permute.xlu1 %10485 }
 0x2b2   : > { %26508 = vmatpush1.msk.msra.mxu0 %vm252_vm1, %v10315_v59  ;;  %12421 = vrot.lane.b32.xlu0 %v29202_v40, %s32684_s15  ;;  %v29508_v59 = vpop.f32.mrf.mxu1 }
 0x2b3   : > { %v10314_v54 = vpop.permute.xlu0 %10313  ;;  %12593 = vrot.lane.b32.xlu1 %v28940_v6, %s32774_s13  ;;  %26509 = vmatmul.mubr.msk.f32.vlgmr.msra.gmra.mxu0 %vm248_vm2, %v27320_v9 }
 0x2b4   : > { %v10318_v46 = vsel %vm754_vm4, %v10312_v16, %v10314_v54  ;;  %10567 = vmatprep.mubr.f32.mxu0 %v32713_v51  ;;  %v27322_v54 = vld [vmem:[%s32641_s1 + $0x28] sm:$0xff] }
 0x2b5   : > { %26510 = vmatprep.subr.msk.mxu1 %vm252_vm1, %v10318_v46  ;;  %v10490_v6 = vpop.permute.xlu1 %10489  ;;  %v29521_v46 = vld [vmem:[%s27482_s17 + $0x3c] sm:$0xff] }
 0x2b6   : > { %26511 = vmatpush1.msk.msra.mxu1 %vm252_vm1, %v10317_v36  ;;  %12425 = vrot.lane.b32.xlu0 %v12411_v2, %s32684_s15  ;;  %v29517_v2 = vpop.f32.mrf.mxu0  ;;  %s32854_s15 = smov 40  }
 0x2b7   : > { %v10484_v57 = vpop.permute.xlu0 %10483  ;;  %12597 = vrot.lane.b32.xlu1 %v29202_v40, %s32774_s13  ;;  %26512 = vmatmul.mubr.msk.f32.vlgmr.msra.gmra.mxu1 %vm248_vm2, %v27320_v9 }
 0x2b8   : > { %v10491_v52 = vsel %vm934_vm5, %v10482_v41, %v10484_v57  ;;  %v10492_v49 = vsel %vm934_vm5, %v10484_v57, %v10486_v15  ;;  %10638 = vmatprep.mubr.f32.mxu1 %v32713_v51  ;;  %v29501_v41 = vld [vmem:[%s27482_s17 + $0x34] sm:$0xff]  ;;  %v29532_v57 = vpop.f32.mrf.mxu1 }
 0x2b9   : > { %26513 = vmatprep.subr.msk.mxu0 %vm252_vm1, %v10492_v49  ;;  %v10660_v22 = vpop.permute.xlu1 %10659  ;;  %v29537_v49 = vpop.f32.mrf.mxu0 }
 0x2ba   : > { %26514 = vmatpush1.msk.msra.mxu0 %vm252_vm1, %v10491_v52  ;;  %12595 = vrot.lane.b32.xlu0 %v28957_v3, %s32774_s13 }
 0x2bb   : > { %v10488_v50 = vpop.permute.xlu0 %10487  ;;  %12601 = vrot.lane.b32.xlu1 %v12587_v43, %s32774_s13  ;;  %26515 = vmatmul.mubr.msk.f32.vlgmr.msra.gmra.mxu0 %vm248_vm2, %v27321_v4 }
 0x2bc   : > { %v10493_v48 = vsel %vm934_vm5, %v10486_v15, %v10488_v50  ;;  %v10494_v19 = vsel %vm934_vm5, %v10488_v50, %v10490_v6  ;;  %10743 = vmatprep.mubr.f32.mxu0 %v32713_v51  ;;  %v12763_v15 = vld [vmem:[%s27482_s17 + $0x38] sm:$0xf]  ;;  %v29528_v6 = vcombine.high %v29501_v41, %v29501_v41 }
 0x2bd   : > { %26516 = vmatprep.subr.msk.mxu1 %vm252_vm1, %v10494_v19  ;;  %v10664_v3 = vpop.permute.xlu1 %10663  ;;  %v27323_v19 = vld [vmem:[%s32641_s1 + $0x30] sm:$0xff] }
 0x2be   : > { %26517 = vmatpush1.msk.msra.mxu1 %vm252_vm1, %v10493_v48  ;;  %12599 = vrot.lane.b32.xlu0 %v29211_v27, %s32774_s13 }
 0x2bf   : > { %v10658_v32 = vpop.permute.xlu0 %10657  ;;  %12771 = vrot.lane.b32.xlu1 %v12767_v14, %s32775_s5  ;;  %26518 = vmatmul.mubr.msk.f32.vlgmr.msra.gmra.mxu1 %vm248_vm2, %v27321_v4  ;;  %v29546_v14 = vcombine.high %v29521_v46, %v29521_v46  ;;  %v29551_v4 = vpop.f32.mrf.mxu1 }
 0x2c0   : > { %10814 = vmatprep.mubr.f32.mxu1 %v32713_v51  ;;  %v10667_v38 = vsel %vm1114_vm6, %v10658_v32, %v10660_v22 }
 0x2c1   : > { %v10834_v8 = vpop.permute.xlu1 %10833 }
 0x2c2   : > { %12769 = vrot.lane.b32.xlu0 %v12761_v34, %s32775_s5 }
 0x2c3   : > { %v10662_v16 = vpop.permute.xlu0 %10661  ;;  %12775 = vrot.lane.b32.xlu1 %v29211_v27, %s32775_s5 }
 0x2c4   : > { %v10668_v24 = vsel %vm1114_vm6, %v10660_v22, %v10662_v16  ;;  %v12939_v22 = vld [vmem:[%s27482_s17 + $0x44] sm:$0xf] }
 0x2c5   : > { %26519 = vmatprep.subr.msk.mxu0 %vm252_vm1, %v10668_v24  ;;  %v10838_v25 = vpop.permute.xlu1 %10837  ;;  %v29567_v24 = vpop.f32.mrf.mxu1 }
 0x2c6   : > { %26520 = vmatpush1.msk.msra.mxu0 %vm252_vm1, %v10667_v38  ;;  %12773 = vrot.lane.b32.xlu0 %v29202_v40, %s32775_s5  ;;  %v10669_v40 = vsel %vm1114_vm6, %v10662_v16, %v10664_v3 }
 0x2c7   : > { %v10666_v27 = vpop.permute.xlu0 %10665  ;;  %12945 = vrot.lane.b32.xlu1 %v29501_v41, %s32776_s20  ;;  %26521 = vmatmul.mubr.msk.f32.vlgmr.msra.gmra.mxu0 %vm248_vm2, %v27322_v54 }
 0x2c8   : > { %v10670_v9 = vsel %vm1114_vm6, %v10664_v3, %v10666_v27  ;;  %10919 = vmatprep.mubr.f32.mxu0 %v32713_v51  ;;  %v29558_v3 = vpop.f32.mrf.mxu0 }
 0x2c9   : > { %26522 = vmatprep.subr.msk.mxu1 %vm252_vm1, %v10670_v9  ;;  %v10842_v36 = vpop.permute.xlu1 %10841 }
 0x2ca   : > { %26523 = vmatpush1.msk.msra.mxu1 %vm252_vm1, %v10669_v40  ;;  %12777 = vrot.lane.b32.xlu0 %v12763_v15, %s32775_s5  ;;  %v29577_v15 = vpop.f32.mrf.mxu1 }
 0x2cb   : > { %v10836_v52 = vpop.permute.xlu0 %10835  ;;  %12949 = vrot.lane.b32.xlu1 %v29521_v46, %s32776_s20  ;;  %26524 = vmatmul.mubr.msk.f32.vlgmr.msra.gmra.mxu1 %vm248_vm2, %v27322_v54 }
 0x2cc   : > { %v10843_v43 = vsel %vm1294_vm7, %v10834_v8, %v10836_v52  ;;  %v10844_v34 = vsel %vm1294_vm7, %v10836_v52, %v10838_v25  ;;  %10990 = vmatprep.mubr.f32.mxu1 %v32713_v51 }
 0x2cd   : > { %26525 = vmatprep.subr.msk.mxu0 %vm252_vm1, %v10844_v34  ;;  %v11012_v50 = vpop.permute.xlu1 %11011 }
 0x2ce   : > { %26526 = vmatpush1.msk.msra.mxu0 %vm252_vm1, %v10843_v43  ;;  %12947 = vrot.lane.b32.xlu0 %v29528_v6, %s32776_s20  ;;  %v29589_v43 = vpop.f32.mrf.mxu1 }
 0x2cf   : > { %v10840_v48 = vpop.permute.xlu0 %10839  ;;  %12953 = vrot.lane.b32.xlu1 %v12939_v22, %s32776_s20  ;;  %26527 = vmatmul.mubr.msk.f32.vlgmr.msra.gmra.mxu0 %vm248_vm2, %v27323_v19  ;;  %v13115_v22 = vld [vmem:[%s27482_s17 + $0x44] sm:$0xf] }
 0x2d0   : > { %v10845_v32 = vsel %vm1294_vm7, %v10838_v25, %v10840_v48  ;;  %v10846_v8 = vsel %vm1294_vm7, %v10840_v48, %v10842_v36  ;;  %11095 = vmatprep.mubr.f32.mxu0 %v32713_v51  ;;  %v29572_v25 = vpop.f32.mrf.mxu0  ;;  %v27324_v48 = vld [vmem:[%s32641_s1 + $0x38] sm:$0xff] }
 0x2d1   : > { %26528 = vmatprep.subr.msk.mxu1 %vm252_vm1, %v10846_v8  ;;  %v11016_v16 = vpop.permute.xlu1 %11015 }
 0x2d2   : > { %26529 = vmatpush1.msk.msra.mxu1 %vm252_vm1, %v10845_v32  ;;  %12951 = vrot.lane.b32.xlu0 %v29546_v14, %s32776_s20  ;;  %v29581_v9 = vpop.f32.mrf.mxu0 }
 0x2d3   : > { %v11010_v38 = vpop.permute.xlu0 %11009  ;;  %13123 = vrot.lane.b32.xlu1 %v29528_v6, %s32777_s6  ;;  %26530 = vmatmul.mubr.msk.f32.vlgmr.msra.gmra.mxu1 %vm248_vm2, %v27323_v19 }
 0x2d4   : > { %11166 = vmatprep.mubr.f32.mxu1 %v32713_v51  ;;  %v11019_v36 = vsel %vm1474_vm8, %v11010_v38, %v11012_v50  ;;  %v29606_v38 = vpop.f32.mrf.mxu1 }
 0x2d5   : > { %v11186_v27 = vpop.permute.xlu1 %11185  ;;  %32778 = vst [vmem:[#allocation3_spill] sm:$0xff] %v29606_v38  ;;  %v5318_v38 = vadd.f32 %v29303_v53, %v29273_v11 }
 0x2d6   : > { %13121 = vrot.lane.b32.xlu0 %v29501_v41, %s32777_s6 }
 0x2d7   : > { %v11014_v54 = vpop.permute.xlu0 %11013  ;;  %13127 = vrot.lane.b32.xlu1 %v29546_v14, %s32777_s6 }
 0x2d8   : > { %v11020_v40 = vsel %vm1474_vm8, %v11012_v50, %v11014_v54  ;;  %v29598_v50 = vpop.f32.mrf.mxu0  ;;  %v11021_v32 = vsel %vm1474_vm8, %v11014_v54, %v11016_v16  ;;  %v13291_v54 = vld [vmem:[%s27482_s17 + $0x44] sm:$0xf] }
 0x2d9   : > { %26531 = vmatprep.subr.msk.mxu0 %vm252_vm1, %v11020_v40  ;;  %v11190_v52 = vpop.permute.xlu1 %11189 }
 0x2da   : > { %26532 = vmatpush1.msk.msra.mxu0 %vm252_vm1, %v11019_v36  ;;  %13125 = vrot.lane.b32.xlu0 %v29521_v46, %s32777_s6  ;;  %v29611_v36 = vpop.f32.mrf.mxu0 }
 0x2db   : > { %v11018_v34 = vpop.permute.xlu0 %11017  ;;  %13297 = vrot.lane.b32.xlu1 %v29501_v41, %s32712_s11  ;;  %26533 = vmatmul.mubr.msk.f32.vlgmr.msra.gmra.mxu0 %vm248_vm2, %v27324_v48 }
 0x2dc   : > { %v11022_v19 = vsel %vm1474_vm8, %v11016_v16, %v11018_v34  ;;  %11271 = vmatprep.mubr.f32.mxu0 %v32713_v51 }
 0x2dd   : > { %26534 = vmatprep.subr.msk.mxu1 %vm252_vm1, %v11022_v19  ;;  %v11194_v8 = vpop.permute.xlu1 %11193  ;;  %v29621_v19 = vpop.f32.mrf.mxu1 }
 0x2de   : > { %26535 = vmatpush1.msk.msra.mxu1 %vm252_vm1, %v11021_v32  ;;  %13129 = vrot.lane.b32.xlu0 %v13115_v22, %s32777_s6  ;;  %32779 = vst [vmem:[#allocation4_spill] sm:$0xff] %v29621_v19  ;;  %v29628_v32 = vpop.f32.mrf.mxu0 }
 0x2df   : > { %v11188_v40 = vpop.permute.xlu0 %11187  ;;  %13301 = vrot.lane.b32.xlu1 %v29521_v46, %s32712_s11  ;;  %26536 = vmatmul.mubr.msk.f32.vlgmr.msra.gmra.mxu1 %vm248_vm2, %v27324_v48  ;;  %32780 = vst [vmem:[#allocation5_spill] sm:$0xff] %v29628_v32  ;;  %v13467_v32 = vld [vmem:[%s27482_s17 + $0x44] sm:$0xf] }
 0x2e0   : > { %v11195_v34 = vsel %vm1654_vm9, %v11186_v27, %v11188_v40  ;;  %v11196_v16 = vsel %vm1654_vm9, %v11188_v40, %v11190_v52  ;;  %11342 = vmatprep.mubr.f32.mxu1 %v32713_v51  ;;  %v27325_v27 = vld [vmem:[%s32641_s1 + $0x40] sm:$0xff] }
 0x2e1   : > { %26537 = vmatprep.subr.msk.mxu0 %vm252_vm1, %v11196_v16  ;;  %v11364_v22 = vpop.permute.xlu1 %11363 }
 0x2e2   : > { %26538 = vmatpush1.msk.msra.mxu0 %vm252_vm1, %v11195_v34  ;;  %13299 = vrot.lane.b32.xlu0 %v29528_v6, %s32712_s11 }
 0x2e3   : > { %v11192_v48 = vpop.permute.xlu0 %11191  ;;  %13305 = vrot.lane.b32.xlu1 %v13291_v54, %s32712_s11  ;;  %26539 = vmatmul.mubr.msk.f32.vlgmr.msra.gmra.mxu0 %vm248_vm2, %v27325_v27  ;;  %v29637_v54 = vpop.f32.mrf.mxu1 }
 0x2e4   : > { %v11197_v40 = vsel %vm1654_vm9, %v11190_v52, %v11192_v48  ;;  %v11198_v34 = vsel %vm1654_vm9, %v11192_v48, %v11194_v8  ;;  %11447 = vmatprep.mubr.f32.mxu0 %v32713_v51  ;;  %32781 = vst [vmem:[#allocation6_spill] sm:$0xff] %v29637_v54  ;;  %v29642_v52 = vpop.f32.mrf.mxu0 }
 0x2e5   : > { %26540 = vmatprep.subr.msk.mxu1 %vm252_vm1, %v11198_v34  ;;  %v11368_v16 = vpop.permute.xlu1 %11367  ;;  %32782 = vst [vmem:[#allocation7_spill] sm:$0xff] %v29642_v52  ;;  %v29647_v48 = vpop.f32.mrf.mxu1 }
 0x2e6   : > { %26541 = vmatpush1.msk.msra.mxu1 %vm252_vm1, %v11197_v40  ;;  %13303 = vrot.lane.b32.xlu0 %v29546_v14, %s32712_s11  ;;  %32783 = vst [vmem:[#allocation8_spill] sm:$0xff] %v29647_v48  ;;  %v29651_v34 = vpop.f32.mrf.mxu0 }
 0x2e7   : > { %v11362_v37 = vpop.permute.xlu0 %11361  ;;  %13475 = vrot.lane.b32.xlu1 %v29528_v6, %s32718_s4  ;;  %26542 = vmatmul.mubr.msk.f32.vlgmr.msra.gmra.mxu1 %vm248_vm2, %v27325_v27  ;;  %32784 = vst [vmem:[#allocation9_spill] sm:$0xff] %v29651_v34  ;;  %v29659_v19 = vpop.f32.mrf.mxu1  ;;  %v27326_v34 = vld [vmem:[%s32641_s1 + $0x48] sm:$0xff] }
 0x2e8   : > { %11518 = vmatprep.mubr.f32.mxu1 %v32713_v51  ;;  %v11371_v27 = vsel %vm1834_vm10, %v11362_v37, %v11364_v22  ;;  %32785 = vst [vmem:[#allocation10_spill] sm:$0xff] %v29659_v19  ;;  %v29668_v37 = vpop.f32.mrf.mxu0 }
 0x2e9   : > { %v11538_v8 = vpop.permute.xlu1 %11537  ;;  %32786 = vst [vmem:[#allocation11_spill] sm:$0xff] %v29668_v37  ;;  %v29680_v37 = vpop.f32.mrf.mxu1 }
 0x2ea   : > { %13473 = vrot.lane.b32.xlu0 %v29501_v41, %s32718_s4 }
 0x2eb   : > { %v11366_v40 = vpop.permute.xlu0 %11365  ;;  %13479 = vrot.lane.b32.xlu1 %v29546_v14, %s32718_s4 }
 0x2ec   : > { %v11372_v54 = vsel %vm1834_vm10, %v11364_v22, %v11366_v40  ;;  %v5316_v22 = vadd.f32 %v29290_v10, %v29264_v28  ;;  %v29685_v10 = vpop.f32.mrf.mxu0 }
 0x2ed   : > { %26543 = vmatprep.subr.msk.mxu0 %vm252_vm1, %v11372_v54  ;;  %v11542_v52 = vpop.permute.xlu1 %11541 }
 0x2ee   : > { %26544 = vmatpush1.msk.msra.mxu0 %vm252_vm1, %v11371_v27  ;;  %13477 = vrot.lane.b32.xlu0 %v29521_v46, %s32718_s4  ;;  %v11373_v27 = vsel %vm1834_vm10, %v11366_v40, %v11368_v16 }
 0x2ef   : > { %v11370_v48 = vpop.permute.xlu0 %11369  ;;  %13649 = vrot.lane.b32.xlu1 %v29501_v41, %s32721_s16  ;;  %26545 = vmatmul.mubr.msk.f32.vlgmr.msra.gmra.mxu0 %vm248_vm2, %v27326_v34 }
 0x2f0   : > { %v11374_v54 = vsel %vm1834_vm10, %v11368_v16, %v11370_v48  ;;  %11623 = vmatprep.mubr.f32.mxu0 %v32713_v51  ;;  %v5387_v16 = vadd.f32 %v29298_v33, %v29269_v63  ;;  %v5563_v48 = vadd.f32 %v29320_v1, %v5316_v22  ;;  %v29701_v63 = vpop.f32.mrf.mxu1  ;;  %v27327_v1 = vld [vmem:[%s32641_s1 + $0x50] sm:$0xff] }
 0x2f1   : > { %26546 = vmatprep.subr.msk.mxu1 %vm252_vm1, %v11374_v54  ;;  %v11546_v19 = vpop.permute.xlu1 %11545  ;;  %v5564_v54 = vadd.f32 %v29334_v39, %v5318_v38 }
 0x2f2   : > { %26547 = vmatpush1.msk.msra.mxu1 %vm252_vm1, %v11373_v27  ;;  %13481 = vrot.lane.b32.xlu0 %v13467_v32, %s32718_s4  ;;  %v13643_v32 = vld [vmem:[%s27482_s17 + $0x44] sm:$0xf] }
 0x2f3   : > { %v11540_v28 = vpop.permute.xlu0 %11539  ;;  %13653 = vrot.lane.b32.xlu1 %v29521_v46, %s32721_s16  ;;  %26548 = vmatmul.mubr.msk.f32.vlgmr.msra.gmra.mxu1 %vm248_vm2, %v27326_v34  ;;  %v5389_v34 = vadd.f32 %v29313_v56, %v29282_v30  ;;  %v5565_v30 = vadd.f32 %v29329_v45, %v5387_v16  ;;  %v5739_v56 = vadd.f32 %v29343_v44, %v5563_v48  ;;  %v29721_v45 = vpop.f32.mrf.mxu1 }
 0x2f4   : > { %v11547_v11 = vsel %vm32787_vm11, %v11538_v8, %v11540_v28  ;;  %v11548_v53 = vsel %vm32788_vm13, %v11540_v28, %v11542_v52  ;;  %11694 = vmatprep.mubr.f32.mxu1 %v32713_v51  ;;  %v29708_v8 = vpop.f32.mrf.mxu0  ;;  %v5740_v28 = vadd.f32 %v29360_v35, %v5564_v54  ;;  %vm32790_vm13 = vcmask 474112  }
 0x2f5   : > { %26549 = vmatprep.subr.msk.mxu0 %vm252_vm1, %v11548_v53  ;;  %v11716_v40 = vpop.permute.xlu1 %11715  ;;  %v5566_v27 = vadd.f32 %v29339_v47, %v5389_v34  ;;  %v5915_v47 = vadd.f32 %v29377_v20, %v5739_v56 }
 0x2f6   : > { %26550 = vmatpush1.msk.msra.mxu0 %vm252_vm1, %v11547_v11  ;;  %13651 = vrot.lane.b32.xlu0 %v29528_v6, %s32721_s16  ;;  %v5916_v48 = vadd.f32 %v29398_v23, %v5740_v28  ;;  %v29735_v11 = vpop.f32.mrf.mxu1 }
 0x2f7   : > { %v11544_v33 = vpop.permute.xlu0 %11543  ;;  %13657 = vrot.lane.b32.xlu1 %v13643_v32, %s32721_s16  ;;  %26551 = vmatmul.mubr.msk.f32.vlgmr.msra.gmra.mxu0 %vm248_vm2, %v27327_v1  ;;  %v5742_v16 = vadd.f32 %v29372_v5, %v5566_v27  ;;  %v6091_v32 = vadd.f32 %v29417_v0, %v5915_v47  ;;  %v13819_v0 = vld [vmem:[%s27482_s17 + $0x44] sm:$0xf] }
 0x2f8   : > { %v11549_v39 = vsel %vm32789_vm12, %v11542_v52, %v11544_v33  ;;  %v11550_v38 = vsel %vm32787_vm11, %v11544_v33, %v11546_v19  ;;  %11799 = vmatprep.mubr.f32.mxu0 %v32713_v51  ;;  %v29726_v19 = vpop.f32.mrf.mxu0  ;;  %v5741_v52 = vadd.f32 %v29352_v62, %v5565_v30  ;;  %vm32791_vm12 = vmmov %vm32790_vm13  ;;  %v6092_v33 = vadd.f32 %v29428_v42, %v5916_v48  ;;  %v13995_v47 = vld [vmem:[%s27482_s17 + $0x44] sm:$0xf] }
 0x2f9   : > { %26552 = vmatprep.subr.msk.mxu1 %vm252_vm1, %v11550_v38  ;;  %v11720_v22 = vpop.permute.xlu1 %11719  ;;  %v5918_v54 = vadd.f32 %v29412_v7, %v5742_v16  ;;  %v6267_v30 = vadd.f32 %v29445_v21, %v6091_v32  ;;  %vm32792_vm11 = vmmov %vm32791_vm12 }
 0x2fa   : > { %26553 = vmatpush1.msk.msra.mxu1 %vm252_vm1, %v11549_v39  ;;  %13655 = vrot.lane.b32.xlu0 %v29546_v14, %s32721_s16  ;;  %v29739_v62 = vpop.f32.mrf.mxu0  ;;  %v5917_v20 = vadd.f32 %v29394_v17, %v5741_v52  ;;  %v6268_v28 = vadd.f32 %v29458_v26, %v6092_v33 }
 0x2fb   : > { %v11714_v44 = vpop.permute.xlu0 %11713  ;;  %13827 = vrot.lane.b32.xlu1 %v29528_v6, %s32722_s7  ;;  %26554 = vmatmul.mubr.msk.f32.vlgmr.msra.gmra.mxu1 %vm248_vm2, %v27327_v1  ;;  %v29751_v1 = vpop.f32.mrf.mxu1  ;;  %v6094_v27 = vadd.f32 %v29436_v29, %v5918_v54  ;;  %v6443_v29 = vadd.f32 %v29476_v58, %v6267_v30 }
 0x2fc   : > { %11870 = vmatprep.mubr.f32.mxu1 %v32713_v51  ;;  %v11723_v23 = vsel %vm32791_vm12, %v11714_v44, %v11716_v40  ;;  %v29760_v7 = vpop.f32.mrf.mxu0  ;;  %v6093_v42 = vadd.f32 %v29424_v61, %v5917_v20  ;;  %vm32794_vm12 = vcmask 343040  }
 0x2fd   : > { %v11890_v35 = vpop.permute.xlu1 %11889  ;;  %v29772_v61 = vpop.f32.mrf.mxu1  ;;  %v6270_v48 = vadd.f32 %v29469_v12, %v6094_v27 }
 0x2fe   : > { %13825 = vrot.lane.b32.xlu0 %v29501_v41, %s32722_s7  ;;  %v6269_v44 = vadd.f32 %v29453_v31, %v6093_v42 }
 0x2ff   : > { %v11718_v53 = vpop.permute.xlu0 %11717  ;;  %13831 = vrot.lane.b32.xlu1 %v29546_v14, %s32722_s7  ;;  %v29791_v31 = vpop.f32.mrf.mxu1  ;;  %v6446_v54 = vadd.f32 %v29493_v18, %v6270_v48  ;;  %v32801_v48 = vld [vmem:[#allocation3_spill] sm:$0xff] }
 0x300   : > { %v11724_v5 = vsel %vm32790_vm13, %v11716_v40, %v11718_v53  ;;  %v27328_v40 = vld [vmem:[%s32641_s1 + $0x58] sm:$0xff]  ;;  %vm32793_vm13 = vmmov %vm32792_vm11  ;;  %v6445_v12 = vadd.f32 %v29485_v13, %v6269_v44 }
 0x301   : > { %26555 = vmatprep.subr.msk.mxu0 %vm252_vm1, %v11724_v5  ;;  %v11894_v34 = vpop.permute.xlu1 %11893  ;;  %v11725_v39 = vsel %vm32793_vm13, %v11718_v53, %v11720_v22  ;;  %v6444_v53 = vadd.f32 %v29489_v55, %v6268_v28  ;;  %v6619_v55 = vadd.f32 %v29497_v60, %v6443_v29  ;;  %v29811_v13 = vpop.f32.mrf.mxu1 }
 0x302   : > { %26556 = vmatpush1.msk.msra.mxu0 %vm252_vm1, %v11723_v23  ;;  %13829 = vrot.lane.b32.xlu0 %v29521_v46, %s32722_s7 }
 0x303   : > { %v11722_v17 = vpop.permute.xlu0 %11721  ;;  %14001 = vrot.lane.b32.xlu1 %v29501_v41, %s32723_s8  ;;  %26557 = vmatmul.mubr.msk.f32.vlgmr.msra.gmra.mxu0 %vm248_vm2, %v27328_v40  ;;  %v6620_v33 = vadd.f32 %v29517_v2, %v6444_v53  ;;  %v6795_v18 = vadd.f32 %v29537_v49, %v6619_v55  ;;  %v29825_v42 = vpop.f32.mrf.mxu1  ;;  %v29875_v55 = vld [vmem:[%s27482_s17 + $0x30] sm:$0xff] }
 0x304   : > { %v11726_v56 = vsel %vm32792_vm11, %v11720_v22, %v11722_v17  ;;  %11975 = vmatprep.mubr.f32.mxu0 %v32713_v51  ;;  %v29777_v22 = vpop.f32.mrf.mxu0  ;;  %vm32795_vm11 = vmmov %vm32794_vm12  ;;  %v6621_v17 = vadd.f32 %v29508_v59, %v6445_v12  ;;  %v14347_v12 = vld [vmem:[%s27482_s17 + $0x44] sm:$0xf] }
 0x305   : > { %26558 = vmatprep.subr.msk.mxu1 %vm252_vm1, %v11726_v56  ;;  %v11898_v38 = vpop.permute.xlu1 %11897  ;;  %vm32796_vm13 = vmmov %vm32795_vm11  ;;  %v6971_v56 = vadd.f32 %v29572_v25, %v6795_v18  ;;  %v14171_v25 = vld [vmem:[%s27482_s17 + $0x44] sm:$0xf]  ;;  %v27331_v18 = vld [vmem:[%s32641_s1 + $0x70] sm:$0xff] }
 0x306   : > { %26559 = vmatpush1.msk.msra.mxu1 %vm252_vm1, %v11725_v39  ;;  %13833 = vrot.lane.b32.xlu0 %v13819_v0, %s32722_s7  ;;  %v29798_v20 = vpop.f32.mrf.mxu0  ;;  %v6622_v0 = vadd.f32 %v29532_v57, %v6446_v54  ;;  %v6797_v49 = vadd.f32 %v29551_v4, %v6621_v17  ;;  %v29889_v17 = vcombine.high %v29875_v55, %v29875_v55 }
 0x307   : > { %v11892_v21 = vpop.permute.xlu0 %11891  ;;  %14005 = vrot.lane.b32.xlu1 %v29521_v46, %s32723_s8  ;;  %26560 = vmatmul.mubr.msk.f32.vlgmr.msra.gmra.mxu1 %vm248_vm2, %v27328_v40  ;;  %v6796_v40 = vadd.f32 %v29558_v3, %v6620_v33  ;;  %v29841_v28 = vpop.f32.mrf.mxu1  ;;  %v7147_v44 = vadd.f32 %v29598_v50, %v6971_v56 }
 0x308   : > { %v11899_v26 = vsel %vm32794_vm12, %v11890_v35, %v11892_v21  ;;  %v11900_v52 = vsel %vm32795_vm11, %v11892_v21, %v11894_v34  ;;  %12046 = vmatprep.mubr.f32.mxu1 %v32713_v51  ;;  %v27329_v35 = vld [vmem:[%s32641_s1 + $0x60] sm:$0xff]  ;;  %vm32797_vm12 = vmmov %vm32795_vm11  ;;  %vm32798_vm11 = vcmask 334848   ;;  %v27330_v21 = vld [vmem:[%s32641_s1 + $0x68] sm:$0xff] }
 0x309   : > { %26561 = vmatprep.subr.msk.mxu0 %vm252_vm1, %v11900_v52  ;;  %v12068_v16 = vpop.permute.xlu1 %12067  ;;  %v6972_v27 = vadd.f32 %v29581_v9, %v6796_v40  ;;  %v6973_v9 = vadd.f32 %v29577_v15, %v6797_v49  ;;  %v29862_v15 = vpop.f32.mrf.mxu1 }
 0x30a   : > { %26562 = vmatpush1.msk.msra.mxu0 %vm252_vm1, %v11899_v26  ;;  %14003 = vrot.lane.b32.xlu0 %v29528_v6, %s32723_s8 }
 0x30b   : > { %v11896_v58 = vpop.permute.xlu0 %11895  ;;  %14009 = vrot.lane.b32.xlu1 %v13995_v47, %s32723_s8  ;;  %26563 = vmatmul.mubr.msk.f32.vlgmr.msra.gmra.mxu0 %vm248_vm2, %v27329_v35  ;;  %v7148_v47 = vadd.f32 %v29611_v36, %v6972_v27  ;;  %v7149_v53 = vadd.f32 %v32801_v48, %v6973_v9 }
 0x30c   : > { %v11901_v32 = vsel %vm32796_vm13, %v11894_v34, %v11896_v58  ;;  %v11902_v5 = vsel %vm32797_vm12, %v11896_v58, %v11898_v38  ;;  %12151 = vmatprep.mubr.f32.mxu0 %v32713_v51  ;;  %v29816_v34 = vpop.f32.mrf.mxu0  ;;  %vm32799_vm13 = vmmov %vm32798_vm11  ;;  %v6798_v38 = vadd.f32 %v29567_v24, %v6622_v0  ;;  %v32802_v58 = vld [vmem:[#allocation5_spill] sm:$0xff]  ;;  %v32807_v0 = vld [vmem:[#allocation6_spill] sm:$0xff] }
 0x30d   : > { %26564 = vmatprep.subr.msk.mxu1 %vm252_vm1, %v11902_v5  ;;  %v12072_v23 = vpop.permute.xlu1 %12071  ;;  %vm32800_vm12 = vmmov %vm32798_vm11  ;;  %v7325_v40 = vadd.f32 %v32807_v0, %v7149_v53 }
 0x30e   : > { %26565 = vmatpush1.msk.msra.mxu1 %vm252_vm1, %v11901_v32  ;;  %14007 = vrot.lane.b32.xlu0 %v29546_v14, %s32723_s8  ;;  %v29829_v59 = vpop.f32.mrf.mxu0  ;;  %v6974_v52 = vadd.f32 %v29589_v43, %v6798_v38  ;;  %v7323_v43 = vadd.f32 %v32802_v58, %v7147_v44  ;;  %v32805_v32 = vld [vmem:[#allocation4_spill] sm:$0xff] }
 0x30f   : > { %v12066_v60 = vpop.permute.xlu0 %12065  ;;  %14179 = vrot.lane.b32.xlu1 %v29528_v6, %s32724_s9  ;;  %26566 = vmatmul.mubr.msk.f32.vlgmr.msra.gmra.mxu1 %vm248_vm2, %v27329_v35  ;;  %v32811_v38 = vld [vmem:[#allocation8_spill] sm:$0xff] }
 0x310   : > { %12222 = vmatprep.mubr.f32.mxu1 %v32713_v51  ;;  %v12075_v3 = vsel %vm32799_vm13, %v12066_v60, %v12068_v16  ;;  %v29850_v24 = vpop.f32.mrf.mxu0  ;;  %vm32803_vm13 = vcmask 326656   ;;  %v7150_v5 = vadd.f32 %v32805_v32, %v6974_v52 }
 0x311   : > { %v12242_v2 = vpop.permute.xlu1 %12241 }
 0x312   : > { %14177 = vrot.lane.b32.xlu0 %v29501_v41, %s32724_s9  ;;  %v7326_v27 = vadd.f32 %v32811_v38, %v7150_v5  ;;  %v27333_v38 = vld [vmem:[%s32641_s1 + $0x80] sm:$0xff] }
 0x313   : > { %v12070_v30 = vpop.permute.xlu0 %12069  ;;  %14183 = vrot.lane.b32.xlu1 %v29546_v14, %s32724_s9  ;;  %v29884_v33 = vpop.f32.mrf.mxu1 }
 0x314   : > { %v12076_v57 = vsel %vm32798_vm11, %v12068_v16, %v12070_v30  ;;  %v12077_v26 = vsel %vm32798_vm11, %v12070_v30, %v12072_v23  ;;  %v29867_v16 = vpop.f32.mrf.mxu0  ;;  %v7502_v52 = vadd.f32 %v29680_v37, %v7326_v27 }
 0x315   : > { %26567 = vmatprep.subr.msk.mxu0 %vm252_vm1, %v12076_v57  ;;  %v12246_v39 = vpop.permute.xlu1 %12245  ;;  %v29902_v57 = vld [vmem:[%s27482_s17 + $0x38] sm:$0xff] }
 0x316   : > { %26568 = vmatpush1.msk.msra.mxu0 %vm252_vm1, %v12075_v3  ;;  %14181 = vrot.lane.b32.xlu0 %v29521_v46, %s32724_s9  ;;  %v29917_v9 = vcombine.high %v29902_v57, %v29902_v57 }
 0x317   : > { %v12074_v4 = vpop.permute.xlu0 %12073  ;;  %14353 = vrot.lane.b32.xlu1 %v29501_v41, %s32700_s10  ;;  %26569 = vmatmul.mubr.msk.f32.vlgmr.msra.gmra.mxu0 %vm248_vm2, %v27330_v21 }
 0x318   : > { %v12078_v29 = vsel %vm32800_vm12, %v12072_v23, %v12074_v4  ;;  %12327 = vmatprep.mubr.f32.mxu0 %v32713_v51  ;;  %vm32804_vm12 = vmmov %vm32803_vm13  ;;  %v32806_v23 = vld [vmem:[#allocation7_spill] sm:$0xff] }
 0x319   : > { %26570 = vmatprep.subr.msk.mxu1 %vm252_vm1, %v12078_v29  ;;  %v12250_v41 = vpop.permute.xlu1 %12249  ;;  %v7324_v54 = vadd.f32 %v32806_v23, %v7148_v47  ;;  %vm32809_vm11 = vmmov %vm32804_vm12  ;;  %v32812_v4 = vld [vmem:[#allocation11_spill] sm:$0xff]  ;;  %v32813_v29 = vld [vmem:[#allocation10_spill] sm:$0xff] }
 0x31a   : > { %26571 = vmatpush1.msk.msra.mxu1 %vm252_vm1, %v12077_v26  ;;  %14185 = vrot.lane.b32.xlu0 %v14171_v25, %s32724_s9  ;;  %v7501_v26 = vadd.f32 %v32813_v29, %v7325_v40 }
 0x31b   : > { %v12244_v50 = vpop.permute.xlu0 %12243  ;;  %14357 = vrot.lane.b32.xlu1 %v29521_v46, %s32700_s10  ;;  %26572 = vmatmul.mubr.msk.f32.vlgmr.msra.gmra.mxu1 %vm248_vm2, %v27330_v21  ;;  %v7500_v25 = vadd.f32 %v32812_v4, %v7324_v54  ;;  %v29911_v21 = vpop.f32.mrf.mxu1 }
 0x31c   : > { %v12251_v36 = vsel %vm32803_vm13, %v12242_v2, %v12244_v50  ;;  %v12252_v35 = vsel %vm32804_vm12, %v12244_v50, %v12246_v39  ;;  %12398 = vmatprep.mubr.f32.mxu1 %v32713_v51  ;;  %v29895_v2 = vpop.f32.mrf.mxu0  ;;  %vm32810_vm13 = vmmov %vm32809_vm11  ;;  %vm32814_vm12 = vcmask 195584  }
 0x31d   : > { %26573 = vmatprep.subr.msk.mxu0 %vm252_vm1, %v12252_v35  ;;  %v12420_v46 = vpop.permute.xlu1 %12419  ;;  %v7676_v47 = vadd.f32 %v29708_v8, %v7500_v25  ;;  %v29929_v50 = vpop.f32.mrf.mxu1 }
 0x31e   : > { %26574 = vmatpush1.msk.msra.mxu0 %vm252_vm1, %v12251_v36  ;;  %14355 = vrot.lane.b32.xlu0 %v29528_v6, %s32700_s10  ;;  %v32808_v6 = vld [vmem:[#allocation9_spill] sm:$0xff]  ;;  %v29920_v44 = vpop.f32.mrf.mxu0  ;;  %v7678_v36 = vadd.f32 %v29721_v45, %v7502_v52 }
 0x31f   : > { %v12248_v60 = vpop.permute.xlu0 %12247  ;;  %14361 = vrot.lane.b32.xlu1 %v14347_v12, %s32700_s10  ;;  %26575 = vmatmul.mubr.msk.f32.vlgmr.msra.gmra.mxu0 %vm248_vm2, %v27331_v18  ;;  %v7499_v30 = vadd.f32 %v32808_v6, %v7323_v43  ;;  %v7852_v35 = vadd.f32 %v29739_v62, %v7676_v47  ;;  %v29945_v12 = vpop.f32.mrf.mxu1 }
 0x320   : > { %v12253_v49 = vsel %vm32809_vm11, %v12246_v39, %v12248_v60  ;;  %v12254_v56 = vsel %vm32810_vm13, %v12248_v60, %v12250_v41  ;;  %12503 = vmatprep.mubr.f32.mxu0 %v32713_v51  ;;  %v29933_v53 = vpop.f32.mrf.mxu0  ;;  %vm32815_vm11 = vmmov %vm32814_vm12  ;;  %v7854_v60 = vadd.f32 %v29751_v1, %v7678_v36 }
 0x321   : > { %26576 = vmatprep.subr.msk.mxu1 %vm252_vm1, %v12254_v56  ;;  %v12424_v3 = vpop.permute.xlu1 %12423  ;;  %v7675_v41 = vadd.f32 %v29685_v10, %v7499_v30  ;;  %v7677_v10 = vadd.f32 %v29701_v63, %v7501_v26  ;;  %vm32816_vm13 = vmmov %vm32815_vm11  ;;  %v14853_v30 = vld [vmem:[%s27482_s17 + $0x40] sm:$0xf] }
 0x322   : > { %26577 = vmatpush1.msk.msra.mxu1 %vm252_vm1, %v12253_v49  ;;  %14359 = vrot.lane.b32.xlu0 %v29546_v14, %s32700_s10  ;;  %v8030_v56 = vadd.f32 %v29791_v31, %v7854_v60 }
 0x323   : > { %v12418_v39 = vpop.permute.xlu0 %12417  ;;  %14539 = vrot.lane.b32.xlu1 %v29889_v17, %s27420_s18  ;;  %26578 = vmatmul.mubr.msk.f32.vlgmr.msra.gmra.mxu1 %vm248_vm2, %v27331_v18  ;;  %v7851_v58 = vadd.f32 %v29726_v19, %v7675_v41  ;;  %v14531_v19 = vld [vmem:[%s27482_s17 + $0x40] sm:$0xf]  ;;  %v29954_v45 = vpop.f32.mrf.mxu0  ;;  %v7853_v62 = vadd.f32 %v29735_v11, %v7677_v10  ;;  %v8028_v18 = vadd.f32 %v29777_v22, %v7852_v35  ;;  %v27334_v35 = vld [vmem:[%s32641_s1 + $0x88] sm:$0xff] }
 0x324   : > { %12574 = vmatprep.mubr.f32.mxu1 %v32713_v51  ;;  %v12427_v8 = vsel %vm32815_vm11, %v12418_v39, %v12420_v46  ;;  %v8206_v29 = vadd.f32 %v29825_v42, %v8030_v56 }
 0x325   : > { %v12594_v14 = vpop.permute.xlu1 %12593  ;;  %v8027_v32 = vadd.f32 %v29760_v7, %v7851_v58  ;;  %v29971_v0 = vpop.f32.mrf.mxu0  ;;  %v8029_v40 = vadd.f32 %v29772_v61, %v7853_v62 }
 0x326   : > { %14537 = vrot.lane.b32.xlu0 %v29875_v55, %s27420_s18  ;;  %v8382_v52 = vadd.f32 %v29862_v15, %v8206_v29 }
 0x327   : > { %v12422_v48 = vpop.permute.xlu0 %12421  ;;  %14543 = vrot.lane.b32.xlu1 %v29917_v9, %s27420_s18  ;;  %v29966_v11 = vpop.f32.mrf.mxu1  ;;  %v8203_v1 = vadd.f32 %v29798_v20, %v8027_v32  ;;  %v8205_v31 = vadd.f32 %v29811_v13, %v8029_v40 }
 0x328   : > { %v12428_v37 = vsel %vm32814_vm12, %v12420_v46, %v12422_v48  ;;  %v27332_v46 = vld [vmem:[%s32641_s1 + $0x78] sm:$0xff]  ;;  %vm32817_vm12 = vmmov %vm32815_vm11  ;;  %vm32818_vm11 = vcmask 187392  }
 0x329   : > { %26579 = vmatprep.subr.msk.mxu0 %vm252_vm1, %v12428_v37  ;;  %v12598_v43 = vpop.permute.xlu1 %12597  ;;  %v12429_v23 = vsel %vm32817_vm12, %v12422_v48, %v12424_v3  ;;  %v29985_v61 = vpop.f32.mrf.mxu1  ;;  %vm32820_vm12 = vmmov %vm32818_vm11 }
 0x32a   : > { %26580 = vmatpush1.msk.msra.mxu0 %vm252_vm1, %v12427_v8  ;;  %14541 = vrot.lane.b32.xlu0 %v29902_v57, %s27420_s18  ;;  %v8558_v8 = vadd.f32 %v29911_v21, %v8382_v52 }
 0x32b   : > { %v12426_v63 = vpop.permute.xlu0 %12425  ;;  %14859 = vrot.lane.b32.xlu1 %v29875_v55, %s32691_s19  ;;  %26581 = vmatmul.mubr.msk.f32.vlgmr.msra.gmra.mxu0 %vm248_vm2, %v27332_v46  ;;  %v9007_v27 = vpop.f32.mrf.mxu0 }
 0x32c   : > { %v12430_v5 = vsel %vm32816_vm13, %v12424_v3, %v12426_v63  ;;  %12679 = vmatprep.mubr.f32.mxu0 %v32713_v51  ;;  %vm32819_vm13 = vmmov %vm32818_vm11  ;;  %v8204_v3 = vadd.f32 %v29816_v34, %v8028_v18  ;;  %v8379_v34 = vadd.f32 %v29829_v59, %v8203_v1  ;;  %v8734_v32 = vadd.f32 %v29945_v12, %v8558_v8 }
 0x32d   : > { %26582 = vmatprep.subr.msk.mxu1 %vm252_vm1, %v12430_v5  ;;  %v12602_v54 = vpop.permute.xlu1 %12601  ;;  %v9009_v41 = vpop.f32.mrf.mxu0 }
 0x32e   : > { %26583 = vmatpush1.msk.msra.mxu1 %vm252_vm1, %v12429_v23  ;;  %14545 = vrot.lane.b32.xlu0 %v14531_v19, %s27420_s18  ;;  %v8380_v26 = vadd.f32 %v29850_v24, %v8204_v3  ;;  %v8555_v42 = vadd.f32 %v29867_v16, %v8379_v34  ;;  %v8910_v40 = vadd.f32 %v29985_v61, %v8734_v32 }
 0x32f   : > { %v12596_v7 = vpop.permute.xlu0 %12595  ;;  %14863 = vrot.lane.b32.xlu1 %v29902_v57, %s32691_s19  ;;  %26584 = vmatmul.mubr.msk.f32.vlgmr.msra.gmra.mxu1 %vm248_vm2, %v27332_v46  ;;  %v30003_v13 = vpop.f32.mrf.mxu1 }
 0x330   : > { %v12603_v22 = vsel %vm32818_vm11, %v12594_v14, %v12596_v7  ;;  %v12604_v6 = vsel %vm32819_vm13, %v12596_v7, %v12598_v43  ;;  %12750 = vmatprep.mubr.f32.mxu1 %v32713_v51  ;;  %v8381_v14 = vadd.f32 %v29841_v28, %v8205_v31  ;;  %v8556_v47 = vadd.f32 %v29895_v2, %v8380_v26  ;;  %v15205_v7 = vld [vmem:[%s27482_s17 + $0x40] sm:$0xf] }
 0x331   : > { %26585 = vmatprep.subr.msk.mxu0 %vm252_vm1, %v12604_v6  ;;  %v12772_v49 = vpop.permute.xlu1 %12771  ;;  %v9080_v48 = vpop.f32.mrf.mxu1  ;;  %v8731_v16 = vadd.f32 %v29920_v44, %v8555_v42  ;;  %vm32822_vm13 = vcmask 179200   ;;  %v15029_v44 = vld [vmem:[%s27482_s17 + $0x40] sm:$0xf] }
 0x332   : > { %26586 = vmatpush1.msk.msra.mxu0 %vm252_vm1, %v12603_v22  ;;  %14861 = vrot.lane.b32.xlu0 %v29889_v17, %s32691_s19  ;;  %v8557_v28 = vadd.f32 %v29884_v33, %v8381_v14 }
 0x333   : > { %v12600_v20 = vpop.permute.xlu0 %12599  ;;  %14867 = vrot.lane.b32.xlu1 %v14853_v30, %s32691_s19  ;;  %26587 = vmatmul.mubr.msk.f32.vlgmr.msra.gmra.mxu0 %vm248_vm2, %v27333_v38  ;;  %v8907_v63 = vadd.f32 %v29954_v45, %v8731_v16  ;;  %v27335_v30 = vld [vmem:[%s32641_s1 + $0x90] sm:$0xff] }
 0x334   : > { %v12605_v4 = vsel %vm32820_vm12, %v12598_v43, %v12600_v20  ;;  %v12606_v25 = vsel %vm32818_vm11, %v12600_v20, %v12602_v54  ;;  %12855 = vmatprep.mubr.f32.mxu0 %v32713_v51  ;;  %vm32823_vm12 = vmmov %vm32822_vm13  ;;  %v8732_v43 = vadd.f32 %v29933_v53, %v8556_v47  ;;  %v8733_v53 = vadd.f32 %v29929_v50, %v8557_v28 }
 0x335   : > { %26588 = vmatprep.subr.msk.mxu1 %vm252_vm1, %v12606_v25  ;;  %v12776_v39 = vpop.permute.xlu1 %12775  ;;  %vm32824_vm11 = vmmov %vm32823_vm12  ;;  %v9083_v60 = vadd.f32 %v9007_v27, %v8907_v63 }
 0x336   : > { %26589 = vmatpush1.msk.msra.mxu1 %vm252_vm1, %v12605_v4  ;;  %14865 = vrot.lane.b32.xlu0 %v29917_v9, %s32691_s19  ;;  %v8908_v5 = vadd.f32 %v29971_v0, %v8732_v43  ;;  %v8909_v54 = vadd.f32 %v29966_v11, %v8733_v53  ;;  %s32853_s19 = smov 41  }
 0x337   : > { %v12770_v59 = vpop.permute.xlu0 %12769  ;;  %15037 = vrot.lane.b32.xlu1 %v29889_v17, %s32821_s30  ;;  %26590 = vmatmul.mubr.msk.f32.vlgmr.msra.gmra.mxu1 %vm248_vm2, %v27333_v38  ;;  %v9183_v58 = vpop.f32.mrf.mxu0  ;;  %v9086_v38 = vadd.f32 %v9080_v48, %v8910_v40 }
 0x338   : > { %12926 = vmatprep.mubr.f32.mxu1 %v32713_v51  ;;  %v12779_v15 = vsel %vm32823_vm12, %v12770_v59, %v12772_v49  ;;  %vm32826_vm12 = vcmask 982016   ;;  %v9084_v1 = vadd.f32 %v9009_v41, %v8908_v5  ;;  %v9259_v56 = vadd.f32 %v9183_v58, %v9083_v60 }
 0x339   : > { %v12946_v24 = vpop.permute.xlu1 %12945  ;;  %v9185_v21 = vpop.f32.mrf.mxu0 }
 0x33a   : > { %15035 = vrot.lane.b32.xlu0 %v29875_v55, %s32821_s30  ;;  %v9260_v27 = vadd.f32 %v9185_v21, %v9084_v1  ;;  %v32833_v21 = vld [vmem:[#allocation2_spill] sm:$0xff] }
 0x33b   : > { %v12774_v10 = vpop.permute.xlu0 %12773  ;;  %15041 = vrot.lane.b32.xlu1 %v29917_v9, %s32821_s30  ;;  %v9254_v36 = vpop.f32.mrf.mxu1 }
 0x33c   : > { %v12780_v37 = vsel %vm32822_vm13, %v12772_v49, %v12774_v10  ;;  %vm32825_vm13 = vmmov %vm32824_vm11  ;;  %v9085_v49 = vadd.f32 %v30003_v13, %v8909_v54 }
 0x33d   : > { %26591 = vmatprep.subr.msk.mxu0 %vm252_vm1, %v12780_v37  ;;  %v12950_v2 = vpop.permute.xlu1 %12949  ;;  %v12781_v46 = vsel %vm32825_vm13, %v12774_v10, %v12776_v39  ;;  %v9256_v50 = vpop.f32.mrf.mxu1 }
 0x33e   : > { %26592 = vmatpush1.msk.msra.mxu0 %vm252_vm1, %v12779_v15  ;;  %15039 = vrot.lane.b32.xlu0 %v29902_v57, %s32821_s30  ;;  %v9261_v25 = vadd.f32 %v9254_v36, %v9085_v49  ;;  %v9262_v26 = vadd.f32 %v9256_v50, %v9086_v38  ;;  %v15381_v15 = vld [vmem:[%s27482_s17 + $0x40] sm:$0xf] }
 0x33f   : > { %v12778_v33 = vpop.permute.xlu0 %12777  ;;  %15211 = vrot.lane.b32.xlu1 %v29875_v55, %s27423_s21  ;;  %26593 = vmatmul.mubr.msk.f32.vlgmr.msra.gmra.mxu0 %vm248_vm2, %v27334_v35  ;;  %v9359_v23 = vpop.f32.mrf.mxu0  ;;  %v15733_v38 = vld [vmem:[%s27482_s17 + $0x40] sm:$0xf] }
 0x340   : > { %v12782_v19 = vsel %vm32824_vm11, %v12776_v39, %v12778_v33  ;;  %13031 = vmatprep.mubr.f32.mxu0 %v32713_v51  ;;  %vm32827_vm11 = vmmov %vm32826_vm12  ;;  %v9435_v39 = vadd.f32 %v9359_v23, %v9259_v56  ;;  %v15557_v23 = vld [vmem:[%s27482_s17 + $0x40] sm:$0xf] }
 0x341   : > { %26594 = vmatprep.subr.msk.mxu1 %vm252_vm1, %v12782_v19  ;;  %v12954_v62 = vpop.permute.xlu1 %12953  ;;  %v9361_v6 = vpop.f32.mrf.mxu0  ;;  %vm32828_vm13 = vmmov %vm32827_vm11 }
 0x342   : > { %26595 = vmatpush1.msk.msra.mxu1 %vm252_vm1, %v12781_v46  ;;  %15043 = vrot.lane.b32.xlu0 %v15029_v44, %s32821_s30  ;;  %v9436_v13 = vadd.f32 %v9361_v6, %v9260_v27  ;;  %v27338_v27 = vld [vmem:[%s32641_s1 + $0xa8] sm:$0xff] }
 0x343   : > { %v12948_v45 = vpop.permute.xlu0 %12947  ;;  %15215 = vrot.lane.b32.xlu1 %v29902_v57, %s27423_s21  ;;  %26596 = vmatmul.mubr.msk.f32.vlgmr.msra.gmra.mxu1 %vm248_vm2, %v27334_v35  ;;  %v9430_v11 = vpop.f32.mrf.mxu1 }
 0x344   : > { %v12955_v18 = vsel %vm32826_vm12, %v12946_v24, %v12948_v45  ;;  %v12956_v12 = vsel %vm32827_vm11, %v12948_v45, %v12950_v2  ;;  %13102 = vmatprep.mubr.f32.mxu1 %v32713_v51  ;;  %vm32829_vm12 = vmmov %vm32827_vm11  ;;  %v9437_v42 = vadd.f32 %v9430_v11, %v9261_v25  ;;  %vm32830_vm11 = vcmask 973824  }
 0x345   : > { %26597 = vmatprep.subr.msk.mxu0 %vm252_vm1, %v12956_v12  ;;  %v13124_v0 = vpop.permute.xlu1 %13123  ;;  %v9432_v31 = vpop.f32.mrf.mxu1 }
 0x346   : > { %26598 = vmatpush1.msk.msra.mxu0 %vm252_vm1, %v12955_v18  ;;  %15213 = vrot.lane.b32.xlu0 %v29889_v17, %s27423_s21  ;;  %v9438_v10 = vadd.f32 %v9432_v31, %v9262_v26  ;;  %v15909_v26 = vld [vmem:[%s27482_s17 + $0x40] sm:$0xf] }
 0x347   : > { %v12952_v22 = vpop.permute.xlu0 %12951  ;;  %15219 = vrot.lane.b32.xlu1 %v15205_v7, %s27423_s21  ;;  %26599 = vmatmul.mubr.msk.f32.vlgmr.msra.gmra.mxu0 %vm248_vm2, %v27335_v30 }
 0x348   : > { %v12957_v3 = vsel %vm32828_vm13, %v12950_v2, %v12952_v22  ;;  %v12958_v61 = vsel %vm32829_vm12, %v12952_v22, %v12954_v62  ;;  %13207 = vmatprep.mubr.f32.mxu0 %v32713_v51  ;;  %vm32831_vm13 = vmmov %vm32830_vm11  ;;  %v27336_v2 = vld [vmem:[%s32641_s1 + $0x98] sm:$0xff] }
 0x349   : > { %26600 = vmatprep.subr.msk.mxu1 %vm252_vm1, %v12958_v61  ;;  %v13128_v20 = vpop.permute.xlu1 %13127  ;;  %vm32832_vm12 = vmmov %vm32830_vm11 }
 0x34a   : > { %26601 = vmatpush1.msk.msra.mxu1 %vm252_vm1, %v12957_v3  ;;  %15217 = vrot.lane.b32.xlu0 %v29917_v9, %s27423_s21 }
 0x34b   : > { %v13122_v34 = vpop.permute.xlu0 %13121  ;;  %15389 = vrot.lane.b32.xlu1 %v29889_v17, %s32706_s22  ;;  %v9535_v4 = vpop.f32.mrf.mxu0  ;;  %26602 = vmatmul.mubr.msk.f32.vlgmr.msra.gmra.mxu1 %vm248_vm2, %v27335_v30 }
 0x34c   : > { %13278 = vmatprep.mubr.f32.mxu1 %v32713_v51  ;;  %v9611_v24 = vadd.f32 %v9535_v4, %v9435_v39  ;;  %v13131_v47 = vsel %vm32831_vm13, %v13122_v34, %v13124_v0  ;;  %vm32834_vm13 = vcmask 965632  }
 0x34d   : > { %v13298_v29 = vpop.permute.xlu1 %13297  ;;  %v9537_v59 = vpop.f32.mrf.mxu0 }
 0x34e   : > { %15387 = vrot.lane.b32.xlu0 %v29875_v55, %s32706_s22  ;;  %v9612_v58 = vadd.f32 %v9537_v59, %v9436_v13 }
 0x34f   : > { %v13126_v41 = vpop.permute.xlu0 %13125  ;;  %15393 = vrot.lane.b32.xlu1 %v29917_v9, %s32706_s22  ;;  %v9606_v14 = vpop.f32.mrf.mxu1 }
 0x350   : > { %v13132_v52 = vsel %vm32830_vm11, %v13124_v0, %v13126_v41  ;;  %v9613_v8 = vadd.f32 %v9606_v14, %v9437_v42  ;;  %v13133_v33 = vsel %vm32830_vm11, %v13126_v41, %v13128_v20  ;;  %v27337_v0 = vld [vmem:[%s32641_s1 + $0xa0] sm:$0xff]  ;;  %v27339_v41 = vld [vmem:[%s32641_s1 + $0xb0] sm:$0xff] }
 0x351   : > { %26603 = vmatprep.subr.msk.mxu0 %vm252_vm1, %v13132_v52  ;;  %v13302_v48 = vpop.permute.xlu1 %13301  ;;  %v9608_v28 = vpop.f32.mrf.mxu1 }
 0x352   : > { %26604 = vmatpush1.msk.msra.mxu0 %vm252_vm1, %v13131_v47  ;;  %15391 = vrot.lane.b32.xlu0 %v29902_v57, %s32706_s22  ;;  %v9614_v63 = vadd.f32 %v9608_v28, %v9438_v10 }
 0x353   : > { %v9711_v16 = vpop.f32.mrf.mxu0  ;;  %v13130_v37 = vpop.permute.xlu0 %13129  ;;  %15563 = vrot.lane.b32.xlu1 %v29875_v55, %s27425_s23  ;;  %26605 = vmatmul.mubr.msk.f32.vlgmr.msra.gmra.mxu0 %vm248_vm2, %v27336_v2 }
 0x354   : > { %v9787_v43 = vadd.f32 %v9711_v16, %v9611_v24  ;;  %v13134_v36 = vsel %vm32832_vm12, %v13128_v20, %v13130_v37  ;;  %13383 = vmatprep.mubr.f32.mxu0 %v32713_v51  ;;  %vm32835_vm12 = vmmov %vm32834_vm13  ;;  %v30174_v24 = vld [vmem:[%s27482_s17 + $0x40] sm:$0xff] }
 0x355   : > { %v9713_v44 = vpop.f32.mrf.mxu0  ;;  %26606 = vmatprep.subr.msk.mxu1 %vm252_vm1, %v13134_v36  ;;  %v13306_v35 = vpop.permute.xlu1 %13305  ;;  %vm32836_vm11 = vmmov %vm32835_vm12 }
 0x356   : > { %v9791_v53 = vadd.f32 %v9787_v43, %v32833_v21  ;;  %v9788_v19 = vadd.f32 %v9713_v44, %v9612_v58  ;;  %26607 = vmatpush1.msk.msra.mxu1 %vm252_vm1, %v13133_v33  ;;  %15395 = vrot.lane.b32.xlu0 %v15381_v15, %s32706_s22 }
 0x357   : > { %v9782_v46 = vpop.f32.mrf.mxu1  ;;  %v13300_v62 = vpop.permute.xlu0 %13299  ;;  %15567 = vrot.lane.b32.xlu1 %v29902_v57, %s27425_s23  ;;  %26608 = vmatmul.mubr.msk.f32.vlgmr.msra.gmra.mxu1 %vm248_vm2, %v27336_v2  ;;  %v16085_v2 = vld [vmem:[%s27482_s17 + $0x48] sm:$0xf] }
 0x358   : > { %9795 = vst [vmem:[%s29097_s14 + $0x20] sm:$0xff] %v9791_v53  ;;  %v9792_v32 = vadd.f32 %v9788_v19, %v32833_v21  ;;  %v9789_v5 = vadd.f32 %v9782_v46, %v9613_v8  ;;  %v13307_v50 = vsel %vm32834_vm13, %v13298_v29, %v13300_v62  ;;  %v13308_v45 = vsel %vm32835_vm12, %v13300_v62, %v13302_v48  ;;  %vm32837_vm13 = vmmov %vm32836_vm11  ;;  %v27340_v8 = vld [vmem:[%s32641_s1 + $0xb8] sm:$0xff]  ;;  %v27341_v62 = vld [vmem:[%s32641_s1 + $0xc0] sm:$0xff] }
 0x359   : > { %13454 = vmatprep.mubr.f32.mxu1 %v32713_v51  ;;  %v9784_v54 = vpop.f32.mrf.mxu1  ;;  %26609 = vmatprep.subr.msk.mxu0 %vm252_vm1, %v13308_v45  ;;  %v13476_v60 = vpop.permute.xlu1 %13475  ;;  %vm32838_vm12 = vcmask 834560  }
 0x35a   : > { %9796 = vst [vmem:[%s29097_s14 + $0x28] sm:$0xff] %v9792_v32  ;;  %v9793_v18 = vadd.f32 %v9789_v5, %v32833_v21  ;;  %v9790_v12 = vadd.f32 %v9784_v54, %v9614_v63  ;;  %26610 = vmatpush1.msk.msra.mxu0 %vm252_vm1, %v13307_v50  ;;  %15565 = vrot.lane.b32.xlu0 %v29889_v17, %s27425_s23  ;;  %v16261_v63 = vld [vmem:[%s27482_s17 + $0x48] sm:$0xf] }
 0x35b   : > { %v13304_v7 = vpop.permute.xlu0 %13303  ;;  %15571 = vrot.lane.b32.xlu1 %v15557_v23, %s27425_s23  ;;  %26611 = vmatmul.mubr.msk.f32.vlgmr.msra.gmra.mxu0 %vm248_vm2, %v27337_v0 }
 0x35c   : > { %9797 = vst [vmem:[%s29097_s14 + $0x30] sm:$0xff] %v9793_v18  ;;  %v9794_v40 = vadd.f32 %v9790_v12, %v32833_v21  ;;  %v13309_v1 = vsel %vm32836_vm11, %v13302_v48, %v13304_v7  ;;  %v13310_v11 = vsel %vm32837_vm13, %v13304_v7, %v13306_v35  ;;  %13559 = vmatprep.mubr.f32.mxu0 %v32713_v51  ;;  %vm32839_vm11 = vmmov %vm32838_vm12 }
 0x35d   : > { %26612 = vmatprep.subr.msk.mxu1 %vm252_vm1, %v13310_v11  ;;  %v13480_v22 = vpop.permute.xlu1 %13479  ;;  %vm32840_vm13 = vmmov %vm32839_vm11  ;;  %v30185_v48 = vcombine.high %v30174_v24, %v30174_v24 }
 0x35e   : > { %9798 = vst [vmem:[%s29097_s14 + $0x38] sm:$0xff] %v9794_v40  ;;  %26613 = vmatpush1.msk.msra.mxu1 %vm252_vm1, %v13309_v1  ;;  %15569 = vrot.lane.b32.xlu0 %v29917_v9, %s27425_s23 }
 0x35f   : > { %v13474_v6 = vpop.permute.xlu0 %13473  ;;  %15741 = vrot.lane.b32.xlu1 %v29889_v17, %s32702_s24  ;;  %26614 = vmatmul.mubr.msk.f32.vlgmr.msra.gmra.mxu1 %vm248_vm2, %v27337_v0  ;;  %v30238_v23 = vpop.f32.mrf.mxu0 }
 0x360   : > { %13630 = vmatprep.mubr.f32.mxu1 %v32713_v51  ;;  %v13483_v3 = vsel %vm32839_vm11, %v13474_v6, %v13476_v60  ;;  %v16437_v6 = vld [vmem:[%s27482_s17 + $0x48] sm:$0xf] }
 0x361   : > { %v13650_v30 = vpop.permute.xlu1 %13649  ;;  %v30247_v12 = vpop.f32.mrf.mxu0 }
 0x362   : > { %15739 = vrot.lane.b32.xlu0 %v29875_v55, %s32702_s24 }
 0x363   : > { %v13478_v49 = vpop.permute.xlu0 %13477  ;;  %15745 = vrot.lane.b32.xlu1 %v29917_v9, %s32702_s24 }
 0x364   : > { %v13484_v56 = vsel %vm32838_vm12, %v13476_v60, %v13478_v49  ;;  %vm32841_vm12 = vmmov %vm32839_vm11  ;;  %vm32842_vm11 = vcmask 826368   ;;  %v30243_v60 = vpop.f32.mrf.mxu1 }
 0x365   : > { %26615 = vmatprep.subr.msk.mxu0 %vm252_vm1, %v13484_v56  ;;  %v13654_v61 = vpop.permute.xlu1 %13653  ;;  %v13485_v34 = vsel %vm32841_vm12, %v13478_v49, %v13480_v22  ;;  %vm32844_vm12 = vmmov %vm32842_vm11 }
 0x366   : > { %26616 = vmatpush1.msk.msra.mxu0 %vm252_vm1, %v13483_v3  ;;  %15743 = vrot.lane.b32.xlu0 %v29902_v57, %s32702_s24  ;;  %v30255_v1 = vpop.f32.mrf.mxu1 }
 0x367   : > { %v13482_v20 = vpop.permute.xlu0 %13481  ;;  %15915 = vrot.lane.b32.xlu1 %v29875_v55, %s32704_s25  ;;  %26617 = vmatmul.mubr.msk.f32.vlgmr.msra.gmra.mxu0 %vm248_vm2, %v27338_v27 }
 0x368   : > { %v13486_v31 = vsel %vm32840_vm13, %v13480_v22, %v13482_v20  ;;  %13735 = vmatprep.mubr.f32.mxu0 %v32713_v51  ;;  %vm32843_vm13 = vmmov %vm32842_vm11  ;;  %v27342_v22 = vld [vmem:[%s32641_s1 + $0xc8] sm:$0xff] }
 0x369   : > { %26618 = vmatprep.subr.msk.mxu1 %vm252_vm1, %v13486_v31  ;;  %v13658_v4 = vpop.permute.xlu1 %13657 }
 0x36a   : > { %26619 = vmatpush1.msk.msra.mxu1 %vm252_vm1, %v13485_v34  ;;  %15747 = vrot.lane.b32.xlu0 %v15733_v38, %s32702_s24  ;;  %v16613_v34 = vld [vmem:[%s27482_s17 + $0x48] sm:$0xf] }
 0x36b   : > { %v13652_v25 = vpop.permute.xlu0 %13651  ;;  %15919 = vrot.lane.b32.xlu1 %v29902_v57, %s32704_s25  ;;  %26620 = vmatmul.mubr.msk.f32.vlgmr.msra.gmra.mxu1 %vm248_vm2, %v27338_v27 }
 0x36c   : > { %v13659_v39 = vsel %vm32842_vm11, %v13650_v30, %v13652_v25  ;;  %v13660_v29 = vsel %vm32843_vm13, %v13652_v25, %v13654_v61  ;;  %13806 = vmatprep.mubr.f32.mxu1 %v32713_v51  ;;  %vm32845_vm13 = vcmask 818176   ;;  %v30264_v30 = vpop.f32.mrf.mxu0 }
 0x36d   : > { %26621 = vmatprep.subr.msk.mxu0 %vm252_vm1, %v13660_v29  ;;  %v13828_v13 = vpop.permute.xlu1 %13827 }
 0x36e   : > { %26622 = vmatpush1.msk.msra.mxu0 %vm252_vm1, %v13659_v39  ;;  %15917 = vrot.lane.b32.xlu0 %v29889_v17, %s32704_s25  ;;  %v30277_v38 = vpop.f32.mrf.mxu0  ;;  %v27343_v39 = vld [vmem:[%s32641_s1 + $0xd0] sm:$0xff] }
 0x36f   : > { %v13656_v59 = vpop.permute.xlu0 %13655  ;;  %15923 = vrot.lane.b32.xlu1 %v15909_v26, %s32704_s25  ;;  %26623 = vmatmul.mubr.msk.f32.vlgmr.msra.gmra.mxu0 %vm248_vm2, %v27339_v41 }
 0x370   : > { %v13661_v14 = vsel %vm32844_vm12, %v13654_v61, %v13656_v59  ;;  %v13662_v42 = vsel %vm32842_vm11, %v13656_v59, %v13658_v4  ;;  %13911 = vmatprep.mubr.f32.mxu0 %v32713_v51  ;;  %vm32846_vm12 = vmmov %vm32845_vm13  ;;  %v30272_v61 = vpop.f32.mrf.mxu1  ;;  %v30294_v26 = vpop.f32.mrf.mxu0 }
 0x371   : > { %26624 = vmatprep.subr.msk.mxu1 %vm252_vm1, %v13662_v42  ;;  %v13832_v52 = vpop.permute.xlu1 %13831  ;;  %vm32847_vm11 = vmmov %vm32846_vm12 }
 0x372   : > { %26625 = vmatpush1.msk.msra.mxu1 %vm252_vm1, %v13661_v14  ;;  %15921 = vrot.lane.b32.xlu0 %v29917_v9, %s32704_s25  ;;  %v30287_v25 = vpop.f32.mrf.mxu1 }
 0x373   : > { %v13826_v47 = vpop.permute.xlu0 %13825  ;;  %16093 = vrot.lane.b32.xlu1 %v29917_v9, %s32703_s26  ;;  %26626 = vmatmul.mubr.msk.f32.vlgmr.msra.gmra.mxu1 %vm248_vm2, %v27339_v41 }
 0x374   : > { %13982 = vmatprep.mubr.f32.mxu1 %v32713_v51  ;;  %v13835_v16 = vsel %vm32846_vm12, %v13826_v47, %v13828_v13  ;;  %vm32849_vm12 = vcmask 687104   ;;  %v30303_v14 = vpop.f32.mrf.mxu1 }
 0x375   : > { %v14002_v10 = vpop.permute.xlu1 %14001 }
 0x376   : > { %16091 = vrot.lane.b32.xlu0 %v29902_v57, %s32703_s26 }
 0x377   : > { %v13830_v58 = vpop.permute.xlu0 %13829  ;;  %16097 = vrot.lane.b32.xlu1 %v30185_v48, %s32703_s26 }
 0x378   : > { %v13836_v28 = vsel %vm32845_vm13, %v13828_v13, %v13830_v58  ;;  %vm32848_vm13 = vmmov %vm32847_vm11 }
 0x379   : > { %26627 = vmatprep.subr.msk.mxu0 %vm252_vm1, %v13836_v28  ;;  %v14006_v37 = vpop.permute.xlu1 %14005  ;;  %v13837_v36 = vsel %vm32848_vm13, %v13830_v58, %v13832_v52 }
 0x37a   : > { %26628 = vmatpush1.msk.msra.mxu0 %vm252_vm1, %v13835_v16  ;;  %16095 = vrot.lane.b32.xlu0 %v30174_v24, %s32703_s26 }
 0x37b   : > { %v13834_v15 = vpop.permute.xlu0 %13833  ;;  %16267 = vrot.lane.b32.xlu1 %v29902_v57, %s32697_s27  ;;  %26629 = vmatmul.mubr.msk.f32.vlgmr.msra.gmra.mxu0 %vm248_vm2, %v27340_v8 }
 0x37c   : > { %v13838_v43 = vsel %vm32847_vm11, %v13832_v52, %v13834_v15  ;;  %14087 = vmatprep.mubr.f32.mxu0 %v32713_v51  ;;  %vm32850_vm11 = vmmov %vm32849_vm12  ;;  %v30308_v52 = vpop.f32.mrf.mxu0 }
 0x37d   : > { %26630 = vmatprep.subr.msk.mxu1 %vm252_vm1, %v13838_v43  ;;  %v14010_v33 = vpop.permute.xlu1 %14009  ;;  %vm32851_vm13 = vmmov %vm32850_vm11  ;;  %v27344_v43 = vld [vmem:[%s32641_s1 + $0x8] sm:$0xff] }
 0x37e   : > { %26631 = vmatpush1.msk.msra.mxu1 %vm252_vm1, %v13837_v36  ;;  %16099 = vrot.lane.b32.xlu0 %v16085_v2, %s32703_s26  ;;  %v30317_v28 = vpop.f32.mrf.mxu0  ;;  %v16789_v36 = vld [vmem:[%s27482_s17 + $0x48] sm:$0xf] }
 0x37f   : > { %v14004_v44 = vpop.permute.xlu0 %14003  ;;  %16271 = vrot.lane.b32.xlu1 %v30174_v24, %s32697_s27  ;;  %26632 = vmatmul.mubr.msk.f32.vlgmr.msra.gmra.mxu1 %vm248_vm2, %v27340_v8 }
 0x380   : > { %v14011_v35 = vsel %vm32849_vm12, %v14002_v10, %v14004_v44  ;;  %v14012_v53 = vsel %vm32850_vm11, %v14004_v44, %v14006_v37  ;;  %14158 = vmatprep.mubr.f32.mxu1 %v32713_v51  ;;  %vm32852_vm12 = vmmov %vm32850_vm11  ;;  %v30313_v10 = vpop.f32.mrf.mxu1  ;;  %vm32865_vm11 = vcmask 482304  }
 0x381   : > { %26633 = vmatprep.subr.msk.mxu0 %vm252_vm1, %v14012_v53  ;;  %v14180_v19 = vpop.permute.xlu1 %14179 }
 0x382   : > { %26634 = vmatpush1.msk.msra.mxu0 %vm252_vm1, %v14011_v35  ;;  %16269 = vrot.lane.b32.xlu0 %v29917_v9, %s32697_s27  ;;  %v30325_v2 = vpop.f32.mrf.mxu1 }
 0x383   : > { %v14008_v46 = vpop.permute.xlu0 %14007  ;;  %16275 = vrot.lane.b32.xlu1 %v16261_v63, %s32697_s27  ;;  %26635 = vmatmul.mubr.msk.f32.vlgmr.msra.gmra.mxu0 %vm248_vm2, %v27341_v62 }
 0x384   : > { %v14013_v32 = vsel %vm32851_vm13, %v14006_v37, %v14008_v46  ;;  %v14014_v5 = vsel %vm32852_vm12, %v14008_v46, %v14010_v33  ;;  %14263 = vmatprep.mubr.f32.mxu0 %v32713_v51  ;;  %v30334_v33 = vpop.f32.mrf.mxu0  ;;  %v30346_v63 = vpop.f32.mrf.mxu1  ;;  %vm32866_vm13 = vmmov %vm32865_vm11 }
 0x385   : > { %26636 = vmatprep.subr.msk.mxu1 %vm252_vm1, %v14014_v5  ;;  %v14184_v50 = vpop.permute.xlu1 %14183  ;;  %vm32867_vm12 = vmmov %vm32865_vm11 }
 0x386   : > { %26637 = vmatpush1.msk.msra.mxu1 %vm252_vm1, %v14013_v32  ;;  %16273 = vrot.lane.b32.xlu0 %v30185_v48, %s32697_s27  ;;  %v16965_v32 = vld [vmem:[%s27482_s17 + $0x48] sm:$0xf]  ;;  %s32855_s27 = smov 24  }
 0x387   : > { %v14178_v45 = vpop.permute.xlu0 %14177  ;;  %16447 = vrot.lane.b32.xlu1 %v30174_v24, %s32695_s28  ;;  %26638 = vmatmul.mubr.msk.f32.vlgmr.msra.gmra.mxu1 %vm248_vm2, %v27341_v62 }
 0x388   : > { %14334 = vmatprep.mubr.f32.mxu1 %v32713_v51  ;;  %v14187_v0 = vsel %vm4714_vm14, %v14178_v45, %v14180_v19 }
 0x389   : > { %v14354_v54 = vpop.permute.xlu1 %14353 }
 0x38a   : > { %16445 = vrot.lane.b32.xlu0 %v29917_v9, %s32695_s28 }
 0x38b   : > { %v14182_v18 = vpop.permute.xlu0 %14181  ;;  %16449 = vrot.lane.b32.xlu1 %v30185_v48, %s32695_s28 }
 0x38c   : > { %v14188_v7 = vsel %vm4714_vm14, %v14180_v19, %v14182_v18  ;;  %v14189_v56 = vsel %vm4714_vm14, %v14182_v18, %v14184_v50 }
 0x38d   : > { %26639 = vmatprep.subr.msk.mxu0 %vm252_vm1, %v14188_v7  ;;  %v14358_v40 = vpop.permute.xlu1 %14357 }
 0x38e   : > { %26640 = vmatpush1.msk.msra.mxu0 %vm252_vm1, %v14187_v0  ;;  %16443 = vrot.lane.b32.xlu0 %v29902_v57, %s32695_s28 }
 0x38f   : > { %v14186_v11 = vpop.permute.xlu0 %14185  ;;  %16621 = vrot.lane.b32.xlu1 %v29917_v9, %s32693_s29  ;;  %26641 = vmatmul.mubr.msk.f32.vlgmr.msra.gmra.mxu0 %vm248_vm2, %v27342_v22 }
 0x390   : > { %v14190_v49 = vsel %vm4714_vm14, %v14184_v50, %v14186_v11  ;;  %14439 = vmatprep.mubr.f32.mxu0 %v32713_v51  ;;  %v30368_v50 = vpop.f32.mrf.mxu1 }
 0x391   : > { %26642 = vmatprep.subr.msk.mxu1 %vm252_vm1, %v14190_v49  ;;  %v14362_v3 = vpop.permute.xlu1 %14361 }
 0x392   : > { %26643 = vmatpush1.msk.msra.mxu1 %vm252_vm1, %v14189_v56  ;;  %16451 = vrot.lane.b32.xlu0 %v16437_v6, %s32695_s28  ;;  %v30386_v11 = vpop.f32.mrf.mxu1  ;;  %s32932_s28 = smov 58  }
 0x393   : > { %v14356_v20 = vpop.permute.xlu0 %14355  ;;  %16619 = vrot.lane.b32.xlu1 %v29902_v57, %s32693_s29  ;;  %26644 = vmatmul.mubr.msk.f32.vlgmr.msra.gmra.mxu1 %vm248_vm2, %v27342_v22 }
 0x394   : > { %v14363_v27 = vsel %vm4894_vm15, %v14354_v54, %v14356_v20  ;;  %v14364_v31 = vsel %vm4894_vm15, %v14356_v20, %v14358_v40  ;;  %14510 = vmatprep.mubr.f32.mxu1 %v32713_v51  ;;  %v30398_v56 = vpop.f32.mrf.mxu1 }
 0x395   : > { %26645 = vmatprep.subr.msk.mxu0 %vm252_vm1, %v14364_v31  ;;  %v14540_v4 = vpop.permute.xlu1 %14539 }
 0x396   : > { %26646 = vmatpush1.msk.msra.mxu0 %vm252_vm1, %v14363_v27  ;;  %16623 = vrot.lane.b32.xlu0 %v30174_v24, %s32693_s29 }
 0x397   : > { %26647 = vmatmul.mubr.msk.f32.vlgmr.msra.gmra.mxu0 %vm248_vm2, %v27343_v39  ;;  %v14360_v29 = vpop.permute.xlu0 %14359  ;;  %16627 = vrot.lane.b32.xlu1 %v16613_v34, %s32693_s29 }
 0x398   : > { %v14365_v13 = vsel %vm4894_vm15, %v14358_v40, %v14360_v29  ;;  %v14366_v59 = vsel %vm4894_vm15, %v14360_v29, %v14362_v3  ;;  %14623 = vmatprep.mubr.f32.mxu0 %v32713_v51  ;;  %v27346_v40 = vld [vmem:[%s32641_s1 + $0x10] sm:$0xff]  ;;  %v17141_v29 = vld [vmem:[%s27482_s17 + $0x48] sm:$0xf] }
 0x399   : > { %26648 = vmatprep.subr.msk.mxu1 %vm252_vm1, %v14366_v59  ;;  %v14544_v41 = vpop.permute.xlu1 %14543 }
 0x39a   : > { %26649 = vmatpush1.msk.msra.mxu1 %vm252_vm1, %v14365_v13  ;;  %16625 = vrot.lane.b32.xlu0 %v30185_v48, %s32693_s29  ;;  %v27347_v13 = vld [vmem:[%s32641_s1 + $0x18] sm:$0xff] }
 0x39b   : > { %26650 = vmatmul.mubr.msk.f32.vlgmr.msra.gmra.mxu1 %vm248_vm2, %v27343_v39  ;;  %v14538_v42 = vpop.permute.xlu0 %14537  ;;  %16799 = vrot.lane.b32.xlu1 %v30174_v24, %s32853_s19 }
 0x39c   : > { %14694 = vmatprep.mubr.f32.mxu1 %v32713_v51  ;;  %v14547_v37 = vsel %vm243_vm0, %v14538_v42, %v14540_v4 }
 0x39d   : > { %v14860_v47 = vpop.permute.xlu1 %14859 }
 0x39e   : > { %16797 = vrot.lane.b32.xlu0 %v29917_v9, %s32853_s19 }
 0x39f   : > { %v14542_v58 = vpop.permute.xlu0 %14541  ;;  %16801 = vrot.lane.b32.xlu1 %v30185_v48, %s32853_s19 }
 0x3a0   : > { %v14548_v16 = vsel %vm243_vm0, %v14540_v4, %v14542_v58  ;;  %v14549_v35 = vsel %vm243_vm0, %v14542_v58, %v14544_v41  ;;  %v30410_v4 = vpop.f32.mrf.mxu1 }
 0x3a1   : > { %26651 = vmatprep.subr.msk.mxu0 %vm252_vm1, %v14548_v16  ;;  %v14864_v15 = vpop.permute.xlu1 %14863 }
 0x3a2   : > { %26652 = vmatpush1.msk.msra.mxu0 %vm252_vm1, %v14547_v37  ;;  %16795 = vrot.lane.b32.xlu0 %v29902_v57, %s32853_s19 }
 0x3a3   : > { %v14546_v8 = vpop.permute.xlu0 %14545  ;;  %16973 = vrot.lane.b32.xlu1 %v29917_v9, %s32854_s15  ;;  %26653 = vmatmul.mubr.msk.f32.vlgmr.msra.gmra.mxu0 %vm248_vm2, %v27344_v43 }
 0x3a4   : > { %v14550_v44 = vsel %vm243_vm0, %v14544_v41, %v14546_v8  ;;  %26657 = vmatprep.subr.msk.mxu0 %vm252_vm1, %v29889_v17  ;;  %14773 = vmatprep.mubr.f32.mxu0 %v32713_v51  ;;  %v30351_v17 = vpop.f32.mrf.mxu0  ;;  %v17317_v8 = vld [vmem:[%s27482_s17 + $0x48] sm:$0xf] }
 0x3a5   : > { %26654 = vmatprep.subr.msk.mxu1 %vm252_vm1, %v14550_v44  ;;  %v14868_v53 = vpop.permute.xlu1 %14867  ;;  %26658 = vmatpush1.msk.msra.mxu0 %vm252_vm1, %v29875_v55  ;;  %v27345_v55 = vld [vmem:[%s32641_s1] sm:$0xff]  ;;  %v17491_v44 = vld [vmem:[%s27482_s17 + $0x38] sm:$0xff] }
 0x3a6   : > { %26655 = vmatpush1.msk.msra.mxu1 %vm252_vm1, %v14549_v35  ;;  %16803 = vrot.lane.b32.xlu0 %v16789_v36, %s32853_s19  ;;  %v30372_v54 = vpop.f32.mrf.mxu0  ;;  %v27348_v35 = vld [vmem:[%s32641_s1 + $0x20] sm:$0xff] }
 0x3a7   : > { %v14862_v19 = vpop.permute.xlu0 %14861  ;;  %16971 = vrot.lane.b32.xlu1 %v29902_v57, %s32854_s15  ;;  %26656 = vmatmul.mubr.msk.f32.vlgmr.msra.gmra.mxu1 %vm248_vm2, %v27344_v43 }
 0x3a8   : > { %v14869_v46 = vsel %vm574_vm3, %v14860_v47, %v14862_v19  ;;  %v14870_v62 = vsel %vm574_vm3, %v14862_v19, %v14864_v15  ;;  %26659 = vmatmul.mubr.msk.f32.vlgmr.msra.gmra.mxu0 %vm248_vm2, %v27345_v55  ;;  %26660 = vmatprep.subr.msk.mxu1 %vm252_vm1, %v29917_v9  ;;  %v30391_v6 = vpop.f32.mrf.mxu0 }
 0x3a9   : > { %26663 = vmatprep.subr.msk.mxu0 %vm252_vm1, %v14870_v62  ;;  %v15038_v5 = vpop.permute.xlu1 %15037  ;;  %26661 = vmatpush1.msk.msra.mxu1 %vm252_vm1, %v29902_v57 }
 0x3aa   : > { %26664 = vmatpush1.msk.msra.mxu0 %vm252_vm1, %v14869_v46  ;;  %16975 = vrot.lane.b32.xlu0 %v30174_v24, %s32854_s15  ;;  %v30402_v20 = vpop.f32.mrf.mxu0 }
 0x3ab   : > { %v14866_v45 = vpop.permute.xlu0 %14865  ;;  %14844 = vmatprep.mubr.f32.mxu1 %v32713_v51  ;;  %16979 = vrot.lane.b32.xlu1 %v16965_v32, %s32854_s15 }
 0x3ac   : > { %v14871_v18 = vsel %vm574_vm3, %v14864_v15, %v14866_v45  ;;  %v14872_v7 = vsel %vm574_vm3, %v14866_v45, %v14868_v53  ;;  %26662 = vmatmul.mubr.msk.f32.vlgmr.msra.gmra.mxu1 %vm248_vm2, %v27345_v55  ;;  %14945 = vmatprep.mubr.f32.mxu0 %v32713_v51  ;;  %v30419_v59 = vpop.f32.mrf.mxu0  ;;  %v17497_v55 = vcombine.high %v17491_v44, %v17491_v44 }
 0x3ad   : > { %26666 = vmatprep.subr.msk.mxu1 %vm252_vm1, %v14872_v7  ;;  %v15042_v0 = vpop.permute.xlu1 %15041  ;;  %26665 = vmatmul.mubr.msk.f32.vlgmr.msra.gmra.mxu0 %vm248_vm2, %v27346_v40 }
 0x3ae   : > { %26667 = vmatpush1.msk.msra.mxu1 %vm252_vm1, %v14871_v18  ;;  %16977 = vrot.lane.b32.xlu0 %v30185_v48, %s32854_s15  ;;  %v30432_v16 = vpop.f32.mrf.mxu0  ;;  %v30467_v18 = vld [vmem:[%s27482_s17 + $0x44] sm:$0xff] }
 0x3af   : > { %v15036_v22 = vpop.permute.xlu0 %15035  ;;  %17151 = vrot.lane.b32.xlu1 %v30174_v24, %s32855_s27  ;;  %15016 = vmatprep.mubr.f32.mxu1 %v32713_v51 }
 0x3b0   : > { %26668 = vmatmul.mubr.msk.f32.vlgmr.msra.gmra.mxu1 %vm248_vm2, %v27346_v40  ;;  %15121 = vmatprep.mubr.f32.mxu0 %v32713_v51  ;;  %v15045_v31 = vsel %vm754_vm4, %v15036_v22, %v15038_v5  ;;  %v30450_v53 = vpop.f32.mrf.mxu0 }
 0x3b1   : > { %v15212_v49 = vpop.permute.xlu1 %15211  ;;  %15192 = vmatprep.mubr.f32.mxu1 %v32713_v51 }
 0x3b2   : > { %17149 = vrot.lane.b32.xlu0 %v29917_v9, %s32855_s27  ;;  %v30464_v45 = vpop.f32.mrf.mxu0 }
 0x3b3   : > { %v15040_v3 = vpop.permute.xlu0 %15039  ;;  %17153 = vrot.lane.b32.xlu1 %v30185_v48, %s32855_s27 }
 0x3b4   : > { %v15046_v27 = vsel %vm754_vm4, %v15038_v5, %v15040_v3  ;;  %v15047_v42 = vsel %vm754_vm4, %v15040_v3, %v15042_v0  ;;  %v30479_v22 = vpop.f32.mrf.mxu0 }
 0x3b5   : > { %26669 = vmatprep.subr.msk.mxu0 %vm252_vm1, %v15046_v27  ;;  %v15216_v34 = vpop.permute.xlu1 %15215 }
 0x3b6   : > { %26670 = vmatpush1.msk.msra.mxu0 %vm252_vm1, %v15045_v31  ;;  %17147 = vrot.lane.b32.xlu0 %v29902_v57, %s32855_s27 }
 0x3b7   : > { %v15044_v39 = vpop.permute.xlu0 %15043  ;;  %17325 = vrot.lane.b32.xlu1 %v29917_v9, %s32774_s13  ;;  %26671 = vmatmul.mubr.msk.f32.vlgmr.msra.gmra.mxu0 %vm248_vm2, %v27347_v13  ;;  %v30427_v9 = vpop.f32.mrf.mxu1 }
 0x3b8   : > { %v15048_v41 = vsel %vm754_vm4, %v15042_v0, %v15044_v39  ;;  %15297 = vmatprep.mubr.f32.mxu0 %v32713_v51  ;;  %v27349_v39 = vld [vmem:[%s32641_s1 + $0x28] sm:$0xff] }
 0x3b9   : > { %26672 = vmatprep.subr.msk.mxu1 %vm252_vm1, %v15048_v41  ;;  %v15220_v47 = vpop.permute.xlu1 %15219 }
 0x3ba   : > { %26673 = vmatpush1.msk.msra.mxu1 %vm252_vm1, %v15047_v42  ;;  %17155 = vrot.lane.b32.xlu0 %v17141_v29, %s32855_s27  ;;  %v30495_v29 = vpop.f32.mrf.mxu0 }
 0x3bb   : > { %v15214_v58 = vpop.permute.xlu0 %15213  ;;  %17323 = vrot.lane.b32.xlu1 %v29902_v57, %s32774_s13  ;;  %26674 = vmatmul.mubr.msk.f32.vlgmr.msra.gmra.mxu1 %vm248_vm2, %v27347_v13  ;;  %v30442_v57 = vpop.f32.mrf.mxu1 }
 0x3bc   : > { %v15221_v37 = vsel %vm934_vm5, %v15212_v49, %v15214_v58  ;;  %v15222_v15 = vsel %vm934_vm5, %v15214_v58, %v15216_v34  ;;  %15368 = vmatprep.mubr.f32.mxu1 %v32713_v51 }
 0x3bd   : > { %26675 = vmatprep.subr.msk.mxu0 %vm252_vm1, %v15222_v15  ;;  %v15390_v43 = vpop.permute.xlu1 %15389  ;;  %v30459_v32 = vpop.f32.mrf.mxu1 }
 0x3be   : > { %26676 = vmatpush1.msk.msra.mxu0 %vm252_vm1, %v15221_v37  ;;  %17327 = vrot.lane.b32.xlu0 %v30174_v24, %s32774_s13  ;;  %v30508_v37 = vld [vmem:[%s27482_s17 + $0x4c] sm:$0xff]  ;;  %v30511_v15 = vpop.f32.mrf.mxu0 }
 0x3bf   : > { %v15218_v36 = vpop.permute.xlu0 %15217  ;;  %17331 = vrot.lane.b32.xlu1 %v17317_v8, %s32774_s13  ;;  %26677 = vmatmul.mubr.msk.f32.vlgmr.msra.gmra.mxu0 %vm248_vm2, %v27348_v35  ;;  %v30471_v0 = vpop.f32.mrf.mxu1 }
 0x3c0   : > { %v15223_v19 = vsel %vm934_vm5, %v15216_v34, %v15218_v36  ;;  %v15224_v46 = vsel %vm934_vm5, %v15218_v36, %v15220_v47  ;;  %15473 = vmatprep.mubr.f32.mxu0 %v32713_v51  ;;  %v17493_v34 = vld [vmem:[%s27482_s17 + $0x48] sm:$0xf]  ;;  %v17669_v36 = vld [vmem:[%s27482_s17 + $0x54] sm:$0xf] }
 0x3c1   : > { %26678 = vmatprep.subr.msk.mxu1 %vm252_vm1, %v15224_v46  ;;  %v15394_v62 = vpop.permute.xlu1 %15393  ;;  %v30486_v31 = vpop.f32.mrf.mxu1 }
 0x3c2   : > { %26679 = vmatpush1.msk.msra.mxu1 %vm252_vm1, %v15223_v19  ;;  %17329 = vrot.lane.b32.xlu0 %v30185_v48, %s32774_s13 }
 0x3c3   : > { %v15388_v5 = vpop.permute.xlu0 %15387  ;;  %17503 = vrot.lane.b32.xlu1 %v30174_v24, %s32775_s5  ;;  %26680 = vmatmul.mubr.msk.f32.vlgmr.msra.gmra.mxu1 %vm248_vm2, %v27348_v35  ;;  %v30477_v24 = vcombine.high %v30467_v18, %v30467_v18  ;;  %v30503_v47 = vpop.f32.mrf.mxu1  ;;  %v30521_v35 = vcombine.high %v30508_v37, %v30508_v37 }
 0x3c4   : > { %15544 = vmatprep.mubr.f32.mxu1 %v32713_v51  ;;  %v15397_v3 = vsel %vm1114_vm6, %v15388_v5, %v15390_v43 }
 0x3c5   : > { %v15564_v7 = vpop.permute.xlu1 %15563  ;;  %v30525_v19 = vpop.f32.mrf.mxu1 }
 0x3c6   : > { %17501 = vrot.lane.b32.xlu0 %v17497_v55, %s32775_s5  ;;  %v30532_v55 = vpop.f32.mrf.mxu0 }
 0x3c7   : > { %v15392_v40 = vpop.permute.xlu0 %15391  ;;  %17505 = vrot.lane.b32.xlu1 %v30185_v48, %s32775_s5 }
 0x3c8   : > { %v15398_v49 = vsel %vm1114_vm6, %v15390_v43, %v15392_v40  ;;  %v15399_v41 = vsel %vm1114_vm6, %v15392_v40, %v15394_v62 }
 0x3c9   : > { %26681 = vmatprep.subr.msk.mxu0 %vm252_vm1, %v15398_v49  ;;  %v15568_v27 = vpop.permute.xlu1 %15567  ;;  %v30541_v49 = vpop.f32.mrf.mxu1 }
 0x3ca   : > { %26682 = vmatpush1.msk.msra.mxu0 %vm252_vm1, %v15397_v3  ;;  %17499 = vrot.lane.b32.xlu0 %v17491_v44, %s32775_s5 }
 0x3cb   : > { %v15396_v48 = vpop.permute.xlu0 %15395  ;;  %17677 = vrot.lane.b32.xlu1 %v30477_v24, %s32776_s20  ;;  %26683 = vmatmul.mubr.msk.f32.vlgmr.msra.gmra.mxu0 %vm248_vm2, %v27349_v39 }
 0x3cc   : > { %v15400_v13 = vsel %vm1114_vm6, %v15394_v62, %v15396_v48  ;;  %15649 = vmatprep.mubr.f32.mxu0 %v32713_v51  ;;  %v27350_v62 = vld [vmem:[%s32641_s1 + $0x30] sm:$0xff] }
 0x3cd   : > { %26684 = vmatprep.subr.msk.mxu1 %vm252_vm1, %v15400_v13  ;;  %v15572_v42 = vpop.permute.xlu1 %15571 }
 0x3ce   : > { %26685 = vmatpush1.msk.msra.mxu1 %vm252_vm1, %v15399_v41  ;;  %17507 = vrot.lane.b32.xlu0 %v17493_v34, %s32775_s5  ;;  %v30551_v34 = vpop.f32.mrf.mxu1 }
 0x3cf   : > { %v15566_v58 = vpop.permute.xlu0 %15565  ;;  %17675 = vrot.lane.b32.xlu1 %v30467_v18, %s32776_s20  ;;  %26686 = vmatmul.mubr.msk.f32.vlgmr.msra.gmra.mxu1 %vm248_vm2, %v27349_v39 }
 0x3d0   : > { %v15573_v8 = vsel %vm1294_vm7, %v15564_v7, %v15566_v58  ;;  %v15574_v43 = vsel %vm1294_vm7, %v15566_v58, %v15568_v27  ;;  %15720 = vmatprep.mubr.f32.mxu1 %v32713_v51 }
 0x3d1   : > { %26687 = vmatprep.subr.msk.mxu0 %vm252_vm1, %v15574_v43  ;;  %v15742_v44 = vpop.permute.xlu1 %15741 }
 0x3d2   : > { %26688 = vmatpush1.msk.msra.mxu0 %vm252_vm1, %v15573_v8  ;;  %17679 = vrot.lane.b32.xlu0 %v30508_v37, %s32776_s20  ;;  %v30563_v8 = vpop.f32.mrf.mxu1 }
 0x3d3   : > { %v15570_v46 = vpop.permute.xlu0 %15569  ;;  %17683 = vrot.lane.b32.xlu1 %v17669_v36, %s32776_s20  ;;  %26689 = vmatmul.mubr.msk.f32.vlgmr.msra.gmra.mxu0 %vm248_vm2, %v27350_v62  ;;  %v17845_v36 = vld [vmem:[%s27482_s17 + $0x54] sm:$0xf] }
 0x3d4   : > { %v15575_v5 = vsel %vm1294_vm7, %v15568_v27, %v15570_v46  ;;  %v15576_v7 = vsel %vm1294_vm7, %v15570_v46, %v15572_v42  ;;  %15825 = vmatprep.mubr.f32.mxu0 %v32713_v51  ;;  %v30546_v27 = vpop.f32.mrf.mxu0  ;;  %v27351_v46 = vld [vmem:[%s32641_s1 + $0x38] sm:$0xff] }
 0x3d5   : > { %26690 = vmatprep.subr.msk.mxu1 %vm252_vm1, %v15576_v7  ;;  %v15746_v40 = vpop.permute.xlu1 %15745 }
 0x3d6   : > { %26691 = vmatpush1.msk.msra.mxu1 %vm252_vm1, %v15575_v5  ;;  %17681 = vrot.lane.b32.xlu0 %v30521_v35, %s32776_s20  ;;  %v30555_v13 = vpop.f32.mrf.mxu0 }
 0x3d7   : > { %v15740_v3 = vpop.permute.xlu0 %15739  ;;  %17855 = vrot.lane.b32.xlu1 %v30508_v37, %s32777_s6  ;;  %26692 = vmatmul.mubr.msk.f32.vlgmr.msra.gmra.mxu1 %vm248_vm2, %v27350_v62 }
 0x3d8   : > { %15896 = vmatprep.mubr.f32.mxu1 %v32713_v51  ;;  %v15749_v42 = vsel %vm1474_vm8, %v15740_v3, %v15742_v44  ;;  %v30580_v3 = vpop.f32.mrf.mxu1 }
 0x3d9   : > { %v15916_v48 = vpop.permute.xlu1 %15915  ;;  %32856 = vst [vmem:[#allocation3_spill] sm:$0xff] %v30580_v3  ;;  %v10048_v3 = vadd.f32 %v30277_v38, %v30247_v12 }
 0x3da   : > { %17853 = vrot.lane.b32.xlu0 %v30477_v24, %s32777_s6 }
 0x3db   : > { %v15744_v39 = vpop.permute.xlu0 %15743  ;;  %17857 = vrot.lane.b32.xlu1 %v30521_v35, %s32777_s6 }
 0x3dc   : > { %v15750_v41 = vsel %vm1474_vm8, %v15742_v44, %v15744_v39  ;;  %v30572_v44 = vpop.f32.mrf.mxu0  ;;  %v15751_v5 = vsel %vm1474_vm8, %v15744_v39, %v15746_v40  ;;  %v18021_v39 = vld [vmem:[%s27482_s17 + $0x54] sm:$0xf] }
 0x3dd   : > { %26693 = vmatprep.subr.msk.mxu0 %vm252_vm1, %v15750_v41  ;;  %v15920_v58 = vpop.permute.xlu1 %15919 }
 0x3de   : > { %26694 = vmatpush1.msk.msra.mxu0 %vm252_vm1, %v15749_v42  ;;  %17851 = vrot.lane.b32.xlu0 %v30467_v18, %s32777_s6  ;;  %v30585_v42 = vpop.f32.mrf.mxu0 }
 0x3df   : > { %v15748_v43 = vpop.permute.xlu0 %15747  ;;  %18029 = vrot.lane.b32.xlu1 %v30477_v24, %s32712_s11  ;;  %26695 = vmatmul.mubr.msk.f32.vlgmr.msra.gmra.mxu0 %vm248_vm2, %v27351_v46 }
 0x3e0   : > { %v15752_v62 = vsel %vm1474_vm8, %v15746_v40, %v15748_v43  ;;  %16001 = vmatprep.mubr.f32.mxu0 %v32713_v51 }
 0x3e1   : > { %26696 = vmatprep.subr.msk.mxu1 %vm252_vm1, %v15752_v62  ;;  %v15924_v7 = vpop.permute.xlu1 %15923  ;;  %v30595_v62 = vpop.f32.mrf.mxu1 }
 0x3e2   : > { %26697 = vmatpush1.msk.msra.mxu1 %vm252_vm1, %v15751_v5  ;;  %17859 = vrot.lane.b32.xlu0 %v17845_v36, %s32777_s6  ;;  %32857 = vst [vmem:[#allocation5_spill] sm:$0xff] %v30595_v62  ;;  %v30602_v5 = vpop.f32.mrf.mxu0 }
 0x3e3   : > { %v15918_v41 = vpop.permute.xlu0 %15917  ;;  %18027 = vrot.lane.b32.xlu1 %v30467_v18, %s32712_s11  ;;  %26698 = vmatmul.mubr.msk.f32.vlgmr.msra.gmra.mxu1 %vm248_vm2, %v27351_v46  ;;  %32858 = vst [vmem:[#allocation4_spill] sm:$0xff] %v30602_v5  ;;  %v18197_v5 = vld [vmem:[%s27482_s17 + $0x54] sm:$0xf] }
 0x3e4   : > { %v15925_v43 = vsel %vm1654_vm9, %v15916_v48, %v15918_v41  ;;  %v15926_v40 = vsel %vm1654_vm9, %v15918_v41, %v15920_v58  ;;  %16072 = vmatprep.mubr.f32.mxu1 %v32713_v51  ;;  %v27352_v48 = vld [vmem:[%s32641_s1 + $0x40] sm:$0xff] }
 0x3e5   : > { %26699 = vmatprep.subr.msk.mxu0 %vm252_vm1, %v15926_v40  ;;  %v16094_v36 = vpop.permute.xlu1 %16093 }
 0x3e6   : > { %26700 = vmatpush1.msk.msra.mxu0 %vm252_vm1, %v15925_v43  ;;  %18031 = vrot.lane.b32.xlu0 %v30508_v37, %s32712_s11 }
 0x3e7   : > { %v15922_v46 = vpop.permute.xlu0 %15921  ;;  %18035 = vrot.lane.b32.xlu1 %v18021_v39, %s32712_s11  ;;  %26701 = vmatmul.mubr.msk.f32.vlgmr.msra.gmra.mxu0 %vm248_vm2, %v27352_v48  ;;  %v30611_v39 = vpop.f32.mrf.mxu1 }
 0x3e8   : > { %v15927_v41 = vsel %vm1654_vm9, %v15920_v58, %v15922_v46  ;;  %v15928_v43 = vsel %vm1654_vm9, %v15922_v46, %v15924_v7  ;;  %16177 = vmatprep.mubr.f32.mxu0 %v32713_v51  ;;  %32859 = vst [vmem:[#allocation7_spill] sm:$0xff] %v30611_v39  ;;  %v30616_v58 = vpop.f32.mrf.mxu0 }
 0x3e9   : > { %26702 = vmatprep.subr.msk.mxu1 %vm252_vm1, %v15928_v43  ;;  %v16098_v40 = vpop.permute.xlu1 %16097  ;;  %32860 = vst [vmem:[#allocation6_spill] sm:$0xff] %v30616_v58  ;;  %v30621_v46 = vpop.f32.mrf.mxu1 }
 0x3ea   : > { %26703 = vmatpush1.msk.msra.mxu1 %vm252_vm1, %v15927_v41  ;;  %18033 = vrot.lane.b32.xlu0 %v30521_v35, %s32712_s11  ;;  %32861 = vst [vmem:[#allocation9_spill] sm:$0xff] %v30621_v46  ;;  %v30625_v43 = vpop.f32.mrf.mxu0 }
 0x3eb   : > { %v16092_v21 = vpop.permute.xlu0 %16091  ;;  %18207 = vrot.lane.b32.xlu1 %v30508_v37, %s32718_s4  ;;  %26704 = vmatmul.mubr.msk.f32.vlgmr.msra.gmra.mxu1 %vm248_vm2, %v27352_v48  ;;  %32862 = vst [vmem:[#allocation8_spill] sm:$0xff] %v30625_v43  ;;  %v30633_v62 = vpop.f32.mrf.mxu1  ;;  %v27353_v43 = vld [vmem:[%s32641_s1 + $0x48] sm:$0xff] }
 0x3ec   : > { %16248 = vmatprep.mubr.f32.mxu1 %v32713_v51  ;;  %v16101_v48 = vsel %vm1834_vm10, %v16092_v21, %v16094_v36  ;;  %32863 = vst [vmem:[#allocation11_spill] sm:$0xff] %v30633_v62  ;;  %v30642_v21 = vpop.f32.mrf.mxu0 }
 0x3ed   : > { %v16268_v7 = vpop.permute.xlu1 %16267  ;;  %32864 = vst [vmem:[#allocation10_spill] sm:$0xff] %v30642_v21  ;;  %v30654_v21 = vpop.f32.mrf.mxu1 }
 0x3ee   : > { %18205 = vrot.lane.b32.xlu0 %v30477_v24, %s32718_s4 }
 0x3ef   : > { %v16096_v41 = vpop.permute.xlu0 %16095  ;;  %18209 = vrot.lane.b32.xlu1 %v30521_v35, %s32718_s4 }
 0x3f0   : > { %v16102_v39 = vsel %vm1834_vm10, %v16094_v36, %v16096_v41  ;;  %v10046_v36 = vadd.f32 %v30264_v30, %v30238_v23  ;;  %v30659_v30 = vpop.f32.mrf.mxu0 }
 0x3f1   : > { %26705 = vmatprep.subr.msk.mxu0 %vm252_vm1, %v16102_v39  ;;  %v16272_v58 = vpop.permute.xlu1 %16271 }
 0x3f2   : > { %26706 = vmatpush1.msk.msra.mxu0 %vm252_vm1, %v16101_v48  ;;  %18203 = vrot.lane.b32.xlu0 %v30467_v18, %s32718_s4  ;;  %v16103_v48 = vsel %vm1834_vm10, %v16096_v41, %v16098_v40 }
 0x3f3   : > { %v16100_v46 = vpop.permute.xlu0 %16099  ;;  %18381 = vrot.lane.b32.xlu1 %v30477_v24, %s32721_s16  ;;  %26707 = vmatmul.mubr.msk.f32.vlgmr.msra.gmra.mxu0 %vm248_vm2, %v27353_v43 }
 0x3f4   : > { %v16104_v39 = vsel %vm1834_vm10, %v16098_v40, %v16100_v46  ;;  %16353 = vmatprep.mubr.f32.mxu0 %v32713_v51  ;;  %v10117_v40 = vadd.f32 %v30272_v61, %v30243_v60  ;;  %v10293_v46 = vadd.f32 %v30294_v26, %v10046_v36  ;;  %v30675_v60 = vpop.f32.mrf.mxu1  ;;  %v27354_v26 = vld [vmem:[%s32641_s1 + $0x50] sm:$0xff] }
 0x3f5   : > { %26708 = vmatprep.subr.msk.mxu1 %vm252_vm1, %v16104_v39  ;;  %v16276_v62 = vpop.permute.xlu1 %16275  ;;  %v10294_v39 = vadd.f32 %v30308_v52, %v10048_v3 }
 0x3f6   : > { %26709 = vmatpush1.msk.msra.mxu1 %vm252_vm1, %v16103_v48  ;;  %18211 = vrot.lane.b32.xlu0 %v18197_v5, %s32718_s4  ;;  %v18373_v5 = vld [vmem:[%s27482_s17 + $0x54] sm:$0xf] }
 0x3f7   : > { %v16270_v23 = vpop.permute.xlu0 %16269  ;;  %18379 = vrot.lane.b32.xlu1 %v30467_v18, %s32721_s16  ;;  %26710 = vmatmul.mubr.msk.f32.vlgmr.msra.gmra.mxu1 %vm248_vm2, %v27353_v43  ;;  %v10119_v43 = vadd.f32 %v30287_v25, %v30255_v1  ;;  %v10295_v1 = vadd.f32 %v30303_v14, %v10117_v40  ;;  %v10469_v25 = vadd.f32 %v30317_v28, %v10293_v46  ;;  %v30695_v14 = vpop.f32.mrf.mxu1 }
 0x3f8   : > { %v16277_v12 = vsel %vm32865_vm11, %v16268_v7, %v16270_v23  ;;  %v16278_v38 = vsel %vm32866_vm13, %v16270_v23, %v16272_v58  ;;  %16424 = vmatprep.mubr.f32.mxu1 %v32713_v51  ;;  %v30682_v7 = vpop.f32.mrf.mxu0  ;;  %v10470_v23 = vadd.f32 %v30334_v33, %v10294_v39  ;;  %vm32868_vm13 = vcmask 474112  }
 0x3f9   : > { %26711 = vmatprep.subr.msk.mxu0 %vm252_vm1, %v16278_v38  ;;  %v16448_v41 = vpop.permute.xlu1 %16447  ;;  %v10296_v48 = vadd.f32 %v30313_v10, %v10119_v43  ;;  %v10645_v10 = vadd.f32 %v30351_v17, %v10469_v25  ;;  %v30711_v38 = vpop.f32.mrf.mxu1 }
 0x3fa   : > { %26712 = vmatpush1.msk.msra.mxu0 %vm252_vm1, %v16277_v12  ;;  %18383 = vrot.lane.b32.xlu0 %v30508_v37, %s32721_s16  ;;  %v10646_v12 = vadd.f32 %v30372_v54, %v10470_v23 }
 0x3fb   : > { %v16274_v61 = vpop.permute.xlu0 %16273  ;;  %18387 = vrot.lane.b32.xlu1 %v18373_v5, %s32721_s16  ;;  %26713 = vmatmul.mubr.msk.f32.vlgmr.msra.gmra.mxu0 %vm248_vm2, %v27354_v26  ;;  %v10472_v46 = vadd.f32 %v30346_v63, %v10296_v48  ;;  %v10821_v43 = vadd.f32 %v30391_v6, %v10645_v10 }
 0x3fc   : > { %v16279_v52 = vsel %vm32867_vm12, %v16272_v58, %v16274_v61  ;;  %v16280_v3 = vsel %vm32865_vm11, %v16274_v61, %v16276_v62  ;;  %16529 = vmatprep.mubr.f32.mxu0 %v32713_v51  ;;  %v30700_v62 = vpop.f32.mrf.mxu0  ;;  %v10471_v58 = vadd.f32 %v30325_v2, %v10295_v1  ;;  %vm32869_vm12 = vmmov %vm32868_vm13  ;;  %v10822_v61 = vadd.f32 %v30402_v20, %v10646_v12  ;;  %v18549_v1 = vld [vmem:[%s27482_s17 + $0x54] sm:$0xf] }
 0x3fd   : > { %26714 = vmatprep.subr.msk.mxu1 %vm252_vm1, %v16280_v3  ;;  %v16450_v36 = vpop.permute.xlu1 %16449  ;;  %v10648_v39 = vadd.f32 %v30386_v11, %v10472_v46  ;;  %v10997_v25 = vadd.f32 %v30419_v59, %v10821_v43  ;;  %vm32870_vm11 = vmmov %vm32869_vm12 }
 0x3fe   : > { %26715 = vmatpush1.msk.msra.mxu1 %vm252_vm1, %v16279_v52  ;;  %18385 = vrot.lane.b32.xlu0 %v30521_v35, %s32721_s16  ;;  %v30715_v2 = vpop.f32.mrf.mxu0  ;;  %v10647_v17 = vadd.f32 %v30368_v50, %v10471_v58  ;;  %v30729_v50 = vpop.f32.mrf.mxu1 }
 0x3ff   : > { %v16446_v28 = vpop.permute.xlu0 %16445  ;;  %18559 = vrot.lane.b32.xlu1 %v30508_v37, %s32722_s7  ;;  %26716 = vmatmul.mubr.msk.f32.vlgmr.msra.gmra.mxu1 %vm248_vm2, %v27354_v26  ;;  %v27355_v26 = vld [vmem:[%s32641_s1 + $0x58] sm:$0xff]  ;;  %v10824_v23 = vadd.f32 %v30410_v4, %v10648_v39  ;;  %v11173_v4 = vadd.f32 %v30450_v53, %v10997_v25 }
 0x400   : > { %v16454_v33 = vsel %vm32868_vm13, %v16446_v28, %v16448_v41  ;;  %16600 = vmatprep.mubr.f32.mxu1 %v32713_v51  ;;  %v30735_v11 = vpop.f32.mrf.mxu0  ;;  %v10823_v20 = vadd.f32 %v30398_v56, %v10647_v17  ;;  %vm32871_vm13 = vmmov %vm32870_vm11  ;;  %v30746_v58 = vpop.f32.mrf.mxu1 }
 0x401   : > { %26717 = vmatprep.subr.msk.mxu0 %vm252_vm1, %v16454_v33  ;;  %v16622_v40 = vpop.permute.xlu1 %16621  ;;  %v16455_v3 = vsel %vm32871_vm13, %v16448_v41, %v16450_v36  ;;  %v11000_v46 = vadd.f32 %v30442_v57, %v10824_v23 }
 0x402   : > { %18557 = vrot.lane.b32.xlu0 %v30477_v24, %s32722_s7  ;;  %v30751_v59 = vpop.f32.mrf.mxu0  ;;  %v10999_v41 = vadd.f32 %v30427_v9, %v10823_v20  ;;  %v30765_v9 = vpop.f32.mrf.mxu1 }
 0x403   : > { %v16444_v5 = vpop.permute.xlu0 %16443  ;;  %18561 = vrot.lane.b32.xlu1 %v30521_v35, %s32722_s7 }
 0x404   : > { %v16453_v63 = vsel %vm32869_vm12, %v16444_v5, %v16446_v28  ;;  %v10998_v28 = vadd.f32 %v30432_v16, %v10822_v61  ;;  %vm32872_vm12 = vcmask 343040   ;;  %v30772_v5 = vpop.f32.mrf.mxu0  ;;  %v11175_v57 = vadd.f32 %v30459_v32, %v10999_v41  ;;  %v30785_v32 = vpop.f32.mrf.mxu1 }
 0x405   : > { %26718 = vmatpush1.msk.msra.mxu0 %vm252_vm1, %v16453_v63  ;;  %v16620_v54 = vpop.permute.xlu1 %16619 }
 0x406   : > { %18555 = vrot.lane.b32.xlu0 %v30467_v18, %s32722_s7  ;;  %26719 = vmatmul.mubr.msk.f32.vlgmr.msra.gmra.mxu0 %vm248_vm2, %v27355_v26  ;;  %v11174_v12 = vadd.f32 %v30464_v45, %v10998_v28  ;;  %v11349_v45 = vadd.f32 %v30479_v22, %v11173_v4  ;;  %v30790_v61 = vpop.f32.mrf.mxu0  ;;  %v30801_v25 = vpop.f32.mrf.mxu1  ;;  %v27357_v28 = vld [vmem:[%s32641_s1 + $0x68] sm:$0xff] }
 0x407   : > { %v16452_v6 = vpop.permute.xlu0 %16451  ;;  %18733 = vrot.lane.b32.xlu1 %v30477_v24, %s32723_s8  ;;  %16705 = vmatprep.mubr.f32.mxu0 %v32713_v51 }
 0x408   : > { %v16456_v52 = vsel %vm32870_vm11, %v16450_v36, %v16452_v6  ;;  %v18725_v36 = vld [vmem:[%s27482_s17 + $0x54] sm:$0xf]  ;;  %vm32873_vm11 = vmmov %vm32872_vm12  ;;  %v11350_v39 = vadd.f32 %v30495_v29, %v11174_v12 }
 0x409   : > { %26720 = vmatprep.subr.msk.mxu1 %vm252_vm1, %v16456_v52  ;;  %v16628_v48 = vpop.permute.xlu1 %16627  ;;  %v16629_v10 = vsel %vm32873_vm11, %v16620_v54, %v16622_v40  ;;  %vm32874_vm13 = vmmov %vm32873_vm11  ;;  %v11176_v54 = vadd.f32 %v30471_v0, %v11000_v46  ;;  %v11525_v0 = vadd.f32 %v30511_v15, %v11349_v45 }
 0x40a   : > { %26721 = vmatpush1.msk.msra.mxu1 %vm252_vm1, %v16455_v3  ;;  %18563 = vrot.lane.b32.xlu0 %v18549_v1, %s32722_s7  ;;  %v11526_v20 = vadd.f32 %v30532_v55, %v11350_v39 }
 0x40b   : > { %v16624_v56 = vpop.permute.xlu0 %16623  ;;  %18731 = vrot.lane.b32.xlu1 %v30467_v18, %s32723_s8  ;;  %26722 = vmatmul.mubr.msk.f32.vlgmr.msra.gmra.mxu1 %vm248_vm2, %v27355_v26  ;;  %v11351_v26 = vadd.f32 %v30486_v31, %v11175_v57  ;;  %v11352_v1 = vadd.f32 %v30503_v47, %v11176_v54  ;;  %v30805_v31 = vpop.f32.mrf.mxu0  ;;  %v11701_v3 = vadd.f32 %v30546_v27, %v11525_v0 }
 0x40c   : > { %v16630_v16 = vsel %vm32872_vm12, %v16622_v40, %v16624_v56  ;;  %16776 = vmatprep.mubr.f32.mxu1 %v32713_v51  ;;  %v27356_v40 = vld [vmem:[%s32641_s1 + $0x60] sm:$0xff]  ;;  %vm32875_vm12 = vmmov %vm32873_vm11  ;;  %vm32876_vm11 = vcmask 334848   ;;  %v11702_v23 = vadd.f32 %v30555_v13, %v11526_v20 }
 0x40d   : > { %26723 = vmatprep.subr.msk.mxu0 %vm252_vm1, %v16630_v16  ;;  %v16800_v33 = vpop.permute.xlu1 %16799  ;;  %v11527_v15 = vadd.f32 %v30525_v19, %v11351_v26  ;;  %v30819_v19 = vpop.f32.mrf.mxu1  ;;  %v11877_v41 = vadd.f32 %v30572_v44, %v11701_v3  ;;  %v27358_v26 = vld [vmem:[%s32641_s1 + $0x70] sm:$0xff] }
 0x40e   : > { %26724 = vmatpush1.msk.msra.mxu0 %vm252_vm1, %v16629_v10  ;;  %18735 = vrot.lane.b32.xlu0 %v30508_v37, %s32723_s8 }
 0x40f   : > { %v16626_v53 = vpop.permute.xlu0 %16625  ;;  %18739 = vrot.lane.b32.xlu1 %v18725_v36, %s32723_s8  ;;  %26725 = vmatmul.mubr.msk.f32.vlgmr.msra.gmra.mxu0 %vm248_vm2, %v27356_v40  ;;  %v11703_v13 = vadd.f32 %v30551_v34, %v11527_v15  ;;  %v30836_v46 = vpop.f32.mrf.mxu1  ;;  %v30874_v15 = vld [vmem:[%s27482_s17 + $0x48] sm:$0xff] }
 0x410   : > { %v16631_v17 = vsel %vm32874_vm13, %v16624_v56, %v16626_v53  ;;  %v16632_v43 = vsel %vm32875_vm12, %v16626_v53, %v16628_v48  ;;  %16881 = vmatprep.mubr.f32.mxu0 %v32713_v51  ;;  %vm32877_vm13 = vmmov %vm32876_vm11  ;;  %v11528_v48 = vadd.f32 %v30541_v49, %v11352_v1  ;;  %v18901_v56 = vld [vmem:[%s27482_s17 + $0x54] sm:$0xf]  ;;  %v30825_v49 = vpop.f32.mrf.mxu0 }
 0x411   : > { %26726 = vmatprep.subr.msk.mxu1 %vm252_vm1, %v16632_v43  ;;  %v16802_v63 = vpop.permute.xlu1 %16801  ;;  %vm32878_vm12 = vmmov %vm32876_vm11  ;;  %v32884_v43 = vld [vmem:[#allocation6_spill] sm:$0xff]  ;;  %v32886_v1 = vld [vmem:[#allocation8_spill] sm:$0xff] }
 0x412   : > { %26727 = vmatpush1.msk.msra.mxu1 %vm252_vm1, %v16631_v17  ;;  %18737 = vrot.lane.b32.xlu0 %v30521_v35, %s32723_s8  ;;  %v16807_v16 = vsel %vm32876_vm11, %v16800_v33, %v16802_v63  ;;  %v11704_v10 = vadd.f32 %v30563_v8, %v11528_v48  ;;  %v32880_v8 = vld [vmem:[#allocation4_spill] sm:$0xff]  ;;  %v32890_v48 = vld [vmem:[#allocation10_spill] sm:$0xff] }
 0x413   : > { %v16798_v22 = vpop.permute.xlu0 %16797  ;;  %18911 = vrot.lane.b32.xlu1 %v30508_v37, %s32724_s9  ;;  %26728 = vmatmul.mubr.msk.f32.vlgmr.msra.gmra.mxu1 %vm248_vm2, %v27356_v40  ;;  %v30841_v44 = vpop.f32.mrf.mxu0  ;;  %v12053_v53 = vadd.f32 %v32880_v8, %v11877_v41  ;;  %v19077_v40 = vld [vmem:[%s27482_s17 + $0x54] sm:$0xf] }
 0x414   : > { %v16806_v29 = vsel %vm32876_vm11, %v16798_v22, %v16800_v33  ;;  %16952 = vmatprep.mubr.f32.mxu1 %v32713_v51  ;;  %v32879_v33 = vld [vmem:[#allocation3_spill] sm:$0xff] }
 0x415   : > { %26729 = vmatprep.subr.msk.mxu0 %vm252_vm1, %v16806_v29  ;;  %v16974_v6 = vpop.permute.xlu1 %16973  ;;  %v11879_v12 = vadd.f32 %v32879_v33, %v11703_v13  ;;  %v30867_v0 = vpop.f32.mrf.mxu0  ;;  %v32885_v29 = vld [vmem:[#allocation7_spill] sm:$0xff]  ;;  %v12229_v20 = vadd.f32 %v32886_v1, %v12053_v53  ;;  %v30891_v13 = vcombine.high %v30874_v15, %v30874_v15  ;;  %v19583_v1 = vld [vmem:[%s27482_s17 + $0x50] sm:$0xf] }
 0x416   : > { %18909 = vrot.lane.b32.xlu0 %v30477_v24, %s32724_s9 }
 0x417   : > { %v16796_v52 = vpop.permute.xlu0 %16795  ;;  %18913 = vrot.lane.b32.xlu1 %v30521_v35, %s32724_s9  ;;  %v30857_v54 = vpop.f32.mrf.mxu1 }
 0x418   : > { %v16805_v47 = vsel %vm32877_vm13, %v16796_v52, %v16798_v22  ;;  %vm32881_vm13 = vcmask 326656   ;;  %v30861_v22 = vld [vmem:[%s27482_s17 + $0x40] sm:$0xff] }
 0x419   : > { %26730 = vmatpush1.msk.msra.mxu0 %vm252_vm1, %v16805_v47  ;;  %v16972_v55 = vpop.permute.xlu1 %16971  ;;  %v32889_v47 = vld [vmem:[#allocation9_spill] sm:$0xff] }
 0x41a   : > { %18907 = vrot.lane.b32.xlu0 %v30467_v18, %s32724_s9  ;;  %26731 = vmatmul.mubr.msk.f32.vlgmr.msra.gmra.mxu0 %vm248_vm2, %v27357_v28 }
 0x41b   : > { %v16804_v27 = vpop.permute.xlu0 %16803  ;;  %19085 = vrot.lane.b32.xlu1 %v30477_v24, %s32700_s10  ;;  %17057 = vmatprep.mubr.f32.mxu0 %v32713_v51  ;;  %v11878_v24 = vadd.f32 %v30585_v42, %v11702_v23  ;;  %v30896_v41 = vpop.f32.mrf.mxu0 }
 0x41c   : > { %v16808_v4 = vsel %vm32878_vm12, %v16802_v63, %v16804_v27  ;;  %vm32882_vm12 = vmmov %vm32881_vm13  ;;  %v30887_v27 = vpop.f32.mrf.mxu1 }
 0x41d   : > { %26732 = vmatprep.subr.msk.mxu1 %vm252_vm1, %v16808_v4  ;;  %v16980_v36 = vpop.permute.xlu1 %16979  ;;  %v16981_v57 = vsel %vm32882_vm12, %v16972_v55, %v16974_v6  ;;  %v12054_v63 = vadd.f32 %v32884_v43, %v11878_v24  ;;  %vm32887_vm11 = vmmov %vm32882_vm12  ;;  %v32891_v4 = vld [vmem:[#allocation11_spill] sm:$0xff]  ;;  %vm32892_vm12 = vcmask 195584  }
 0x41e   : > { %26733 = vmatpush1.msk.msra.mxu1 %vm252_vm1, %v16807_v16  ;;  %18915 = vrot.lane.b32.xlu0 %v18901_v56, %s32724_s9  ;;  %v12405_v16 = vadd.f32 %v30659_v30, %v12229_v20  ;;  %v30912_v30 = vpop.f32.mrf.mxu0 }
 0x41f   : > { %v16976_v34 = vpop.permute.xlu0 %16975  ;;  %19083 = vrot.lane.b32.xlu1 %v30467_v18, %s32700_s10  ;;  %26734 = vmatmul.mubr.msk.f32.vlgmr.msra.gmra.mxu1 %vm248_vm2, %v27357_v28  ;;  %v32883_v18 = vld [vmem:[#allocation5_spill] sm:$0xff]  ;;  %v12230_v23 = vadd.f32 %v32890_v48, %v12054_v63  ;;  %v30885_v28 = vcombine.high %v30861_v22, %v30861_v22  ;;  %v30908_v33 = vpop.f32.mrf.mxu1 }
 0x420   : > { %v16982_v42 = vsel %vm32881_vm13, %v16974_v6, %v16976_v34  ;;  %17128 = vmatprep.mubr.f32.mxu1 %v32713_v51  ;;  %v11880_v17 = vadd.f32 %v32883_v18, %v11704_v10  ;;  %v12055_v6 = vadd.f32 %v32885_v29, %v11879_v12  ;;  %vm32888_vm13 = vmmov %vm32887_vm11  ;;  %v12581_v53 = vadd.f32 %v30700_v62, %v12405_v16  ;;  %v19261_v18 = vld [vmem:[%s27482_s17 + $0x50] sm:$0xf] }
 0x421   : > { %26735 = vmatprep.subr.msk.mxu0 %vm252_vm1, %v16982_v42  ;;  %v30850_v45 = vpop.permute.xlu1 %17151 }
 0x422   : > { %26736 = vmatpush1.msk.msra.mxu0 %vm252_vm1, %v16981_v57  ;;  %19087 = vrot.lane.b32.xlu0 %v30508_v37, %s32700_s10  ;;  %v12056_v55 = vadd.f32 %v32889_v47, %v11880_v17  ;;  %v27359_v57 = vld [vmem:[%s32641_s1 + $0x78] sm:$0xff]  ;;  %v12757_v17 = vadd.f32 %v30735_v11, %v12581_v53  ;;  %v27360_v47 = vld [vmem:[%s32641_s1 + $0x80] sm:$0xff] }
 0x423   : > { %v16978_v39 = vpop.permute.xlu0 %16977  ;;  %19091 = vrot.lane.b32.xlu1 %v19077_v40, %s32700_s10  ;;  %26737 = vmatmul.mubr.msk.f32.vlgmr.msra.gmra.mxu0 %vm248_vm2, %v27358_v26 }
 0x424   : > { %v16983_v37 = vsel %vm32887_vm11, %v16976_v34, %v16978_v39  ;;  %v16984_v52 = vsel %vm32888_vm13, %v16978_v39, %v16980_v36  ;;  %17233 = vmatprep.mubr.f32.mxu0 %v32713_v51  ;;  %v12232_v24 = vadd.f32 %v30654_v21, %v12056_v55  ;;  %v12406_v34 = vadd.f32 %v30682_v7, %v12230_v23  ;;  %vm32893_vm11 = vmmov %vm32892_vm12 }
 0x425   : > { %26738 = vmatprep.subr.msk.mxu1 %vm252_vm1, %v16984_v52  ;;  %v17154_v3 = vpop.permute.xlu1 %17153  ;;  %vm32895_vm13 = vmmov %vm32893_vm11 }
 0x426   : > { %26739 = vmatpush1.msk.msra.mxu1 %vm252_vm1, %v16983_v37  ;;  %19089 = vrot.lane.b32.xlu0 %v30521_v35, %s32700_s10  ;;  %v12231_v35 = vadd.f32 %v32891_v4, %v12055_v6  ;;  %v12408_v42 = vadd.f32 %v30695_v14, %v12232_v24  ;;  %v12582_v40 = vadd.f32 %v30715_v2, %v12406_v34  ;;  %s32894_s10 = smov 126  }
 0x427   : > { %v17150_v56 = vpop.permute.xlu0 %17149  ;;  %19271 = vrot.lane.b32.xlu1 %v30874_v15, %s27420_s18  ;;  %26740 = vmatmul.mubr.msk.f32.vlgmr.msra.gmra.mxu1 %vm248_vm2, %v27358_v26  ;;  %v30932_v14 = vpop.f32.mrf.mxu0 }
 0x428   : > { %v17158_v36 = vsel %vm32892_vm12, %v17150_v56, %v30850_v45  ;;  %17304 = vmatprep.mubr.f32.mxu1 %v32713_v51  ;;  %v12407_v8 = vadd.f32 %v30675_v60, %v12231_v35  ;;  %v30926_v60 = vpop.f32.mrf.mxu1  ;;  %vm32896_vm12 = vmmov %vm32893_vm11  ;;  %v12584_v26 = vadd.f32 %v30729_v50, %v12408_v42  ;;  %v12758_v29 = vadd.f32 %v30751_v59, %v12582_v40  ;;  %v27361_v42 = vld [vmem:[%s32641_s1 + $0x88] sm:$0xff]  ;;  %v19759_v40 = vld [vmem:[%s27482_s17 + $0x50] sm:$0xf] }
 0x429   : > { %26741 = vmatprep.subr.msk.mxu0 %vm252_vm1, %v17158_v36  ;;  %v17326_v10 = vpop.permute.xlu1 %17325  ;;  %v17159_v63 = vsel %vm32896_vm12, %v30850_v45, %v17154_v3  ;;  %v30949_v45 = vpop.f32.mrf.mxu0  ;;  %v12933_v50 = vadd.f32 %v30772_v5, %v12757_v17 }
 0x42a   : > { %19269 = vrot.lane.b32.xlu0 %v30885_v28, %s27420_s18  ;;  %v12583_v2 = vadd.f32 %v30711_v38, %v12407_v8  ;;  %v12760_v52 = vadd.f32 %v30765_v9, %v12584_v26 }
 0x42b   : > { %v17148_v12 = vpop.permute.xlu0 %17147  ;;  %19273 = vrot.lane.b32.xlu1 %v30891_v13, %s27420_s18  ;;  %v30944_v38 = vpop.f32.mrf.mxu1 }
 0x42c   : > { %v17157_v21 = vsel %vm32893_vm11, %v17148_v12, %v17150_v56  ;;  %v12759_v6 = vadd.f32 %v30746_v58, %v12583_v2  ;;  %vm32897_vm11 = vcmask 187392   ;;  %v12936_v4 = vadd.f32 %v30801_v25, %v12760_v52 }
 0x42d   : > { %26742 = vmatpush1.msk.msra.mxu0 %vm252_vm1, %v17157_v21  ;;  %v17324_v7 = vpop.permute.xlu1 %17323  ;;  %v30963_v58 = vpop.f32.mrf.mxu1  ;;  %vm32899_vm12 = vmmov %vm32897_vm11 }
 0x42e   : > { %19267 = vrot.lane.b32.xlu0 %v30861_v22, %s27420_s18  ;;  %26743 = vmatmul.mubr.msk.f32.vlgmr.msra.gmra.mxu0 %vm248_vm2, %v27359_v57  ;;  %v12935_v9 = vadd.f32 %v30785_v32, %v12759_v6  ;;  %v13112_v24 = vadd.f32 %v30836_v46, %v12936_v4 }
 0x42f   : > { %v17156_v62 = vpop.permute.xlu0 %17155  ;;  %19591 = vrot.lane.b32.xlu1 %v30885_v28, %s32894_s10  ;;  %17409 = vmatprep.mubr.f32.mxu0 %v32713_v51  ;;  %v13737_v55 = vpop.f32.mrf.mxu0 }
 0x430   : > { %v17160_v43 = vsel %vm32895_vm13, %v17154_v3, %v17156_v62  ;;  %vm32898_vm13 = vmmov %vm32897_vm11  ;;  %v12934_v3 = vadd.f32 %v30790_v61, %v12758_v29  ;;  %v13109_v61 = vadd.f32 %v30805_v31, %v12933_v50  ;;  %v13111_v36 = vadd.f32 %v30819_v19, %v12935_v9 }
 0x431   : > { %26744 = vmatprep.subr.msk.mxu1 %vm252_vm1, %v17160_v43  ;;  %v17332_v39 = vpop.permute.xlu1 %17331  ;;  %v17333_v20 = vsel %vm32898_vm13, %v17324_v7, %v17326_v10  ;;  %v13739_v16 = vpop.f32.mrf.mxu0  ;;  %vm32900_vm13 = vcmask 179200  }
 0x432   : > { %26745 = vmatpush1.msk.msra.mxu1 %vm252_vm1, %v17159_v63  ;;  %19275 = vrot.lane.b32.xlu0 %v19261_v18, %s27420_s18  ;;  %v13110_v35 = vadd.f32 %v30825_v49, %v12934_v3  ;;  %v13285_v25 = vadd.f32 %v30841_v44, %v13109_v61  ;;  %v13287_v44 = vadd.f32 %v30857_v54, %v13111_v36 }
 0x433   : > { %v17328_v11 = vpop.permute.xlu0 %17327  ;;  %19589 = vrot.lane.b32.xlu1 %v30861_v22, %s32894_s10  ;;  %26746 = vmatmul.mubr.msk.f32.vlgmr.msra.gmra.mxu1 %vm248_vm2, %v27359_v57  ;;  %v30981_v32 = vpop.f32.mrf.mxu1 }
 0x434   : > { %v17334_v59 = vsel %vm32897_vm11, %v17326_v10, %v17328_v11  ;;  %17480 = vmatprep.mubr.f32.mxu1 %v32713_v51  ;;  %v13286_v34 = vadd.f32 %v30867_v0, %v13110_v35  ;;  %v13461_v53 = vadd.f32 %v30896_v41, %v13285_v25  ;;  %v13288_v0 = vadd.f32 %v30887_v27, %v13112_v24 }
 0x435   : > { %26747 = vmatprep.subr.msk.mxu0 %vm252_vm1, %v17334_v59  ;;  %v17504_v37 = vpop.permute.xlu1 %17503  ;;  %v13810_v12 = vpop.f32.mrf.mxu1  ;;  %v13463_v27 = vadd.f32 %v30908_v33, %v13287_v44  ;;  %v27363_v44 = vld [vmem:[%s32641_s1 + $0x98] sm:$0xff] }
 0x436   : > { %26748 = vmatpush1.msk.msra.mxu0 %vm252_vm1, %v17333_v20  ;;  %19593 = vrot.lane.b32.xlu0 %v30874_v15, %s32894_s10  ;;  %v13462_v7 = vadd.f32 %v30912_v30, %v13286_v34  ;;  %v13637_v30 = vadd.f32 %v30932_v14, %v13461_v53  ;;  %v13464_v17 = vadd.f32 %v30926_v60, %v13288_v0  ;;  %v19935_v60 = vld [vmem:[%s27482_s17 + $0x50] sm:$0xf] }
 0x437   : > { %v17330_v5 = vpop.permute.xlu0 %17329  ;;  %19597 = vrot.lane.b32.xlu1 %v19583_v1, %s32894_s10  ;;  %26749 = vmatmul.mubr.msk.f32.vlgmr.msra.gmra.mxu0 %vm248_vm2, %v27360_v47  ;;  %v27362_v20 = vld [vmem:[%s32641_s1 + $0x90] sm:$0xff] }
 0x438   : > { %v17335_v48 = vsel %vm32899_vm12, %v17328_v11, %v17330_v5  ;;  %v17336_v23 = vsel %vm32897_vm11, %v17330_v5, %v17332_v39  ;;  %17585 = vmatprep.mubr.f32.mxu0 %v32713_v51  ;;  %vm32901_vm12 = vmmov %vm32900_vm13  ;;  %v13638_v43 = vadd.f32 %v30949_v45, %v13462_v7  ;;  %v13639_v39 = vadd.f32 %v30944_v38, %v13463_v27 }
 0x439   : > { %26750 = vmatprep.subr.msk.mxu1 %vm252_vm1, %v17336_v23  ;;  %v17506_v56 = vpop.permute.xlu1 %17505  ;;  %vm32902_vm11 = vmmov %vm32901_vm12  ;;  %v13813_v26 = vadd.f32 %v13737_v55, %v13637_v30  ;;  %v13640_v6 = vadd.f32 %v30963_v58, %v13464_v17 }
 0x43a   : > { %26751 = vmatpush1.msk.msra.mxu1 %vm252_vm1, %v17335_v48  ;;  %19595 = vrot.lane.b32.xlu0 %v30891_v13, %s32894_s10  ;;  %v13814_v50 = vadd.f32 %v13739_v16, %v13638_v43 }
 0x43b   : > { %v17502_v31 = vpop.permute.xlu0 %17501  ;;  %19769 = vrot.lane.b32.xlu1 %v30874_v15, %s32821_s30  ;;  %26752 = vmatmul.mubr.msk.f32.vlgmr.msra.gmra.mxu1 %vm248_vm2, %v27360_v47  ;;  %v13913_v19 = vpop.f32.mrf.mxu0  ;;  %v13816_v47 = vadd.f32 %v13810_v12, %v13640_v6 }
 0x43c   : > { %v17510_v49 = vsel %vm32900_vm13, %v17502_v31, %v17504_v37  ;;  %17656 = vmatprep.mubr.f32.mxu1 %v32713_v51  ;;  %vm32903_vm13 = vmmov %vm32902_vm11  ;;  %v13989_v52 = vadd.f32 %v13913_v19, %v13813_v26 }
 0x43d   : > { %26753 = vmatprep.subr.msk.mxu0 %vm252_vm1, %v17510_v49  ;;  %v17678_v10 = vpop.permute.xlu1 %17677  ;;  %v13915_v57 = vpop.f32.mrf.mxu0  ;;  %v17511_v18 = vsel %vm32903_vm13, %v17504_v37, %v17506_v56  ;;  %v13815_v37 = vadd.f32 %v30981_v32, %v13639_v39 }
 0x43e   : > { %19767 = vrot.lane.b32.xlu0 %v30885_v28, %s32821_s30  ;;  %v13990_v55 = vadd.f32 %v13915_v57, %v13814_v50  ;;  %v32911_v57 = vld [vmem:[#allocation2_spill] sm:$0xff] }
 0x43f   : > { %v17500_v8 = vpop.permute.xlu0 %17499  ;;  %19771 = vrot.lane.b32.xlu1 %v30891_v13, %s32821_s30  ;;  %v13984_v54 = vpop.f32.mrf.mxu1 }
 0x440   : > { %v17509_v21 = vsel %vm32901_vm12, %v17500_v8, %v17502_v31  ;;  %vm32904_vm12 = vcmask 982016   ;;  %v13991_v23 = vadd.f32 %v13984_v54, %v13815_v37 }
 0x441   : > { %26754 = vmatpush1.msk.msra.mxu0 %vm252_vm1, %v17509_v21  ;;  %v17676_v46 = vpop.permute.xlu1 %17675  ;;  %v13986_v63 = vpop.f32.mrf.mxu1 }
 0x442   : > { %19765 = vrot.lane.b32.xlu0 %v30861_v22, %s32821_s30  ;;  %26755 = vmatmul.mubr.msk.f32.vlgmr.msra.gmra.mxu0 %vm248_vm2, %v27361_v42  ;;  %v13992_v32 = vadd.f32 %v13986_v63, %v13816_v47 }
 0x443   : > { %v17508_v41 = vpop.permute.xlu0 %17507  ;;  %19943 = vrot.lane.b32.xlu1 %v30885_v28, %s27423_s21  ;;  %17761 = vmatprep.mubr.f32.mxu0 %v32713_v51  ;;  %v14089_v14 = vpop.f32.mrf.mxu0 }
 0x444   : > { %v17512_v62 = vsel %vm32902_vm11, %v17506_v56, %v17508_v41  ;;  %vm32905_vm11 = vmmov %vm32904_vm12  ;;  %v14165_v56 = vadd.f32 %v14089_v14, %v13989_v52 }
 0x445   : > { %26756 = vmatprep.subr.msk.mxu1 %vm252_vm1, %v17512_v62  ;;  %v17684_v2 = vpop.permute.xlu1 %17683  ;;  %v17685_v11 = vsel %vm32905_vm11, %v17676_v46, %v17678_v10  ;;  %v14091_v1 = vpop.f32.mrf.mxu0  ;;  %vm32906_vm13 = vmmov %vm32905_vm11  ;;  %v20111_v46 = vld [vmem:[%s27482_s17 + $0x50] sm:$0xf] }
 0x446   : > { %26757 = vmatpush1.msk.msra.mxu1 %vm252_vm1, %v17511_v18  ;;  %19773 = vrot.lane.b32.xlu0 %v19759_v40, %s32821_s30  ;;  %v14166_v31 = vadd.f32 %v14091_v1, %v13990_v55  ;;  %v20463_v55 = vld [vmem:[%s27482_s17 + $0x50] sm:$0xf] }
 0x447   : > { %v17680_v33 = vpop.permute.xlu0 %17679  ;;  %19941 = vrot.lane.b32.xlu1 %v30861_v22, %s27423_s21  ;;  %26758 = vmatmul.mubr.msk.f32.vlgmr.msra.gmra.mxu1 %vm248_vm2, %v27361_v42  ;;  %v14160_v38 = vpop.f32.mrf.mxu1 }
 0x448   : > { %v17686_v29 = vsel %vm32904_vm12, %v17678_v10, %v17680_v33  ;;  %17832 = vmatprep.mubr.f32.mxu1 %v32713_v51  ;;  %vm32907_vm12 = vmmov %vm32905_vm11  ;;  %vm32908_vm11 = vcmask 973824   ;;  %v14167_v49 = vadd.f32 %v14160_v38, %v13991_v23 }
 0x449   : > { %26759 = vmatprep.subr.msk.mxu0 %vm252_vm1, %v17686_v29  ;;  %v17856_v45 = vpop.permute.xlu1 %17855  ;;  %v14162_v9 = vpop.f32.mrf.mxu1 }
 0x44a   : > { %26760 = vmatpush1.msk.msra.mxu0 %vm252_vm1, %v17685_v11  ;;  %19945 = vrot.lane.b32.xlu0 %v30874_v15, %s27423_s21  ;;  %v14168_v12 = vadd.f32 %v14162_v9, %v13992_v32 }
 0x44b   : > { %v17682_v59 = vpop.permute.xlu0 %17681  ;;  %19949 = vrot.lane.b32.xlu1 %v19935_v60, %s27423_s21  ;;  %26761 = vmatmul.mubr.msk.f32.vlgmr.msra.gmra.mxu0 %vm248_vm2, %v27362_v20 }
 0x44c   : > { %v17687_v3 = vsel %vm32906_vm13, %v17680_v33, %v17682_v59  ;;  %v17688_v58 = vsel %vm32907_vm12, %v17682_v59, %v17684_v2  ;;  %17937 = vmatprep.mubr.f32.mxu0 %v32713_v51  ;;  %vm32909_vm13 = vmmov %vm32908_vm11  ;;  %v20287_v33 = vld [vmem:[%s27482_s17 + $0x50] sm:$0xf] }
 0x44d   : > { %26762 = vmatprep.subr.msk.mxu1 %vm252_vm1, %v17688_v58  ;;  %v17858_v5 = vpop.permute.xlu1 %17857  ;;  %vm32910_vm12 = vmmov %vm32908_vm11 }
 0x44e   : > { %26763 = vmatpush1.msk.msra.mxu1 %vm252_vm1, %v17687_v3  ;;  %19947 = vrot.lane.b32.xlu0 %v30891_v13, %s27423_s21  ;;  %v17863_v54 = vsel %vm32908_vm11, %v17856_v45, %v17858_v5 }
 0x44f   : > { %v17854_v61 = vpop.permute.xlu0 %17853  ;;  %20121 = vrot.lane.b32.xlu1 %v30874_v15, %s32706_s22  ;;  %v14265_v48 = vpop.f32.mrf.mxu0  ;;  %26764 = vmatmul.mubr.msk.f32.vlgmr.msra.gmra.mxu1 %vm248_vm2, %v27362_v20 }
 0x450   : > { %v17862_v4 = vsel %vm32908_vm11, %v17854_v61, %v17856_v45  ;;  %18008 = vmatprep.mubr.f32.mxu1 %v32713_v51  ;;  %v14341_v10 = vadd.f32 %v14265_v48, %v14165_v56  ;;  %v27364_v45 = vld [vmem:[%s32641_s1 + $0xa0] sm:$0xff] }
 0x451   : > { %26765 = vmatprep.subr.msk.mxu0 %vm252_vm1, %v17862_v4  ;;  %v18030_v35 = vpop.permute.xlu1 %18029  ;;  %v14267_v16 = vpop.f32.mrf.mxu0  ;;  %v20639_v4 = vld [vmem:[%s27482_s17 + $0x50] sm:$0xf] }
 0x452   : > { %20119 = vrot.lane.b32.xlu0 %v30885_v28, %s32706_s22  ;;  %v14342_v8 = vadd.f32 %v14267_v16, %v14166_v31  ;;  %v27366_v16 = vld [vmem:[%s32641_s1 + $0xb0] sm:$0xff] }
 0x453   : > { %v17852_v36 = vpop.permute.xlu0 %17851  ;;  %20123 = vrot.lane.b32.xlu1 %v30891_v13, %s32706_s22  ;;  %v14336_v25 = vpop.f32.mrf.mxu1 }
 0x454   : > { %v17861_v24 = vsel %vm32909_vm13, %v17852_v36, %v17854_v61  ;;  %v14343_v0 = vadd.f32 %v14336_v25, %v14167_v49  ;;  %vm32912_vm13 = vcmask 965632   ;;  %v31152_v49 = vld [vmem:[%s27482_s17 + $0x50] sm:$0xff] }
 0x455   : > { %26766 = vmatpush1.msk.msra.mxu0 %vm252_vm1, %v17861_v24  ;;  %v18028_v34 = vpop.permute.xlu1 %18027  ;;  %v14338_v19 = vpop.f32.mrf.mxu1 }
 0x456   : > { %20117 = vrot.lane.b32.xlu0 %v30861_v22, %s32706_s22  ;;  %26767 = vmatmul.mubr.msk.f32.vlgmr.msra.gmra.mxu0 %vm248_vm2, %v27363_v44  ;;  %v14344_v30 = vadd.f32 %v14338_v19, %v14168_v12 }
 0x457   : > { %v14441_v53 = vpop.f32.mrf.mxu0  ;;  %v17860_v21 = vpop.permute.xlu0 %17859  ;;  %20295 = vrot.lane.b32.xlu1 %v30885_v28, %s27425_s23  ;;  %18113 = vmatprep.mubr.f32.mxu0 %v32713_v51 }
 0x458   : > { %v14517_v7 = vadd.f32 %v14441_v53, %v14341_v10  ;;  %v17864_v42 = vsel %vm32910_vm12, %v17858_v5, %v17860_v21  ;;  %vm32913_vm12 = vmmov %vm32912_vm13  ;;  %v27365_v5 = vld [vmem:[%s32641_s1 + $0xa8] sm:$0xff]  ;;  %v27367_v21 = vld [vmem:[%s32641_s1 + $0xb8] sm:$0xff] }
 0x459   : > { %v14443_v41 = vpop.f32.mrf.mxu0  ;;  %26768 = vmatprep.subr.msk.mxu1 %vm252_vm1, %v17864_v42  ;;  %v18036_v40 = vpop.permute.xlu1 %18035  ;;  %v18037_v14 = vsel %vm32913_vm12, %v18028_v34, %v18030_v35  ;;  %vm32914_vm11 = vmmov %vm32913_vm12  ;;  %vm32916_vm12 = vcmask 834560   ;;  %v31161_v34 = vcombine.high %v31152_v49, %v31152_v49 }
 0x45a   : > { %v14521_v27 = vadd.f32 %v14517_v7, %v32911_v57  ;;  %v14518_v62 = vadd.f32 %v14443_v41, %v14342_v8  ;;  %26769 = vmatpush1.msk.msra.mxu1 %vm252_vm1, %v17863_v54  ;;  %20125 = vrot.lane.b32.xlu0 %v20111_v46, %s32706_s22  ;;  %s32958_s22 = smov 82  }
 0x45b   : > { %v14512_v18 = vpop.f32.mrf.mxu1  ;;  %v18032_v2 = vpop.permute.xlu0 %18031  ;;  %20293 = vrot.lane.b32.xlu1 %v30861_v22, %s27425_s23  ;;  %26770 = vmatmul.mubr.msk.f32.vlgmr.msra.gmra.mxu1 %vm248_vm2, %v27363_v44 }
 0x45c   : > { %14525 = vst [vmem:[%s29097_s14 + $0x40] sm:$0xff] %v14521_v27  ;;  %v14522_v17 = vadd.f32 %v14518_v62, %v32911_v57  ;;  %v14519_v43 = vadd.f32 %v14512_v18, %v14343_v0  ;;  %v18038_v63 = vsel %vm32912_vm13, %v18030_v35, %v18032_v2  ;;  %18184 = vmatprep.mubr.f32.mxu1 %v32713_v51  ;;  %vm32915_vm13 = vmmov %vm32914_vm11  ;;  %v20815_v0 = vld [vmem:[%s27482_s17 + $0x58] sm:$0xf] }
 0x45d   : > { %v14514_v39 = vpop.f32.mrf.mxu1  ;;  %26771 = vmatprep.subr.msk.mxu0 %vm252_vm1, %v18038_v63  ;;  %v18208_v26 = vpop.permute.xlu1 %18207  ;;  %v20991_v27 = vld [vmem:[%s27482_s17 + $0x58] sm:$0xf] }
 0x45e   : > { %14526 = vst [vmem:[%s29097_s14 + $0x48] sm:$0xff] %v14522_v17  ;;  %v14523_v29 = vadd.f32 %v14519_v43, %v32911_v57  ;;  %v14520_v60 = vadd.f32 %v14514_v39, %v14344_v30  ;;  %26772 = vmatpush1.msk.msra.mxu0 %vm252_vm1, %v18037_v14  ;;  %20297 = vrot.lane.b32.xlu0 %v30874_v15, %s27425_s23 }
 0x45f   : > { %v18034_v11 = vpop.permute.xlu0 %18033  ;;  %20301 = vrot.lane.b32.xlu1 %v20287_v33, %s27425_s23  ;;  %26773 = vmatmul.mubr.msk.f32.vlgmr.msra.gmra.mxu0 %vm248_vm2, %v27364_v45 }
 0x460   : > { %14527 = vst [vmem:[%s29097_s14 + $0x50] sm:$0xff] %v14523_v29  ;;  %v14524_v6 = vadd.f32 %v14520_v60, %v32911_v57  ;;  %v18039_v50 = vsel %vm32914_vm11, %v18032_v2, %v18034_v11  ;;  %v18040_v38 = vsel %vm32915_vm13, %v18034_v11, %v18036_v40  ;;  %18289 = vmatprep.mubr.f32.mxu0 %v32713_v51  ;;  %vm32917_vm11 = vmmov %vm32916_vm12  ;;  %v27368_v2 = vld [vmem:[%s32641_s1 + $0xc0] sm:$0xff] }
 0x461   : > { %26774 = vmatprep.subr.msk.mxu1 %vm252_vm1, %v18040_v38  ;;  %v18210_v59 = vpop.permute.xlu1 %18209  ;;  %vm32918_vm13 = vmmov %vm32917_vm11 }
 0x462   : > { %14528 = vst [vmem:[%s29097_s14 + $0x58] sm:$0xff] %v14524_v6  ;;  %26775 = vmatpush1.msk.msra.mxu1 %vm252_vm1, %v18039_v50  ;;  %20299 = vrot.lane.b32.xlu0 %v30891_v13, %s27425_s23  ;;  %v27369_v50 = vld [vmem:[%s32641_s1 + $0xc8] sm:$0xff] }
 0x463   : > { %v18206_v1 = vpop.permute.xlu0 %18205  ;;  %20473 = vrot.lane.b32.xlu1 %v30874_v15, %s32702_s24  ;;  %26776 = vmatmul.mubr.msk.f32.vlgmr.msra.gmra.mxu1 %vm248_vm2, %v27364_v45  ;;  %v31213_v33 = vpop.f32.mrf.mxu0 }
 0x464   : > { %v18214_v20 = vsel %vm32916_vm12, %v18206_v1, %v18208_v26  ;;  %18360 = vmatprep.mubr.f32.mxu1 %v32713_v51  ;;  %vm32919_vm12 = vmmov %vm32917_vm11 }
 0x465   : > { %26777 = vmatprep.subr.msk.mxu0 %vm252_vm1, %v18214_v20  ;;  %v18382_v37 = vpop.permute.xlu1 %18381  ;;  %v18215_v61 = vsel %vm32919_vm12, %v18208_v26, %v18210_v59  ;;  %v31223_v29 = vpop.f32.mrf.mxu0 }
 0x466   : > { %20471 = vrot.lane.b32.xlu0 %v30885_v28, %s32702_s24 }
 0x467   : > { %v18204_v52 = vpop.permute.xlu0 %18203  ;;  %20475 = vrot.lane.b32.xlu1 %v30891_v13, %s32702_s24  ;;  %v31227_v11 = vpop.f32.mrf.mxu1 }
 0x468   : > { %v18213_v3 = vsel %vm32917_vm11, %v18204_v52, %v18206_v1  ;;  %vm32920_vm11 = vcmask 826368   ;;  %v31237_v38 = vpop.f32.mrf.mxu0  ;;  %v21167_v1 = vld [vmem:[%s27482_s17 + $0x58] sm:$0xf] }
 0x469   : > { %26778 = vmatpush1.msk.msra.mxu0 %vm252_vm1, %v18213_v3  ;;  %v18380_v58 = vpop.permute.xlu1 %18379  ;;  %vm32922_vm12 = vmmov %vm32920_vm11  ;;  %v31243_v20 = vpop.f32.mrf.mxu1 }
 0x46a   : > { %20469 = vrot.lane.b32.xlu0 %v30861_v22, %s32702_s24  ;;  %26779 = vmatmul.mubr.msk.f32.vlgmr.msra.gmra.mxu0 %vm248_vm2, %v27365_v5 }
 0x46b   : > { %v18212_v47 = vpop.permute.xlu0 %18211  ;;  %20647 = vrot.lane.b32.xlu1 %v30885_v28, %s32704_s25  ;;  %18465 = vmatprep.mubr.f32.mxu0 %v32713_v51 }
 0x46c   : > { %v18216_v9 = vsel %vm32918_vm13, %v18210_v59, %v18212_v47  ;;  %vm32921_vm13 = vmmov %vm32920_vm11  ;;  %v31255_v47 = vpop.f32.mrf.mxu1 }
 0x46d   : > { %26780 = vmatprep.subr.msk.mxu1 %vm252_vm1, %v18216_v9  ;;  %v18388_v48 = vpop.permute.xlu1 %18387  ;;  %v18389_v35 = vsel %vm32921_vm13, %v18380_v58, %v18382_v37  ;;  %vm32923_vm13 = vcmask 818176   ;;  %v31250_v58 = vpop.f32.mrf.mxu0  ;;  %v21343_v9 = vld [vmem:[%s27482_s17 + $0x58] sm:$0xf] }
 0x46e   : > { %26781 = vmatpush1.msk.msra.mxu1 %vm252_vm1, %v18215_v61  ;;  %20477 = vrot.lane.b32.xlu0 %v20463_v55, %s32702_s24  ;;  %s32925_s24 = smov 59  }
 0x46f   : > { %v18384_v23 = vpop.permute.xlu0 %18383  ;;  %20645 = vrot.lane.b32.xlu1 %v30861_v22, %s32704_s25  ;;  %26782 = vmatmul.mubr.msk.f32.vlgmr.msra.gmra.mxu1 %vm248_vm2, %v27365_v5 }
 0x470   : > { %v18390_v56 = vsel %vm32920_vm11, %v18382_v37, %v18384_v23  ;;  %18536 = vmatprep.mubr.f32.mxu1 %v32713_v51 }
 0x471   : > { %26783 = vmatprep.subr.msk.mxu0 %vm252_vm1, %v18390_v56  ;;  %v18560_v32 = vpop.permute.xlu1 %18559  ;;  %v27370_v56 = vld [vmem:[%s32641_s1 + $0xd0] sm:$0xff] }
 0x472   : > { %26784 = vmatpush1.msk.msra.mxu0 %vm252_vm1, %v18389_v35  ;;  %20649 = vrot.lane.b32.xlu0 %v30874_v15, %s32704_s25  ;;  %v31272_v35 = vpop.f32.mrf.mxu1 }
 0x473   : > { %v18386_v31 = vpop.permute.xlu0 %18385  ;;  %20653 = vrot.lane.b32.xlu1 %v20639_v4, %s32704_s25  ;;  %26785 = vmatmul.mubr.msk.f32.vlgmr.msra.gmra.mxu0 %vm248_vm2, %v27366_v16 }
 0x474   : > { %v18391_v36 = vsel %vm32922_vm12, %v18384_v23, %v18386_v31  ;;  %v18392_v25 = vsel %vm32920_vm11, %v18386_v31, %v18388_v48  ;;  %18641 = vmatprep.mubr.f32.mxu0 %v32713_v51  ;;  %vm32924_vm12 = vmmov %vm32923_vm13  ;;  %v31265_v23 = vpop.f32.mrf.mxu0 }
 0x475   : > { %26786 = vmatprep.subr.msk.mxu1 %vm252_vm1, %v18392_v25  ;;  %v18562_v10 = vpop.permute.xlu1 %18561  ;;  %vm32926_vm11 = vmmov %vm32924_vm12 }
 0x476   : > { %26787 = vmatpush1.msk.msra.mxu1 %vm252_vm1, %v18391_v36  ;;  %20651 = vrot.lane.b32.xlu0 %v30891_v13, %s32704_s25  ;;  %s32933_s25 = smov 42   ;;  %v31281_v36 = vpop.f32.mrf.mxu0 }
 0x477   : > { %v18558_v24 = vpop.permute.xlu0 %18557  ;;  %20825 = vrot.lane.b32.xlu1 %v31152_v49, %s32703_s26  ;;  %26788 = vmatmul.mubr.msk.f32.vlgmr.msra.gmra.mxu1 %vm248_vm2, %v27366_v16 }
 0x478   : > { %v18566_v12 = vsel %vm32923_vm13, %v18558_v24, %v18560_v32  ;;  %18712 = vmatprep.mubr.f32.mxu1 %v32713_v51  ;;  %vm32927_vm13 = vmmov %vm32926_vm11 }
 0x479   : > { %26789 = vmatprep.subr.msk.mxu0 %vm252_vm1, %v18566_v12  ;;  %v18734_v8 = vpop.permute.xlu1 %18733  ;;  %v18567_v42 = vsel %vm32927_vm13, %v18560_v32, %v18562_v10 }
 0x47a   : > { %20823 = vrot.lane.b32.xlu0 %v30891_v13, %s32703_s26 }
 0x47b   : > { %v18556_v19 = vpop.permute.xlu0 %18555  ;;  %20827 = vrot.lane.b32.xlu1 %v31161_v34, %s32703_s26 }
 0x47c   : > { %v18565_v44 = vsel %vm32924_vm12, %v18556_v19, %v18558_v24  ;;  %vm32928_vm12 = vcmask 687104  }
 0x47d   : > { %26790 = vmatpush1.msk.msra.mxu0 %vm252_vm1, %v18565_v44  ;;  %v18732_v53 = vpop.permute.xlu1 %18731 }
 0x47e   : > { %20821 = vrot.lane.b32.xlu0 %v30874_v15, %s32703_s26  ;;  %26791 = vmatmul.mubr.msk.f32.vlgmr.msra.gmra.mxu0 %vm248_vm2, %v27367_v21 }
 0x47f   : > { %v18564_v46 = vpop.permute.xlu0 %18563  ;;  %20999 = vrot.lane.b32.xlu1 %v30891_v13, %s32925_s24  ;;  %18817 = vmatprep.mubr.f32.mxu0 %v32713_v51 }
 0x480   : > { %v18568_v7 = vsel %vm32926_vm11, %v18562_v10, %v18564_v46  ;;  %vm32929_vm11 = vmmov %vm32928_vm12  ;;  %v31286_v10 = vpop.f32.mrf.mxu1  ;;  %v27371_v46 = vld [vmem:[%s32641_s1 + $0x8] sm:$0xff] }
 0x481   : > { %26792 = vmatprep.subr.msk.mxu1 %vm252_vm1, %v18568_v7  ;;  %v18740_v54 = vpop.permute.xlu1 %18739  ;;  %v18741_v30 = vsel %vm32929_vm11, %v18732_v53, %v18734_v8  ;;  %vm32930_vm13 = vmmov %vm32929_vm11 }
 0x482   : > { %26793 = vmatpush1.msk.msra.mxu1 %vm252_vm1, %v18567_v42  ;;  %20829 = vrot.lane.b32.xlu0 %v20815_v0, %s32703_s26  ;;  %v31297_v44 = vpop.f32.mrf.mxu1  ;;  %v21519_v42 = vld [vmem:[%s27482_s17 + $0x58] sm:$0xf] }
 0x483   : > { %v18736_v41 = vpop.permute.xlu0 %18735  ;;  %20997 = vrot.lane.b32.xlu1 %v30874_v15, %s32925_s24  ;;  %26794 = vmatmul.mubr.msk.f32.vlgmr.msra.gmra.mxu1 %vm248_vm2, %v27367_v21 }
 0x484   : > { %v18742_v40 = vsel %vm32928_vm12, %v18734_v8, %v18736_v41  ;;  %18888 = vmatprep.mubr.f32.mxu1 %v32713_v51  ;;  %vm32931_vm12 = vmmov %vm32929_vm11  ;;  %v31293_v8 = vpop.f32.mrf.mxu0 }
 0x485   : > { %26795 = vmatprep.subr.msk.mxu0 %vm252_vm1, %v18742_v40  ;;  %v18912_v62 = vpop.permute.xlu1 %18911 }
 0x486   : > { %26796 = vmatpush1.msk.msra.mxu0 %vm252_vm1, %v18741_v30  ;;  %21001 = vrot.lane.b32.xlu0 %v31152_v49, %s32925_s24  ;;  %v31307_v0 = vpop.f32.mrf.mxu0 }
 0x487   : > { %v18738_v18 = vpop.permute.xlu0 %18737  ;;  %21005 = vrot.lane.b32.xlu1 %v20991_v27, %s32925_s24  ;;  %26797 = vmatmul.mubr.msk.f32.vlgmr.msra.gmra.mxu0 %vm248_vm2, %v27368_v2 }
 0x488   : > { %v18743_v17 = vsel %vm32930_vm13, %v18736_v41, %v18738_v18  ;;  %v18744_v43 = vsel %vm32931_vm12, %v18738_v18, %v18740_v54  ;;  %18993 = vmatprep.mubr.f32.mxu0 %v32713_v51  ;;  %v31314_v54 = vpop.f32.mrf.mxu1  ;;  %v27372_v18 = vld [vmem:[%s32641_s1] sm:$0xff] }
 0x489   : > { %26798 = vmatprep.subr.msk.mxu1 %vm252_vm1, %v18744_v43  ;;  %v18914_v63 = vpop.permute.xlu1 %18913 }
 0x48a   : > { %26799 = vmatpush1.msk.msra.mxu1 %vm252_vm1, %v18743_v17  ;;  %21003 = vrot.lane.b32.xlu0 %v31161_v34, %s32925_s24  ;;  %v18919_v52 = vsel %vm4714_vm14, %v18912_v62, %v18914_v63 }
 0x48b   : > { %v18910_v14 = vpop.permute.xlu0 %18909  ;;  %21177 = vrot.lane.b32.xlu1 %v31152_v49, %s32932_s28  ;;  %26800 = vmatmul.mubr.msk.f32.vlgmr.msra.gmra.mxu1 %vm248_vm2, %v27368_v2  ;;  %v21695_v2 = vld [vmem:[%s27482_s17 + $0x58] sm:$0xf] }
 0x48c   : > { %v18918_v39 = vsel %vm4714_vm14, %v18910_v14, %v18912_v62  ;;  %19064 = vmatprep.mubr.f32.mxu1 %v32713_v51 }
 0x48d   : > { %26801 = vmatprep.subr.msk.mxu0 %vm252_vm1, %v18918_v39  ;;  %v19086_v26 = vpop.permute.xlu1 %19085 }
 0x48e   : > { %21175 = vrot.lane.b32.xlu0 %v30891_v13, %s32932_s28 }
 0x48f   : > { %v18908_v60 = vpop.permute.xlu0 %18907  ;;  %21179 = vrot.lane.b32.xlu1 %v31161_v34, %s32932_s28 }
 0x490   : > { %v18917_v45 = vsel %vm4714_vm14, %v18908_v60, %v18910_v14 }
 0x491   : > { %26802 = vmatpush1.msk.msra.mxu0 %vm252_vm1, %v18917_v45  ;;  %v19084_v6 = vpop.permute.xlu1 %19083 }
 0x492   : > { %21173 = vrot.lane.b32.xlu0 %v30874_v15, %s32932_s28  ;;  %26803 = vmatmul.mubr.msk.f32.vlgmr.msra.gmra.mxu0 %vm248_vm2, %v27369_v50  ;;  %v19093_v61 = vsel %vm4894_vm15, %v19084_v6, %v19086_v26  ;;  %v27373_v6 = vld [vmem:[%s32641_s1 + $0x10] sm:$0xff] }
 0x493   : > { %v18916_v59 = vpop.permute.xlu0 %18915  ;;  %21351 = vrot.lane.b32.xlu1 %v30891_v13, %s32933_s25  ;;  %19169 = vmatprep.mubr.f32.mxu0 %v32713_v51 }
 0x494   : > { %v18920_v37 = vsel %vm4714_vm14, %v18914_v63, %v18916_v59 }
 0x495   : > { %26804 = vmatprep.subr.msk.mxu1 %vm252_vm1, %v18920_v37  ;;  %v19092_v3 = vpop.permute.xlu1 %19091 }
 0x496   : > { %26805 = vmatpush1.msk.msra.mxu1 %vm252_vm1, %v18919_v52  ;;  %21181 = vrot.lane.b32.xlu0 %v21167_v1, %s32932_s28  ;;  %v31373_v52 = vld [vmem:[%s27482_s17 + $0x48] sm:$0xff] }
 0x497   : > { %v19088_v5 = vpop.permute.xlu0 %19087  ;;  %21349 = vrot.lane.b32.xlu1 %v30874_v15, %s32933_s25  ;;  %26806 = vmatmul.mubr.msk.f32.vlgmr.msra.gmra.mxu1 %vm248_vm2, %v27369_v50 }
 0x498   : > { %v19094_v55 = vsel %vm4894_vm15, %v19086_v26, %v19088_v5  ;;  %19240 = vmatprep.mubr.f32.mxu1 %v32713_v51 }
 0x499   : > { %26807 = vmatprep.subr.msk.mxu0 %vm252_vm1, %v19094_v55  ;;  %v19272_v48 = vpop.permute.xlu1 %19271 }
 0x49a   : > { %26808 = vmatpush1.msk.msra.mxu0 %vm252_vm1, %v19093_v61  ;;  %21353 = vrot.lane.b32.xlu0 %v31152_v49, %s32933_s25 }
 0x49b   : > { %26809 = vmatmul.mubr.msk.f32.vlgmr.msra.gmra.mxu0 %vm248_vm2, %v27370_v56  ;;  %v19090_v4 = vpop.permute.xlu0 %19089  ;;  %21357 = vrot.lane.b32.xlu1 %v21343_v9, %s32933_s25  ;;  %v22051_v9 = vcombine.high %v31373_v52, %v31373_v52 }
 0x49c   : > { %v19095_v32 = vsel %vm4894_vm15, %v19088_v5, %v19090_v4  ;;  %v19096_v31 = vsel %vm4894_vm15, %v19090_v4, %v19092_v3  ;;  %19353 = vmatprep.mubr.f32.mxu0 %v32713_v51 }
 0x49d   : > { %26810 = vmatprep.subr.msk.mxu1 %vm252_vm1, %v19096_v31  ;;  %v19274_v16 = vpop.permute.xlu1 %19273  ;;  %v21871_v31 = vld [vmem:[%s27482_s17 + $0x58] sm:$0xf] }
 0x49e   : > { %26811 = vmatpush1.msk.msra.mxu1 %vm252_vm1, %v19095_v32  ;;  %21355 = vrot.lane.b32.xlu0 %v31161_v34, %s32933_s25  ;;  %v19279_v40 = vsel %vm243_vm0, %v19272_v48, %v19274_v16 }
 0x49f   : > { %26812 = vmatmul.mubr.msk.f32.vlgmr.msra.gmra.mxu1 %vm248_vm2, %v27370_v56  ;;  %v19270_v25 = vpop.permute.xlu0 %19269  ;;  %21529 = vrot.lane.b32.xlu1 %v31152_v49, %s32853_s19 }
 0x4a0   : > { %v19278_v24 = vsel %vm243_vm0, %v19270_v25, %v19272_v48  ;;  %19424 = vmatprep.mubr.f32.mxu1 %v32713_v51 }
 0x4a1   : > { %26813 = vmatprep.subr.msk.mxu0 %vm252_vm1, %v19278_v24  ;;  %v19592_v12 = vpop.permute.xlu1 %19591 }
 0x4a2   : > { %21527 = vrot.lane.b32.xlu0 %v30891_v13, %s32853_s19 }
 0x4a3   : > { %v19268_v19 = vpop.permute.xlu0 %19267  ;;  %21531 = vrot.lane.b32.xlu1 %v31161_v34, %s32853_s19 }
 0x4a4   : > { %v19277_v53 = vsel %vm243_vm0, %v19268_v19, %v19270_v25 }
 0x4a5   : > { %26814 = vmatpush1.msk.msra.mxu0 %vm252_vm1, %v19277_v53  ;;  %v19590_v21 = vpop.permute.xlu1 %19589 }
 0x4a6   : > { %21525 = vrot.lane.b32.xlu0 %v30874_v15, %s32853_s19  ;;  %26815 = vmatmul.mubr.msk.f32.vlgmr.msra.gmra.mxu0 %vm248_vm2, %v27371_v46  ;;  %v19599_v17 = vsel %vm574_vm3, %v19590_v21, %v19592_v12 }
 0x4a7   : > { %v19276_v7 = vpop.permute.xlu0 %19275  ;;  %21703 = vrot.lane.b32.xlu1 %v30891_v13, %s32854_s15  ;;  %26819 = vmatprep.subr.msk.mxu0 %vm252_vm1, %v30885_v28  ;;  %v31324_v28 = vpop.f32.mrf.mxu0 }
 0x4a8   : > { %v19280_v41 = vsel %vm243_vm0, %v19274_v16, %v19276_v7  ;;  %26820 = vmatpush1.msk.msra.mxu0 %vm252_vm1, %v30861_v22  ;;  %19503 = vmatprep.mubr.f32.mxu0 %v32713_v51  ;;  %v31329_v22 = vpop.f32.mrf.mxu1  ;;  %vm32944_vm0 = vcmask 482304  }
 0x4a9   : > { %26816 = vmatprep.subr.msk.mxu1 %vm252_vm1, %v19280_v41  ;;  %v19598_v27 = vpop.permute.xlu1 %19597  ;;  %v31346_v63 = vpop.f32.mrf.mxu0 }
 0x4aa   : > { %26817 = vmatpush1.msk.msra.mxu1 %vm252_vm1, %v19279_v40  ;;  %21533 = vrot.lane.b32.xlu0 %v21519_v42, %s32853_s19  ;;  %v31350_v39 = vpop.f32.mrf.mxu1 }
 0x4ab   : > { %v19594_v30 = vpop.permute.xlu0 %19593  ;;  %21701 = vrot.lane.b32.xlu1 %v30874_v15, %s32854_s15  ;;  %26818 = vmatmul.mubr.msk.f32.vlgmr.msra.gmra.mxu1 %vm248_vm2, %v27371_v46  ;;  %v31364_v50 = vpop.f32.mrf.mxu0  ;;  %v22047_v46 = vld [vmem:[%s27482_s17 + $0x58] sm:$0xf] }
 0x4ac   : > { %v19600_v62 = vsel %vm574_vm3, %v19592_v12, %v19594_v30  ;;  %26821 = vmatmul.mubr.msk.f32.vlgmr.msra.gmra.mxu0 %vm248_vm2, %v27372_v18  ;;  %26822 = vmatprep.subr.msk.mxu1 %vm252_vm1, %v30891_v13  ;;  %v31369_v1 = vpop.f32.mrf.mxu1 }
 0x4ad   : > { %26825 = vmatprep.subr.msk.mxu0 %vm252_vm1, %v19600_v62  ;;  %v19770_v43 = vpop.permute.xlu1 %19769  ;;  %26823 = vmatpush1.msk.msra.mxu1 %vm252_vm1, %v30874_v15  ;;  %v31381_v5 = vpop.f32.mrf.mxu0 }
 0x4ae   : > { %26826 = vmatpush1.msk.msra.mxu0 %vm252_vm1, %v19599_v17  ;;  %21705 = vrot.lane.b32.xlu0 %v31152_v49, %s32854_s15  ;;  %v31387_v61 = vpop.f32.mrf.mxu1 }
 0x4af   : > { %v19596_v14 = vpop.permute.xlu0 %19595  ;;  %19574 = vmatprep.mubr.f32.mxu1 %v32713_v51  ;;  %21709 = vrot.lane.b32.xlu1 %v21695_v2, %s32854_s15  ;;  %v31397_v4 = vpop.f32.mrf.mxu0 }
 0x4b0   : > { %v19601_v26 = vsel %vm574_vm3, %v19594_v30, %v19596_v14  ;;  %v19602_v60 = vsel %vm574_vm3, %v19596_v14, %v19598_v27  ;;  %26824 = vmatmul.mubr.msk.f32.vlgmr.msra.gmra.mxu1 %vm248_vm2, %v27372_v18  ;;  %19675 = vmatprep.mubr.f32.mxu0 %v32713_v51  ;;  %v31402_v16 = vpop.f32.mrf.mxu1  ;;  %v27375_v27 = vld [vmem:[%s32641_s1 + $0x20] sm:$0xff]  ;;  %vm32945_vm3 = vmmov %vm32944_vm0 }
 0x4b1   : > { %26828 = vmatprep.subr.msk.mxu1 %vm252_vm1, %v19602_v60  ;;  %v19772_v45 = vpop.permute.xlu1 %19771  ;;  %26827 = vmatmul.mubr.msk.f32.vlgmr.msra.gmra.mxu0 %vm248_vm2, %v27373_v6  ;;  %v31409_v12 = vpop.f32.mrf.mxu0  ;;  %v31449_v60 = vld [vmem:[%s27482_s17 + $0x54] sm:$0xff] }
 0x4b2   : > { %26829 = vmatpush1.msk.msra.mxu1 %vm252_vm1, %v19601_v26  ;;  %21707 = vrot.lane.b32.xlu0 %v31161_v34, %s32854_s15  ;;  %v31414_v53 = vpop.f32.mrf.mxu1 }
 0x4b3   : > { %v19768_v59 = vpop.permute.xlu0 %19767  ;;  %21881 = vrot.lane.b32.xlu1 %v31152_v49, %s32855_s27  ;;  %19746 = vmatprep.mubr.f32.mxu1 %v32713_v51  ;;  %v31424_v41 = vpop.f32.mrf.mxu0 }
 0x4b4   : > { %v19776_v37 = vsel %vm754_vm4, %v19768_v59, %v19770_v43  ;;  %26830 = vmatmul.mubr.msk.f32.vlgmr.msra.gmra.mxu1 %vm248_vm2, %v27373_v6  ;;  %19851 = vmatprep.mubr.f32.mxu0 %v32713_v51  ;;  %v31431_v30 = vpop.f32.mrf.mxu1 }
 0x4b5   : > { %26831 = vmatprep.subr.msk.mxu0 %vm252_vm1, %v19776_v37  ;;  %v19944_v3 = vpop.permute.xlu1 %19943  ;;  %19922 = vmatprep.mubr.f32.mxu1 %v32713_v51  ;;  %v31440_v17 = vpop.f32.mrf.mxu0 }
 0x4b6   : > { %21879 = vrot.lane.b32.xlu0 %v30891_v13, %s32855_s27  ;;  %v27374_v13 = vld [vmem:[%s32641_s1 + $0x18] sm:$0xff]  ;;  %v31445_v14 = vpop.f32.mrf.mxu1 }
 0x4b7   : > { %v19766_v55 = vpop.permute.xlu0 %19765  ;;  %21883 = vrot.lane.b32.xlu1 %v31161_v34, %s32855_s27  ;;  %v31454_v6 = vpop.f32.mrf.mxu0 }
 0x4b8   : > { %v19775_v48 = vsel %vm754_vm4, %v19766_v55, %v19768_v59  ;;  %v31462_v37 = vpop.f32.mrf.mxu1 }
 0x4b9   : > { %26832 = vmatpush1.msk.msra.mxu0 %vm252_vm1, %v19775_v48  ;;  %v19942_v56 = vpop.permute.xlu1 %19941 }
 0x4ba   : > { %21877 = vrot.lane.b32.xlu0 %v30874_v15, %s32855_s27  ;;  %26833 = vmatmul.mubr.msk.f32.vlgmr.msra.gmra.mxu0 %vm248_vm2, %v27374_v13  ;;  %v19777_v15 = vsel %vm754_vm4, %v19770_v43, %v19772_v45  ;;  %v19951_v7 = vsel %vm934_vm5, %v19942_v56, %v19944_v3  ;;  %v22223_v56 = vld [vmem:[%s27482_s17 + $0x58] sm:$0xf] }
 0x4bb   : > { %v19774_v32 = vpop.permute.xlu0 %19773  ;;  %22055 = vrot.lane.b32.xlu1 %v22051_v9, %s32774_s13  ;;  %20027 = vmatprep.mubr.f32.mxu0 %v32713_v51 }
 0x4bc   : > { %v19778_v25 = vsel %vm754_vm4, %v19772_v45, %v19774_v32  ;;  %vm32946_vm4 = vmmov %vm32944_vm0 }
 0x4bd   : > { %26834 = vmatprep.subr.msk.mxu1 %vm252_vm1, %v19778_v25  ;;  %v19950_v24 = vpop.permute.xlu1 %19949 }
 0x4be   : > { %26835 = vmatpush1.msk.msra.mxu1 %vm252_vm1, %v19777_v15  ;;  %21885 = vrot.lane.b32.xlu0 %v21871_v31, %s32855_s27 }
 0x4bf   : > { %v19946_v19 = vpop.permute.xlu0 %19945  ;;  %22053 = vrot.lane.b32.xlu1 %v31373_v52, %s32774_s13  ;;  %26836 = vmatmul.mubr.msk.f32.vlgmr.msra.gmra.mxu1 %vm248_vm2, %v27374_v13  ;;  %v31478_v13 = vpop.f32.mrf.mxu1 }
 0x4c0   : > { %v19952_v21 = vsel %vm934_vm5, %v19944_v3, %v19946_v19  ;;  %20098 = vmatprep.mubr.f32.mxu1 %v32713_v51 }
 0x4c1   : > { %26837 = vmatprep.subr.msk.mxu0 %vm252_vm1, %v19952_v21  ;;  %v20122_v42 = vpop.permute.xlu1 %20121 }
 0x4c2   : > { %26838 = vmatpush1.msk.msra.mxu0 %vm252_vm1, %v19951_v7  ;;  %22057 = vrot.lane.b32.xlu0 %v31152_v49, %s32774_s13 }
 0x4c3   : > { %v19948_v40 = vpop.permute.xlu0 %19947  ;;  %22061 = vrot.lane.b32.xlu1 %v22047_v46, %s32774_s13  ;;  %26839 = vmatmul.mubr.msk.f32.vlgmr.msra.gmra.mxu0 %vm248_vm2, %v27375_v27  ;;  %v22399_v46 = vld [vmem:[%s27482_s17 + $0x64] sm:$0xf] }
 0x4c4   : > { %v19953_v62 = vsel %vm934_vm5, %v19946_v19, %v19948_v40  ;;  %v19954_v18 = vsel %vm934_vm5, %v19948_v40, %v19950_v24  ;;  %20203 = vmatprep.mubr.f32.mxu0 %v32713_v51  ;;  %v31490_v24 = vld [vmem:[%s27482_s17 + $0x5c] sm:$0xff]  ;;  %v31493_v19 = vpop.f32.mrf.mxu1  ;;  %vm32947_vm5 = vmmov %vm32944_vm0 }
 0x4c5   : > { %26840 = vmatprep.subr.msk.mxu1 %vm252_vm1, %v19954_v18  ;;  %v20124_v2 = vpop.permute.xlu1 %20123  ;;  %v31503_v40 = vcombine.high %v31490_v24, %v31490_v24  ;;  %v27377_v18 = vld [vmem:[%s32641_s1 + $0x30] sm:$0xff] }
 0x4c6   : > { %26841 = vmatpush1.msk.msra.mxu1 %vm252_vm1, %v19953_v62  ;;  %22059 = vrot.lane.b32.xlu0 %v31161_v34, %s32774_s13  ;;  %v20129_v32 = vsel %vm1114_vm6, %v20122_v42, %v20124_v2 }
 0x4c7   : > { %v20120_v43 = vpop.permute.xlu0 %20119  ;;  %22233 = vrot.lane.b32.xlu1 %v31152_v49, %s32775_s5  ;;  %26842 = vmatmul.mubr.msk.f32.vlgmr.msra.gmra.mxu1 %vm248_vm2, %v27375_v27  ;;  %v31460_v49 = vcombine.high %v31449_v60, %v31449_v60 }
 0x4c8   : > { %v20128_v26 = vsel %vm1114_vm6, %v20120_v43, %v20122_v42  ;;  %20274 = vmatprep.mubr.f32.mxu1 %v32713_v51 }
 0x4c9   : > { %26843 = vmatprep.subr.msk.mxu0 %vm252_vm1, %v20128_v26  ;;  %v20296_v45 = vpop.permute.xlu1 %20295 }
 0x4ca   : > { %22231 = vrot.lane.b32.xlu0 %v22051_v9, %s32775_s5  ;;  %v27376_v9 = vld [vmem:[%s32641_s1 + $0x28] sm:$0xff] }
 0x4cb   : > { %v20118_v59 = vpop.permute.xlu0 %20117  ;;  %22235 = vrot.lane.b32.xlu1 %v31161_v34, %s32775_s5  ;;  %v31472_v34 = vpop.f32.mrf.mxu0 }
 0x4cc   : > { %v20127_v3 = vsel %vm1114_vm6, %v20118_v59, %v20120_v43 }
 0x4cd   : > { %26844 = vmatpush1.msk.msra.mxu0 %vm252_vm1, %v20127_v3  ;;  %v20294_v55 = vpop.permute.xlu1 %20293  ;;  %v31485_v25 = vpop.f32.mrf.mxu0 }
 0x4ce   : > { %22229 = vrot.lane.b32.xlu0 %v31373_v52, %s32775_s5  ;;  %26845 = vmatmul.mubr.msk.f32.vlgmr.msra.gmra.mxu0 %vm248_vm2, %v27376_v9  ;;  %v20303_v7 = vsel %vm1294_vm7, %v20294_v55, %v20296_v45 }
 0x4cf   : > { %v20126_v48 = vpop.permute.xlu0 %20125  ;;  %22407 = vrot.lane.b32.xlu1 %v31460_v49, %s32776_s20  ;;  %20379 = vmatprep.mubr.f32.mxu0 %v32713_v51  ;;  %v31507_v27 = vpop.f32.mrf.mxu0 }
 0x4d0   : > { %v20130_v52 = vsel %vm1114_vm6, %v20124_v2, %v20126_v48  ;;  %v31514_v2 = vpop.f32.mrf.mxu1  ;;  %vm32948_vm6 = vcmask 474112  }
 0x4d1   : > { %26846 = vmatprep.subr.msk.mxu1 %vm252_vm1, %v20130_v52  ;;  %v20302_v31 = vpop.permute.xlu1 %20301  ;;  %v31523_v59 = vpop.f32.mrf.mxu0 }
 0x4d2   : > { %26847 = vmatpush1.msk.msra.mxu1 %vm252_vm1, %v20129_v32  ;;  %22237 = vrot.lane.b32.xlu0 %v22223_v56, %s32775_s5  ;;  %v31528_v55 = vpop.f32.mrf.mxu1 }
 0x4d3   : > { %v20298_v15 = vpop.permute.xlu0 %20297  ;;  %22405 = vrot.lane.b32.xlu1 %v31449_v60, %s32776_s20  ;;  %26848 = vmatmul.mubr.msk.f32.vlgmr.msra.gmra.mxu1 %vm248_vm2, %v27376_v9  ;;  %v31535_v56 = vpop.f32.mrf.mxu0 }
 0x4d4   : > { %v20304_v21 = vsel %vm1294_vm7, %v20296_v45, %v20298_v15  ;;  %20450 = vmatprep.mubr.f32.mxu1 %v32713_v51  ;;  %v31539_v32 = vpop.f32.mrf.mxu1 }
 0x4d5   : > { %26849 = vmatprep.subr.msk.mxu0 %vm252_vm1, %v20304_v21  ;;  %v20474_v42 = vpop.permute.xlu1 %20473  ;;  %v27378_v21 = vld [vmem:[%s32641_s1 + $0x38] sm:$0xff] }
 0x4d6   : > { %26850 = vmatpush1.msk.msra.mxu0 %vm252_vm1, %v20303_v7  ;;  %22409 = vrot.lane.b32.xlu0 %v31490_v24, %s32776_s20 }
 0x4d7   : > { %v20300_v62 = vpop.permute.xlu0 %20299  ;;  %22413 = vrot.lane.b32.xlu1 %v22399_v46, %s32776_s20  ;;  %26851 = vmatmul.mubr.msk.f32.vlgmr.msra.gmra.mxu0 %vm248_vm2, %v27377_v18  ;;  %v31549_v46 = vpop.f32.mrf.mxu0 }
 0x4d8   : > { %v20305_v43 = vsel %vm1294_vm7, %v20298_v15, %v20300_v62  ;;  %v20306_v26 = vsel %vm1294_vm7, %v20300_v62, %v20302_v31  ;;  %20555 = vmatprep.mubr.f32.mxu0 %v32713_v51  ;;  %v22575_v62 = vld [vmem:[%s27482_s17 + $0x64] sm:$0xf]  ;;  %vm32949_vm7 = vmmov %vm32948_vm6 }
 0x4d9   : > { %26852 = vmatprep.subr.msk.mxu1 %vm252_vm1, %v20306_v26  ;;  %v20476_v45 = vpop.permute.xlu1 %20475 }
 0x4da   : > { %26853 = vmatpush1.msk.msra.mxu1 %vm252_vm1, %v20305_v43  ;;  %22411 = vrot.lane.b32.xlu0 %v31503_v40, %s32776_s20  ;;  %v20481_v26 = vsel %vm1474_vm8, %v20474_v42, %v20476_v45 }
 0x4db   : > { %v20472_v3 = vpop.permute.xlu0 %20471  ;;  %22585 = vrot.lane.b32.xlu1 %v31490_v24, %s32777_s6  ;;  %26854 = vmatmul.mubr.msk.f32.vlgmr.msra.gmra.mxu1 %vm248_vm2, %v27377_v18  ;;  %v31555_v18 = vpop.f32.mrf.mxu1 }
 0x4dc   : > { %v20480_v9 = vsel %vm1474_vm8, %v20472_v3, %v20474_v42  ;;  %20626 = vmatprep.mubr.f32.mxu1 %v32713_v51  ;;  %v22751_v42 = vld [vmem:[%s27482_s17 + $0x64] sm:$0xf] }
 0x4dd   : > { %26855 = vmatprep.subr.msk.mxu0 %vm252_vm1, %v20480_v9  ;;  %v20648_v48 = vpop.permute.xlu1 %20647  ;;  %v31562_v9 = vpop.f32.mrf.mxu0 }
 0x4de   : > { %22583 = vrot.lane.b32.xlu0 %v31460_v49, %s32777_s6  ;;  %32934 = vst [vmem:[#allocation3_spill] sm:$0xff] %v31562_v9 }
 0x4df   : > { %v20470_v52 = vpop.permute.xlu0 %20469  ;;  %22587 = vrot.lane.b32.xlu1 %v31503_v40, %s32777_s6 }
 0x4e0   : > { %v20479_v31 = vsel %vm1474_vm8, %v20470_v52, %v20472_v3 }
 0x4e1   : > { %26856 = vmatpush1.msk.msra.mxu0 %vm252_vm1, %v20479_v31  ;;  %v20646_v15 = vpop.permute.xlu1 %20645  ;;  %v31567_v31 = vpop.f32.mrf.mxu1 }
 0x4e2   : > { %22581 = vrot.lane.b32.xlu0 %v31449_v60, %s32777_s6  ;;  %26857 = vmatmul.mubr.msk.f32.vlgmr.msra.gmra.mxu0 %vm248_vm2, %v27378_v21  ;;  %32935 = vst [vmem:[#allocation4_spill] sm:$0xff] %v31567_v31  ;;  %v14778_v31 = vadd.f32 %v31250_v58, %v31223_v29  ;;  %v23103_v58 = vld [vmem:[%s27482_s17 + $0x64] sm:$0xf] }
 0x4e3   : > { %v20478_v7 = vpop.permute.xlu0 %20477  ;;  %22759 = vrot.lane.b32.xlu1 %v31460_v49, %s32712_s11  ;;  %20731 = vmatprep.mubr.f32.mxu0 %v32713_v51 }
 0x4e4   : > { %v20482_v43 = vsel %vm1474_vm8, %v20476_v45, %v20478_v7  ;;  %v20655_v45 = vsel %vm1654_vm9, %v20646_v15, %v20648_v48  ;;  %vm32950_vm8 = vmmov %vm32948_vm6 }
 0x4e5   : > { %26858 = vmatprep.subr.msk.mxu1 %vm252_vm1, %v20482_v43  ;;  %v20654_v3 = vpop.permute.xlu1 %20653  ;;  %v31577_v43 = vpop.f32.mrf.mxu0 }
 0x4e6   : > { %26859 = vmatpush1.msk.msra.mxu1 %vm252_vm1, %v20481_v26  ;;  %22589 = vrot.lane.b32.xlu0 %v22575_v62, %s32777_s6  ;;  %32936 = vst [vmem:[#allocation5_spill] sm:$0xff] %v31577_v43  ;;  %v27379_v26 = vld [vmem:[%s32641_s1 + $0x40] sm:$0xff] }
 0x4e7   : > { %v20650_v52 = vpop.permute.xlu0 %20649  ;;  %22757 = vrot.lane.b32.xlu1 %v31449_v60, %s32712_s11  ;;  %26860 = vmatmul.mubr.msk.f32.vlgmr.msra.gmra.mxu1 %vm248_vm2, %v27378_v21 }
 0x4e8   : > { %v20656_v7 = vsel %vm1654_vm9, %v20648_v48, %v20650_v52  ;;  %20802 = vmatprep.mubr.f32.mxu1 %v32713_v51  ;;  %v31584_v48 = vpop.f32.mrf.mxu1 }
 0x4e9   : > { %26861 = vmatprep.subr.msk.mxu0 %vm252_vm1, %v20656_v7  ;;  %v20826_v62 = vpop.permute.xlu1 %20825  ;;  %32937 = vst [vmem:[#allocation6_spill] sm:$0xff] %v31584_v48 }
 0x4ea   : > { %26862 = vmatpush1.msk.msra.mxu0 %vm252_vm1, %v20655_v45  ;;  %22761 = vrot.lane.b32.xlu0 %v31490_v24, %s32712_s11 }
 0x4eb   : > { %v20652_v21 = vpop.permute.xlu0 %20651  ;;  %22765 = vrot.lane.b32.xlu1 %v22751_v42, %s32712_s11  ;;  %26863 = vmatmul.mubr.msk.f32.vlgmr.msra.gmra.mxu0 %vm248_vm2, %v27379_v26  ;;  %v31593_v42 = vpop.f32.mrf.mxu0 }
 0x4ec   : > { %v20657_v15 = vsel %vm1654_vm9, %v20650_v52, %v20652_v21  ;;  %v20658_v7 = vsel %vm1654_vm9, %v20652_v21, %v20654_v3  ;;  %20907 = vmatprep.mubr.f32.mxu0 %v32713_v51  ;;  %32938 = vst [vmem:[#allocation7_spill] sm:$0xff] %v31593_v42  ;;  %v31598_v52 = vpop.f32.mrf.mxu1  ;;  %vm32951_vm9 = vmmov %vm32948_vm6 }
 0x4ed   : > { %26864 = vmatprep.subr.msk.mxu1 %vm252_vm1, %v20658_v7  ;;  %v20828_v45 = vpop.permute.xlu1 %20827  ;;  %32939 = vst [vmem:[#allocation8_spill] sm:$0xff] %v31598_v52 }
 0x4ee   : > { %26865 = vmatpush1.msk.msra.mxu1 %vm252_vm1, %v20657_v15  ;;  %22763 = vrot.lane.b32.xlu0 %v31503_v40, %s32712_s11  ;;  %v31605_v15 = vpop.f32.mrf.mxu0  ;;  %v20833_v43 = vsel %vm1834_vm10, %v20826_v62, %v20828_v45 }
 0x4ef   : > { %v20824_v57 = vpop.permute.xlu0 %20823  ;;  %22937 = vrot.lane.b32.xlu1 %v31490_v24, %s32718_s4  ;;  %26866 = vmatmul.mubr.msk.f32.vlgmr.msra.gmra.mxu1 %vm248_vm2, %v27379_v26  ;;  %32940 = vst [vmem:[#allocation9_spill] sm:$0xff] %v31605_v15  ;;  %v31609_v26 = vpop.f32.mrf.mxu1 }
 0x4f0   : > { %v20832_v3 = vsel %vm1834_vm10, %v20824_v57, %v20826_v62  ;;  %20978 = vmatprep.mubr.f32.mxu1 %v32713_v51  ;;  %32941 = vst [vmem:[#allocation10_spill] sm:$0xff] %v31609_v26  ;;  %v31619_v15 = vpop.f32.mrf.mxu0  ;;  %v22927_v26 = vld [vmem:[%s27482_s17 + $0x64] sm:$0xf] }
 0x4f1   : > { %26867 = vmatprep.subr.msk.mxu0 %vm252_vm1, %v20832_v3  ;;  %v21000_v21 = vpop.permute.xlu1 %20999  ;;  %v27380_v3 = vld [vmem:[%s32641_s1 + $0x48] sm:$0xff]  ;;  %32942 = vst [vmem:[#allocation11_spill] sm:$0xff] %v31619_v15 }
 0x4f2   : > { %22935 = vrot.lane.b32.xlu0 %v31460_v49, %s32718_s4  ;;  %v31636_v9 = vpop.f32.mrf.mxu0 }
 0x4f3   : > { %v20822_v7 = vpop.permute.xlu0 %20821  ;;  %22939 = vrot.lane.b32.xlu1 %v31503_v40, %s32718_s4 }
 0x4f4   : > { %v20831_v52 = vsel %vm1834_vm10, %v20822_v7, %v20824_v57  ;;  %v31625_v57 = vpop.f32.mrf.mxu1 }
 0x4f5   : > { %26868 = vmatpush1.msk.msra.mxu0 %vm252_vm1, %v20831_v52  ;;  %v20998_v42 = vpop.permute.xlu1 %20997  ;;  %32943 = vst [vmem:[#allocation12_spill] sm:$0xff] %v31625_v57  ;;  %v14776_v52 = vadd.f32 %v31237_v38, %v31213_v33  ;;  %v14847_v38 = vadd.f32 %v31255_v47, %v31227_v11  ;;  %v31657_v11 = vpop.f32.mrf.mxu0 }
 0x4f6   : > { %22933 = vrot.lane.b32.xlu0 %v31449_v60, %s32718_s4  ;;  %26869 = vmatmul.mubr.msk.f32.vlgmr.msra.gmra.mxu0 %vm248_vm2, %v27380_v3  ;;  %v31641_v33 = vpop.f32.mrf.mxu1 }
 0x4f7   : > { %v20830_v48 = vpop.permute.xlu0 %20829  ;;  %23111 = vrot.lane.b32.xlu1 %v31460_v49, %s32721_s16  ;;  %21083 = vmatprep.mubr.f32.mxu0 %v32713_v51  ;;  %v15023_v62 = vadd.f32 %v31265_v23, %v14776_v52  ;;  %v27381_v23 = vld [vmem:[%s32641_s1 + $0x50] sm:$0xff] }
 0x4f8   : > { %v20834_v7 = vsel %vm1834_vm10, %v20828_v45, %v20830_v48  ;;  %v14849_v45 = vadd.f32 %v31272_v35, %v31243_v20  ;;  %v15025_v20 = vadd.f32 %v31286_v10, %v14847_v38  ;;  %v31677_v10 = vpop.f32.mrf.mxu0  ;;  %vm32952_vm10 = vcmask 343040  }
 0x4f9   : > { %26870 = vmatprep.subr.msk.mxu1 %vm252_vm1, %v20834_v7  ;;  %v21006_v15 = vpop.permute.xlu1 %21005  ;;  %v15199_v35 = vadd.f32 %v31293_v8, %v15023_v62  ;;  %vm32953_vm11 = vmmov %vm32952_vm10 }
 0x4fa   : > { %26871 = vmatpush1.msk.msra.mxu1 %vm252_vm1, %v20833_v43  ;;  %22941 = vrot.lane.b32.xlu0 %v22927_v26, %s32718_s4  ;;  %v21007_v43 = vsel %vm32945_vm3, %v20998_v42, %v21000_v21  ;;  %v15024_v26 = vadd.f32 %v31281_v36, %v14778_v31  ;;  %v31664_v42 = vpop.f32.mrf.mxu1  ;;  %vm32954_vm13 = vmmov %vm32952_vm10 }
 0x4fb   : > { %v21002_v57 = vpop.permute.xlu0 %21001  ;;  %23109 = vrot.lane.b32.xlu1 %v31449_v60, %s32721_s16  ;;  %26872 = vmatmul.mubr.msk.f32.vlgmr.msra.gmra.mxu1 %vm248_vm2, %v27380_v3  ;;  %v15026_v3 = vadd.f32 %v31297_v44, %v14849_v45  ;;  %v15375_v44 = vadd.f32 %v31324_v28, %v15199_v35  ;;  %vm32955_vm12 = vmmov %vm32952_vm10 }
 0x4fc   : > { %v21008_v29 = vsel %vm32944_vm0, %v21000_v21, %v21002_v57  ;;  %21154 = vmatprep.mubr.f32.mxu1 %v32713_v51  ;;  %v15200_v52 = vadd.f32 %v31307_v0, %v15024_v26  ;;  %vm32956_vm0 = vcmask 334848  }
 0x4fd   : > { %26873 = vmatprep.subr.msk.mxu0 %vm252_vm1, %v21008_v29  ;;  %v21178_v48 = vpop.permute.xlu1 %21177  ;;  %v15202_v38 = vadd.f32 %v31329_v22, %v15026_v3  ;;  %v31693_v29 = vpop.f32.mrf.mxu0  ;;  %vm32957_vm3 = vmmov %vm32956_vm0 }
 0x4fe   : > { %26874 = vmatpush1.msk.msra.mxu0 %vm252_vm1, %v21007_v43  ;;  %23113 = vrot.lane.b32.xlu0 %v31490_v24, %s32721_s16  ;;  %v15376_v62 = vadd.f32 %v31346_v63, %v15200_v52  ;;  %v15551_v43 = vadd.f32 %v31364_v50, %v15375_v44 }
 0x4ff   : > { %v21004_v47 = vpop.permute.xlu0 %21003  ;;  %23117 = vrot.lane.b32.xlu1 %v23103_v58, %s32721_s16  ;;  %26875 = vmatmul.mubr.msk.f32.vlgmr.msra.gmra.mxu0 %vm248_vm2, %v27381_v23  ;;  %v15378_v45 = vadd.f32 %v31369_v1, %v15202_v38 }
 0x500   : > { %v21009_v36 = vsel %vm32946_vm4, %v21002_v57, %v21004_v47  ;;  %v21010_v31 = vsel %vm32947_vm5, %v21004_v47, %v21006_v15  ;;  %21259 = vmatprep.mubr.f32.mxu0 %v32713_v51  ;;  %v31682_v15 = vpop.f32.mrf.mxu1  ;;  %v15201_v57 = vadd.f32 %v31314_v54, %v15025_v20  ;;  %v15552_v26 = vadd.f32 %v31381_v5, %v15376_v62  ;;  %v27382_v47 = vld [vmem:[%s32641_s1 + $0x58] sm:$0xff]  ;;  %vm32959_vm4 = vmmov %vm32956_vm0 }
 0x501   : > { %26876 = vmatprep.subr.msk.mxu1 %vm252_vm1, %v21010_v31  ;;  %v21180_v21 = vpop.permute.xlu1 %21179  ;;  %v15727_v20 = vadd.f32 %v31397_v4, %v15551_v43  ;;  %v15554_v3 = vadd.f32 %v31402_v16, %v15378_v45  ;;  %vm32960_vm5 = vmmov %vm32956_vm0 }
 0x502   : > { %26877 = vmatpush1.msk.msra.mxu1 %vm252_vm1, %v21009_v36  ;;  %23115 = vrot.lane.b32.xlu0 %v31503_v40, %s32721_s16  ;;  %v31697_v54 = vpop.f32.mrf.mxu1  ;;  %v15377_v28 = vadd.f32 %v31350_v39, %v15201_v57  ;;  %v31711_v39 = vpop.f32.mrf.mxu0  ;;  %v21185_v36 = vsel %vm32951_vm9, %v21178_v48, %v21180_v21  ;;  %v15728_v52 = vadd.f32 %v31409_v12, %v15552_v26 }
 0x503   : > { %v21176_v8 = vpop.permute.xlu0 %21175  ;;  %23289 = vrot.lane.b32.xlu1 %v31490_v24, %s32722_s7  ;;  %26878 = vmatmul.mubr.msk.f32.vlgmr.msra.gmra.mxu1 %vm248_vm2, %v27381_v23  ;;  %v23279_v23 = vld [vmem:[%s27482_s17 + $0x64] sm:$0xf]  ;;  %v15903_v16 = vadd.f32 %v31424_v41, %v15727_v20 }
 0x504   : > { %v21184_v0 = vsel %vm32948_vm6, %v21176_v8, %v21178_v48  ;;  %21330 = vmatprep.mubr.f32.mxu1 %v32713_v51  ;;  %v31717_v1 = vpop.f32.mrf.mxu1  ;;  %v15553_v5 = vadd.f32 %v31387_v61, %v15377_v28  ;;  %v15904_v38 = vadd.f32 %v31440_v17, %v15728_v52  ;;  %vm32964_vm6 = vcmask 326656  }
 0x505   : > { %26879 = vmatprep.subr.msk.mxu0 %vm252_vm1, %v21184_v0  ;;  %v21352_v7 = vpop.permute.xlu1 %21351  ;;  %v15730_v0 = vadd.f32 %v31431_v30, %v15554_v3  ;;  %v16079_v17 = vadd.f32 %v31454_v6, %v15903_v16  ;;  %v31800_v3 = vld [vmem:[%s32641_s1 + $0x68] sm:$0xff]  ;;  %vm32971_vm9 = vmmov %vm32964_vm6 }
 0x506   : > { %23287 = vrot.lane.b32.xlu0 %v31460_v49, %s32722_s7  ;;  %v31733_v4 = vpop.f32.mrf.mxu1  ;;  %v15729_v48 = vadd.f32 %v31414_v53, %v15553_v5 }
 0x507   : > { %v21174_v58 = vpop.permute.xlu0 %21173  ;;  %23291 = vrot.lane.b32.xlu1 %v31503_v40, %s32722_s7 }
 0x508   : > { %v21183_v22 = vsel %vm32949_vm7, %v21174_v58, %v21176_v8  ;;  %v31728_v8 = vpop.f32.mrf.mxu0  ;;  %v31754_v62 = vpop.f32.mrf.mxu1  ;;  %v15905_v30 = vadd.f32 %v31445_v14, %v15729_v48  ;;  %vm32965_vm7 = vmmov %vm32964_vm6 }
 0x509   : > { %26880 = vmatpush1.msk.msra.mxu0 %vm252_vm1, %v21183_v22  ;;  %v21350_v63 = vpop.permute.xlu1 %21349  ;;  %v15906_v22 = vadd.f32 %v31462_v37, %v15730_v0  ;;  %v16255_v37 = vadd.f32 %v31485_v25, %v16079_v17 }
 0x50a   : > { %23285 = vrot.lane.b32.xlu0 %v31449_v60, %s32722_s7  ;;  %26881 = vmatmul.mubr.msk.f32.vlgmr.msra.gmra.mxu0 %vm248_vm2, %v27382_v47  ;;  %v21359_v57 = vsel %vm32953_vm11, %v21350_v63, %v21352_v7  ;;  %v31747_v53 = vpop.f32.mrf.mxu0  ;;  %v16080_v63 = vadd.f32 %v31472_v34, %v15904_v38  ;;  %v31772_v45 = vpop.f32.mrf.mxu1  ;;  %v16081_v26 = vadd.f32 %v31478_v13, %v15905_v30  ;;  %v23807_v30 = vld [vmem:[%s27482_s17 + $0x64] sm:$0xf] }
 0x50b   : > { %v21182_v50 = vpop.permute.xlu0 %21181  ;;  %23463 = vrot.lane.b32.xlu1 %v31460_v49, %s32723_s8  ;;  %21435 = vmatprep.mubr.f32.mxu0 %v32713_v51 }
 0x50c   : > { %v21186_v35 = vsel %vm32950_vm8, %v21180_v21, %v21182_v50  ;;  %v23455_v21 = vld [vmem:[%s27482_s17 + $0x64] sm:$0xf]  ;;  %v31767_v14 = vpop.f32.mrf.mxu0  ;;  %v16082_v50 = vadd.f32 %v31493_v19, %v15906_v22  ;;  %v31787_v13 = vpop.f32.mrf.mxu1  ;;  %v16257_v25 = vadd.f32 %v31514_v2, %v16081_v26  ;;  %v31849_v26 = vld [vmem:[%s32641_s1 + $0x70] sm:$0xff]  ;;  %vm32970_vm8 = vmmov %vm32964_vm6 }
 0x50d   : > { %26882 = vmatprep.subr.msk.mxu1 %vm252_vm1, %v21186_v35  ;;  %v21358_v31 = vpop.permute.xlu1 %21357  ;;  %v16431_v35 = vadd.f32 %v31523_v59, %v16255_v37 }
 0x50e   : > { %26883 = vmatpush1.msk.msra.mxu1 %vm252_vm1, %v21185_v36  ;;  %23293 = vrot.lane.b32.xlu0 %v23279_v23, %s32722_s7  ;;  %v16256_v23 = vadd.f32 %v31507_v27, %v16080_v63  ;;  %v31783_v5 = vpop.f32.mrf.mxu0  ;;  %v16258_v36 = vadd.f32 %v31528_v55, %v16082_v50  ;;  %v23631_v55 = vld [vmem:[%s27482_s17 + $0x64] sm:$0xf]  ;;  %v16433_v52 = vadd.f32 %v31539_v32, %v16257_v25  ;;  %v32969_v50 = vld [vmem:[#allocation9_spill] sm:$0xff]  ;;  %v24137_v25 = vld [vmem:[%s27482_s17 + $0x50] sm:$0xf] }
 0x50f   : > { %v21354_v61 = vpop.permute.xlu0 %21353  ;;  %23461 = vrot.lane.b32.xlu1 %v31449_v60, %s32723_s8  ;;  %26884 = vmatmul.mubr.msk.f32.vlgmr.msra.gmra.mxu1 %vm248_vm2, %v27382_v47 }
 0x510   : > { %v21360_v12 = vsel %vm32952_vm10, %v21352_v7, %v21354_v61  ;;  %21506 = vmatprep.mubr.f32.mxu1 %v32713_v51  ;;  %v27383_v7 = vld [vmem:[%s32641_s1 + $0x60] sm:$0xff]  ;;  %v31804_v2 = vpop.f32.mrf.mxu0  ;;  %vm32975_vm10 = vcmask 195584  }
 0x511   : > { %26885 = vmatprep.subr.msk.mxu0 %vm252_vm1, %v21360_v12  ;;  %v21530_v44 = vpop.permute.xlu1 %21529  ;;  %vm32976_vm11 = vmmov %vm32975_vm10 }
 0x512   : > { %26886 = vmatpush1.msk.msra.mxu0 %vm252_vm1, %v21359_v57  ;;  %23465 = vrot.lane.b32.xlu0 %v31490_v24, %s32723_s8 }
 0x513   : > { %v21356_v41 = vpop.permute.xlu0 %21355  ;;  %23469 = vrot.lane.b32.xlu1 %v23455_v21, %s32723_s8  ;;  %26887 = vmatmul.mubr.msk.f32.vlgmr.msra.gmra.mxu0 %vm248_vm2, %v27383_v7  ;;  %v16434_v21 = vadd.f32 %v31555_v18, %v16258_v36  ;;  %v32963_v18 = vld [vmem:[#allocation5_spill] sm:$0xff]  ;;  %v32973_v36 = vld [vmem:[#allocation11_spill] sm:$0xff] }
 0x514   : > { %v21361_v58 = vsel %vm32954_vm13, %v21354_v61, %v21356_v41  ;;  %v21362_v28 = vsel %vm32955_vm12, %v21356_v41, %v21358_v31  ;;  %21611 = vmatprep.mubr.f32.mxu0 %v32713_v51  ;;  %v16432_v31 = vadd.f32 %v31535_v56, %v16256_v23  ;;  %v31810_v56 = vpop.f32.mrf.mxu1  ;;  %v16607_v61 = vadd.f32 %v31549_v46, %v16431_v35  ;;  %vm32977_vm13 = vmmov %vm32975_vm10 }
 0x515   : > { %26888 = vmatprep.subr.msk.mxu1 %vm252_vm1, %v21362_v28  ;;  %v21532_v43 = vpop.permute.xlu1 %21531  ;;  %vm32978_vm12 = vmmov %vm32975_vm10 }
 0x516   : > { %26889 = vmatpush1.msk.msra.mxu1 %vm252_vm1, %v21361_v58  ;;  %23467 = vrot.lane.b32.xlu0 %v31503_v40, %s32723_s8  ;;  %v21537_v16 = vsel %vm32960_vm5, %v21530_v44, %v21532_v43  ;;  %v31821_v0 = vpop.f32.mrf.mxu0  ;;  %v31827_v46 = vpop.f32.mrf.mxu1  ;;  %v16783_v41 = vadd.f32 %v32963_v18, %v16607_v61  ;;  %v32966_v58 = vld [vmem:[#allocation6_spill] sm:$0xff] }
 0x517   : > { %v21528_v6 = vpop.permute.xlu0 %21527  ;;  %23641 = vrot.lane.b32.xlu1 %v31490_v24, %s32724_s9  ;;  %26890 = vmatmul.mubr.msk.f32.vlgmr.msra.gmra.mxu1 %vm248_vm2, %v27383_v7  ;;  %v16610_v28 = vadd.f32 %v32966_v58, %v16434_v21  ;;  %v24291_v21 = vld [vmem:[%s27482_s17 + $0x50] sm:$0xf] }
 0x518   : > { %v21536_v34 = vsel %vm32956_vm0, %v21528_v6, %v21530_v44  ;;  %21682 = vmatprep.mubr.f32.mxu1 %v32713_v51  ;;  %v32962_v44 = vld [vmem:[#allocation4_spill] sm:$0xff]  ;;  %v31843_v63 = vpop.f32.mrf.mxu0  ;;  %vm32981_vm0 = vcmask 187392  }
 0x519   : > { %26891 = vmatprep.subr.msk.mxu0 %vm252_vm1, %v21536_v34  ;;  %v21704_v47 = vpop.permute.xlu1 %21703  ;;  %v16609_v38 = vadd.f32 %v32962_v44, %v16433_v52  ;;  %v32968_v34 = vld [vmem:[#allocation8_spill] sm:$0xff]  ;;  %vm32985_vm5 = vmmov %vm32981_vm0 }
 0x51a   : > { %23639 = vrot.lane.b32.xlu0 %v31460_v49, %s32724_s9  ;;  %v31871_v52 = vld [vmem:[%s27482_s17 + $0x50] sm:$0xf] }
 0x51b   : > { %v21526_v20 = vpop.permute.xlu0 %21525  ;;  %23643 = vrot.lane.b32.xlu1 %v31503_v40, %s32724_s9  ;;  %v31853_v37 = vpop.f32.mrf.mxu1 }
 0x51c   : > { %v21535_v19 = vsel %vm32957_vm3, %v21526_v20, %v21528_v6  ;;  %vm32982_vm3 = vmmov %vm32981_vm0 }
 0x51d   : > { %26892 = vmatpush1.msk.msra.mxu0 %vm252_vm1, %v21535_v19  ;;  %v21702_v27 = vpop.permute.xlu1 %21701  ;;  %v32972_v19 = vld [vmem:[#allocation10_spill] sm:$0xff]  ;;  %v31875_v61 = vpop.f32.mrf.mxu1 }
 0x51e   : > { %23637 = vrot.lane.b32.xlu0 %v31449_v60, %s32724_s9  ;;  %26893 = vmatmul.mubr.msk.f32.vlgmr.msra.gmra.mxu0 %vm248_vm2, %v31800_v3  ;;  %v21711_v17 = vsel %vm32965_vm7, %v21702_v27, %v21704_v47  ;;  %v16786_v27 = vadd.f32 %v32972_v19, %v16610_v28  ;;  %v31905_v28 = vld [vmem:[%s32641_s1 + $0x78] sm:$0xff] }
 0x51f   : > { %v21534_v59 = vpop.permute.xlu0 %21533  ;;  %23815 = vrot.lane.b32.xlu1 %v31460_v49, %s32958_s22  ;;  %21787 = vmatprep.mubr.f32.mxu0 %v32713_v51  ;;  %v32961_v49 = vld [vmem:[#allocation3_spill] sm:$0xff] }
 0x520   : > { %v21538_v48 = vsel %vm32959_vm4, %v21532_v43, %v21534_v59  ;;  %v16608_v57 = vadd.f32 %v32961_v49, %v16432_v31  ;;  %v32967_v43 = vld [vmem:[#allocation7_spill] sm:$0xff]  ;;  %v31867_v59 = vpop.f32.mrf.mxu0  ;;  %vm32984_vm4 = vmmov %vm32981_vm0 }
 0x521   : > { %26894 = vmatprep.subr.msk.mxu1 %vm252_vm1, %v21538_v48  ;;  %v21710_v12 = vpop.permute.xlu1 %21709  ;;  %v32974_v48 = vld [vmem:[#allocation12_spill] sm:$0xff] }
 0x522   : > { %26895 = vmatpush1.msk.msra.mxu1 %vm252_vm1, %v21537_v16  ;;  %23645 = vrot.lane.b32.xlu0 %v23631_v55, %s32724_s9  ;;  %v16784_v22 = vadd.f32 %v32967_v43, %v16608_v57  ;;  %v16962_v57 = vadd.f32 %v31641_v33, %v16786_v27  ;;  %v31888_v44 = vpop.f32.mrf.mxu0  ;;  %v24368_v43 = vld [vmem:[%s27482_s17 + $0x50] sm:$0xf] }
 0x523   : > { %v21706_v32 = vpop.permute.xlu0 %21705  ;;  %23813 = vrot.lane.b32.xlu1 %v31449_v60, %s32958_s22  ;;  %26896 = vmatmul.mubr.msk.f32.vlgmr.msra.gmra.mxu1 %vm248_vm2, %v31800_v3  ;;  %v31892_v18 = vpop.f32.mrf.mxu1 }
 0x524   : > { %v21712_v7 = vsel %vm32964_vm6, %v21704_v47, %v21706_v32  ;;  %21858 = vmatprep.mubr.f32.mxu1 %v32713_v51  ;;  %v16785_v47 = vadd.f32 %v32968_v34, %v16609_v38  ;;  %v16960_v31 = vadd.f32 %v32973_v36, %v16784_v22  ;;  %v24214_v38 = vld [vmem:[%s27482_s17 + $0x50] sm:$0xf]  ;;  %vm32987_vm6 = vcmask 179200  }
 0x525   : > { %26897 = vmatprep.subr.msk.mxu0 %vm252_vm1, %v21712_v7  ;;  %v31836_v60 = vpop.permute.xlu1 %21881  ;;  %v24599_v34 = vld [vmem:[%s27482_s17 + $0x50] sm:$0xf]  ;;  %vm32988_vm7 = vmmov %vm32987_vm6 }
 0x526   : > { %26898 = vmatpush1.msk.msra.mxu0 %vm252_vm1, %v21711_v17  ;;  %23817 = vrot.lane.b32.xlu0 %v31490_v24, %s32958_s22  ;;  %v16959_v24 = vadd.f32 %v32969_v50, %v16783_v41  ;;  %v16961_v16 = vadd.f32 %v32974_v48, %v16785_v47  ;;  %v17138_v17 = vadd.f32 %v31682_v15, %v16962_v57  ;;  %v31914_v15 = vpop.f32.mrf.mxu1  ;;  %v31955_v48 = vld [vmem:[%s32641_s1 + $0x80] sm:$0xff] }
 0x527   : > { %v21708_v6 = vpop.permute.xlu0 %21707  ;;  %23821 = vrot.lane.b32.xlu1 %v23807_v30, %s32958_s22  ;;  %26899 = vmatmul.mubr.msk.f32.vlgmr.msra.gmra.mxu0 %vm248_vm2, %v31849_v26  ;;  %v24445_v30 = vld [vmem:[%s27482_s17 + $0x50] sm:$0xf] }
 0x528   : > { %v21713_v23 = vsel %vm32970_vm8, %v21706_v32, %v21708_v6  ;;  %v21714_v20 = vsel %vm32971_vm9, %v21708_v6, %v21710_v12  ;;  %21963 = vmatprep.mubr.f32.mxu0 %v32713_v51  ;;  %v17135_v12 = vadd.f32 %v31636_v9, %v16959_v24  ;;  %v17136_v32 = vadd.f32 %v31657_v11, %v16960_v31  ;;  %vm32989_vm8 = vmmov %vm32987_vm6 }
 0x529   : > { %26900 = vmatprep.subr.msk.mxu1 %vm252_vm1, %v21714_v20  ;;  %v21884_v35 = vpop.permute.xlu1 %21883  ;;  %v17137_v41 = vadd.f32 %v31664_v42, %v16961_v16  ;;  %v17314_v24 = vadd.f32 %v31717_v1, %v17138_v17  ;;  %v24522_v20 = vld [vmem:[%s27482_s17 + $0x50] sm:$0xf]  ;;  %vm32990_vm9 = vmmov %vm32987_vm6 }
 0x52a   : > { %26901 = vmatpush1.msk.msra.mxu1 %vm252_vm1, %v21713_v23  ;;  %23819 = vrot.lane.b32.xlu0 %v31503_v40, %s32958_s22  ;;  %v17311_v7 = vadd.f32 %v31677_v10, %v17135_v12  ;;  %v17312_v58 = vadd.f32 %v31693_v29, %v17136_v32  ;;  %v31909_v42 = vpop.f32.mrf.mxu0  ;;  %v21889_v47 = vsel %vm32978_vm12, %v31836_v60, %v21884_v35 }
 0x52b   : > { %v21880_v55 = vpop.permute.xlu0 %21879  ;;  %24139 = vrot.lane.b32.xlu1 %v24137_v25, %s32894_s10  ;;  %26902 = vmatmul.mubr.msk.f32.vlgmr.msra.gmra.mxu1 %vm248_vm2, %v31849_v26  ;;  %v17313_v29 = vadd.f32 %v31697_v54, %v17137_v41  ;;  %s32980_s10 = smov 90   ;;  %v17490_v36 = vadd.f32 %v31754_v62, %v17314_v24 }
 0x52c   : > { %v21888_v40 = vsel %vm32975_vm10, %v21880_v55, %v31836_v60  ;;  %22034 = vmatprep.mubr.f32.mxu1 %v32713_v51  ;;  %v17487_v22 = vadd.f32 %v31711_v39, %v17311_v7  ;;  %v17488_v23 = vadd.f32 %v31728_v8, %v17312_v58  ;;  %v31927_v54 = vpop.f32.mrf.mxu0  ;;  %v25061_v7 = vld [vmem:[%s27482_s17 + $0x58] sm:$0xf]  ;;  %vm32991_vm10 = vcmask 982016  }
 0x52d   : > { %26903 = vmatprep.subr.msk.mxu0 %vm252_vm1, %v21888_v40  ;;  %v22056_v49 = vpop.permute.xlu1 %22055  ;;  %v17489_v1 = vadd.f32 %v31733_v4, %v17313_v29  ;;  %v17666_v57 = vadd.f32 %v31787_v13, %v17490_v36  ;;  %vm32994_vm12 = vmmov %vm32991_vm10 }
 0x52e   : > { %23991 = vrot.lane.b32.xlu0 %v31871_v52, %s27420_s18  ;;  %v17663_v8 = vadd.f32 %v31747_v53, %v17487_v22  ;;  %v17664_v31 = vadd.f32 %v31767_v14, %v17488_v23 }
 0x52f   : > { %v21878_v9 = vpop.permute.xlu0 %21877  ;;  %24293 = vrot.lane.b32.xlu1 %v24291_v21, %s27423_s21  ;;  %v31933_v60 = vpop.f32.mrf.mxu1  ;;  %v17665_v14 = vadd.f32 %v31772_v45, %v17489_v1  ;;  %v24907_v21 = vld [vmem:[%s27482_s17 + $0x58] sm:$0xf] }
 0x530   : > { %v21887_v33 = vsel %vm32976_vm11, %v21878_v9, %v21880_v55  ;;  %v24676_v55 = vld [vmem:[%s27482_s17 + $0x58] sm:$0xf]  ;;  %v17839_v16 = vadd.f32 %v31783_v5, %v17663_v8  ;;  %v17840_v32 = vadd.f32 %v31804_v2, %v17664_v31  ;;  %vm32992_vm11 = vmmov %vm32991_vm10 }
 0x531   : > { %26904 = vmatpush1.msk.msra.mxu0 %vm252_vm1, %v21887_v33  ;;  %v22054_v11 = vpop.permute.xlu1 %22053  ;;  %v31959_v62 = vpop.f32.mrf.mxu1  ;;  %v24830_v9 = vld [vmem:[%s27482_s17 + $0x58] sm:$0xf]  ;;  %v17841_v41 = vadd.f32 %v31810_v56, %v17665_v14 }
 0x532   : > { %24216 = vrot.lane.b32.xlu0 %v24214_v38, %s32821_s30  ;;  %26905 = vmatmul.mubr.msk.f32.vlgmr.msra.gmra.mxu0 %vm248_vm2, %v31905_v28  ;;  %v22063_v19 = vsel %vm32982_vm3, %v22054_v11, %v22056_v49  ;;  %s32983_s30 = smov 91   ;;  %v18015_v13 = vadd.f32 %v31821_v0, %v17839_v16  ;;  %v31984_v33 = vld [vmem:[%s27482_s17 + $0x58] sm:$0xff]  ;;  %v17842_v11 = vadd.f32 %v31827_v46, %v17666_v57 }
 0x533   : > { %v21886_v10 = vpop.permute.xlu0 %21885  ;;  %24447 = vrot.lane.b32.xlu1 %v24445_v30, %s27425_s23  ;;  %22139 = vmatprep.mubr.f32.mxu0 %v32713_v51  ;;  %s32979_s23 = smov 108   ;;  %v31948_v4 = vpop.f32.mrf.mxu0  ;;  %v18016_v17 = vadd.f32 %v31843_v63, %v17840_v32  ;;  %v24984_v0 = vld [vmem:[%s27482_s17 + $0x58] sm:$0xf]  ;;  %v18017_v29 = vadd.f32 %v31853_v37, %v17841_v41 }
 0x534   : > { %v21890_v6 = vsel %vm32977_vm13, %v21884_v35, %v21886_v10  ;;  %v24753_v35 = vld [vmem:[%s27482_s17 + $0x58] sm:$0xf]  ;;  %v25140_v10 = vcombine.high %v31984_v33, %v31984_v33  ;;  %v18191_v22 = vadd.f32 %v31867_v59, %v18015_v13  ;;  %v18018_v63 = vadd.f32 %v31875_v61, %v17842_v11  ;;  %vm32993_vm13 = vmmov %vm32991_vm10  ;;  %v25612_v13 = vld [vmem:[%s27482_s17 + $0x64] sm:$0xf] }
 0x535   : > { %26906 = vmatprep.subr.msk.mxu1 %vm252_vm1, %v21890_v6  ;;  %v22062_v50 = vpop.permute.xlu1 %22061  ;;  %v18469_v45 = vpop.f32.mrf.mxu0  ;;  %v18193_v61 = vadd.f32 %v31892_v18, %v18017_v29 }
 0x536   : > { %26907 = vmatpush1.msk.msra.mxu1 %vm252_vm1, %v21889_v47  ;;  %24370 = vrot.lane.b32.xlu0 %v24368_v43, %s32979_s23  ;;  %v32005_v47 = vld [vmem:[%s32641_s1 + $0x88] sm:$0xff] }
 0x537   : > { %v22058_v39 = vpop.permute.xlu0 %22057  ;;  %24601 = vrot.lane.b32.xlu1 %v24599_v34, %s32980_s10  ;;  %26908 = vmatmul.mubr.msk.f32.vlgmr.msra.gmra.mxu1 %vm248_vm2, %v31905_v28  ;;  %v31976_v38 = vpop.f32.mrf.mxu1  ;;  %v18192_v34 = vadd.f32 %v31888_v44, %v18016_v17  ;;  %v18367_v44 = vadd.f32 %v31909_v42, %v18191_v22 }
 0x538   : > { %v22064_v25 = vsel %vm32981_vm0, %v22056_v49, %v22058_v39  ;;  %22210 = vmatprep.mubr.f32.mxu1 %v32713_v51  ;;  %vm32995_vm0 = vcmask 973824  }
 0x539   : > { %26909 = vmatprep.subr.msk.mxu0 %vm252_vm1, %v22064_v25  ;;  %v31942_v27 = vpop.permute.xlu1 %22233  ;;  %v18540_v43 = vpop.f32.mrf.mxu1  ;;  %v18368_v1 = vadd.f32 %v31927_v54, %v18192_v34  ;;  %v18369_v25 = vadd.f32 %v31933_v60, %v18193_v61  ;;  %vm32996_vm3 = vmmov %vm32995_vm0 }
 0x53a   : > { %26910 = vmatpush1.msk.msra.mxu0 %vm252_vm1, %v22063_v19  ;;  %24524 = vrot.lane.b32.xlu0 %v24522_v20, %s32983_s30  ;;  %v18194_v20 = vadd.f32 %v31914_v15, %v18018_v63  ;;  %v32073_v63 = vld [vmem:[%s32641_s1 + $0x98] sm:$0xff] }
 0x53b   : > { %v22060_v53 = vpop.permute.xlu0 %22059  ;;  %24755 = vrot.lane.b32.xlu1 %v24753_v35, %s32925_s24  ;;  %26911 = vmatmul.mubr.msk.f32.vlgmr.msra.gmra.mxu0 %vm248_vm2, %v31955_v48  ;;  %s32986_s24 = smov 60   ;;  %v18543_v35 = vadd.f32 %v31948_v4, %v18367_v44  ;;  %v18544_v36 = vadd.f32 %v18469_v45, %v18368_v1  ;;  %v32999_v1 = vld [vmem:[#allocation2_spill] sm:$0xff] }
 0x53c   : > { %v22065_v12 = vsel %vm32984_vm4, %v22058_v39, %v22060_v53  ;;  %v22066_v40 = vsel %vm32985_vm5, %v22060_v53, %v22062_v50  ;;  %22315 = vmatprep.mubr.f32.mxu0 %v32713_v51  ;;  %v32041_v53 = vld [vmem:[%s32641_s1 + $0x90] sm:$0xff]  ;;  %vm32997_vm4 = vmmov %vm32995_vm0 }
 0x53d   : > { %26912 = vmatprep.subr.msk.mxu1 %vm252_vm1, %v22066_v40  ;;  %v22236_v49 = vpop.permute.xlu1 %22235  ;;  %vm32998_vm5 = vmmov %vm32995_vm0 }
 0x53e   : > { %26913 = vmatpush1.msk.msra.mxu1 %vm252_vm1, %v22065_v12  ;;  %24678 = vrot.lane.b32.xlu0 %v24676_v55, %s32986_s24  ;;  %v18643_v56 = vpop.f32.mrf.mxu0  ;;  %v22241_v23 = vsel %vm32990_vm9, %v31942_v27, %v22236_v49  ;;  %v18545_v55 = vadd.f32 %v31976_v38, %v18369_v25  ;;  %v25458_v12 = vld [vmem:[%s27482_s17 + $0x64] sm:$0xf] }
 0x53f   : > { %v22232_v5 = vpop.permute.xlu0 %22231  ;;  %24909 = vrot.lane.b32.xlu1 %v24907_v21, %s32933_s25  ;;  %26914 = vmatmul.mubr.msk.f32.vlgmr.msra.gmra.mxu1 %vm248_vm2, %v31955_v48 }
 0x540   : > { %v22240_v2 = vsel %vm32987_vm6, %v22232_v5, %v31942_v27  ;;  %22386 = vmatprep.mubr.f32.mxu1 %v32713_v51  ;;  %v18645_v37 = vpop.f32.mrf.mxu0  ;;  %v18370_v27 = vadd.f32 %v31959_v62, %v18194_v20  ;;  %v18719_v62 = vadd.f32 %v18643_v56, %v18543_v35  ;;  %v25535_v56 = vld [vmem:[%s27482_s17 + $0x64] sm:$0xf]  ;;  %vm33000_vm6 = vcmask 965632  }
 0x541   : > { %26915 = vmatprep.subr.msk.mxu0 %vm252_vm1, %v22240_v2  ;;  %v22408_v30 = vpop.permute.xlu1 %22407  ;;  %vm33003_vm9 = vmmov %vm33000_vm6 }
 0x542   : > { %24832 = vrot.lane.b32.xlu0 %v24830_v9, %s32932_s28  ;;  %v18546_v21 = vadd.f32 %v18540_v43, %v18370_v27  ;;  %v25766_v43 = vld [vmem:[%s27482_s17 + $0x64] sm:$0xf] }
 0x543   : > { %v22230_v58 = vpop.permute.xlu0 %22229  ;;  %25063 = vrot.lane.b32.xlu1 %v25061_v7, %s32854_s15  ;;  %v18714_v50 = vpop.f32.mrf.mxu1 }
 0x544   : > { %v22239_v6 = vsel %vm32988_vm7, %v22230_v58, %v22232_v5  ;;  %v25381_v5 = vld [vmem:[%s27482_s17 + $0x64] sm:$0xf]  ;;  %v18721_v9 = vadd.f32 %v18714_v50, %v18545_v55  ;;  %vm33001_vm7 = vmmov %vm33000_vm6 }
 0x545   : > { %26916 = vmatpush1.msk.msra.mxu0 %vm252_vm1, %v22239_v6  ;;  %v22406_v46 = vpop.permute.xlu1 %22405  ;;  %v18716_v42 = vpop.f32.mrf.mxu1 }
 0x546   : > { %24986 = vrot.lane.b32.xlu0 %v24984_v0, %s32853_s19  ;;  %26917 = vmatmul.mubr.msk.f32.vlgmr.msra.gmra.mxu0 %vm248_vm2, %v32005_v47  ;;  %v22415_v54 = vsel %vm32992_vm11, %v22406_v46, %v22408_v30  ;;  %v18722_v7 = vadd.f32 %v18716_v42, %v18546_v21 }
 0x547   : > { %v22238_v59 = vpop.permute.xlu0 %22237  ;;  %25143 = vrot.lane.b32.xlu1 %v25140_v10, %s32855_s27  ;;  %22491 = vmatprep.mubr.f32.mxu0 %v32713_v51  ;;  %v18819_v18 = vpop.f32.mrf.mxu0 }
 0x548   : > { %v22242_v24 = vsel %vm32989_vm8, %v22236_v49, %v22238_v59  ;;  %v18720_v49 = vadd.f32 %v18645_v37, %v18544_v36  ;;  %v18895_v38 = vadd.f32 %v18819_v18, %v18719_v62  ;;  %v25689_v59 = vld [vmem:[%s27482_s17 + $0x64] sm:$0xf]  ;;  %vm33002_vm8 = vmmov %vm33000_vm6 }
 0x549   : > { %26918 = vmatprep.subr.msk.mxu1 %vm252_vm1, %v22242_v24  ;;  %v22414_v39 = vpop.permute.xlu1 %22413  ;;  %v18821_v60 = vpop.f32.mrf.mxu0  ;;  %v25920_v24 = vld [vmem:[%s27482_s17 + $0x64] sm:$0xf] }
 0x54a   : > { %26919 = vmatpush1.msk.msra.mxu1 %vm252_vm1, %v22241_v23  ;;  %25141 = vrot.lane.b32.xlu0 %v31984_v33, %s32855_s27 }
 0x54b   : > { %v22410_v8 = vpop.permute.xlu0 %22409  ;;  %25224 = vrot.lane.b32.xlu1 %v25140_v10, %s32774_s13  ;;  %26920 = vmatmul.mubr.msk.f32.vlgmr.msra.gmra.mxu1 %vm248_vm2, %v32005_v47  ;;  %v18890_v4 = vpop.f32.mrf.mxu1 }
 0x54c   : > { %v22416_v15 = vsel %vm32991_vm10, %v22408_v30, %v22410_v8  ;;  %22562 = vmatprep.mubr.f32.mxu1 %v32713_v51  ;;  %v18897_v58 = vadd.f32 %v18890_v4, %v18721_v9  ;;  %vm33004_vm10 = vcmask 834560  }
 0x54d   : > { %26921 = vmatprep.subr.msk.mxu0 %vm252_vm1, %v22416_v15  ;;  %v32031_v19 = vpop.permute.xlu1 %22585  ;;  %v18892_v45 = vpop.f32.mrf.mxu1  ;;  %v25843_v15 = vld [vmem:[%s27482_s17 + $0x64] sm:$0xf]  ;;  %vm33005_vm11 = vmmov %vm33004_vm10 }
 0x54e   : > { %26922 = vmatpush1.msk.msra.mxu0 %vm252_vm1, %v22415_v54  ;;  %25222 = vrot.lane.b32.xlu0 %v31984_v33, %s32774_s13  ;;  %v18898_v22 = vadd.f32 %v18892_v45, %v18722_v7 }
 0x54f   : > { %v22412_v31 = vpop.permute.xlu0 %22411  ;;  %25305 = vrot.lane.b32.xlu1 %v25140_v10, %s32775_s5  ;;  %26923 = vmatmul.mubr.msk.f32.vlgmr.msra.gmra.mxu0 %vm248_vm2, %v32041_v53 }
 0x550   : > { %v22417_v14 = vsel %vm32993_vm13, %v22410_v8, %v22412_v31  ;;  %v22418_v16 = vsel %vm32994_vm12, %v22412_v31, %v22414_v39  ;;  %22667 = vmatprep.mubr.f32.mxu0 %v32713_v51  ;;  %vm33006_vm13 = vmmov %vm33004_vm10 }
 0x551   : > { %26924 = vmatprep.subr.msk.mxu1 %vm252_vm1, %v22418_v16  ;;  %v22588_v40 = vpop.permute.xlu1 %22587  ;;  %v25997_v16 = vld [vmem:[%s27482_s17 + $0x64] sm:$0xf]  ;;  %vm33007_vm12 = vmmov %vm33004_vm10 }
 0x552   : > { %26925 = vmatpush1.msk.msra.mxu1 %vm252_vm1, %v22417_v14  ;;  %25303 = vrot.lane.b32.xlu0 %v31984_v33, %s32775_s5  ;;  %v18995_v57 = vpop.f32.mrf.mxu0  ;;  %v18896_v33 = vadd.f32 %v18821_v60, %v18720_v49  ;;  %v22593_v23 = vsel %vm32998_vm5, %v32031_v19, %v22588_v40  ;;  %v32105_v14 = vld [vmem:[%s32641_s1 + $0xa0] sm:$0xff] }
 0x553   : > { %v22584_v32 = vpop.permute.xlu0 %22583  ;;  %25460 = vrot.lane.b32.xlu1 %v25458_v12, %s32777_s6  ;;  %26926 = vmatmul.mubr.msk.f32.vlgmr.msra.gmra.mxu1 %vm248_vm2, %v32041_v53  ;;  %v19071_v0 = vadd.f32 %v18995_v57, %v18895_v38 }
 0x554   : > { %v22592_v41 = vsel %vm32995_vm0, %v22584_v32, %v32031_v19  ;;  %22738 = vmatprep.mubr.f32.mxu1 %v32713_v51  ;;  %v18997_v30 = vpop.f32.mrf.mxu0  ;;  %vm33008_vm0 = vcmask 826368  }
 0x555   : > { %26927 = vmatprep.subr.msk.mxu0 %vm252_vm1, %v22592_v41  ;;  %v22760_v2 = vpop.permute.xlu1 %22759  ;;  %v19072_v6 = vadd.f32 %v18997_v30, %v18896_v33  ;;  %v32129_v41 = vld [vmem:[%s32641_s1 + $0xa8] sm:$0xff]  ;;  %vm33011_vm5 = vmmov %vm33008_vm0 }
 0x556   : > { %25383 = vrot.lane.b32.xlu0 %v25381_v5, %s32776_s20 }
 0x557   : > { %v22582_v11 = vpop.permute.xlu0 %22581  ;;  %v19066_v17 = vpop.f32.mrf.mxu1  ;;  %25614 = vrot.lane.b32.xlu1 %v25612_v13, %s32718_s4 }
 0x558   : > { %v22591_v10 = vsel %vm32996_vm3, %v22582_v11, %v22584_v32  ;;  %v19073_v50 = vadd.f32 %v19066_v17, %v18897_v58  ;;  %vm33009_vm3 = vmmov %vm33008_vm0  ;;  %v32148_v58 = vld [vmem:[%s32641_s1 + $0xb0] sm:$0xff] }
 0x559   : > { %26928 = vmatpush1.msk.msra.mxu0 %vm252_vm1, %v22591_v10  ;;  %v22758_v29 = vpop.permute.xlu1 %22757  ;;  %v19068_v46 = vpop.f32.mrf.mxu1 }
 0x55a   : > { %25537 = vrot.lane.b32.xlu0 %v25535_v56, %s32712_s11  ;;  %26929 = vmatmul.mubr.msk.f32.vlgmr.msra.gmra.mxu0 %vm248_vm2, %v32073_v63  ;;  %v19074_v8 = vadd.f32 %v19068_v46, %v18898_v22  ;;  %v22767_v36 = vsel %vm33001_vm7, %v22758_v29, %v22760_v2 }
 0x55b   : > { %v19171_v34 = vpop.f32.mrf.mxu0  ;;  %v22590_v37 = vpop.permute.xlu0 %22589  ;;  %25768 = vrot.lane.b32.xlu1 %v25766_v43, %s32722_s7  ;;  %22843 = vmatprep.mubr.f32.mxu0 %v32713_v51 }
 0x55c   : > { %v19247_v61 = vadd.f32 %v19171_v34, %v19071_v0  ;;  %v22594_v44 = vsel %vm32997_vm4, %v22588_v40, %v22590_v37  ;;  %vm33010_vm4 = vmmov %vm33008_vm0 }
 0x55d   : > { %v19173_v39 = vpop.f32.mrf.mxu0  ;;  %26930 = vmatprep.subr.msk.mxu1 %vm252_vm1, %v22594_v44  ;;  %v22766_v20 = vpop.permute.xlu1 %22765 }
 0x55e   : > { %v19251_v18 = vadd.f32 %v19247_v61, %v32999_v1  ;;  %v19248_v42 = vadd.f32 %v19173_v39, %v19072_v6  ;;  %26931 = vmatpush1.msk.msra.mxu1 %vm252_vm1, %v22593_v23  ;;  %25691 = vrot.lane.b32.xlu0 %v25689_v59, %s32721_s16 }
 0x55f   : > { %v19242_v25 = vpop.f32.mrf.mxu1  ;;  %v22762_v35 = vpop.permute.xlu0 %22761  ;;  %26932 = vmatmul.mubr.msk.f32.vlgmr.msra.gmra.mxu1 %vm248_vm2, %v32073_v63  ;;  %25922 = vrot.lane.b32.xlu1 %v25920_v24, %s32724_s9 }
 0x560   : > { %19255 = vst [vmem:[%s29097_s14 + $0x60] sm:$0xff] %v19251_v18  ;;  %v19252_v54 = vadd.f32 %v19248_v42, %v32999_v1  ;;  %v19249_v19 = vadd.f32 %v19242_v25, %v19073_v50  ;;  %v22768_v27 = vsel %vm33000_vm6, %v22760_v2, %v22762_v35  ;;  %22914 = vmatprep.mubr.f32.mxu1 %v32713_v51  ;;  %vm33012_vm6 = vcmask 818176   ;;  %v32167_v50 = vld [vmem:[%s32641_s1 + $0xb8] sm:$0xff]  ;;  %v32186_v42 = vld [vmem:[%s32641_s1 + $0xc0] sm:$0xff] }
 0x561   : > { %v19244_v60 = vpop.f32.mrf.mxu1  ;;  %26933 = vmatprep.subr.msk.mxu0 %vm252_vm1, %v22768_v27  ;;  %v22938_v31 = vpop.permute.xlu1 %22937  ;;  %vm33013_vm7 = vmmov %vm33012_vm6 }
 0x562   : > { %19256 = vst [vmem:[%s29097_s14 + $0x68] sm:$0xff] %v19252_v54  ;;  %v19253_v4 = vadd.f32 %v19249_v19, %v32999_v1  ;;  %v19250_v55 = vadd.f32 %v19244_v60, %v19074_v8  ;;  %26934 = vmatpush1.msk.msra.mxu0 %vm252_vm1, %v22767_v36  ;;  %25845 = vrot.lane.b32.xlu0 %v25843_v15, %s32723_s8 }
 0x563   : > { %v22764_v62 = vpop.permute.xlu0 %22763  ;;  %26935 = vmatmul.mubr.msk.f32.vlgmr.msra.gmra.mxu0 %vm248_vm2, %v32105_v14 }
 0x564   : > { %19257 = vst [vmem:[%s29097_s14 + $0x70] sm:$0xff] %v19253_v4  ;;  %v19254_v12 = vadd.f32 %v19250_v55, %v32999_v1  ;;  %v22769_v40 = vsel %vm33002_vm8, %v22762_v35, %v22764_v62  ;;  %v22770_v21 = vsel %vm33003_vm9, %v22764_v62, %v22766_v20  ;;  %23019 = vmatprep.mubr.f32.mxu0 %v32713_v51  ;;  %vm33014_vm8 = vmmov %vm33012_vm6  ;;  %v32205_v55 = vld [vmem:[%s32641_s1 + $0xc8] sm:$0xff] }
 0x565   : > { %26936 = vmatprep.subr.msk.mxu1 %vm252_vm1, %v22770_v21  ;;  %v22940_v49 = vpop.permute.xlu1 %22939  ;;  %vm33015_vm9 = vmmov %vm33012_vm6 }
 0x566   : > { %19258 = vst [vmem:[%s29097_s14 + $0x78] sm:$0xff] %v19254_v12  ;;  %26937 = vmatpush1.msk.msra.mxu1 %vm252_vm1, %v22769_v40  ;;  %25999 = vrot.lane.b32.xlu0 %v25997_v16, %s32958_s22  ;;  %v22945_v7 = vsel %vm33007_vm12, %v22938_v31, %v22940_v49 }
 0x567   : > { %26938 = vmatmul.mubr.msk.f32.vlgmr.msra.gmra.mxu1 %vm248_vm2, %v32105_v14  ;;  %v22936_v57 = vpop.permute.xlu0 %22935 }
 0x568   : > { %v22944_v32 = vsel %vm33004_vm10, %v22936_v57, %v22938_v31  ;;  %23090 = vmatprep.mubr.f32.mxu1 %v32713_v51  ;;  %vm33016_vm10 = vcmask 687104  }
 0x569   : > { %26939 = vmatprep.subr.msk.mxu0 %vm252_vm1, %v22944_v32  ;;  %v23112_v45 = vpop.permute.xlu1 %23111  ;;  %vm33019_vm12 = vmmov %vm33016_vm10 }
 0x56b   : > { %v22934_v5 = vpop.permute.xlu0 %22933 }
 0x56c   : > { %v22943_v9 = vsel %vm33005_vm11, %v22934_v5, %v22936_v57  ;;  %vm33017_vm11 = vmmov %vm33016_vm10  ;;  %v32226_v5 = vld [vmem:[%s32641_s1 + $0xd0] sm:$0xff] }
 0x56d   : > { %26940 = vmatpush1.msk.msra.mxu0 %vm252_vm1, %v22943_v9  ;;  %v23110_v38 = vpop.permute.xlu1 %23109 }
 0x56e   : > { %26941 = vmatmul.mubr.msk.f32.vlgmr.msra.gmra.mxu0 %vm248_vm2, %v32129_v41  ;;  %v23119_v17 = vsel %vm33009_vm3, %v23110_v38, %v23112_v45  ;;  %vm33022_vm3 = vcmask 179200  }
 0x56f   : > { %v22942_v13 = vpop.permute.xlu0 %22941  ;;  %23195 = vmatprep.mubr.f32.mxu0 %v32713_v51 }
 0x570   : > { %v22946_v2 = vsel %vm33006_vm13, %v22940_v49, %v22942_v13  ;;  %vm33018_vm13 = vmmov %vm33016_vm10  ;;  %v32216_v49 = vpop.f32.mrf.mxu0 }
 0x571   : > { %26942 = vmatprep.subr.msk.mxu1 %vm252_vm1, %v22946_v2  ;;  %v23118_v33 = vpop.permute.xlu1 %23117 }
 0x572   : > { %26943 = vmatpush1.msk.msra.mxu1 %vm252_vm1, %v22945_v7  ;;  %v32231_v38 = vpop.f32.mrf.mxu0 }
 0x573   : > { %26944 = vmatmul.mubr.msk.f32.vlgmr.msra.gmra.mxu1 %vm248_vm2, %v32129_v41  ;;  %v23114_v30 = vpop.permute.xlu0 %23113 }
 0x574   : > { %v23120_v11 = vsel %vm33008_vm0, %v23112_v45, %v23114_v30  ;;  %23266 = vmatprep.mubr.f32.mxu1 %v32713_v51  ;;  %vm33021_vm0 = vcmask 187392  }
 0x575   : > { %26945 = vmatprep.subr.msk.mxu0 %vm252_vm1, %v23120_v11  ;;  %v23290_v56 = vpop.permute.xlu1 %23289  ;;  %v32244_v11 = vpop.f32.mrf.mxu0 }
 0x576   : > { %26946 = vmatpush1.msk.msra.mxu0 %vm252_vm1, %v23119_v17  ;;  %v27398_v17 = vld [vmem:[%s32641_s1 + $0x8] sm:$0xff] }
 0x577   : > { %26947 = vmatmul.mubr.msk.f32.vlgmr.msra.gmra.mxu0 %vm248_vm2, %v32148_v58  ;;  %v23116_v0 = vpop.permute.xlu0 %23115 }
 0x578   : > { %v23121_v10 = vsel %vm33010_vm4, %v23114_v30, %v23116_v0  ;;  %v23122_v43 = vsel %vm33011_vm5, %v23116_v0, %v23118_v33  ;;  %23371 = vmatprep.mubr.f32.mxu0 %v32713_v51  ;;  %v32238_v33 = vpop.f32.mrf.mxu1 }
 0x579   : > { %26948 = vmatprep.subr.msk.mxu1 %vm252_vm1, %v23122_v43  ;;  %v23292_v29 = vpop.permute.xlu1 %23291  ;;  %v32264_v43 = vpop.f32.mrf.mxu0 }
 0x57a   : > { %26949 = vmatpush1.msk.msra.mxu1 %vm252_vm1, %v23121_v10  ;;  %v23297_v24 = vsel %vm33015_vm9, %v23290_v56, %v23292_v29  ;;  %v32254_v0 = vpop.f32.mrf.mxu1 }
 0x57b   : > { %26950 = vmatmul.mubr.msk.f32.vlgmr.msra.gmra.mxu1 %vm248_vm2, %v32148_v58  ;;  %v23288_v22 = vpop.permute.xlu0 %23287 }
 0x57c   : > { %v23296_v6 = vsel %vm33012_vm6, %v23288_v22, %v23290_v56  ;;  %23442 = vmatprep.mubr.f32.mxu1 %v32713_v51 }
 0x57d   : > { %26951 = vmatprep.subr.msk.mxu0 %vm252_vm1, %v23296_v6  ;;  %v23464_v46 = vpop.permute.xlu1 %23463  ;;  %v32274_v6 = vpop.f32.mrf.mxu1 }
 0x57f   : > { %v23286_v34 = vpop.permute.xlu0 %23285 }
 0x580   : > { %v23295_v37 = vsel %vm33013_vm7, %v23286_v34, %v23288_v22  ;;  %v27401_v34 = vld [vmem:[%s32641_s1 + $0x18] sm:$0xff] }
 0x581   : > { %26952 = vmatpush1.msk.msra.mxu0 %vm252_vm1, %v23295_v37  ;;  %v23462_v59 = vpop.permute.xlu1 %23461  ;;  %v32284_v37 = vpop.f32.mrf.mxu0 }
 0x582   : > { %26953 = vmatmul.mubr.msk.f32.vlgmr.msra.gmra.mxu0 %vm248_vm2, %v32167_v50  ;;  %v23471_v18 = vsel %vm33017_vm11, %v23462_v59, %v23464_v46  ;;  %v27402_v59 = vld [vmem:[%s32641_s1 + $0x20] sm:$0xff] }
 0x583   : > { %v23294_v61 = vpop.permute.xlu0 %23293  ;;  %23547 = vmatprep.mubr.f32.mxu0 %v32713_v51 }
 0x584   : > { %v23298_v44 = vsel %vm33014_vm8, %v23292_v29, %v23294_v61  ;;  %v27400_v29 = vld [vmem:[%s32641_s1 + $0x10] sm:$0xff] }
 0x585   : > { %26954 = vmatprep.subr.msk.mxu1 %vm252_vm1, %v23298_v44  ;;  %v23470_v23 = vpop.permute.xlu1 %23469  ;;  %v32294_v44 = vpop.f32.mrf.mxu1 }
 0x586   : > { %26955 = vmatpush1.msk.msra.mxu1 %vm252_vm1, %v23297_v24 }
 0x587   : > { %26956 = vmatmul.mubr.msk.f32.vlgmr.msra.gmra.mxu1 %vm248_vm2, %v32167_v50  ;;  %v23466_v39 = vpop.permute.xlu0 %23465 }
 0x588   : > { %v23472_v20 = vsel %vm33016_vm10, %v23464_v46, %v23466_v39  ;;  %23618 = vmatprep.mubr.f32.mxu1 %v32713_v51 }
 0x589   : > { %26957 = vmatprep.subr.msk.mxu0 %vm252_vm1, %v23472_v20  ;;  %v23642_v8 = vpop.permute.xlu1 %23641  ;;  %v27404_v20 = vld [vmem:[%s32641_s1 + $0x30] sm:$0xff] }
 0x58a   : > { %26958 = vmatpush1.msk.msra.mxu0 %vm252_vm1, %v23471_v18 }
 0x58b   : > { %26959 = vmatmul.mubr.msk.f32.vlgmr.msra.gmra.mxu0 %vm248_vm2, %v32186_v42  ;;  %v23468_v25 = vpop.permute.xlu0 %23467 }
 0x58c   : > { %v23473_v35 = vsel %vm33018_vm13, %v23466_v39, %v23468_v25  ;;  %v23474_v15 = vsel %vm33019_vm12, %v23468_v25, %v23470_v23  ;;  %23723 = vmatprep.mubr.f32.mxu0 %v32713_v51  ;;  %v27403_v23 = vld [vmem:[%s32641_s1 + $0x28] sm:$0xff]  ;;  %v32304_v39 = vpop.f32.mrf.mxu0 }
 0x58d   : > { %26960 = vmatprep.subr.msk.mxu1 %vm252_vm1, %v23474_v15  ;;  %v23644_v54 = vpop.permute.xlu1 %23643 }
 0x58e   : > { %26961 = vmatpush1.msk.msra.mxu1 %vm252_vm1, %v23473_v35  ;;  %v23649_v12 = vsel %vm4714_vm14, %v23642_v8, %v23644_v54  ;;  %v27405_v35 = vld [vmem:[%s32641_s1 + $0x38] sm:$0xff]  ;;  %v32324_v15 = vpop.f32.mrf.mxu0 }
 0x58f   : > { %26962 = vmatmul.mubr.msk.f32.vlgmr.msra.gmra.mxu1 %vm248_vm2, %v32186_v42  ;;  %v23640_v19 = vpop.permute.xlu0 %23639 }
 0x590   : > { %v23648_v27 = vsel %vm4714_vm14, %v23640_v19, %v23642_v8  ;;  %23794 = vmatprep.mubr.f32.mxu1 %v32713_v51  ;;  %v32314_v8 = vpop.f32.mrf.mxu1 }
 0x591   : > { %26963 = vmatprep.subr.msk.mxu0 %vm252_vm1, %v23648_v27  ;;  %v23816_v36 = vpop.permute.xlu1 %23815 }
 0x592   : > { %v32334_v27 = vpop.f32.mrf.mxu1 }
 0x593   : > { %v23638_v60 = vpop.permute.xlu0 %23637 }
 0x594   : > { %v23647_v31 = vsel %vm4714_vm14, %v23638_v60, %v23640_v19  ;;  %v27407_v60 = vld [vmem:[%s32641_s1 + $0x48] sm:$0xff] }
 0x595   : > { %26964 = vmatpush1.msk.msra.mxu0 %vm252_vm1, %v23647_v31  ;;  %v23814_v4 = vpop.permute.xlu1 %23813  ;;  %v32344_v31 = vpop.f32.mrf.mxu0 }
 0x596   : > { %26965 = vmatmul.mubr.msk.f32.vlgmr.msra.gmra.mxu0 %vm248_vm2, %v32205_v55  ;;  %v23823_v32 = vsel %vm4894_vm15, %v23814_v4, %v23816_v36  ;;  %v27408_v4 = vld [vmem:[%s32641_s1 + $0x50] sm:$0xff] }
 0x597   : > { %v23646_v62 = vpop.permute.xlu0 %23645  ;;  %23899 = vmatprep.mubr.f32.mxu0 %v32713_v51 }
 0x598   : > { %v23650_v16 = vsel %vm4714_vm14, %v23644_v54, %v23646_v62  ;;  %vm27447_vm14 = vmmov 0   ;;  %v27406_v54 = vld [vmem:[%s32641_s1 + $0x40] sm:$0xff] }
 0x599   : > { %26966 = vmatprep.subr.msk.mxu1 %vm252_vm1, %v23650_v16  ;;  %v23822_v40 = vpop.permute.xlu1 %23821  ;;  %v32354_v16 = vpop.f32.mrf.mxu1 }
 0x59a   : > { %26967 = vmatpush1.msk.msra.mxu1 %vm252_vm1, %v23649_v12 }
 0x59b   : > { %26968 = vmatmul.mubr.msk.f32.vlgmr.msra.gmra.mxu1 %vm248_vm2, %v32205_v55  ;;  %v23818_v21 = vpop.permute.xlu0 %23817 }
 0x59c   : > { %v23824_v57 = vsel %vm4894_vm15, %v23816_v36, %v23818_v21  ;;  %23970 = vmatprep.mubr.f32.mxu1 %v32713_v51 }
 0x59d   : > { %26969 = vmatprep.subr.msk.mxu0 %vm252_vm1, %v23824_v57  ;;  %v24140_v45 = vpop.permute.xlu1 %24139  ;;  %v27410_v57 = vld [vmem:[%s32641_s1 + $0x60] sm:$0xff] }
 0x59e   : > { %26970 = vmatpush1.msk.msra.mxu0 %vm252_vm1, %v23823_v32 }
 0x59f   : > { %26971 = vmatmul.mubr.msk.f32.vlgmr.msra.gmra.mxu0 %vm248_vm2, %v32226_v5  ;;  %v23820_v9 = vpop.permute.xlu0 %23819  ;;  %27085 = vmatprep.subr.mxu0 %v32713_v51 }
 0x5a0   : > { %v23825_v13 = vsel %vm4894_vm15, %v23818_v21, %v23820_v9  ;;  %v23826_v2 = vsel %vm4894_vm15, %v23820_v9, %v23822_v40  ;;  %27087 = vmatprep.mubr.msk.f32.mxu0 %vm27447_vm14, %v32713_v51  ;;  %v27409_v40 = vld [vmem:[%s32641_s1 + $0x58] sm:$0xff]  ;;  %v32364_v21 = vpop.f32.mrf.mxu0  ;;  %vm33020_vm15 = vcmask 195584  }
 0x5a1   : > { %26972 = vmatprep.subr.msk.mxu1 %vm252_vm1, %v23826_v2  ;;  %v24294_v7 = vpop.permute.xlu1 %24293 }
 0x5a2   : > { %26973 = vmatpush1.msk.msra.mxu1 %vm252_vm1, %v23825_v13  ;;  %v32382_v13 = vpop.f32.mrf.mxu0 }
 0x5a3   : > { %26974 = vmatmul.mubr.msk.f32.vlgmr.msra.gmra.mxu1 %vm248_vm2, %v32226_v5  ;;  %v23992_v30 = vpop.permute.xlu0 %23991  ;;  %27090 = vmatprep.subr.mxu1 %v32713_v51 }
 0x5a4   : > { %27086 = vmatpush3.msk.msra.mxu0 %vm252_vm1, %v23992_v30  ;;  %27091 = vmatpush3.msk.msra.mxu1 %vm252_vm1, %v31871_v52  ;;  %v27399_v52 = vld [vmem:[%s32641_s1] sm:$0xff] }
 0x5a5   : > { %27088 = vmatmul.mubr.msk.f32.vlgmr.msra.gmra.mxu0 %vm248_vm2, %v27398_v17  ;;  %27095 = vmatprep.subr.mxu0 %v32713_v51  ;;  %v24448_v56 = vpop.permute.xlu1 %24447  ;;  %v32400_v17 = vpop.f32.mrf.mxu0 }
 0x5a6   : > { %27096 = vmatpush3.msk.msra.mxu0 %vm252_vm1, %v24140_v45  ;;  %27092 = vmatprep.mubr.msk.f32.mxu1 %vm27447_vm14, %v32713_v51  ;;  %v32374_v45 = vpop.f32.mrf.mxu1 }
 0x5a7   : > { %27100 = vmatprep.subr.mxu1 %v32713_v51  ;;  %v24217_v10 = vpop.permute.xlu0 %24216  ;;  %27093 = vmatmul.mubr.msk.f32.vlgmr.msra.gmra.mxu1 %vm248_vm2, %v27399_v52  ;;  %v32413_v52 = vpop.f32.mrf.mxu0 }
 0x5a8   : > { %27097 = vmatprep.mubr.msk.f32.mxu0 %vm27447_vm14, %v32713_v51  ;;  %27101 = vmatpush3.msk.msra.mxu1 %vm252_vm1, %v24217_v10  ;;  %v32391_v30 = vpop.f32.mrf.mxu1 }
 0x5a9   : > { %27105 = vmatprep.subr.mxu0 %v32713_v51  ;;  %27098 = vmatmul.mubr.msk.f32.vlgmr.msra.gmra.mxu0 %vm248_vm2, %v27400_v29  ;;  %v24602_v22 = vpop.permute.xlu1 %24601 }
 0x5aa   : > { %27106 = vmatpush3.msk.msra.mxu0 %vm252_vm1, %v24294_v7  ;;  %27102 = vmatprep.mubr.msk.f32.mxu1 %vm27447_vm14, %v32713_v51  ;;  %v32406_v10 = vpop.f32.mrf.mxu1 }
 0x5ab   : > { %27110 = vmatprep.subr.mxu1 %v32713_v51  ;;  %v24371_v46 = vpop.permute.xlu0 %24370  ;;  %27103 = vmatmul.mubr.msk.f32.vlgmr.msra.gmra.mxu1 %vm248_vm2, %v27401_v34  ;;  %v32425_v34 = vpop.f32.mrf.mxu0 }
 0x5ac   : > { %27107 = vmatprep.mubr.msk.f32.mxu0 %vm27447_vm14, %v32713_v51  ;;  %27111 = vmatpush3.msk.msra.mxu1 %vm252_vm1, %v24371_v46  ;;  %v32417_v46 = vpop.f32.mrf.mxu1 }
 0x5ad   : > { %27115 = vmatprep.subr.mxu0 %v32713_v51  ;;  %27108 = vmatmul.mubr.msk.f32.vlgmr.msra.gmra.mxu0 %vm248_vm2, %v27402_v59  ;;  %v24756_v61 = vpop.permute.xlu1 %24755 }
 0x5ae   : > { %27116 = vmatpush3.msk.msra.mxu0 %vm252_vm1, %v24448_v56  ;;  %27112 = vmatprep.mubr.msk.f32.mxu1 %vm27447_vm14, %v32713_v51 }
 0x5af   : > { %27120 = vmatprep.subr.mxu1 %v32713_v51  ;;  %v24525_v24 = vpop.permute.xlu0 %24524  ;;  %27113 = vmatmul.mubr.msk.f32.vlgmr.msra.gmra.mxu1 %vm248_vm2, %v27403_v23 }
 0x5b0   : > { %27117 = vmatprep.mubr.msk.f32.mxu0 %vm27447_vm14, %v32713_v51  ;;  %27121 = vmatpush3.msk.msra.mxu1 %vm252_vm1, %v24525_v24  ;;  %v32441_v24 = vpop.f32.mrf.mxu0 }
 0x5b1   : > { %27125 = vmatprep.subr.mxu0 %v32713_v51  ;;  %27118 = vmatmul.mubr.msk.f32.vlgmr.msra.gmra.mxu0 %vm248_vm2, %v27404_v20  ;;  %v24910_v18 = vpop.permute.xlu1 %24909 }
 0x5b2   : > { %27126 = vmatpush3.msk.msra.mxu0 %vm252_vm1, %v24602_v22  ;;  %27122 = vmatprep.mubr.msk.f32.mxu1 %vm27447_vm14, %v32713_v51  ;;  %v32457_v23 = vpop.f32.mrf.mxu0 }
 0x5b3   : > { %27130 = vmatprep.subr.mxu1 %v32713_v51  ;;  %v24679_v25 = vpop.permute.xlu0 %24678  ;;  %27123 = vmatmul.mubr.msk.f32.vlgmr.msra.gmra.mxu1 %vm248_vm2, %v27405_v35 }
 0x5b4   : > { %27127 = vmatprep.mubr.msk.f32.mxu0 %vm27447_vm14, %v32713_v51  ;;  %27131 = vmatpush3.msk.msra.mxu1 %vm252_vm1, %v24679_v25 }
 0x5b5   : > { %27135 = vmatprep.subr.mxu0 %v32713_v51  ;;  %27128 = vmatmul.mubr.msk.f32.vlgmr.msra.gmra.mxu0 %vm248_vm2, %v27406_v54  ;;  %v25064_v19 = vpop.permute.xlu1 %25063 }
 0x5b6   : > { %27136 = vmatpush3.msk.msra.mxu0 %vm252_vm1, %v24756_v61  ;;  %27132 = vmatprep.mubr.msk.f32.mxu1 %vm27447_vm14, %v32713_v51 }
 0x5b7   : > { %27140 = vmatprep.subr.mxu1 %v32713_v51  ;;  %v24833_v36 = vpop.permute.xlu0 %24832  ;;  %27133 = vmatmul.mubr.msk.f32.vlgmr.msra.gmra.mxu1 %vm248_vm2, %v27407_v60 }
 0x5b8   : > { %27137 = vmatprep.mubr.msk.f32.mxu0 %vm27447_vm14, %v32713_v51  ;;  %27141 = vmatpush3.msk.msra.mxu1 %vm252_vm1, %v24833_v36 }
 0x5b9   : > { %27145 = vmatprep.subr.mxu0 %v32713_v51  ;;  %27138 = vmatmul.mubr.msk.f32.vlgmr.msra.gmra.mxu0 %vm248_vm2, %v27408_v4  ;;  %v25144_v62 = vpop.permute.xlu1 %25143 }
 0x5ba   : > { %27146 = vmatpush3.msk.msra.mxu0 %vm252_vm1, %v24910_v18  ;;  %27142 = vmatprep.mubr.msk.f32.mxu1 %vm27447_vm14, %v32713_v51  ;;  %v32473_v18 = vpop.f32.mrf.mxu0 }
 0x5bb   : > { %27150 = vmatprep.subr.mxu1 %v32713_v51  ;;  %v24987_v12 = vpop.permute.xlu0 %24986  ;;  %27143 = vmatmul.mubr.msk.f32.vlgmr.msra.gmra.mxu1 %vm248_vm2, %v27409_v40 }
 0x5bc   : > { %27147 = vmatprep.mubr.msk.f32.mxu0 %vm27447_vm14, %v32713_v51  ;;  %27151 = vmatpush3.msk.msra.mxu1 %vm252_vm1, %v24987_v12  ;;  %v32485_v25 = vpop.f32.mrf.mxu0 }
 0x5bd   : > { %27155 = vmatprep.subr.mxu0 %v32713_v51  ;;  %27148 = vmatmul.mubr.msk.f32.vlgmr.msra.gmra.mxu0 %vm248_vm2, %v27410_v57  ;;  %v25225_v32 = vpop.permute.xlu1 %25224 }
 0x5be   : > { %27156 = vmatpush3.msk.msra.mxu0 %vm252_vm1, %v25064_v19  ;;  %27152 = vmatprep.mubr.msk.f32.mxu1 %vm27447_vm14, %v32713_v51 }
 0x5bf   : > { %v25142_v9 = vpop.permute.xlu0 %25141  ;;  %27160 = vmatprep.subr.mxu1 %v32713_v51  ;;  %27153 = vmatmul.mubr.msk.f32.vlgmr.msra.gmra.mxu1 %vm248_vm2, %v31800_v3 }
 0x5c0   : > { %v25145_v2 = vsel %vm33020_vm15, %v25142_v9, %v25144_v62  ;;  %27157 = vmatprep.mubr.msk.f32.mxu0 %vm27447_vm14, %v32713_v51  ;;  %27165 = vmatprep.subr.mxu0 %v32713_v51 }
 0x5c1   : > { %27161 = vmatpush3.msk.msra.mxu1 %vm252_vm1, %v25145_v2  ;;  %27158 = vmatmul.mubr.msk.f32.vlgmr.msra.gmra.mxu0 %vm248_vm2, %v31849_v26  ;;  %v25306_v7 = vpop.permute.xlu1 %25305 }
 0x5c2   : > { %27162 = vmatprep.mubr.msk.f32.mxu1 %vm27447_vm14, %v32713_v51  ;;  %27167 = vmatprep.mubr.msk.f32.mxu0 %vm27447_vm14, %v32713_v51 }
 0x5c3   : > { %v25223_v3 = vpop.permute.xlu0 %25222  ;;  %27163 = vmatmul.mubr.msk.f32.vlgmr.msra.gmra.mxu1 %vm248_vm2, %v31905_v28  ;;  %27170 = vmatprep.subr.mxu1 %v32713_v51 }
 0x5c4   : > { %v25226_v56 = vsel %vm33021_vm0, %v25223_v3, %v25225_v32  ;;  %27172 = vmatprep.mubr.msk.f32.mxu1 %vm27447_vm14, %v32713_v51 }
 0x5c5   : > { %27166 = vmatpush3.msk.msra.mxu0 %vm252_vm1, %v25226_v56  ;;  %v25461_v26 = vpop.permute.xlu1 %25460 }
 0x5c6   : > { %27168 = vmatmul.mubr.msk.f32.vlgmr.msra.gmra.mxu0 %vm248_vm2, %v31955_v48  ;;  %27175 = vmatprep.subr.mxu0 %v32713_v51 }
 0x5c7   : > { %v25304_v28 = vpop.permute.xlu0 %25303  ;;  %27177 = vmatprep.mubr.msk.f32.mxu0 %vm27447_vm14, %v32713_v51 }
 0x5c8   : > { %v25307_v29 = vsel %vm33022_vm3, %v25304_v28, %v25306_v7 }
 0x5c9   : > { %27171 = vmatpush3.msk.msra.mxu1 %vm252_vm1, %v25307_v29  ;;  %v25615_v22 = vpop.permute.xlu1 %25614  ;;  %v19506_v29 = vadd.f32 %v32244_v11, %v32216_v49 }
 0x5ca   : > { %27173 = vmatmul.mubr.msk.f32.vlgmr.msra.gmra.mxu1 %vm248_vm2, %v32005_v47  ;;  %27180 = vmatprep.subr.mxu1 %v32713_v51  ;;  %v32432_v47 = vpop.f32.mrf.mxu1 }
 0x5cb   : > { %v25384_v48 = vpop.permute.xlu0 %25383  ;;  %27181 = vmatpush3.msk.msra.mxu1 %vm252_vm1, %v25461_v26  ;;  %27182 = vmatprep.mubr.msk.f32.mxu1 %vm27447_vm14, %v32713_v51 }
 0x5cc   : > { %27176 = vmatpush3.msk.msra.mxu0 %vm252_vm1, %v25384_v48  ;;  %27190 = vmatprep.subr.mxu1 %v32713_v51 }
 0x5cd   : > { %27178 = vmatmul.mubr.msk.f32.vlgmr.msra.gmra.mxu0 %vm248_vm2, %v32041_v53  ;;  %27185 = vmatprep.subr.mxu0 %v32713_v51  ;;  %v25769_v59 = vpop.permute.xlu1 %25768  ;;  %v32448_v53 = vpop.f32.mrf.mxu1 }
 0x5ce   : > { %27183 = vmatmul.mubr.msk.f32.vlgmr.msra.gmra.mxu1 %vm248_vm2, %v32073_v63  ;;  %27187 = vmatprep.mubr.msk.f32.mxu0 %vm27447_vm14, %v32713_v51 }
 0x5cf   : > { %v25538_v61 = vpop.permute.xlu0 %25537  ;;  %27191 = vmatpush3.msk.msra.mxu1 %vm252_vm1, %v25615_v22  ;;  %27192 = vmatprep.mubr.msk.f32.mxu1 %vm27447_vm14, %v32713_v51 }
 0x5d0   : > { %27186 = vmatpush3.msk.msra.mxu0 %vm252_vm1, %v25538_v61  ;;  %27200 = vmatprep.subr.mxu1 %v32713_v51  ;;  %v19753_v61 = vadd.f32 %v32284_v37, %v19506_v29 }
 0x5d1   : > { %27188 = vmatmul.mubr.msk.f32.vlgmr.msra.gmra.mxu0 %vm248_vm2, %v32105_v14  ;;  %27195 = vmatprep.subr.mxu0 %v32713_v51  ;;  %v25923_v14 = vpop.permute.xlu1 %25922 }
 0x5d2   : > { %27193 = vmatmul.mubr.msk.f32.vlgmr.msra.gmra.mxu1 %vm248_vm2, %v32129_v41  ;;  %27197 = vmatprep.mubr.msk.f32.mxu0 %vm27447_vm14, %v32713_v51  ;;  %v32464_v41 = vpop.f32.mrf.mxu1  ;;  %v19929_v11 = vadd.f32 %v32324_v15, %v19753_v61 }
 0x5d3   : > { %v25692_v63 = vpop.permute.xlu0 %25691  ;;  %27201 = vmatpush3.msk.msra.mxu1 %vm252_vm1, %v25769_v59  ;;  %27202 = vmatprep.mubr.msk.f32.mxu1 %vm27447_vm14, %v32713_v51  ;;  %v19508_v59 = vadd.f32 %v32264_v43, %v32231_v38 }
 0x5d4   : > { %27196 = vmatpush3.msk.msra.mxu0 %vm252_vm1, %v25692_v63  ;;  %27210 = vmatprep.subr.mxu1 %v32713_v51 }
 0x5d5   : > { %27198 = vmatmul.mubr.msk.f32.vlgmr.msra.gmra.mxu0 %vm248_vm2, %v32148_v58  ;;  %27205 = vmatprep.subr.mxu0 %v32713_v51  ;;  %v32479_v58 = vpop.f32.mrf.mxu1  ;;  %v19754_v49 = vadd.f32 %v32304_v39, %v19508_v59 }
 0x5d6   : > { %27203 = vmatmul.mubr.msk.f32.vlgmr.msra.gmra.mxu1 %vm248_vm2, %v32167_v50  ;;  %27207 = vmatprep.mubr.msk.f32.mxu0 %vm27447_vm14, %v32713_v51 }
 0x5d7   : > { %v25846_v20 = vpop.permute.xlu0 %25845  ;;  %27211 = vmatpush3.msk.msra.mxu1 %vm252_vm1, %v25923_v14  ;;  %27212 = vmatprep.mubr.msk.f32.mxu1 %vm27447_vm14, %v32713_v51  ;;  %v32490_v35 = vpop.f32.mrf.mxu1  ;;  %v19577_v14 = vadd.f32 %v32274_v6, %v32238_v33  ;;  %v19930_v29 = vadd.f32 %v32344_v31, %v19754_v49  ;;  %v20105_v33 = vadd.f32 %v32364_v21, %v19929_v11 }
 0x5d8   : > { %27206 = vmatpush3.msk.msra.mxu0 %vm252_vm1, %v25846_v20 }
 0x5d9   : > { %27208 = vmatmul.mubr.msk.f32.vlgmr.msra.gmra.mxu0 %vm248_vm2, %v32186_v42  ;;  %27215 = vmatprep.subr.mxu0 %v32713_v51  ;;  %v32492_v42 = vpop.f32.mrf.mxu0  ;;  %v32494_v54 = vpop.f32.mrf.mxu1  ;;  %v19755_v38 = vadd.f32 %v32314_v8, %v19577_v14  ;;  %v20106_v15 = vadd.f32 %v32382_v13, %v19930_v29  ;;  %v20281_v8 = vadd.f32 %v32400_v17, %v20105_v33 }
 0x5da   : > { %27213 = vmatmul.mubr.msk.f32.vlgmr.msra.gmra.mxu1 %vm248_vm2, %v32205_v55  ;;  %27217 = vmatprep.mubr.msk.f32.mxu0 %vm27447_vm14, %v32713_v51 }
 0x5db   : > { %v26000_v50 = vpop.permute.xlu0 %25999  ;;  %v32496_v19 = vpop.f32.mrf.mxu0  ;;  %v20282_v21 = vadd.f32 %v32413_v52, %v20106_v15 }
 0x5dc   : > { %27216 = vmatpush3.msk.msra.mxu0 %vm252_vm1, %v26000_v50  ;;  %v32498_v55 = vpop.f32.mrf.mxu1  ;;  %v19579_v50 = vadd.f32 %v32294_v44, %v32254_v0  ;;  %v19931_v0 = vadd.f32 %v32354_v16, %v19755_v38  ;;  %v20457_v16 = vadd.f32 %v32425_v34, %v20281_v8  ;;  %vm26075_vm1 = vcmask 261120  }
 0x5dd   : > { %27218 = vmatmul.mubr.msk.f32.vlgmr.msra.gmra.mxu0 %vm248_vm2, %v32226_v5  ;;  %v32500_v36 = vpop.f32.mrf.mxu0  ;;  %v20458_v17 = vadd.f32 %v32441_v24, %v20282_v21 }
 0x5de   : > { %v32502_v51 = vpop.f32.mrf.mxu1  ;;  %v19756_v37 = vadd.f32 %v32334_v27, %v19579_v50  ;;  %v20107_v27 = vadd.f32 %v32391_v30, %v19931_v0  ;;  %v20633_v30 = vadd.f32 %v32457_v23, %v20457_v16 }
 0x5df   : > { %v32504_v60 = vpop.f32.mrf.mxu0  ;;  %v20634_v34 = vadd.f32 %v32473_v18, %v20458_v17 }
 0x5e0   : > { %v32506_v4 = vpop.f32.mrf.mxu1  ;;  %v19932_v39 = vadd.f32 %v32374_v45, %v19756_v37  ;;  %v20283_v45 = vadd.f32 %v32417_v46, %v20107_v27  ;;  %v20809_v38 = vadd.f32 %v32485_v25, %v20633_v30 }
 0x5e1   : > { %v32508_v62 = vpop.f32.mrf.mxu0  ;;  %v20810_v24 = vadd.f32 %v32492_v42, %v20634_v34 }
 0x5e2   : > { %v32510_v5 = vpop.f32.mrf.mxu1  ;;  %v20108_v31 = vadd.f32 %v32406_v10, %v19932_v39  ;;  %v20459_v10 = vadd.f32 %v32448_v53, %v20283_v45  ;;  %v20985_v23 = vadd.f32 %v32496_v19, %v20809_v38 }
 0x5e3   : > { %v32512_v12 = vpop.f32.mrf.mxu0  ;;  %v20986_v18 = vadd.f32 %v32500_v36, %v20810_v24 }
 0x5e4   : > { %v32514_v40 = vpop.f32.mrf.mxu1  ;;  %v20284_v13 = vadd.f32 %v32432_v47, %v20108_v31  ;;  %v20635_v37 = vadd.f32 %v32479_v58, %v20459_v10  ;;  %v21161_v25 = vadd.f32 %v32504_v60, %v20985_v23 }
 0x5e5   : > { %v32516_v57 = vpop.f32.mrf.mxu0  ;;  %v21162_v42 = vadd.f32 %v32508_v62, %v20986_v18 }
 0x5e6   : > { %v32518_v32 = vpop.f32.mrf.mxu1  ;;  %v20460_v52 = vadd.f32 %v32464_v41, %v20284_v13  ;;  %v20811_v53 = vadd.f32 %v32494_v54, %v20635_v37  ;;  %v21337_v19 = vadd.f32 %v32512_v12, %v21161_v25 }
 0x5e7   : > { %v32520_v9 = vpop.f32.mrf.mxu0  ;;  %v21338_v36 = vadd.f32 %v32516_v57, %v21162_v42 }
 0x5e8   : > { %v32522_v2 = vpop.f32.mrf.mxu1  ;;  %v20636_v47 = vadd.f32 %v32490_v35, %v20460_v52  ;;  %v20987_v58 = vadd.f32 %v32502_v51, %v20811_v53  ;;  %v21513_v60 = vadd.f32 %v32520_v9, %v21337_v19 }
 0x5e9   : > { %v32524_v7 = vpop.f32.mrf.mxu0 }
 0x5ea   : > { %v32526_v3 = vpop.f32.mrf.mxu1  ;;  %v20812_v41 = vadd.f32 %v32498_v55, %v20636_v47  ;;  %v21163_v54 = vadd.f32 %v32510_v5, %v20987_v58  ;;  %v21514_v62 = vadd.f32 %v32524_v7, %v21338_v36 }
 0x5eb   : > { %v32528_v56 = vpop.f32.mrf.mxu0 }
 0x5ec   : > { %v32530_v26 = vpop.f32.mrf.mxu1  ;;  %v20988_v35 = vadd.f32 %v32506_v4, %v20812_v41  ;;  %v21339_v51 = vadd.f32 %v32518_v32, %v21163_v54  ;;  %v21689_v12 = vadd.f32 %v32528_v56, %v21513_v60 }
 0x5ed   : > { %v32532_v28 = vpop.f32.mrf.mxu0 }
 0x5ee   : > { %v32536_v22 = vpop.f32.mrf.mxu1  ;;  %v21164_v55 = vadd.f32 %v32514_v40, %v20988_v35  ;;  %v21515_v5 = vadd.f32 %v32526_v3, %v21339_v51  ;;  %v21690_v57 = vadd.f32 %v32532_v28, %v21514_v62 }
 0x5ef   : > { %v32538_v48 = vpop.f32.mrf.mxu0 }
 0x5f0   : > { %v32543_v63 = vpop.f32.mrf.mxu1  ;;  %v21340_v4 = vadd.f32 %v32522_v2, %v21164_v55  ;;  %v21865_v9 = vadd.f32 %v32538_v48, %v21689_v12  ;;  %v21691_v32 = vadd.f32 %v32536_v22, %v21515_v5 }
 0x5f1   : > { %v32547_v20 = vpop.f32.mrf.mxu0 }
 0x5f2   : > { %v32553_v1 = vpop.f32.mrf.mxu1  ;;  %v21516_v40 = vadd.f32 %v32530_v26, %v21340_v4  ;;  %v21866_v7 = vadd.f32 %v32547_v20, %v21690_v57 }
 0x5f3   : > { %v32556_v43 = vpop.f32.mrf.mxu0  ;;  %v21867_v3 = vadd.f32 %v32553_v1, %v21691_v32 }
 0x5f4   : > { %v32561_v6 = vpop.f32.mrf.mxu1  ;;  %v21692_v2 = vadd.f32 %v32543_v63, %v21516_v40  ;;  %v22041_v56 = vadd.f32 %v32556_v43, %v21865_v9 }
 0x5f5   : > { %v32564_v44 = vpop.f32.mrf.mxu0 }
 0x5f6   : > { %v21868_v26 = vadd.f32 %v32561_v6, %v21692_v2  ;;  %v22042_v28 = vadd.f32 %v32564_v44, %v21866_v7 }
 0x5f7   : > { %v32569_v59 = vpop.f32.mrf.mxu1 }
 0x5f8   : > { %v22043_v38 = vadd.f32 %v32569_v59, %v21867_v3 }
 0x5f9   : > { %v32577_v14 = vpop.f32.mrf.mxu1 }
 0x5fa   : > { %v22044_v63 = vadd.f32 %v32577_v14, %v21868_v26 }
 0x5fb   : > { %v32572_v61 = vpop.f32.mrf.mxu0 }
 0x5fc   : > { %v22217_v48 = vadd.f32 %v32572_v61, %v22041_v56 }
 0x5fd   : > { %v32580_v50 = vpop.f32.mrf.mxu0 }
 0x5fe   : > { %v22218_v20 = vadd.f32 %v32580_v50, %v22042_v28  ;;  %v33023_v28 = vld [vmem:[#allocation2_spill] sm:$0xff] }
 0x5ff   : > { %v32585_v49 = vpop.f32.mrf.mxu1 }
 0x600   : > { %v22219_v1 = vadd.f32 %v32585_v49, %v22043_v38 }
 0x601   : > { %v22214_v46 = vpop.f32.mrf.mxu1 }
 0x602   : > { %v22220_v6 = vadd.f32 %v22214_v46, %v22044_v63 }
 0x606   : > { %v22317_v11 = vpop.f32.mrf.mxu0 }
 0x607   : > { %v22393_v43 = vadd.f32 %v22317_v11, %v22217_v48 }
 0x608   : > { %v22319_v29 = vpop.f32.mrf.mxu0 }
 0x609   : > { %v22394_v53 = vadd.f32 %v22319_v29, %v22218_v20 }
 0x60b   : > { %v22388_v33 = vpop.f32.mrf.mxu1 }
 0x60c   : > { %v22395_v61 = vadd.f32 %v22388_v33, %v22219_v1 }
 0x60d   : > { %v22390_v39 = vpop.f32.mrf.mxu1 }
 0x60e   : > { %v22396_v25 = vadd.f32 %v22390_v39, %v22220_v6 }
 0x60f   : > { %v22493_v0 = vpop.f32.mrf.mxu0 }
 0x610   : > { %v22569_v44 = vadd.f32 %v22493_v0, %v22393_v43 }
 0x611   : > { %v22495_v15 = vpop.f32.mrf.mxu0 }
 0x612   : > { %v22570_v58 = vadd.f32 %v22495_v15, %v22394_v53 }
 0x613   : > { %v22564_v8 = vpop.f32.mrf.mxu1 }
 0x614   : > { %v22571_v14 = vadd.f32 %v22564_v8, %v22395_v61 }
 0x615   : > { %v22566_v31 = vpop.f32.mrf.mxu1 }
 0x616   : > { %v22572_v50 = vadd.f32 %v22566_v31, %v22396_v25 }
 0x61a   : > { %v22669_v27 = vpop.f32.mrf.mxu0 }
 0x61b   : > { %v22745_v59 = vadd.f32 %v22669_v27, %v22569_v44 }
 0x61c   : > { %v22671_v21 = vpop.f32.mrf.mxu0 }
 0x61d   : > { %v22746_v11 = vadd.f32 %v22671_v21, %v22570_v58 }
 0x61f   : > { %v22740_v16 = vpop.f32.mrf.mxu1 }
 0x620   : > { %v22747_v49 = vadd.f32 %v22740_v16, %v22571_v14 }
 0x621   : > { %v22742_v13 = vpop.f32.mrf.mxu1 }
 0x622   : > { %v22748_v0 = vadd.f32 %v22742_v13, %v22572_v50 }
 0x623   : > { %v22845_v45 = vpop.f32.mrf.mxu0 }
 0x624   : > { %v22921_v54 = vadd.f32 %v22845_v45, %v22745_v59 }
 0x625   : > { %v22847_v17 = vpop.f32.mrf.mxu0 }
 0x626   : > { %v22922_v36 = vadd.f32 %v22847_v17, %v22746_v11 }
 0x627   : > { %v22916_v30 = vpop.f32.mrf.mxu1 }
 0x628   : > { %v22923_v51 = vadd.f32 %v22916_v30, %v22747_v49 }
 0x629   : > { %v22918_v52 = vpop.f32.mrf.mxu1 }
 0x62a   : > { %v22924_v15 = vadd.f32 %v22918_v52, %v22748_v0 }
 0x62e   : > { %v23021_v10 = vpop.f32.mrf.mxu0 }
 0x62f   : > { %v23097_v60 = vadd.f32 %v23021_v10, %v22921_v54 }
 0x630   : > { %v23023_v34 = vpop.f32.mrf.mxu0 }
 0x631   : > { %v23098_v33 = vadd.f32 %v23023_v34, %v22922_v36 }
 0x633   : > { %v23092_v22 = vpop.f32.mrf.mxu1 }
 0x634   : > { %v23099_v27 = vadd.f32 %v23092_v22, %v22923_v51 }
 0x635   : > { %v23094_v47 = vpop.f32.mrf.mxu1 }
 0x636   : > { %v23100_v5 = vadd.f32 %v23094_v47, %v22924_v15 }
 0x637   : > { %v23197_v37 = vpop.f32.mrf.mxu0 }
 0x638   : > { %v23273_v4 = vadd.f32 %v23197_v37, %v23097_v60 }
 0x639   : > { %v23199_v24 = vpop.f32.mrf.mxu0 }
 0x63a   : > { %v23274_v62 = vadd.f32 %v23199_v24, %v23098_v33 }
 0x63b   : > { %v23268_v23 = vpop.f32.mrf.mxu1 }
 0x63c   : > { %v23275_v31 = vadd.f32 %v23268_v23, %v23099_v27 }
 0x63d   : > { %v23270_v18 = vpop.f32.mrf.mxu1 }
 0x63e   : > { %v23276_v57 = vadd.f32 %v23270_v18, %v23100_v5 }
 0x642   : > { %v23373_v41 = vpop.f32.mrf.mxu0 }
 0x643   : > { %v23449_v12 = vadd.f32 %v23373_v41, %v23273_v4 }
 0x644   : > { %v23375_v35 = vpop.f32.mrf.mxu0 }
 0x645   : > { %v23450_v21 = vadd.f32 %v23375_v35, %v23274_v62 }
 0x647   : > { %v23444_v42 = vpop.f32.mrf.mxu1 }
 0x648   : > { %v23451_v9 = vadd.f32 %v23444_v42, %v23275_v31 }
 0x649   : > { %v23446_v55 = vpop.f32.mrf.mxu1 }
 0x64a   : > { %v23452_v30 = vadd.f32 %v23446_v55, %v23276_v57 }
 0x64b   : > { %v23549_v19 = vpop.f32.mrf.mxu0 }
 0x64c   : > { %v23625_v45 = vadd.f32 %v23549_v19, %v23449_v12 }
 0x64d   : > { %v23551_v46 = vpop.f32.mrf.mxu0 }
 0x64e   : > { %v23626_v32 = vadd.f32 %v23551_v46, %v23450_v21 }
 0x64f   : > { %v23620_v29 = vpop.f32.mrf.mxu1 }
 0x650   : > { %v23627_v2 = vadd.f32 %v23620_v29, %v23451_v9 }
 0x651   : > { %v23622_v8 = vpop.f32.mrf.mxu1 }
 0x652   : > { %v23628_v52 = vadd.f32 %v23622_v8, %v23452_v30 }
 0x656   : > { %v23725_v39 = vpop.f32.mrf.mxu0 }
 0x657   : > { %v23801_v13 = vadd.f32 %v23725_v39, %v23625_v45 }
 0x658   : > { %v23727_v40 = vpop.f32.mrf.mxu0 }
 0x659   : > { %v23802_v7 = vadd.f32 %v23727_v40, %v23626_v32 }
 0x65b   : > { %v23796_v16 = vpop.f32.mrf.mxu1 }
 0x65c   : > { %v23803_v26 = vadd.f32 %v23796_v16, %v23627_v2 }
 0x65d   : > { %v23798_v10 = vpop.f32.mrf.mxu1 }
 0x65e   : > { %v23804_v38 = vadd.f32 %v23798_v10, %v23628_v52 }
 0x65f   : > { %v23901_v17 = vpop.f32.mrf.mxu0 }
 0x660   : > { %v23977_v56 = vadd.f32 %v23901_v17, %v23801_v13 }
 0x661   : > { %v23903_v3 = vpop.f32.mrf.mxu0 }
 0x662   : > { %v23981_v48 = vadd.f32 %v23977_v56, %v33023_v28  ;;  %v23978_v34 = vadd.f32 %v23903_v3, %v23802_v7 }
 0x663   : > { %v23972_v22 = vpop.f32.mrf.mxu1 }
 0x664   : > { %23985 = vst [vmem:[%s29097_s14 + $0x80] sm:$0xff] %v23981_v48  ;;  %v23982_v37 = vadd.f32 %v23978_v34, %v33023_v28  ;;  %v23979_v63 = vadd.f32 %v23972_v22, %v23803_v26 }
 0x665   : > { %v23974_v20 = vpop.f32.mrf.mxu1  ;;  %v24061_v43 = vpop.f32.mrf.mxu0 }
 0x666   : > { %23986 = vst [vmem:[%s29097_s14 + $0x88] sm:$0xff] %v23982_v37  ;;  %v23983_v47 = vadd.f32 %v23979_v63, %v33023_v28  ;;  %v23980_v1 = vadd.f32 %v23974_v20, %v23804_v38 }
 0x667   : > { %v27089_v24 = vpop.f32.mrf.mxu0  ;;  %v24133_v23 = vpop.f32.mrf.mxu1 }
 0x668   : > { %23987 = vst [vmem:[%s29097_s14 + $0x90] sm:$0xff] %v23983_v47  ;;  %v23984_v6 = vadd.f32 %v23980_v1, %v33023_v28  ;;  %v24134_v53 = vadd.f32 %v24133_v23, %v24061_v43 }
 0x669   : > { %v27094_v44 = vpop.f32.mrf.mxu1  ;;  %v24209_v41 = vpop.f32.mrf.mxu0 }
 0x66a   : > { %23988 = vst [vmem:[%s29097_s14 + $0x98] sm:$0xff] %v23984_v6  ;;  %v24213_v61 = vadd.f32 %v24209_v41, %v24134_v53 }
 0x66b   : > { %v27099_v18 = vpop.f32.mrf.mxu0  ;;  %v24286_v25 = vpop.f32.mrf.mxu1 }
 0x66c   : > { %v24290_v58 = vadd.f32 %v24286_v25, %v24213_v61 }
 0x66d   : > { %v27104_v59 = vpop.f32.mrf.mxu1  ;;  %v24363_v35 = vpop.f32.mrf.mxu0 }
 0x66e   : > { %v24367_v42 = vadd.f32 %v24363_v35, %v24290_v58 }
 0x66f   : > { %v27109_v14 = vpop.f32.mrf.mxu0  ;;  %v24440_v19 = vpop.f32.mrf.mxu1 }
 0x670   : > { %v24444_v50 = vadd.f32 %v24440_v19, %v24367_v42 }
 0x671   : > { %v27114_v11 = vpop.f32.mrf.mxu1  ;;  %v24517_v54 = vpop.f32.mrf.mxu0 }
 0x672   : > { %v24521_v55 = vadd.f32 %v24517_v54, %v24444_v50 }
 0x673   : > { %v27119_v49 = vpop.f32.mrf.mxu0  ;;  %v24594_v36 = vpop.f32.mrf.mxu1 }
 0x674   : > { %v24598_v60 = vadd.f32 %v24594_v36, %v24521_v55 }
 0x675   : > { %v27124_v46 = vpop.f32.mrf.mxu1  ;;  %v24671_v29 = vpop.f32.mrf.mxu0 }
 0x676   : > { %v24675_v0 = vadd.f32 %v24671_v29, %v24598_v60 }
 0x677   : > { %v27129_v51 = vpop.f32.mrf.mxu0  ;;  %v24748_v33 = vpop.f32.mrf.mxu1 }
 0x678   : > { %v24752_v4 = vadd.f32 %v24748_v33, %v24675_v0 }
 0x679   : > { %v27134_v39 = vpop.f32.mrf.mxu1  ;;  %v24825_v15 = vpop.f32.mrf.mxu0 }
 0x67a   : > { %v24829_v27 = vadd.f32 %v24825_v15, %v24752_v4 }
 0x67b   : > { %v27139_v62 = vpop.f32.mrf.mxu0  ;;  %v24902_v12 = vpop.f32.mrf.mxu1 }
 0x67c   : > { %v24906_v8 = vadd.f32 %v24902_v12, %v24829_v27 }
 0x67d   : > { %v27144_v5 = vpop.f32.mrf.mxu1  ;;  %v24979_v31 = vpop.f32.mrf.mxu0 }
 0x67e   : > { %v24983_v21 = vadd.f32 %v24979_v31, %v24906_v8 }
 0x67f   : > { %v27149_v45 = vpop.f32.mrf.mxu0  ;;  %v25056_v40 = vpop.f32.mrf.mxu1 }
 0x680   : > { %v25060_v16 = vadd.f32 %v25056_v40, %v24983_v21 }
 0x681   : > { %v27154_v57 = vpop.f32.mrf.mxu1  ;;  %v25133_v9 = vpop.f32.mrf.mxu0 }
 0x682   : > { %v25137_v32 = vadd.f32 %v25133_v9, %v25060_v16 }
 0x683   : > { %v27159_v13 = vpop.f32.mrf.mxu0  ;;  %v25214_v17 = vpop.f32.mrf.mxu1 }
 0x684   : > { %v25218_v30 = vadd.f32 %v25214_v17, %v25137_v32 }
 0x685   : > { %v27164_v2 = vpop.f32.mrf.mxu1 }
 0x686   : > { %v25295_v7 = vpop.f32.mrf.mxu0 }
 0x687   : > { %v25299_v56 = vadd.f32 %v25295_v7, %v25218_v30 }
 0x688   : > { %v27169_v10 = vpop.f32.mrf.mxu0 }
 0x68a   : > { %v25376_v3 = vpop.f32.mrf.mxu1 }
 0x68b   : > { %v25380_v52 = vadd.f32 %v25376_v3, %v25299_v56 }
 0x68c   : > { %v27174_v26 = vpop.f32.mrf.mxu1 }
 0x68d   : > { %v25453_v48 = vpop.f32.mrf.mxu0 }
 0x68e   : > { %v25457_v34 = vadd.f32 %v25453_v48, %v25380_v52  ;;  %v25530_v22 = vpop.f32.mrf.mxu1 }
 0x68f   : > { %v27179_v38 = vpop.f32.mrf.mxu0 }
 0x690   : > { %v25534_v37 = vadd.f32 %v25530_v22, %v25457_v34  ;;  %v27184_v63 = vpop.f32.mrf.mxu1 }
 0x691   : > { %v25607_v20 = vpop.f32.mrf.mxu0 }
 0x692   : > { %v25611_v43 = vadd.f32 %v25607_v20, %v25534_v37  ;;  %v25684_v47 = vpop.f32.mrf.mxu1 }
 0x693   : > { %v27189_v1 = vpop.f32.mrf.mxu0 }
 0x694   : > { %v25688_v24 = vadd.f32 %v25684_v47, %v25611_v43  ;;  %v27194_v23 = vpop.f32.mrf.mxu1 }
 0x695   : > { %v25761_v6 = vpop.f32.mrf.mxu0 }
 0x696   : > { %v25765_v53 = vadd.f32 %v25761_v6, %v25688_v24  ;;  %v25838_v44 = vpop.f32.mrf.mxu1 }
 0x697   : > { %v27199_v41 = vpop.f32.mrf.mxu0 }
 0x698   : > { %v25842_v61 = vadd.f32 %v25838_v44, %v25765_v53  ;;  %v27204_v18 = vpop.f32.mrf.mxu1 }
 0x699   : > { %v25915_v25 = vpop.f32.mrf.mxu0 }
 0x69a   : > { %v25919_v58 = vadd.f32 %v25915_v25, %v25842_v61  ;;  %v25992_v59 = vpop.f32.mrf.mxu1 }
 0x69b   : > { %v27209_v35 = vpop.f32.mrf.mxu0 }
 0x69c   : > { %v25996_v42 = vadd.f32 %v25992_v59, %v25919_v58  ;;  %v27214_v14 = vpop.f32.mrf.mxu1 }
 0x69d   : > { %v26069_v19 = vpop.f32.mrf.mxu0 }
 0x69e   : > { %v26073_v50 = vadd.f32 %v26069_v19, %v25996_v42 }
 0x69f   : > { %v27219_v11 = vpop.f32.mrf.mxu0 }
 0x6a0   : > { %v26074_v54 = vadd.f32 %v26073_v50, %v33023_v28 }
 0x6a2   : > { %26076 = vst.msk [vmem:[%s29097_s14 + $0xa0] sm:$0xff] %vm26075_vm1, %v26074_v54 }
 0x6a3 PF: > { %s13_s12 = sadd.s32 1, %s27417_s12  }
 0x6a4   : > { %p10_p4 = scmp.ge.s32.totalorder %s13_s12, 4  }
 0x6a6   :  { %12 = sbr.rel (!%p10_p4) target bundleno = 1 (0x1), region = 88 }

</bundles_post_ra>
